<compile_context>
chip_gen: v7x
topology: tpu7x:2x2x1
jax: 0.10.0
libtpu: 0.0.40
codegen_flags: <defaults>
</compile_context>

<pallas_src>
import functools

import jax
import jax.numpy as jnp
from jax.experimental import pallas as pl
from jax.experimental.pallas import tpu as pltpu

N_EMBD = 64
N_HEAD = 4
HEAD_SIZE = N_EMBD // N_HEAD
LN_EPS = 1e-5


def _layernorm(v, gamma, beta):
    mu = jnp.mean(v, axis=-1, keepdims=True)
    var = jnp.mean((v - mu) ** 2, axis=-1, keepdims=True)
    return (v - mu) * jax.lax.rsqrt(var + LN_EPS) * gamma + beta


def encoder_block_kernel(
    x_ref,
    ln1_g_ref, ln1_b_ref,
    wqkv_ref,
    wo_ref, bo_ref,
    ln2_g_ref, ln2_b_ref,
    w1_ref, b1_ref,
    w2_ref, b2_ref,
    o_ref,
    *, seq_len, matmul_dtype,
):
    C = N_EMBD
    HS = HEAD_SIZE
    m_blk = x_ref.shape[0]       # rows in this block = block_batch * seq_len
    bt = m_blk // seq_len        # batch elements in this block

    x = x_ref[...].astype(jnp.float32)                           # (M, C)

    # ---- Multi-head self-attention on LN1(x) ----
    h = _layernorm(x, ln1_g_ref[0], ln1_b_ref[0])                # (M, C) f32
    # Fused Q/K/V projection: one (M, C) x (C, 3C) matmul, f32 accumulation.
    qkv = jnp.dot(h.astype(matmul_dtype), wqkv_ref[...],
                  preferred_element_type=jnp.float32)            # (M, 3C) f32
    qkv_mm = qkv.astype(matmul_dtype)

    scale = float(N_EMBD) ** (-0.5)   # PyTorch scales by C = n_embd, not head_size
    sa = None                          # register accumulator for sum_h O_h @ Wo_h
    for hd in range(N_HEAD):
        qo = hd * HS
        q_h = qkv_mm[:, qo:qo + HS].reshape(bt, seq_len, HS)
        k_h = qkv_mm[:, C + qo:C + qo + HS].reshape(bt, seq_len, HS)
        v_h = qkv_mm[:, 2 * C + qo:2 * C + qo + HS].reshape(bt, seq_len, HS)

        s = jnp.einsum("bqd,bkd->bqk", q_h, k_h,
                       preferred_element_type=jnp.float32) * scale  # (bt, T, T)
        s = s - jnp.max(s, axis=-1, keepdims=True)
        p = jnp.exp(s)
        p = p * pl.reciprocal(jnp.sum(p, axis=-1, keepdims=True), approx=True)

        o_h = jnp.einsum("bqk,bkd->bqd", p.astype(matmul_dtype), v_h,
                         preferred_element_type=jnp.float32)        # (bt, T, HS)
        # Per-head output-projection contribution accumulated in registers:
        # concat([O_0..O_3]) @ Wo == sum_h O_h @ Wo[h*HS:(h+1)*HS, :].
        # The Wo row slice is static and 16-row aligned (f32 and bf16 tiles).
        contrib = jnp.dot(o_h.reshape(m_blk, HS).astype(matmul_dtype),
                          wo_ref[qo:qo + HS, :],
                          preferred_element_type=jnp.float32)       # (M, C)
        sa = contrib if sa is None else sa + contrib

    x = x + sa + bo_ref[0]                                        # residual 1

    # ---- FeedForward on LN2(x) ----
    h2 = _layernorm(x, ln2_g_ref[0], ln2_b_ref[0])
    ff = jnp.dot(h2.astype(matmul_dtype), w1_ref[...],
                 preferred_element_type=jnp.float32) + b1_ref[0]
    ff = jnp.maximum(ff, 0.0)
    ff = jnp.dot(ff.astype(matmul_dtype), w2_ref[...],
                 preferred_element_type=jnp.float32) + b2_ref[0]
    o_ref[...] = (x + ff).astype(o_ref.dtype)                     # residual 2


def _num_tensorcores():
    """Grid steps per chip: 2 TensorCores on v7x, 1 on v5e/v6e (serial grid)."""
    try:
        kind = jax.devices()[0].device_kind.lower()
    except Exception:
        return 1
    if "v7" in kind or "7x" in kind:
        return 2
    return 1


def encoder_block(x, params, *, matmul_dtype=jnp.bfloat16, max_block_rows=4096):
    (ln1_g, ln1_b, wq, wk, wv, wo, bo, ln2_g, ln2_b, w1, b1, w2, b2) = params
    B, T, C = x.shape
    assert C == N_EMBD
    M = B * T

    # One grid step per TensorCore; grow the step count (keeping it a multiple
    # of the TC count) only if a single block would exceed the row cap.
    base_steps = _num_tensorcores()
    num_steps = base_steps
    while pl.cdiv(B, num_steps) * T > max_block_rows:
        num_steps += base_steps

    bb = pl.cdiv(B, num_steps)       # batch elements per block (robust to any B)
    block_m = bb * T
    M_pad = bb * num_steps * T

    x2 = x.reshape(M, C)
    if M_pad != M:
        # Zero-pad the tail block; padded rows are independent and sliced off.
        x2 = jnp.pad(x2, ((0, M_pad - M), (0, 0)))

    # Fuse Q/K/V into one wide weight and cast matmul weights once on the
    # wrapper side (half the DMA bytes when bf16). Biases / LN params stay f32.
    w_qkv = jnp.concatenate([wq, wk, wv], axis=1).astype(matmul_dtype)  # (C, 3C)
    wo_c = wo.astype(matmul_dtype)
    w1_c = w1.astype(matmul_dtype)
    w2_c = w2.astype(matmul_dtype)

    full = lambda shape: pl.BlockSpec(shape, lambda i: (0,) * len(shape))
    in_specs = [
        pl.BlockSpec((block_m, C), lambda i: (i, 0)),     # x rows
        full((1, C)), full((1, C)),                       # ln1 gamma, beta
        full((C, 3 * C)),                                 # fused Wqkv
        full((C, C)), full((1, C)),                       # proj W, b
        full((1, C)), full((1, C)),                       # ln2 gamma, beta
        full((C, 4 * C)), full((1, 4 * C)),               # ffn W1, b1
        full((4 * C, C)), full((1, C)),                   # ffn W2, b2
    ]
    out_spec = pl.BlockSpec((block_m, C), lambda i: (i, 0))

    kernel = functools.partial(encoder_block_kernel,
                               seq_len=T, matmul_dtype=matmul_dtype)

    out2 = pl.pallas_call(
        kernel,
        out_shape=jax.ShapeDtypeStruct((M_pad, C), x.dtype),
        grid_spec=pltpu.PrefetchScalarGridSpec(
            num_scalar_prefetch=0,
            grid=(num_steps,),
            in_specs=in_specs,
            out_specs=out_spec,
        ),
        compiler_params=pltpu.CompilerParams(
            dimension_semantics=("parallel",)),
    )(x2, ln1_g, ln1_b, w_qkv, wo_c, bo, ln2_g, ln2_b, w1_c, b1, w2_c, b2)
    return out2[:M].reshape(B, T, C)


def make_params(key):
    ks = jax.random.split(key, 8)
    C = N_EMBD

    def lin(k, fan_in, fan_out):
        bound = 1.0 / (fan_in ** 0.5)
        return jax.random.uniform(k, (fan_in, fan_out), jnp.float32, -bound, bound)

    ln1_g = jnp.ones((1, C), jnp.float32)
    ln1_b = jnp.zeros((1, C), jnp.float32)
    ln2_g = jnp.ones((1, C), jnp.float32)
    ln2_b = jnp.zeros((1, C), jnp.float32)
    # Per-head K/Q/V weights concatenated along output dim (bias=False in PyTorch).
    wq = lin(ks[0], C, C)
    wk = lin(ks[1], C, C)
    wv = lin(ks[2], C, C)
    wo = lin(ks[3], C, C)
    bo = jax.random.uniform(ks[4], (1, C), jnp.float32, -1.0 / C ** 0.5, 1.0 / C ** 0.5)
    w1 = lin(ks[5], C, 4 * C)
    b1 = jax.random.uniform(ks[6], (1, 4 * C), jnp.float32, -1.0 / C ** 0.5, 1.0 / C ** 0.5)
    w2 = lin(ks[7], 4 * C, C)
    b2 = jnp.zeros((1, C), jnp.float32)
    return (ln1_g, ln1_b, wq, wk, wv, wo, bo, ln2_g, ln2_b, w1, b1, w2, b2)


def encoder_block_ref(x, params):
    """Pure-JAX reference matching the PyTorch forward (eval mode), f32."""
    (ln1_g, ln1_b, wq, wk, wv, wo, bo, ln2_g, ln2_b, w1, b1, w2, b2) = params
    B, T, C = x.shape

    def ln(v, g, b):
        mu = jnp.mean(v, -1, keepdims=True)
        var = jnp.mean((v - mu) ** 2, -1, keepdims=True)
        return (v - mu) / jnp.sqrt(var + LN_EPS) * g[0] + b[0]

    h = ln(x, ln1_g, ln1_b)
    q = h @ wq
    k = h @ wk
    v = h @ wv
    outs = []
    for hd in range(N_HEAD):
        s = slice(hd * HEAD_SIZE, (hd + 1) * HEAD_SIZE)
        wei = jnp.einsum("btd,bsd->bts", q[..., s], k[..., s]) * (C ** -0.5)
        wei = jax.nn.softmax(wei, axis=-1)
        outs.append(jnp.einsum("bts,bsd->btd", wei, v[..., s]))
    sa = jnp.concatenate(outs, -1) @ wo + bo[0]
    x = x + sa
    h2 = ln(x, ln2_g, ln2_b)
    ff = jax.nn.relu(h2 @ w1 + b1[0]) @ w2 + b2[0]
    return x + ff


if __name__ == "__main__":
    key = jax.random.PRNGKey(0)
    k_x, k_p = jax.random.split(key)
    # B=32, T=8 -> flattened M=256: one 256-row block on v5e/v6e (single TC),
    # two 128-row "parallel" blocks on v7x (2 TCs).
    B, T = 32, 8
    x = jax.random.normal(k_x, (B, T, N_EMBD), jnp.float32)
    params = make_params(k_p)

    ref = encoder_block_ref(x, params)

    # f32-operand path (tighter check; approx softmax reciprocal -> ~1e-3 noise).
    out_f32 = jax.block_until_ready(encoder_block(x, params, matmul_dtype=jnp.float32))
    assert out_f32.shape == (B, T, N_EMBD)
    assert jnp.allclose(out_f32, ref, atol=1e-2, rtol=1e-2), (
        f"f32 path max abs diff {jnp.max(jnp.abs(out_f32 - ref))}")

    # bf16-operand path (production config for v6e/v7x, f32 accumulation).
    out_bf16 = jax.block_until_ready(encoder_block(x, params, matmul_dtype=jnp.bfloat16))
    assert out_bf16.shape == (B, T, N_EMBD)
    assert jnp.allclose(out_bf16, ref, atol=6e-2, rtol=6e-2), (
        f"bf16 path max abs diff {jnp.max(jnp.abs(out_bf16 - ref))}")

    print("KERNEL_OK")
</pallas_src>

<mosaic_0001>
module attributes {stable_mosaic.version = 11 : i64} {
  func.func @encoder_block_kernel(%arg0: i32, %arg1: memref<256x64xf32, #tpu.memory_space<vmem>>, %arg2: memref<1x64xf32, #tpu.memory_space<vmem>>, %arg3: memref<1x64xf32, #tpu.memory_space<vmem>>, %arg4: memref<64x192xf32, #tpu.memory_space<vmem>>, %arg5: memref<64x64xf32, #tpu.memory_space<vmem>>, %arg6: memref<1x64xf32, #tpu.memory_space<vmem>>, %arg7: memref<1x64xf32, #tpu.memory_space<vmem>>, %arg8: memref<1x64xf32, #tpu.memory_space<vmem>>, %arg9: memref<64x256xf32, #tpu.memory_space<vmem>>, %arg10: memref<1x256xf32, #tpu.memory_space<vmem>>, %arg11: memref<256x64xf32, #tpu.memory_space<vmem>>, %arg12: memref<1x64xf32, #tpu.memory_space<vmem>>, %arg13: memref<256x64xf32, #tpu.memory_space<vmem>>) attributes {dimension_semantics = [#tpu.dimension_semantics<parallel>], iteration_bounds = array<i64: 1>, scalar_prefetch = 0 : i64, scratch_operands = 0 : i64, tpu.core_type = #tpu.core_type<tc>, window_params = [{transform_indices = @transform_0, window_bounds = array<i64: 256, 64>}, {pipeline_mode = #tpu.pipeline_mode<synchronous>, transform_indices = @transform_1, window_bounds = array<i64: 1, 64>}, {pipeline_mode = #tpu.pipeline_mode<synchronous>, transform_indices = @transform_2, window_bounds = array<i64: 1, 64>}, {pipeline_mode = #tpu.pipeline_mode<synchronous>, transform_indices = @transform_3, window_bounds = array<i64: 64, 192>}, {pipeline_mode = #tpu.pipeline_mode<synchronous>, transform_indices = @transform_4, window_bounds = array<i64: 64, 64>}, {pipeline_mode = #tpu.pipeline_mode<synchronous>, transform_indices = @transform_5, window_bounds = array<i64: 1, 64>}, {pipeline_mode = #tpu.pipeline_mode<synchronous>, transform_indices = @transform_6, window_bounds = array<i64: 1, 64>}, {pipeline_mode = #tpu.pipeline_mode<synchronous>, transform_indices = @transform_7, window_bounds = array<i64: 1, 64>}, {pipeline_mode = #tpu.pipeline_mode<synchronous>, transform_indices = @transform_8, window_bounds = array<i64: 64, 256>}, {pipeline_mode = #tpu.pipeline_mode<synchronous>, transform_indices = @transform_9, window_bounds = array<i64: 1, 256>}, {pipeline_mode = #tpu.pipeline_mode<synchronous>, transform_indices = @transform_10, window_bounds = array<i64: 256, 64>}, {pipeline_mode = #tpu.pipeline_mode<synchronous>, transform_indices = @transform_11, window_bounds = array<i64: 1, 64>}, {transform_indices = @transform_12, window_bounds = array<i64: 256, 64>}]} {
    %c0 = arith.constant 0 : index
    %c0_0 = arith.constant 0 : index
    %0 = vector.load %arg1[%c0, %c0_0] : memref<256x64xf32, #tpu.memory_space<vmem>>, vector<256x64xf32>
    %c0_1 = arith.constant 0 : index
    %c0_2 = arith.constant 0 : index
    %1 = vector.load %arg2[%c0_1, %c0_2] : memref<1x64xf32, #tpu.memory_space<vmem>>, vector<1x64xf32>
    %2 = vector.shape_cast %1 : vector<1x64xf32> to vector<64xf32>
    %c0_3 = arith.constant 0 : index
    %c0_4 = arith.constant 0 : index
    %3 = vector.load %arg3[%c0_3, %c0_4] : memref<1x64xf32, #tpu.memory_space<vmem>>, vector<1x64xf32>
    %4 = vector.shape_cast %3 : vector<1x64xf32> to vector<64xf32>
    %cst = arith.constant dense<0.000000e+00> : vector<256xf32>
    %5 = vector.multi_reduction <add>, %0, %cst [1] : vector<256x64xf32> to vector<256xf32>
    %6 = vector.shape_cast %5 : vector<256xf32> to vector<256x1xf32>
    %cst_5 = arith.constant 6.400000e+01 : f32
    %7 = vector.broadcast %cst_5 : f32 to vector<256x1xf32>
    %8 = arith.divf %6, %7 : vector<256x1xf32>
    %9 = vector.broadcast %8 : vector<256x1xf32> to vector<256x64xf32>
    %10 = arith.subf %0, %9 : vector<256x64xf32>
    %11 = arith.mulf %10, %10 : vector<256x64xf32>
    %cst_6 = arith.constant dense<0.000000e+00> : vector<256xf32>
    %12 = vector.multi_reduction <add>, %11, %cst_6 [1] : vector<256x64xf32> to vector<256xf32>
    %13 = vector.shape_cast %12 : vector<256xf32> to vector<256x1xf32>
    %cst_7 = arith.constant 6.400000e+01 : f32
    %14 = vector.broadcast %cst_7 : f32 to vector<256x1xf32>
    %15 = arith.divf %13, %14 : vector<256x1xf32>
    %16 = vector.broadcast %8 : vector<256x1xf32> to vector<256x64xf32>
    %17 = arith.subf %0, %16 : vector<256x64xf32>
    %cst_8 = arith.constant 9.99999974E-6 : f32
    %18 = vector.broadcast %cst_8 : f32 to vector<256x1xf32>
    %19 = arith.addf %15, %18 : vector<256x1xf32>
    %20 = math.rsqrt %19 : vector<256x1xf32>
    %21 = vector.broadcast %20 : vector<256x1xf32> to vector<256x64xf32>
    %22 = arith.mulf %17, %21 : vector<256x64xf32>
    %23 = vector.shape_cast %2 : vector<64xf32> to vector<1x64xf32>
    %24 = vector.broadcast %23 : vector<1x64xf32> to vector<256x64xf32>
    %25 = arith.mulf %22, %24 : vector<256x64xf32>
    %26 = vector.shape_cast %4 : vector<64xf32> to vector<1x64xf32>
    %27 = vector.broadcast %26 : vector<1x64xf32> to vector<256x64xf32>
    %28 = arith.addf %25, %27 : vector<256x64xf32>
    %c0_9 = arith.constant 0 : index
    %c0_10 = arith.constant 0 : index
    %29 = vector.load %arg4[%c0_9, %c0_10] : memref<64x192xf32, #tpu.memory_space<vmem>>, vector<64x192xf32>
    %cst_11 = arith.constant dense<0.000000e+00> : vector<256x192xf32>
    %30 = tpu.matmul %28, %29, %cst_11 {dimension_numbers = #tpu.dot_dimension_numbers<[1], [0], [0], [1], [0, 0, 1, 1], [], []>} : vector<256x64xf32>, vector<64x192xf32>, vector<256x192xf32> -> vector<256x192xf32>
    %31 = vector.extract_strided_slice %30 {offsets = [0, 0], sizes = [256, 16], strides = [1, 1]} : vector<256x192xf32> to vector<256x16xf32>
    %32 = vector.shape_cast %31 : vector<256x16xf32> to vector<32x8x16xf32>
    %33 = vector.extract_strided_slice %30 {offsets = [0, 64], sizes = [256, 16], strides = [1, 1]} : vector<256x192xf32> to vector<256x16xf32>
    %34 = vector.shape_cast %33 : vector<256x16xf32> to vector<32x8x16xf32>
    %35 = vector.extract_strided_slice %30 {offsets = [0, 128], sizes = [256, 16], strides = [1, 1]} : vector<256x192xf32> to vector<256x16xf32>
    %36 = vector.shape_cast %35 : vector<256x16xf32> to vector<32x8x16xf32>
    "tpu.trace_start"() <{level = 10 : i32, message = "bqd,bkd->bqk"}> : () -> ()
    %cst_12 = arith.constant dense<0.000000e+00> : vector<32x8x8xf32>
    %37 = tpu.matmul %32, %34, %cst_12 {dimension_numbers = #tpu.dot_dimension_numbers<[2], [2], [1], [1], [0, 0, 0, 1, 1, 1], [0], [0]>} : vector<32x8x16xf32>, vector<32x8x16xf32>, vector<32x8x8xf32> -> vector<32x8x8xf32>
    "tpu.trace_stop"() : () -> ()
    %cst_13 = arith.constant 1.250000e-01 : f32
    %38 = vector.broadcast %cst_13 : f32 to vector<32x8x8xf32>
    %39 = arith.mulf %37, %38 : vector<32x8x8xf32>
    %cst_14 = arith.constant dense<0xFF800000> : vector<32x8xf32>
    %40 = vector.multi_reduction <maximumf>, %39, %cst_14 [2] : vector<32x8x8xf32> to vector<32x8xf32>
    %41 = vector.shape_cast %40 : vector<32x8xf32> to vector<32x8x1xf32>
    %42 = vector.broadcast %41 : vector<32x8x1xf32> to vector<32x8x8xf32>
    %43 = arith.subf %39, %42 : vector<32x8x8xf32>
    %44 = math.exp %43 : vector<32x8x8xf32>
    %cst_15 = arith.constant dense<0.000000e+00> : vector<32x8xf32>
    %45 = vector.multi_reduction <add>, %44, %cst_15 [2] : vector<32x8x8xf32> to vector<32x8xf32>
    %46 = vector.shape_cast %45 : vector<32x8xf32> to vector<32x8x1xf32>
    %47 = tpu.reciprocal %46 {approx = true} : vector<32x8x1xf32> -> vector<32x8x1xf32>
    %48 = vector.broadcast %47 : vector<32x8x1xf32> to vector<32x8x8xf32>
    %49 = arith.mulf %44, %48 : vector<32x8x8xf32>
    "tpu.trace_start"() <{level = 10 : i32, message = "bqk,bkd->bqd"}> : () -> ()
    %cst_16 = arith.constant dense<0.000000e+00> : vector<32x8x16xf32>
    %50 = tpu.matmul %49, %36, %cst_16 {dimension_numbers = #tpu.dot_dimension_numbers<[2], [1], [1], [2], [0, 0, 0, 1, 1, 2], [0], [0]>} : vector<32x8x8xf32>, vector<32x8x16xf32>, vector<32x8x16xf32> -> vector<32x8x16xf32>
    "tpu.trace_stop"() : () -> ()
    %51 = vector.shape_cast %50 : vector<32x8x16xf32> to vector<256x16xf32>
    %c0_17 = arith.constant 0 : index
    %c0_18 = arith.constant 0 : index
    %52 = vector.load %arg5[%c0_17, %c0_18] : memref<64x64xf32, #tpu.memory_space<vmem>>, vector<16x64xf32>
    %cst_19 = arith.constant dense<0.000000e+00> : vector<256x64xf32>
    %53 = tpu.matmul %51, %52, %cst_19 {dimension_numbers = #tpu.dot_dimension_numbers<[1], [0], [0], [1], [0, 0, 1, 1], [], []>} : vector<256x16xf32>, vector<16x64xf32>, vector<256x64xf32> -> vector<256x64xf32>
    %54 = vector.extract_strided_slice %30 {offsets = [0, 16], sizes = [256, 16], strides = [1, 1]} : vector<256x192xf32> to vector<256x16xf32>
    %55 = vector.shape_cast %54 : vector<256x16xf32> to vector<32x8x16xf32>
    %56 = vector.extract_strided_slice %30 {offsets = [0, 80], sizes = [256, 16], strides = [1, 1]} : vector<256x192xf32> to vector<256x16xf32>
    %57 = vector.shape_cast %56 : vector<256x16xf32> to vector<32x8x16xf32>
    %58 = vector.extract_strided_slice %30 {offsets = [0, 144], sizes = [256, 16], strides = [1, 1]} : vector<256x192xf32> to vector<256x16xf32>
    %59 = vector.shape_cast %58 : vector<256x16xf32> to vector<32x8x16xf32>
    "tpu.trace_start"() <{level = 10 : i32, message = "bqd,bkd->bqk"}> : () -> ()
    %cst_20 = arith.constant dense<0.000000e+00> : vector<32x8x8xf32>
    %60 = tpu.matmul %55, %57, %cst_20 {dimension_numbers = #tpu.dot_dimension_numbers<[2], [2], [1], [1], [0, 0, 0, 1, 1, 1], [0], [0]>} : vector<32x8x16xf32>, vector<32x8x16xf32>, vector<32x8x8xf32> -> vector<32x8x8xf32>
    "tpu.trace_stop"() : () -> ()
    %cst_21 = arith.constant 1.250000e-01 : f32
    %61 = vector.broadcast %cst_21 : f32 to vector<32x8x8xf32>
    %62 = arith.mulf %60, %61 : vector<32x8x8xf32>
    %cst_22 = arith.constant dense<0xFF800000> : vector<32x8xf32>
    %63 = vector.multi_reduction <maximumf>, %62, %cst_22 [2] : vector<32x8x8xf32> to vector<32x8xf32>
    %64 = vector.shape_cast %63 : vector<32x8xf32> to vector<32x8x1xf32>
    %65 = vector.broadcast %64 : vector<32x8x1xf32> to vector<32x8x8xf32>
    %66 = arith.subf %62, %65 : vector<32x8x8xf32>
    %67 = math.exp %66 : vector<32x8x8xf32>
    %cst_23 = arith.constant dense<0.000000e+00> : vector<32x8xf32>
    %68 = vector.multi_reduction <add>, %67, %cst_23 [2] : vector<32x8x8xf32> to vector<32x8xf32>
    %69 = vector.shape_cast %68 : vector<32x8xf32> to vector<32x8x1xf32>
    %70 = tpu.reciprocal %69 {approx = true} : vector<32x8x1xf32> -> vector<32x8x1xf32>
    %71 = vector.broadcast %70 : vector<32x8x1xf32> to vector<32x8x8xf32>
    %72 = arith.mulf %67, %71 : vector<32x8x8xf32>
    "tpu.trace_start"() <{level = 10 : i32, message = "bqk,bkd->bqd"}> : () -> ()
    %cst_24 = arith.constant dense<0.000000e+00> : vector<32x8x16xf32>
    %73 = tpu.matmul %72, %59, %cst_24 {dimension_numbers = #tpu.dot_dimension_numbers<[2], [1], [1], [2], [0, 0, 0, 1, 1, 2], [0], [0]>} : vector<32x8x8xf32>, vector<32x8x16xf32>, vector<32x8x16xf32> -> vector<32x8x16xf32>
    "tpu.trace_stop"() : () -> ()
    %74 = vector.shape_cast %73 : vector<32x8x16xf32> to vector<256x16xf32>
    %c16 = arith.constant 16 : index
    %c0_25 = arith.constant 0 : index
    %75 = vector.load %arg5[%c16, %c0_25] : memref<64x64xf32, #tpu.memory_space<vmem>>, vector<16x64xf32>
    %cst_26 = arith.constant dense<0.000000e+00> : vector<256x64xf32>
    %76 = tpu.matmul %74, %75, %cst_26 {dimension_numbers = #tpu.dot_dimension_numbers<[1], [0], [0], [1], [0, 0, 1, 1], [], []>} : vector<256x16xf32>, vector<16x64xf32>, vector<256x64xf32> -> vector<256x64xf32>
    %77 = arith.addf %53, %76 : vector<256x64xf32>
    %78 = vector.extract_strided_slice %30 {offsets = [0, 32], sizes = [256, 16], strides = [1, 1]} : vector<256x192xf32> to vector<256x16xf32>
    %79 = vector.shape_cast %78 : vector<256x16xf32> to vector<32x8x16xf32>
    %80 = vector.extract_strided_slice %30 {offsets = [0, 96], sizes = [256, 16], strides = [1, 1]} : vector<256x192xf32> to vector<256x16xf32>
    %81 = vector.shape_cast %80 : vector<256x16xf32> to vector<32x8x16xf32>
    %82 = vector.extract_strided_slice %30 {offsets = [0, 160], sizes = [256, 16], strides = [1, 1]} : vector<256x192xf32> to vector<256x16xf32>
    %83 = vector.shape_cast %82 : vector<256x16xf32> to vector<32x8x16xf32>
    "tpu.trace_start"() <{level = 10 : i32, message = "bqd,bkd->bqk"}> : () -> ()
    %cst_27 = arith.constant dense<0.000000e+00> : vector<32x8x8xf32>
    %84 = tpu.matmul %79, %81, %cst_27 {dimension_numbers = #tpu.dot_dimension_numbers<[2], [2], [1], [1], [0, 0, 0, 1, 1, 1], [0], [0]>} : vector<32x8x16xf32>, vector<32x8x16xf32>, vector<32x8x8xf32> -> vector<32x8x8xf32>
    "tpu.trace_stop"() : () -> ()
    %cst_28 = arith.constant 1.250000e-01 : f32
    %85 = vector.broadcast %cst_28 : f32 to vector<32x8x8xf32>
    %86 = arith.mulf %84, %85 : vector<32x8x8xf32>
    %cst_29 = arith.constant dense<0xFF800000> : vector<32x8xf32>
    %87 = vector.multi_reduction <maximumf>, %86, %cst_29 [2] : vector<32x8x8xf32> to vector<32x8xf32>
    %88 = vector.shape_cast %87 : vector<32x8xf32> to vector<32x8x1xf32>
    %89 = vector.broadcast %88 : vector<32x8x1xf32> to vector<32x8x8xf32>
    %90 = arith.subf %86, %89 : vector<32x8x8xf32>
    %91 = math.exp %90 : vector<32x8x8xf32>
    %cst_30 = arith.constant dense<0.000000e+00> : vector<32x8xf32>
    %92 = vector.multi_reduction <add>, %91, %cst_30 [2] : vector<32x8x8xf32> to vector<32x8xf32>
    %93 = vector.shape_cast %92 : vector<32x8xf32> to vector<32x8x1xf32>
    %94 = tpu.reciprocal %93 {approx = true} : vector<32x8x1xf32> -> vector<32x8x1xf32>
    %95 = vector.broadcast %94 : vector<32x8x1xf32> to vector<32x8x8xf32>
    %96 = arith.mulf %91, %95 : vector<32x8x8xf32>
    "tpu.trace_start"() <{level = 10 : i32, message = "bqk,bkd->bqd"}> : () -> ()
    %cst_31 = arith.constant dense<0.000000e+00> : vector<32x8x16xf32>
    %97 = tpu.matmul %96, %83, %cst_31 {dimension_numbers = #tpu.dot_dimension_numbers<[2], [1], [1], [2], [0, 0, 0, 1, 1, 2], [0], [0]>} : vector<32x8x8xf32>, vector<32x8x16xf32>, vector<32x8x16xf32> -> vector<32x8x16xf32>
    "tpu.trace_stop"() : () -> ()
    %98 = vector.shape_cast %97 : vector<32x8x16xf32> to vector<256x16xf32>
    %c32 = arith.constant 32 : index
    %c0_32 = arith.constant 0 : index
    %99 = vector.load %arg5[%c32, %c0_32] : memref<64x64xf32, #tpu.memory_space<vmem>>, vector<16x64xf32>
    %cst_33 = arith.constant dense<0.000000e+00> : vector<256x64xf32>
    %100 = tpu.matmul %98, %99, %cst_33 {dimension_numbers = #tpu.dot_dimension_numbers<[1], [0], [0], [1], [0, 0, 1, 1], [], []>} : vector<256x16xf32>, vector<16x64xf32>, vector<256x64xf32> -> vector<256x64xf32>
    %101 = arith.addf %77, %100 : vector<256x64xf32>
    %102 = vector.extract_strided_slice %30 {offsets = [0, 48], sizes = [256, 16], strides = [1, 1]} : vector<256x192xf32> to vector<256x16xf32>
    %103 = vector.shape_cast %102 : vector<256x16xf32> to vector<32x8x16xf32>
    %104 = vector.extract_strided_slice %30 {offsets = [0, 112], sizes = [256, 16], strides = [1, 1]} : vector<256x192xf32> to vector<256x16xf32>
    %105 = vector.shape_cast %104 : vector<256x16xf32> to vector<32x8x16xf32>
    %106 = vector.extract_strided_slice %30 {offsets = [0, 176], sizes = [256, 16], strides = [1, 1]} : vector<256x192xf32> to vector<256x16xf32>
    %107 = vector.shape_cast %106 : vector<256x16xf32> to vector<32x8x16xf32>
    "tpu.trace_start"() <{level = 10 : i32, message = "bqd,bkd->bqk"}> : () -> ()
    %cst_34 = arith.constant dense<0.000000e+00> : vector<32x8x8xf32>
    %108 = tpu.matmul %103, %105, %cst_34 {dimension_numbers = #tpu.dot_dimension_numbers<[2], [2], [1], [1], [0, 0, 0, 1, 1, 1], [0], [0]>} : vector<32x8x16xf32>, vector<32x8x16xf32>, vector<32x8x8xf32> -> vector<32x8x8xf32>
    "tpu.trace_stop"() : () -> ()
    %cst_35 = arith.constant 1.250000e-01 : f32
    %109 = vector.broadcast %cst_35 : f32 to vector<32x8x8xf32>
    %110 = arith.mulf %108, %109 : vector<32x8x8xf32>
    %cst_36 = arith.constant dense<0xFF800000> : vector<32x8xf32>
    %111 = vector.multi_reduction <maximumf>, %110, %cst_36 [2] : vector<32x8x8xf32> to vector<32x8xf32>
    %112 = vector.shape_cast %111 : vector<32x8xf32> to vector<32x8x1xf32>
    %113 = vector.broadcast %112 : vector<32x8x1xf32> to vector<32x8x8xf32>
    %114 = arith.subf %110, %113 : vector<32x8x8xf32>
    %115 = math.exp %114 : vector<32x8x8xf32>
    %cst_37 = arith.constant dense<0.000000e+00> : vector<32x8xf32>
    %116 = vector.multi_reduction <add>, %115, %cst_37 [2] : vector<32x8x8xf32> to vector<32x8xf32>
    %117 = vector.shape_cast %116 : vector<32x8xf32> to vector<32x8x1xf32>
    %118 = tpu.reciprocal %117 {approx = true} : vector<32x8x1xf32> -> vector<32x8x1xf32>
    %119 = vector.broadcast %118 : vector<32x8x1xf32> to vector<32x8x8xf32>
    %120 = arith.mulf %115, %119 : vector<32x8x8xf32>
    "tpu.trace_start"() <{level = 10 : i32, message = "bqk,bkd->bqd"}> : () -> ()
    %cst_38 = arith.constant dense<0.000000e+00> : vector<32x8x16xf32>
    %121 = tpu.matmul %120, %107, %cst_38 {dimension_numbers = #tpu.dot_dimension_numbers<[2], [1], [1], [2], [0, 0, 0, 1, 1, 2], [0], [0]>} : vector<32x8x8xf32>, vector<32x8x16xf32>, vector<32x8x16xf32> -> vector<32x8x16xf32>
    "tpu.trace_stop"() : () -> ()
    %122 = vector.shape_cast %121 : vector<32x8x16xf32> to vector<256x16xf32>
    %c48 = arith.constant 48 : index
    %c0_39 = arith.constant 0 : index
    %123 = vector.load %arg5[%c48, %c0_39] : memref<64x64xf32, #tpu.memory_space<vmem>>, vector<16x64xf32>
    %cst_40 = arith.constant dense<0.000000e+00> : vector<256x64xf32>
    %124 = tpu.matmul %122, %123, %cst_40 {dimension_numbers = #tpu.dot_dimension_numbers<[1], [0], [0], [1], [0, 0, 1, 1], [], []>} : vector<256x16xf32>, vector<16x64xf32>, vector<256x64xf32> -> vector<256x64xf32>
    %125 = arith.addf %101, %124 : vector<256x64xf32>
    %126 = arith.addf %0, %125 : vector<256x64xf32>
    %c0_41 = arith.constant 0 : index
    %c0_42 = arith.constant 0 : index
    %127 = vector.load %arg6[%c0_41, %c0_42] : memref<1x64xf32, #tpu.memory_space<vmem>>, vector<1x64xf32>
    %128 = vector.shape_cast %127 : vector<1x64xf32> to vector<64xf32>
    %129 = vector.shape_cast %128 : vector<64xf32> to vector<1x64xf32>
    %130 = vector.broadcast %129 : vector<1x64xf32> to vector<256x64xf32>
    %131 = arith.addf %126, %130 : vector<256x64xf32>
    %c0_43 = arith.constant 0 : index
    %c0_44 = arith.constant 0 : index
    %132 = vector.load %arg7[%c0_43, %c0_44] : memref<1x64xf32, #tpu.memory_space<vmem>>, vector<1x64xf32>
    %133 = vector.shape_cast %132 : vector<1x64xf32> to vector<64xf32>
    %c0_45 = arith.constant 0 : index
    %c0_46 = arith.constant 0 : index
    %134 = vector.load %arg8[%c0_45, %c0_46] : memref<1x64xf32, #tpu.memory_space<vmem>>, vector<1x64xf32>
    %135 = vector.shape_cast %134 : vector<1x64xf32> to vector<64xf32>
    %cst_47 = arith.constant dense<0.000000e+00> : vector<256xf32>
    %136 = vector.multi_reduction <add>, %131, %cst_47 [1] : vector<256x64xf32> to vector<256xf32>
    %137 = vector.shape_cast %136 : vector<256xf32> to vector<256x1xf32>
    %cst_48 = arith.constant 6.400000e+01 : f32
    %138 = vector.broadcast %cst_48 : f32 to vector<256x1xf32>
    %139 = arith.divf %137, %138 : vector<256x1xf32>
    %140 = vector.broadcast %139 : vector<256x1xf32> to vector<256x64xf32>
    %141 = arith.subf %131, %140 : vector<256x64xf32>
    %142 = arith.mulf %141, %141 : vector<256x64xf32>
    %cst_49 = arith.constant dense<0.000000e+00> : vector<256xf32>
    %143 = vector.multi_reduction <add>, %142, %cst_49 [1] : vector<256x64xf32> to vector<256xf32>
    %144 = vector.shape_cast %143 : vector<256xf32> to vector<256x1xf32>
    %cst_50 = arith.constant 6.400000e+01 : f32
    %145 = vector.broadcast %cst_50 : f32 to vector<256x1xf32>
    %146 = arith.divf %144, %145 : vector<256x1xf32>
    %147 = vector.broadcast %139 : vector<256x1xf32> to vector<256x64xf32>
    %148 = arith.subf %131, %147 : vector<256x64xf32>
    %cst_51 = arith.constant 9.99999974E-6 : f32
    %149 = vector.broadcast %cst_51 : f32 to vector<256x1xf32>
    %150 = arith.addf %146, %149 : vector<256x1xf32>
    %151 = math.rsqrt %150 : vector<256x1xf32>
    %152 = vector.broadcast %151 : vector<256x1xf32> to vector<256x64xf32>
    %153 = arith.mulf %148, %152 : vector<256x64xf32>
    %154 = vector.shape_cast %133 : vector<64xf32> to vector<1x64xf32>
    %155 = vector.broadcast %154 : vector<1x64xf32> to vector<256x64xf32>
    %156 = arith.mulf %153, %155 : vector<256x64xf32>
    %157 = vector.shape_cast %135 : vector<64xf32> to vector<1x64xf32>
    %158 = vector.broadcast %157 : vector<1x64xf32> to vector<256x64xf32>
    %159 = arith.addf %156, %158 : vector<256x64xf32>
    %c0_52 = arith.constant 0 : index
    %c0_53 = arith.constant 0 : index
    %160 = vector.load %arg9[%c0_52, %c0_53] : memref<64x256xf32, #tpu.memory_space<vmem>>, vector<64x256xf32>
    %cst_54 = arith.constant dense<0.000000e+00> : vector<256x256xf32>
    %161 = tpu.matmul %159, %160, %cst_54 {dimension_numbers = #tpu.dot_dimension_numbers<[1], [0], [0], [1], [0, 0, 1, 1], [], []>} : vector<256x64xf32>, vector<64x256xf32>, vector<256x256xf32> -> vector<256x256xf32>
    %c0_55 = arith.constant 0 : index
    %c0_56 = arith.constant 0 : index
    %162 = vector.load %arg10[%c0_55, %c0_56] : memref<1x256xf32, #tpu.memory_space<vmem>>, vector<1x256xf32>
    %163 = vector.shape_cast %162 : vector<1x256xf32> to vector<256xf32>
    %164 = vector.shape_cast %163 : vector<256xf32> to vector<1x256xf32>
    %165 = vector.broadcast %164 : vector<1x256xf32> to vector<256x256xf32>
    %166 = arith.addf %161, %165 : vector<256x256xf32>
    %cst_57 = arith.constant 0.000000e+00 : f32
    %167 = vector.broadcast %cst_57 : f32 to vector<256x256xf32>
    %168 = arith.maximumf %166, %167 : vector<256x256xf32>
    %c0_58 = arith.constant 0 : index
    %c0_59 = arith.constant 0 : index
    %169 = vector.load %arg11[%c0_58, %c0_59] : memref<256x64xf32, #tpu.memory_space<vmem>>, vector<256x64xf32>
    %cst_60 = arith.constant dense<0.000000e+00> : vector<256x64xf32>
    %170 = tpu.matmul %168, %169, %cst_60 {dimension_numbers = #tpu.dot_dimension_numbers<[1], [0], [0], [1], [0, 0, 1, 1], [], []>} : vector<256x256xf32>, vector<256x64xf32>, vector<256x64xf32> -> vector<256x64xf32>
    %c0_61 = arith.constant 0 : index
    %c0_62 = arith.constant 0 : index
    %171 = vector.load %arg12[%c0_61, %c0_62] : memref<1x64xf32, #tpu.memory_space<vmem>>, vector<1x64xf32>
    %172 = vector.shape_cast %171 : vector<1x64xf32> to vector<64xf32>
    %173 = vector.shape_cast %172 : vector<64xf32> to vector<1x64xf32>
    %174 = vector.broadcast %173 : vector<1x64xf32> to vector<256x64xf32>
    %175 = arith.addf %170, %174 : vector<256x64xf32>
    %176 = arith.addf %131, %175 : vector<256x64xf32>
    %c0_63 = arith.constant 0 : index
    %c0_64 = arith.constant 0 : index
    %177 = vector.load %arg13[%c0_63, %c0_64] : memref<256x64xf32, #tpu.memory_space<vmem>>, vector<256x64xf32>
    tpu.vector_store %arg13[%c0_63, %c0_64], %176 {strides = array<i32>} : memref<256x64xf32, #tpu.memory_space<vmem>>, vector<256x64xf32>,
    return
  }
  func.func @transform_0(%arg0: i32) -> (i32, i32) {
    %c0_i32 = arith.constant 0 : i32
    %c0_i32_0 = arith.constant 0 : i32
    return %arg0, %c0_i32 : i32, i32
  }
  func.func @transform_1(%arg0: i32) -> (i32, i32) {
    %c0_i32 = arith.constant 0 : i32
    %c0_i32_0 = arith.constant 0 : i32
    %c0_i32_1 = arith.constant 0 : i32
    return %c0_i32, %c0_i32_0 : i32, i32
  }
  func.func @transform_2(%arg0: i32) -> (i32, i32) {
    %c0_i32 = arith.constant 0 : i32
    %c0_i32_0 = arith.constant 0 : i32
    %c0_i32_1 = arith.constant 0 : i32
    return %c0_i32, %c0_i32_0 : i32, i32
  }
  func.func @transform_3(%arg0: i32) -> (i32, i32) {
    %c0_i32 = arith.constant 0 : i32
    %c0_i32_0 = arith.constant 0 : i32
    %c0_i32_1 = arith.constant 0 : i32
    return %c0_i32, %c0_i32_0 : i32, i32
  }
  func.func @transform_4(%arg0: i32) -> (i32, i32) {
    %c0_i32 = arith.constant 0 : i32
    %c0_i32_0 = arith.constant 0 : i32
    %c0_i32_1 = arith.constant 0 : i32
    return %c0_i32, %c0_i32_0 : i32, i32
  }
  func.func @transform_5(%arg0: i32) -> (i32, i32) {
    %c0_i32 = arith.constant 0 : i32
    %c0_i32_0 = arith.constant 0 : i32
    %c0_i32_1 = arith.constant 0 : i32
    return %c0_i32, %c0_i32_0 : i32, i32
  }
  func.func @transform_6(%arg0: i32) -> (i32, i32) {
    %c0_i32 = arith.constant 0 : i32
    %c0_i32_0 = arith.constant 0 : i32
    %c0_i32_1 = arith.constant 0 : i32
    return %c0_i32, %c0_i32_0 : i32, i32
  }
  func.func @transform_7(%arg0: i32) -> (i32, i32) {
    %c0_i32 = arith.constant 0 : i32
    %c0_i32_0 = arith.constant 0 : i32
    %c0_i32_1 = arith.constant 0 : i32
    return %c0_i32, %c0_i32_0 : i32, i32
  }
  func.func @transform_8(%arg0: i32) -> (i32, i32) {
    %c0_i32 = arith.constant 0 : i32
    %c0_i32_0 = arith.constant 0 : i32
    %c0_i32_1 = arith.constant 0 : i32
    return %c0_i32, %c0_i32_0 : i32, i32
  }
  func.func @transform_9(%arg0: i32) -> (i32, i32) {
    %c0_i32 = arith.constant 0 : i32
    %c0_i32_0 = arith.constant 0 : i32
    %c0_i32_1 = arith.constant 0 : i32
    return %c0_i32, %c0_i32_0 : i32, i32
  }
  func.func @transform_10(%arg0: i32) -> (i32, i32) {
    %c0_i32 = arith.constant 0 : i32
    %c0_i32_0 = arith.constant 0 : i32
    %c0_i32_1 = arith.constant 0 : i32
    return %c0_i32, %c0_i32_0 : i32, i32
  }
  func.func @transform_11(%arg0: i32) -> (i32, i32) {
    %c0_i32 = arith.constant 0 : i32
    %c0_i32_0 = arith.constant 0 : i32
    %c0_i32_1 = arith.constant 0 : i32
    return %c0_i32, %c0_i32_0 : i32, i32
  }
  func.func @transform_12(%arg0: i32) -> (i32, i32) {
    %c0_i32 = arith.constant 0 : i32
    %c0_i32_0 = arith.constant 0 : i32
    return %arg0, %c0_i32 : i32, i32
  }
}

</mosaic_0001>

<bundles_post_ra>
// kernel: tpu_custom_call.1
= control target key start
LH: loop header
LB: loop body
LE: loop exit
PB: predicated region body
PF: predicated region fallthrough
CT: control target
= control target key end

     0   :  { %vm75_vm0 = vcmask 523264   ;;  %vm28385_vm1 = vmmov 0   ;;  %vm941_vm2 = vcmask 130048   ;;  %s28388_s30 = smov 112   ;;  %vm3435_vm3 = vcmask 64512   ;;  %s28389_s13 = smov 32   ;;  %s34379_s0 = inlined_call_operand.vmem [shape: f32[256,64], index: 0, kind: input, shape index: {}]   ;;  %s34380_s3 = inlined_call_operand.vmem [shape: f32[64,192], index: 3, kind: input, shape index: {}]   ;;  %s34381_s1 = inlined_call_operand.vmem [shape: f32[1,64], index: 1, kind: input, shape index: {}]   ;;  %s34382_s2 = inlined_call_operand.vmem [shape: f32[1,64], index: 2, kind: input, shape index: {}]   ;;  %s34383_s4 = inlined_call_operand.vmem [shape: f32[64,64], index: 4, kind: input, shape index: {}]   ;;  %s34384_s5 = inlined_call_operand.vmem [shape: f32[1,64], index: 5, kind: input, shape index: {}]   ;;  %s34385_s8 = inlined_call_operand.vmem [shape: f32[64,256], index: 8, kind: input, shape index: {}]   ;;  %s34386_s6 = inlined_call_operand.vmem [shape: f32[1,64], index: 6, kind: input, shape index: {}]   ;;  %s34387_s7 = inlined_call_operand.vmem [shape: f32[1,64], index: 7, kind: input, shape index: {}]   ;;  %s34388_s10 = inlined_call_operand.vmem [shape: f32[256,64], index: 10, kind: input, shape index: {}]   ;;  %s34389_s9 = inlined_call_operand.vmem [shape: f32[1,256], index: 9, kind: input, shape index: {}]   ;;  %s34390_s11 = inlined_call_operand.vmem [shape: f32[1,64], index: 11, kind: input, shape index: {}]   ;;  %s34391_s12 = inlined_call_operand.vmem [shape: f32[256,64], index: 12, kind: output, shape index: {}]  }
   0x1   :  { %v28462_v0 = vld [vmem:[%s34379_s0 + $0x10] sm:$0xff]  ;;  %v28467_v1 = vld [vmem:[%s34379_s0] sm:$0xff]  ;;  %v28472_v2 = vld [vmem:[%s34379_s0 + $0x18] sm:$0xff]  ;;  %s28390_s14 = smov 96   ;;  %s28391_s23 = smov 80  }
   0x2   :  { %v82_v3 = vsel %vm75_vm0, %v28462_v0, 0.0  ;;  %v76_v4 = vsel %vm75_vm0, %v28467_v1, 0.0  ;;  %v28481_v5 = vld [vmem:[%s34379_s0 + $0x8] sm:$0xff]  ;;  %v85_v6 = vsel %vm75_vm0, %v28472_v2, 0.0  ;;  %v28495_v9 = vld [vmem:[%s34379_s0 + $0x20] sm:$0xff]  ;;  %v28504_v12 = vld [vmem:[%s34379_s0 + $0x38] sm:$0xff] }
   0x3   :  { %83 = vadd.xlane.f32.xlu1 %v82_v3  ;;  %77 = vadd.xlane.f32.xlu0 %v76_v4  ;;  %v79_v7 = vsel %vm75_vm0, %v28481_v5, 0.0  ;;  %v28490_v8 = vld [vmem:[%s34379_s0 + $0x28] sm:$0xff]  ;;  %v88_v11 = vsel %vm75_vm0, %v28495_v9, 0.0  ;;  %v28509_v13 = vld [vmem:[%s34379_s0 + $0x30] sm:$0xff]  ;;  %v97_v14 = vsel %vm75_vm0, %v28504_v12, 0.0  ;;  %v28523_v17 = vld [vmem:[%s34379_s0 + $0x40] sm:$0xff] }
   0x4   :  { %v91_v10 = vsel %vm75_vm0, %v28490_v8, 0.0  ;;  %v94_v15 = vsel %vm75_vm0, %v28509_v13, 0.0  ;;  %v28518_v16 = vld [vmem:[%s34379_s0 + $0x48] sm:$0xff]  ;;  %v100_v19 = vsel %vm75_vm0, %v28523_v17, 0.0  ;;  %v28532_v20 = vld [vmem:[%s34379_s0 + $0x58] sm:$0xff]  ;;  %v28537_v21 = vld [vmem:[%s34379_s0 + $0x50] sm:$0xff] }
   0x5   :  { %v103_v18 = vsel %vm75_vm0, %v28518_v16, 0.0  ;;  %v109_v22 = vsel %vm75_vm0, %v28532_v20, 0.0  ;;  %v106_v23 = vsel %vm75_vm0, %v28537_v21, 0.0  ;;  %v28546_v24 = vld [vmem:[%s34379_s0 + $0x68] sm:$0xff]  ;;  %v28551_v25 = vld [vmem:[%s34379_s0 + $0x60] sm:$0xff]  ;;  %v28560_v28 = vld [vmem:[%s34379_s0 + $0x78] sm:$0xff] }
   0x6   :  { %v115_v26 = vsel %vm75_vm0, %v28546_v24, 0.0  ;;  %v112_v27 = vsel %vm75_vm0, %v28551_v25, 0.0  ;;  %v28565_v29 = vld [vmem:[%s34379_s0 + $0x70] sm:$0xff]  ;;  %v121_v30 = vsel %vm75_vm0, %v28560_v28, 0.0  ;;  %v28574_v32 = vld [vmem:[%s34379_s0 + $0x88] sm:$0xff]  ;;  %v28579_v33 = vld [vmem:[%s34379_s0 + $0x80] sm:$0xff] }
   0x7   :  { %86 = vadd.xlane.f32.xlu1 %v85_v6  ;;  %80 = vadd.xlane.f32.xlu0 %v79_v7  ;;  %v118_v31 = vsel %vm75_vm0, %v28565_v29, 0.0  ;;  %v127_v34 = vsel %vm75_vm0, %v28574_v32, 0.0  ;;  %v124_v35 = vsel %vm75_vm0, %v28579_v33, 0.0  ;;  %v28588_v36 = vld [vmem:[%s34379_s0 + $0x98] sm:$0xff]  ;;  %v28593_v37 = vld [vmem:[%s34379_s0 + $0x90] sm:$0xff]  ;;  %v28602_v40 = vld [vmem:[%s34379_s0 + $0xa0] sm:$0xff] }
   0x8   :  { %v133_v38 = vsel %vm75_vm0, %v28588_v36, 0.0  ;;  %v130_v39 = vsel %vm75_vm0, %v28593_v37, 0.0  ;;  %v136_v41 = vsel %vm75_vm0, %v28602_v40, 0.0  ;;  %v28609_v42 = vld [vmem:[%s34379_s0 + $0xa8] sm:$0xff]  ;;  %v28616_v44 = vld [vmem:[%s34379_s0 + $0xb0] sm:$0xff]  ;;  %v28623_v46 = vld [vmem:[%s34379_s0 + $0xb8] sm:$0xff] }
   0x9   :  { %v139_v43 = vsel %vm75_vm0, %v28609_v42, 0.0  ;;  %v142_v45 = vsel %vm75_vm0, %v28616_v44, 0.0  ;;  %v145_v47 = vsel %vm75_vm0, %v28623_v46, 0.0  ;;  %v28630_v48 = vld [vmem:[%s34379_s0 + $0xc0] sm:$0xff]  ;;  %v28637_v50 = vld [vmem:[%s34379_s0 + $0xc8] sm:$0xff]  ;;  %v28644_v52 = vld [vmem:[%s34379_s0 + $0xd0] sm:$0xff] }
   0xa   :  { %v148_v49 = vsel %vm75_vm0, %v28630_v48, 0.0  ;;  %v151_v51 = vsel %vm75_vm0, %v28637_v50, 0.0  ;;  %v154_v53 = vsel %vm75_vm0, %v28644_v52, 0.0  ;;  %v28651_v54 = vld [vmem:[%s34379_s0 + $0xd8] sm:$0xff]  ;;  %v28658_v56 = vld [vmem:[%s34379_s0 + $0xe0] sm:$0xff]  ;;  %v28665_v58 = vld [vmem:[%s34379_s0 + $0xe8] sm:$0xff] }
   0xb   :  { %92 = vadd.xlane.f32.xlu1 %v91_v10  ;;  %89 = vadd.xlane.f32.xlu0 %v88_v11  ;;  %v157_v55 = vsel %vm75_vm0, %v28651_v54, 0.0  ;;  %v160_v57 = vsel %vm75_vm0, %v28658_v56, 0.0  ;;  %v163_v59 = vsel %vm75_vm0, %v28665_v58, 0.0  ;;  %v28672_v60 = vld [vmem:[%s34379_s0 + $0xf0] sm:$0xff]  ;;  %v28679_v62 = vld [vmem:[%s34379_s0 + $0xf8] sm:$0xff]  ;;  %s28392_s24 = smov 16  }
   0xc   :  { %v166_v61 = vsel %vm75_vm0, %v28672_v60, 0.0  ;;  %v169_v63 = vsel %vm75_vm0, %v28679_v62, 0.0 }
   0xf   :  { %98 = vadd.xlane.f32.xlu1 %v97_v14  ;;  %95 = vadd.xlane.f32.xlu0 %v94_v15 }
  0x13   :  { %104 = vadd.xlane.f32.xlu1 %v103_v18  ;;  %101 = vadd.xlane.f32.xlu0 %v100_v19 }
  0x17   :  { %110 = vadd.xlane.f32.xlu1 %v109_v22  ;;  %107 = vadd.xlane.f32.xlu0 %v106_v23 }
  0x1b   :  { %116 = vadd.xlane.f32.xlu1 %v115_v26  ;;  %113 = vadd.xlane.f32.xlu0 %v112_v27 }
  0x1f   :  { %122 = vadd.xlane.f32.xlu1 %v121_v30  ;;  %119 = vadd.xlane.f32.xlu0 %v118_v31 }
  0x23   :  { %128 = vadd.xlane.f32.xlu1 %v127_v34  ;;  %125 = vadd.xlane.f32.xlu0 %v124_v35 }
  0x27   :  { %134 = vadd.xlane.f32.xlu1 %v133_v38  ;;  %131 = vadd.xlane.f32.xlu0 %v130_v39 }
  0x2b   :  { %137 = vadd.xlane.f32.xlu1 %v136_v41 }
  0x2f   :  { %140 = vadd.xlane.f32.xlu1 %v139_v43 }
  0x33   :  { %143 = vadd.xlane.f32.xlu1 %v142_v45 }
  0x37   :  { %146 = vadd.xlane.f32.xlu1 %v145_v47 }
  0x3b   :  { %149 = vadd.xlane.f32.xlu1 %v148_v49 }
  0x3f   :  { %152 = vadd.xlane.f32.xlu1 %v151_v51 }
  0x43   :  { %155 = vadd.xlane.f32.xlu1 %v154_v53 }
  0x47   :  { %158 = vadd.xlane.f32.xlu1 %v157_v55 }
  0x4b   :  { %161 = vadd.xlane.f32.xlu1 %v160_v57 }
  0x4f   :  { %164 = vadd.xlane.f32.xlu1 %v163_v59 }
  0x53   :  { %167 = vadd.xlane.f32.xlu1 %v166_v61 }
  0x57   :  { %170 = vadd.xlane.f32.xlu1 %v169_v63 }
  0x90   :  { %v84_v3 = vpop.xlane.xlu1 %83  ;;  %v78_v4 = vpop.xlane.xlu0 %77 }
  0x91   :  { %v175_v6 = vmul.f32 0.015625, %v84_v3  ;;  %v173_v7 = vmul.f32 0.015625, %v78_v4  ;;  %v570_v4 = vld [vmem:[%s34380_s3 + $0x8] sm:$0xff] }
  0x93   :  { %v28684_v10 = vsub.f32 %v28467_v1, %v173_v7  ;;  %v28687_v15 = vsub.f32 %v28462_v0, %v175_v6  ;;  %v572_v6 = vld [vmem:[%s34380_s3 + $0x18] sm:$0xff] }
  0x94   :  { %v87_v11 = vpop.xlane.xlu1 %86  ;;  %v81_v14 = vpop.xlane.xlu0 %80 }
  0x95   :  { %v176_v18 = vmul.f32 0.015625, %v87_v11  ;;  %v174_v19 = vmul.f32 0.015625, %v81_v14  ;;  %v237_v22 = vmul.f32 %v28684_v10, %v28684_v10  ;;  %v239_v31 = vmul.f32 %v28687_v15, %v28687_v15 }
  0x97   :  { %v28692_v23 = vsub.f32 %v28481_v5, %v174_v19  ;;  %v269_v26 = vsel %vm75_vm0, %v237_v22, 0.0  ;;  %v28696_v1 = vsub.f32 %v28472_v2, %v176_v18  ;;  %v275_v39 = vsel %vm75_vm0, %v239_v31, 0.0  ;;  %v571_v18 = vld [vmem:[%s34380_s3 + $0x10] sm:$0xff] }
  0x98   :  { %v93_v27 = vpop.xlane.xlu1 %92  ;;  %270 = vadd.xlane.f32.xlu0 %v269_v26  ;;  %v90_v30 = vpop.xlane.xlu0 %89  ;;  %v27508_v19 = vpack.c.bf16 %v572_v6, %v570_v4 }
  0x99   :  { %v238_v0 = vmul.f32 %v28692_v23, %v28692_v23  ;;  %v177_v34 = vmul.f32 0.015625, %v90_v30  ;;  %v178_v5 = vmul.f32 0.015625, %v93_v27  ;;  %v240_v2 = vmul.f32 %v28696_v1, %v28696_v1 }
  0x9a   :  { %27509 = vmatprep.subr.bf16.mxu0 %v27508_v19 }
  0x9b   :  { %v272_v35 = vsel %vm75_vm0, %v238_v0, 0.0  ;;  %v28705_v41 = vsub.f32 %v28495_v9, %v177_v34  ;;  %v28710_v47 = vsub.f32 %v28490_v8, %v178_v5  ;;  %v278_v49 = vsel %vm75_vm0, %v240_v2, 0.0  ;;  %v574_v34 = vld [vmem:[%s34380_s3 + $0x28] sm:$0xff]  ;;  %v573_v2 = vld [vmem:[%s34380_s3 + $0x20] sm:$0xff] }
  0x9c   :  { %v99_v38 = vpop.xlane.xlu1 %98  ;;  %273 = vadd.xlane.f32.xlu0 %v272_v35  ;;  %v96_v43 = vpop.xlane.xlu0 %95  ;;  %v576_v35 = vld [vmem:[%s34380_s3 + $0x38] sm:$0xff] }
  0x9d   :  { %v241_v51 = vmul.f32 %v28705_v41, %v28705_v41  ;;  %v179_v53 = vmul.f32 0.015625, %v96_v43  ;;  %v180_v55 = vmul.f32 0.015625, %v99_v38  ;;  %v242_v61 = vmul.f32 %v28710_v47, %v28710_v47  ;;  %v575_v43 = vld [vmem:[%s34380_s3 + $0x30] sm:$0xff] }
  0x9f   :  { %v281_v9 = vsel %vm75_vm0, %v241_v51, 0.0  ;;  %v28717_v59 = vsub.f32 %v28509_v13, %v179_v53  ;;  %v28722_v8 = vsub.f32 %v28504_v12, %v180_v55  ;;  %v284_v13 = vsel %vm75_vm0, %v242_v61, 0.0  ;;  %v569_v12 = vld [vmem:[%s34380_s3] sm:$0xff] }
  0xa0   :  { %v105_v45 = vpop.xlane.xlu1 %104  ;;  %276 = vadd.xlane.f32.xlu0 %v275_v39  ;;  %v102_v63 = vpop.xlane.xlu0 %101  ;;  %v27510_v22 = vpack.c.bf16 %v571_v18, %v569_v12 }
  0xa1   :  { %v243_v11 = vmul.f32 %v28717_v59, %v28717_v59  ;;  %v181_v14 = vmul.f32 0.015625, %v102_v63  ;;  %v182_v27 = vmul.f32 0.015625, %v105_v45  ;;  %v244_v0 = vmul.f32 %v28722_v8, %v28722_v8  ;;  %v578_v63 = vld [vmem:[%s34380_s3 + $0x48] sm:$0xff] }
  0xa2   :  { %27511 = vmatpush1.bf16.msra.mxu0 %v27510_v22  ;;  %v27512_v45 = vpack.c.bf16 %v576_v35, %v574_v34  ;;  %v581_v35 = vld [vmem:[%s34380_s3 + $0x60] sm:$0xff] }
  0xa3   :  { %v287_v5 = vsel %vm75_vm0, %v243_v11, 0.0  ;;  %v28754_v39 = vsub.f32 %v28523_v17, %v181_v14  ;;  %v28767_v55 = vsub.f32 %v28518_v16, %v182_v27 }
  0xa4   :  { %v111_v57 = vpop.xlane.xlu1 %110  ;;  %279 = vadd.xlane.f32.xlu0 %v278_v49  ;;  %v108_v31 = vpop.xlane.xlu0 %107  ;;  %v27514_v49 = vpack.c.bf16 %v575_v43, %v573_v2  ;;  %27513 = vmatprep.subr.bf16.mxu0 %v27512_v45 }
  0xa5   :  { %v245_v16 = vmul.f32 %v28754_v39, %v28754_v39  ;;  %v183_v6 = vmul.f32 0.015625, %v108_v31  ;;  %v184_v19 = vmul.f32 0.015625, %v111_v57  ;;  %v246_v27 = vmul.f32 %v28767_v55, %v28767_v55 }
  0xa6   :  { %27515 = vmatpush1.bf16.msra.mxu0 %v27514_v49 }
  0xa7   :  { %v293_v57 = vsel %vm75_vm0, %v245_v16, 0.0  ;;  %v28802_v34 = vsub.f32 %v28537_v21, %v183_v6  ;;  %v28815_v21 = vsub.f32 %v28532_v20, %v184_v19 }
  0xa8   :  { %v117_v3 = vpop.xlane.xlu1 %116  ;;  %282 = vadd.xlane.f32.xlu0 %v281_v9  ;;  %v290_v9 = vsel %vm75_vm0, %v244_v0, 0.0  ;;  %v114_v61 = vpop.xlane.xlu0 %113  ;;  %v584_v0 = vld [vmem:[%s34380_s3 + $0x78] sm:$0xff] }
  0xa9   :  { %v186_v7 = vmul.f32 0.015625, %v117_v3 }
  0xab   :  { %v28740_v26 = vsub.f32 %v28546_v24, %v186_v7  ;;  %v577_v7 = vld [vmem:[%s34380_s3 + $0x40] sm:$0xff] }
  0xac   :  { %v123_v30 = vpop.xlane.xlu1 %122  ;;  %285 = vadd.xlane.f32.xlu0 %v284_v13  ;;  %v579_v13 = vld [vmem:[%s34380_s3 + $0x50] sm:$0xff] }
  0xad   :  { %v188_v38 = vmul.f32 0.015625, %v123_v30  ;;  %v250_v24 = vmul.f32 %v28740_v26, %v28740_v26  ;;  %v27518_v14 = vpack.c.bf16 %v579_v13, %v577_v7  ;;  %v582_v30 = vld [vmem:[%s34380_s3 + $0x68] sm:$0xff]  ;;  %v248_v7 = vmul.f32 %v28815_v21, %v28815_v21 }
  0xaf   :  { %v28763_v51 = vsub.f32 %v28560_v28, %v188_v38  ;;  %v308_v53 = vsel %vm75_vm0, %v250_v24, 0.0  ;;  %v580_v28 = vld [vmem:[%s34380_s3 + $0x58] sm:$0xff]  ;;  %v583_v38 = vld [vmem:[%s34380_s3 + $0x70] sm:$0xff]  ;;  %v120_v24 = vpop.xlane.xlu0 %119  ;;  %v302_v19 = vsel %vm75_vm0, %v248_v7, 0.0 }
  0xb0   :  { %309 = vadd.xlane.f32.xlu1 %v308_v53  ;;  %v129_v17 = vpop.xlane.xlu1 %128  ;;  %288 = vadd.xlane.f32.xlu0 %v287_v5  ;;  %v27516_v11 = vpack.c.bf16 %v580_v28, %v578_v63  ;;  %v27520_v5 = vpack.c.bf16 %v584_v0, %v582_v30  ;;  %v27522_v2 = vpack.c.bf16 %v583_v38, %v581_v35  ;;  %v296_v53 = vsel %vm75_vm0, %v246_v27, 0.0 }
  0xb1   :  { %v190_v3 = vmul.f32 0.015625, %v129_v17  ;;  %v252_v4 = vmul.f32 %v28763_v51, %v28763_v51  ;;  %v185_v63 = vmul.f32 0.015625, %v114_v61 }
  0xb2   :  { %27517 = vmatprep.subr.bf16.mxu0 %v27516_v11 }
  0xb3   :  { %v28787_v12 = vsub.f32 %v28574_v32, %v190_v3  ;;  %v314_v18 = vsel %vm75_vm0, %v252_v4, 0.0  ;;  %27519 = vmatpush1.bf16.msra.mxu0 %v27518_v14  ;;  %v187_v3 = vmul.f32 0.015625, %v120_v24  ;;  %v126_v4 = vpop.xlane.xlu0 %125  ;;  %v28828_v61 = vsub.f32 %v28551_v25, %v185_v63 }
  0xb4   :  { %315 = vadd.xlane.f32.xlu1 %v314_v18  ;;  %v135_v22 = vpop.xlane.xlu1 %134  ;;  %291 = vadd.xlane.f32.xlu0 %v290_v9  ;;  %v247_v9 = vmul.f32 %v28802_v34, %v28802_v34 }
  0xb5   :  { %v192_v31 = vmul.f32 0.015625, %v135_v22  ;;  %v254_v32 = vmul.f32 %v28787_v12, %v28787_v12  ;;  %27521 = vmatprep.subr.bf16.mxu0 %v27520_v5  ;;  %v28836_v14 = vsub.f32 %v28565_v29, %v187_v3  ;;  %v249_v25 = vmul.f32 %v28828_v61, %v28828_v61 }
  0xb6   :  { %v299_v6 = vsel %vm75_vm0, %v247_v9, 0.0  ;;  %v189_v22 = vmul.f32 0.015625, %v126_v4 }
  0xb7   :  { %v28811_v43 = vsub.f32 %v28588_v36, %v192_v31  ;;  %v320_v45 = vsel %vm75_vm0, %v254_v32, 0.0  ;;  %27523 = vmatpush1.bf16.msra.mxu0 %v27522_v2  ;;  %v34412_v36 = vmov 0.0   ;;  %v132_v27 = vpop.xlane.xlu0 %131  ;;  %v251_v0 = vmul.f32 %v28836_v14, %v28836_v14 }
  0xb8   :  { %321 = vadd.xlane.f32.xlu1 %v320_v45  ;;  %v138_v49 = vpop.xlane.xlu1 %137  ;;  %294 = vadd.xlane.f32.xlu0 %v293_v57  ;;  %v305_v31 = vsel %vm75_vm0, %v249_v25, 0.0  ;;  %v28848_v32 = vsub.f32 %v28579_v33, %v189_v22  ;;  %v191_v57 = vmul.f32 0.015625, %v132_v27 }
  0xb9   :  { %v256_v17 = vmul.f32 %v28811_v43, %v28811_v43  ;;  %745 = vmatprep.mubr.f32.mxu0 %v34412_v36  ;;  %26195 = vmatprep.subr.mxu0 %v34412_v36  ;;  %v311_v24 = vsel %vm75_vm0, %v251_v0, 0.0  ;;  %v193_v5 = vmul.f32 0.015625, %v138_v49 }
  0xba   :  { %26020 = vmatprep.subr.mxu1 %v34412_v36  ;;  %v28857_v45 = vsub.f32 %v28593_v37, %v191_v57  ;;  %26022 = vmatprep.mubr.msk.f32.mxu1 %vm28385_vm1, %v34412_v36 }
  0xbb   :  { %v326_v20 = vsel %vm75_vm0, %v256_v17, 0.0  ;;  %v28863_v9 = vsub.f32 %v28602_v40, %v193_v5 }
  0xbc   :  { %327 = vadd.xlane.f32.xlu1 %v326_v20  ;;  %v141_v28 = vpop.xlane.xlu1 %140  ;;  %297 = vadd.xlane.f32.xlu0 %v296_v53  ;;  %v253_v53 = vmul.f32 %v28848_v32, %v28848_v32  ;;  %v255_v20 = vmul.f32 %v28857_v45, %v28857_v45 }
  0xbd   :  { %v194_v16 = vmul.f32 0.015625, %v141_v28 }
  0xbe   :  { %v317_v49 = vsel %vm75_vm0, %v253_v53, 0.0  ;;  %v323_v40 = vsel %vm75_vm0, %v255_v20, 0.0 }
  0xbf   :  { %v28833_v13 = vsub.f32 %v28609_v42, %v194_v16 }
  0xc0   :  { %v144_v11 = vpop.xlane.xlu1 %143  ;;  %300 = vadd.xlane.f32.xlu0 %v299_v6  ;;  %v257_v6 = vmul.f32 %v28863_v9, %v28863_v9 }
  0xc1   :  { %v258_v18 = vmul.f32 %v28833_v13, %v28833_v13  ;;  %v195_v17 = vmul.f32 0.015625, %v144_v11 }
  0xc2   :  { %v329_v25 = vsel %vm75_vm0, %v257_v6, 0.0 }
  0xc3   :  { %v332_v30 = vsel %vm75_vm0, %v258_v18, 0.0  ;;  %v28872_v28 = vsub.f32 %v28616_v44, %v195_v17 }
  0xc4   :  { %333 = vadd.xlane.f32.xlu1 %v332_v30  ;;  %v147_v42 = vpop.xlane.xlu1 %146  ;;  %303 = vadd.xlane.f32.xlu0 %v302_v19 }
  0xc5   :  { %v196_v29 = vmul.f32 0.015625, %v147_v42  ;;  %v259_v44 = vmul.f32 %v28872_v28, %v28872_v28 }
  0xc7   :  { %v28851_v35 = vsub.f32 %v28623_v46, %v196_v29  ;;  %v335_v30 = vsel %vm75_vm0, %v259_v44, 0.0 }
  0xc8   :  { %v150_v38 = vpop.xlane.xlu1 %149  ;;  %306 = vadd.xlane.f32.xlu0 %v305_v31 }
  0xc9   :  { %v260_v2 = vmul.f32 %v28851_v35, %v28851_v35  ;;  %v197_v4 = vmul.f32 0.015625, %v150_v38 }
  0xcb   :  { %v338_v33 = vsel %vm75_vm0, %v260_v2, 0.0 }
  0xcc   :  { %339 = vadd.xlane.f32.xlu1 %v338_v33  ;;  %v153_v46 = vpop.xlane.xlu1 %152  ;;  %312 = vadd.xlane.f32.xlu0 %v311_v24 }
  0xcd   :  { %v198_v63 = vmul.f32 0.015625, %v153_v46 }
  0xcf   :  { %v28869_v37 = vsub.f32 %v28637_v50, %v198_v63  ;;  %v28883_v50 = vsub.f32 %v28630_v48, %v197_v4 }
  0xd0   :  { %v156_v3 = vpop.xlane.xlu1 %155  ;;  %318 = vadd.xlane.f32.xlu0 %v317_v49 }
  0xd1   :  { %v262_v16 = vmul.f32 %v28869_v37, %v28869_v37  ;;  %v199_v18 = vmul.f32 0.015625, %v156_v3  ;;  %v261_v48 = vmul.f32 %v28883_v50, %v28883_v50 }
  0xd3   :  { %v344_v7 = vsel %vm75_vm0, %v262_v16, 0.0  ;;  %v28891_v42 = vsub.f32 %v28644_v52, %v199_v18  ;;  %v341_v24 = vsel %vm75_vm0, %v261_v48, 0.0 }
  0xd4   :  { %345 = vadd.xlane.f32.xlu1 %v344_v7  ;;  %v159_v11 = vpop.xlane.xlu1 %158  ;;  %324 = vadd.xlane.f32.xlu0 %v323_v40 }
  0xd5   :  { %v200_v19 = vmul.f32 0.015625, %v159_v11  ;;  %v263_v52 = vmul.f32 %v28891_v42, %v28891_v42 }
  0xd7   :  { %v28887_v22 = vsub.f32 %v28651_v54, %v200_v19  ;;  %v347_v17 = vsel %vm75_vm0, %v263_v52, 0.0  ;;  %v28935_v52 = vld [vmem:[%s34382_s2] ss:$0 sm:$0xff]  ;;  %s28387_s2 = smov 48  }
  0xd8   :  { %v162_v27 = vpop.xlane.xlu1 %161  ;;  %330 = vadd.xlane.f32.xlu0 %v329_v25 }
  0xd9   :  { %v201_v0 = vmul.f32 0.015625, %v162_v27  ;;  %v264_v29 = vmul.f32 %v28887_v22, %v28887_v22 }
  0xdb   :  { %v350_v31 = vsel %vm75_vm0, %v264_v29, 0.0  ;;  %v28899_v54 = vsub.f32 %v28658_v56, %v201_v0 }
  0xdc   :  { %351 = vadd.xlane.f32.xlu1 %v350_v31  ;;  %v165_v57 = vpop.xlane.xlu1 %164  ;;  %336 = vadd.xlane.f32.xlu0 %v335_v30  ;;  %v28929_v31 = vld [vmem:[%s34381_s1] ss:$0 sm:$0xff]  ;;  %s28386_s1 = smov 64  }
  0xdd   :  { %v202_v38 = vmul.f32 0.015625, %v165_v57  ;;  %v265_v56 = vmul.f32 %v28899_v54, %v28899_v54 }
  0xdf   :  { %v28905_v5 = vsub.f32 %v28665_v58, %v202_v38  ;;  %v353_v20 = vsel %vm75_vm0, %v265_v56, 0.0 }
  0xe0   :  { %v168_v2 = vpop.xlane.xlu1 %167  ;;  %342 = vadd.xlane.f32.xlu0 %v341_v24 }
  0xe1   :  { %v203_v53 = vmul.f32 0.015625, %v168_v2  ;;  %v266_v33 = vmul.f32 %v28905_v5, %v28905_v5 }
  0xe3   :  { %v28913_v46 = vsub.f32 %v28672_v60, %v203_v53  ;;  %v356_v63 = vsel %vm75_vm0, %v266_v33, 0.0 }
  0xe4   :  { %357 = vadd.xlane.f32.xlu1 %v356_v63  ;;  %v171_v49 = vpop.xlane.xlu1 %170  ;;  %348 = vadd.xlane.f32.xlu0 %v347_v17 }
  0xe5   :  { %v204_v58 = vmul.f32 0.015625, %v171_v49  ;;  %v267_v3 = vmul.f32 %v28913_v46, %v28913_v46 }
  0xe7   :  { %v28920_v4 = vsub.f32 %v28679_v62, %v204_v58  ;;  %v359_v60 = vsel %vm75_vm0, %v267_v3, 0.0 }
  0xe8   :  { %354 = vadd.xlane.f32.xlu0 %v353_v20 }
  0xe9   :  { %v268_v16 = vmul.f32 %v28920_v4, %v28920_v4 }
  0xeb   :  { %v362_v40 = vsel %vm75_vm0, %v268_v16, 0.0 }
  0xec   :  { %363 = vadd.xlane.f32.xlu1 %v362_v40  ;;  %360 = vadd.xlane.f32.xlu0 %v359_v60 }
 0x125   :  { %v271_v6 = vpop.xlane.xlu0 %270 }
 0x126   :  { %v365_v7 = vmul.f32 0.015625, %v271_v6 }
 0x128   :  { %v397_v11 = vadd.f32 1e-05, %v365_v7 }
 0x129   :  { %v274_v44 = vpop.xlane.xlu0 %273 }
 0x12a   :  { %27712 = vrsqrt.f32 %v397_v11  ;;  %v366_v18 = vmul.f32 0.015625, %v274_v44 }
 0x12c   :  { %v398_v19 = vadd.f32 1e-05, %v366_v18 }
 0x12d   :  { %v277_v25 = vpop.xlane.xlu0 %276 }
 0x12e   :  { %27714 = vrsqrt.f32 %v398_v19  ;;  %v367_v62 = vmul.f32 0.015625, %v277_v25 }
 0x130   :  { %v399_v27 = vadd.f32 1e-05, %v367_v62 }
 0x131   :  { %v280_v30 = vpop.xlane.xlu0 %279 }
 0x132   :  { %27716 = vrsqrt.f32 %v399_v27  ;;  %v368_v0 = vmul.f32 0.015625, %v280_v30 }
 0x134   :  { %v27713_v29 = vpop.eup %27712  ;;  %v400_v48 = vadd.f32 1e-05, %v368_v0 }
 0x135   :  { %v283_v57 = vpop.xlane.xlu0 %282  ;;  %v461_v38 = vmul.f32 %v27713_v29, %v28684_v10 }
 0x136   :  { %27718 = vrsqrt.f32 %v400_v48  ;;  %v369_v24 = vmul.f32 0.015625, %v283_v57 }
 0x137   :  { %v499_v2 = vmul.f32 %v28929_v31, %v461_v38 }
 0x138   :  { %v27715_v53 = vpop.eup %27714  ;;  %v401_v33 = vadd.f32 1e-05, %v369_v24 }
 0x139   :  { %v286_v17 = vpop.xlane.xlu0 %285  ;;  %v537_v56 = vadd.f32 %v28935_v52, %v499_v2  ;;  %v462_v63 = vmul.f32 %v27715_v53, %v28692_v23 }
 0x13a   :  { %27720 = vrsqrt.f32 %v401_v33  ;;  %v370_v49 = vmul.f32 0.015625, %v286_v17 }
 0x13b   :  { %24792 = vmatmul.mubr.msk.f32.vlgmr.msra.gmra.mrb[0].mxu0 %vm75_vm0, %v537_v56  ;;  %v500_v10 = vmul.f32 %v28929_v31, %v462_v63 }
 0x13c   :  { %v27717_v58 = vpop.eup %27716  ;;  %v402_v20 = vadd.f32 1e-05, %v370_v49  ;;  %751 = vmatprep.mubr.f32.mxu0 %v34412_v36 }
 0x13d   :  { %v289_v3 = vpop.xlane.xlu0 %288  ;;  %v538_v16 = vadd.f32 %v28935_v52, %v500_v10  ;;  %v463_v60 = vmul.f32 %v27717_v58, %v28687_v15  ;;  %v310_v49 = vpop.xlane.xlu1 %309 }
 0x13e   :  { %27722 = vrsqrt.f32 %v402_v20  ;;  %v371_v40 = vmul.f32 0.015625, %v289_v3 }
 0x13f   :  { %24793 = vmatmul.mubr.msk.f32.gmra.mrb[2].mxu0 %vm75_vm0, %v538_v16  ;;  %v501_v23 = vmul.f32 %v28929_v31, %v463_v60  ;;  %v378_v16 = vmul.f32 0.015625, %v310_v49 }
 0x140   :  { %v27719_v6 = vpop.eup %27718  ;;  %v403_v7 = vadd.f32 1e-05, %v371_v40  ;;  %757 = vmatprep.mubr.f32.mxu0 %v34412_v36 }
 0x141   :  { %v292_v11 = vpop.xlane.xlu0 %291  ;;  %v539_v44 = vadd.f32 %v28935_v52, %v501_v23  ;;  %v464_v18 = vmul.f32 %v27719_v6, %v28696_v1 }
 0x142   :  { %v372_v19 = vmul.f32 0.015625, %v292_v11  ;;  %27724 = vrsqrt.f32 %v403_v7  ;;  %v410_v11 = vadd.f32 1e-05, %v378_v16 }
 0x143   :  { %24794 = vmatmul.mubr.msk.f32.gmra.mrb[4].mxu0 %vm75_vm0, %v539_v44  ;;  %v502_v15 = vmul.f32 %v28929_v31, %v464_v18 }
 0x144   :  { %v27721_v25 = vpop.eup %27720  ;;  %v404_v62 = vadd.f32 1e-05, %v372_v19  ;;  %763 = vmatprep.mubr.f32.mxu0 %v34412_v36 }
 0x145   :  { %v295_v27 = vpop.xlane.xlu0 %294  ;;  %v540_v30 = vadd.f32 %v28935_v52, %v502_v15  ;;  %v465_v0 = vmul.f32 %v27721_v25, %v28705_v41  ;;  %v316_v25 = vpop.xlane.xlu1 %315 }
 0x146   :  { %v373_v29 = vmul.f32 0.015625, %v295_v27  ;;  %27726 = vrsqrt.f32 %v404_v62 }
 0x147   :  { %24795 = vmatmul.mubr.msk.f32.gmra.mrb[6].mxu0 %vm75_vm0, %v540_v30  ;;  %v503_v1 = vmul.f32 %v28929_v31, %v465_v0 }
 0x148   :  { %v27723_v48 = vpop.eup %27722  ;;  %v405_v57 = vadd.f32 1e-05, %v373_v29  ;;  %769 = vmatprep.mubr.f32.mxu0 %v34412_v36  ;;  %v380_v29 = vmul.f32 0.015625, %v316_v25 }
 0x149   :  { %v298_v38 = vpop.xlane.xlu0 %297  ;;  %v541_v24 = vadd.f32 %v28935_v52, %v503_v1  ;;  %v466_v2 = vmul.f32 %v27723_v48, %v28710_v47 }
 0x14a   :  { %v374_v53 = vmul.f32 0.015625, %v298_v38  ;;  %27728 = vrsqrt.f32 %v405_v57 }
 0x14b   :  { %24796 = vmatmul.mubr.msk.f32.gmra.mrb[8].mxu0 %vm75_vm0, %v541_v24  ;;  %v504_v41 = vmul.f32 %v28929_v31, %v466_v2 }
 0x14c   :  { %v406_v33 = vadd.f32 1e-05, %v374_v53  ;;  %775 = vmatprep.mubr.f32.mxu0 %v34412_v36  ;;  %v27725_v17 = vpop.eup %27724 }
 0x14d   :  { %v301_v56 = vpop.xlane.xlu0 %300  ;;  %v542_v63 = vadd.f32 %v28935_v52, %v504_v41  ;;  %v467_v58 = vmul.f32 %v27725_v17, %v28717_v59  ;;  %v412_v41 = vadd.f32 1e-05, %v380_v29  ;;  %v322_v17 = vpop.xlane.xlu1 %321 }
 0x14e   :  { %v375_v10 = vmul.f32 0.015625, %v301_v56  ;;  %27730 = vrsqrt.f32 %v406_v33 }
 0x14f   :  { %24797 = vmatmul.mubr.msk.f32.gmra.mrb[10].mxu0 %vm75_vm0, %v542_v63  ;;  %v505_v20 = vmul.f32 %v28929_v31, %v467_v58 }
 0x150   :  { %v407_v47 = vadd.f32 1e-05, %v375_v10  ;;  %781 = vmatprep.mubr.f32.mxu0 %v34412_v36  ;;  %v27727_v3 = vpop.eup %27726  ;;  %v382_v10 = vmul.f32 0.015625, %v322_v17 }
 0x151   :  { %v304_v60 = vpop.xlane.xlu0 %303  ;;  %v543_v23 = vadd.f32 %v28935_v52, %v505_v20  ;;  %v468_v6 = vmul.f32 %v27727_v3, %v28722_v8 }
 0x152   :  { %27732 = vrsqrt.f32 %v407_v47  ;;  %v376_v40 = vmul.f32 0.015625, %v304_v60 }
 0x153   :  { %24798 = vmatmul.mubr.msk.f32.gmra.mrb[12].mxu0 %vm75_vm0, %v543_v23  ;;  %v506_v18 = vmul.f32 %v28929_v31, %v468_v6 }
 0x154   :  { %v408_v7 = vadd.f32 1e-05, %v376_v40  ;;  %v27729_v59 = vpop.eup %27728  ;;  %787 = vmatprep.mubr.f32.mxu0 %v34412_v36  ;;  %v414_v40 = vadd.f32 1e-05, %v382_v10 }
 0x155   :  { %v307_v44 = vpop.xlane.xlu0 %306  ;;  %v469_v15 = vmul.f32 %v27729_v59, %v28754_v39  ;;  %v544_v62 = vadd.f32 %v28935_v52, %v506_v18 }
 0x156   :  { %v377_v19 = vmul.f32 0.015625, %v307_v44  ;;  %27734 = vrsqrt.f32 %v408_v7  ;;  %v328_v7 = vpop.xlane.xlu1 %327 }
 0x157   :  { %v507_v8 = vmul.f32 %v28929_v31, %v469_v15  ;;  %27736 = vrsqrt.f32 %v410_v11  ;;  %24799 = vmatmul.mubr.msk.f32.gmra.mrb[14].mxu0 %vm75_vm0, %v544_v62  ;;  %v384_v18 = vmul.f32 0.015625, %v328_v7 }
 0x158   :  { %v409_v27 = vadd.f32 1e-05, %v377_v19  ;;  %v27731_v30 = vpop.eup %27730  ;;  %793 = vmatprep.mubr.f32.mxu0 %v34412_v36 }
 0x159   :  { %v313_v0 = vpop.xlane.xlu0 %312  ;;  %v545_v48 = vadd.f32 %v28935_v52, %v507_v8  ;;  %v470_v39 = vmul.f32 %v27731_v30, %v28767_v55 }
 0x15a   :  { %27738 = vrsqrt.f32 %v409_v27  ;;  %v379_v1 = vmul.f32 0.015625, %v313_v0  ;;  %v416_v27 = vadd.f32 1e-05, %v384_v18  ;;  %v334_v8 = vpop.xlane.xlu1 %333 }
 0x15b   :  { %24800 = vmatmul.mubr.msk.f32.gmra.mrb[16].mxu0 %vm75_vm0, %v545_v48  ;;  %v508_v2 = vmul.f32 %v28929_v31, %v470_v39 }
 0x15c   :  { %v27733_v57 = vpop.eup %27732  ;;  %v411_v38 = vadd.f32 1e-05, %v379_v1  ;;  %799 = vmatprep.mubr.f32.mxu0 %v34412_v36 }
 0x15d   :  { %v319_v24 = vpop.xlane.xlu0 %318  ;;  %v471_v53 = vmul.f32 %v27733_v57, %v28802_v34  ;;  %v546_v56 = vadd.f32 %v28935_v52, %v508_v2 }
 0x15e   :  { %v381_v33 = vmul.f32 0.015625, %v319_v24  ;;  %27740 = vrsqrt.f32 %v411_v38 }
 0x15f   :  { %v509_v63 = vmul.f32 %v28929_v31, %v471_v53  ;;  %24801 = vmatmul.mubr.msk.f32.gmra.mrb[18].mxu0 %vm75_vm0, %v546_v56  ;;  %27742 = vrsqrt.f32 %v412_v41  ;;  %v340_v41 = vpop.xlane.xlu1 %339 }
 0x160   :  { %v27735_v55 = vpop.eup %27734  ;;  %v413_v58 = vadd.f32 1e-05, %v381_v33  ;;  %805 = vmatprep.mubr.f32.mxu0 %v34412_v36 }
 0x161   :  { %v547_v49 = vadd.f32 %v28935_v52, %v509_v63  ;;  %v472_v34 = vmul.f32 %v27735_v55, %v28815_v21  ;;  %v27737_v47 = vpop.eup %27736  ;;  %v325_v20 = vpop.xlane.xlu0 %324 }
 0x162   :  { %27744 = vrsqrt.f32 %v413_v58  ;;  %v383_v23 = vmul.f32 0.015625, %v325_v20  ;;  %v474_v21 = vmul.f32 %v27737_v47, %v28740_v26 }
 0x163   :  { %v510_v16 = vmul.f32 %v28929_v31, %v472_v34  ;;  %24802 = vmatmul.mubr.msk.f32.gmra.mrb[20].mxu0 %vm75_vm0, %v547_v49  ;;  %27746 = vrsqrt.f32 %v414_v40 }
 0x164   :  { %v27739_v3 = vpop.eup %27738  ;;  %811 = vmatprep.mubr.f32.mxu0 %v34412_v36  ;;  %v512_v15 = vmul.f32 %v28929_v31, %v474_v21 }
 0x165   :  { %v473_v60 = vmul.f32 %v27739_v3, %v28828_v61  ;;  %v548_v6 = vadd.f32 %v28935_v52, %v510_v16  ;;  %v415_v61 = vadd.f32 1e-05, %v383_v23  ;;  %v331_v19 = vpop.xlane.xlu0 %330  ;;  %v346_v3 = vpop.xlane.xlu1 %345 }
 0x166   :  { %v385_v26 = vmul.f32 0.015625, %v331_v19  ;;  %v550_v30 = vadd.f32 %v28935_v52, %v512_v15 }
 0x167   :  { %v511_v59 = vmul.f32 %v28929_v31, %v473_v60  ;;  %24803 = vmatmul.mubr.msk.f32.gmra.mrb[22].mxu0 %vm75_vm0, %v548_v6  ;;  %27748 = vrsqrt.f32 %v415_v61 }
 0x168   :  { %v27741_v11 = vpop.eup %27740  ;;  %817 = vmatprep.mubr.f32.mxu0 %v34412_v36  ;;  %27750 = vrsqrt.f32 %v416_v27  ;;  %v417_v48 = vadd.f32 1e-05, %v385_v26 }
 0x169   :  { %v549_v44 = vadd.f32 %v28935_v52, %v511_v59  ;;  %v475_v25 = vmul.f32 %v27741_v11, %v28836_v14  ;;  %v27743_v62 = vpop.eup %27742  ;;  %v386_v14 = vmul.f32 0.015625, %v334_v8  ;;  %v337_v39 = vpop.xlane.xlu0 %336 }
 0x16a   :  { %v476_v29 = vmul.f32 %v27743_v62, %v28763_v51  ;;  %27752 = vrsqrt.f32 %v417_v48  ;;  %v387_v51 = vmul.f32 0.015625, %v337_v39  ;;  %v352_v61 = vpop.xlane.xlu1 %351 }
 0x16b   :  { %24804 = vmatmul.mubr.msk.f32.gmra.mrb[24].mxu0 %vm75_vm0, %v549_v44  ;;  %v513_v0 = vmul.f32 %v28929_v31, %v475_v25  ;;  %v418_v53 = vadd.f32 1e-05, %v386_v14 }
 0x16c   :  { %823 = vmatprep.mubr.f32.mxu0 %v34412_v36  ;;  %v27745_v1 = vpop.eup %27744  ;;  %v514_v38 = vmul.f32 %v28929_v31, %v476_v29  ;;  %v419_v55 = vadd.f32 1e-05, %v387_v51 }
 0x16d   :  { %v551_v57 = vadd.f32 %v28935_v52, %v513_v0  ;;  %v477_v24 = vmul.f32 %v27745_v1, %v28848_v32  ;;  %v27747_v2 = vpop.eup %27746  ;;  %27754 = vrsqrt.f32 %v418_v53  ;;  %v388_v32 = vmul.f32 0.015625, %v340_v41  ;;  %v343_v49 = vpop.xlane.xlu0 %342 }
 0x16e   :  { %v552_v33 = vadd.f32 %v28935_v52, %v514_v38  ;;  %v478_v56 = vmul.f32 %v27747_v2, %v28787_v12  ;;  %27756 = vrsqrt.f32 %v419_v55  ;;  %v389_v12 = vmul.f32 0.015625, %v343_v49 }
 0x16f   :  { %24805 = vmatmul.mubr.msk.f32.gmra.mrb[26].mxu0 %vm75_vm0, %v550_v30  ;;  %v515_v17 = vmul.f32 %v28929_v31, %v477_v24  ;;  %v420_v20 = vadd.f32 1e-05, %v388_v32 }
 0x170   :  { %829 = vmatprep.mubr.f32.mxu0 %v34412_v36  ;;  %v516_v58 = vmul.f32 %v28929_v31, %v478_v56  ;;  %v421_v6 = vadd.f32 1e-05, %v389_v12 }
 0x171   :  { %v27749_v63 = vpop.eup %27748  ;;  %v553_v10 = vadd.f32 %v28935_v52, %v515_v17  ;;  %27758 = vrsqrt.f32 %v420_v20  ;;  %v349_v7 = vpop.xlane.xlu0 %348 }
 0x172   :  { %v479_v34 = vmul.f32 %v27749_v63, %v28857_v45  ;;  %v27751_v47 = vpop.eup %27750  ;;  %v554_v16 = vadd.f32 %v28935_v52, %v516_v58  ;;  %v390_v45 = vmul.f32 0.015625, %v346_v3  ;;  %27760 = vrsqrt.f32 %v421_v6  ;;  %v358_v14 = vpop.xlane.xlu1 %357 }
 0x173   :  { %24806 = vmatmul.mubr.msk.f32.gmra.mrb[28].mxu0 %vm75_vm0, %v551_v57  ;;  %v480_v40 = vmul.f32 %v27751_v47, %v28811_v43  ;;  %v391_v43 = vmul.f32 0.015625, %v349_v7 }
 0x174   :  { %835 = vmatprep.mubr.f32.mxu0 %v34412_v36  ;;  %v517_v60 = vmul.f32 %v28929_v31, %v479_v34  ;;  %v27753_v23 = vpop.eup %27752  ;;  %v422_v18 = vadd.f32 1e-05, %v390_v45 }
 0x175   :  { %v518_v21 = vmul.f32 %v28929_v31, %v480_v40  ;;  %v481_v11 = vmul.f32 %v27753_v23, %v28863_v9  ;;  %v392_v9 = vmul.f32 0.015625, %v352_v61  ;;  %v423_v27 = vadd.f32 1e-05, %v391_v43  ;;  %v355_v26 = vpop.xlane.xlu0 %354 }
 0x176   :  { %v555_v59 = vadd.f32 %v28935_v52, %v517_v60  ;;  %27762 = vrsqrt.f32 %v422_v18 }
 0x177   :  { %24807 = vmatmul.mubr.msk.f32.gmra.mrb[30].mxu0 %vm75_vm0, %v552_v33  ;;  %v27755_v44 = vpop.eup %27754  ;;  %v556_v19 = vadd.f32 %v28935_v52, %v518_v21  ;;  %v519_v15 = vmul.f32 %v28929_v31, %v481_v11  ;;  %v424_v1 = vadd.f32 1e-05, %v392_v9  ;;  %27764 = vrsqrt.f32 %v423_v27 }
 0x178   :  { %841 = vmatprep.mubr.f32.mxu0 %v34412_v36  ;;  %v482_v25 = vmul.f32 %v27755_v44, %v28833_v13  ;;  %v27757_v62 = vpop.eup %27756  ;;  %v393_v13 = vmul.f32 0.015625, %v355_v26 }
 0x179   :  { %v557_v8 = vadd.f32 %v28935_v52, %v519_v15  ;;  %v483_v0 = vmul.f32 %v27757_v62, %v28872_v28  ;;  %27766 = vrsqrt.f32 %v424_v1  ;;  %v394_v28 = vmul.f32 0.015625, %v358_v14  ;;  %v361_v2 = vpop.xlane.xlu0 %360  ;;  %v364_v56 = vpop.xlane.xlu1 %363 }
 0x17a   :  { %v520_v30 = vmul.f32 %v28929_v31, %v482_v25  ;;  %v425_v24 = vadd.f32 1e-05, %v393_v13 }
 0x17b   :  { %24808 = vmatmul.mubr.msk.f32.gmra.mrb[32].mxu0 %vm75_vm0, %v553_v10  ;;  %v27759_v29 = vpop.eup %27758  ;;  %v521_v39 = vmul.f32 %v28929_v31, %v483_v0  ;;  %v426_v17 = vadd.f32 1e-05, %v394_v28 }
 0x17c   :  { %847 = vmatprep.mubr.f32.mxu0 %v34412_v36  ;;  %v558_v48 = vadd.f32 %v28935_v52, %v520_v30  ;;  %v484_v57 = vmul.f32 %v27759_v29, %v28851_v35  ;;  %v27761_v38 = vpop.eup %27760  ;;  %27768 = vrsqrt.f32 %v425_v24  ;;  %v395_v35 = vmul.f32 0.015625, %v361_v2 }
 0x17d   :  { %v559_v53 = vadd.f32 %v28935_v52, %v521_v39  ;;  %v485_v41 = vmul.f32 %v27761_v38, %v28883_v50  ;;  %27770 = vrsqrt.f32 %v426_v17  ;;  %v396_v50 = vmul.f32 0.015625, %v364_v56 }
 0x17e   :  { %v522_v51 = vmul.f32 %v28929_v31, %v484_v57  ;;  %v427_v10 = vadd.f32 1e-05, %v395_v35 }
 0x17f   :  { %24809 = vmatmul.mubr.msk.f32.gmra.mrb[34].mxu0 %vm75_vm0, %v554_v16  ;;  %v523_v32 = vmul.f32 %v28929_v31, %v485_v41  ;;  %v428_v12 = vadd.f32 1e-05, %v396_v50 }
 0x180   :  { %853 = vmatprep.mubr.f32.mxu0 %v34412_v36  ;;  %v27763_v33 = vpop.eup %27762  ;;  %v560_v63 = vadd.f32 %v28935_v52, %v522_v51  ;;  %27772 = vrsqrt.f32 %v427_v10 }
 0x181   :  { %v486_v55 = vmul.f32 %v27763_v33, %v28869_v37  ;;  %v27765_v49 = vpop.eup %27764  ;;  %v561_v58 = vadd.f32 %v28935_v52, %v523_v32  ;;  %27774 = vrsqrt.f32 %v428_v12 }
 0x182   :  { %v487_v47 = vmul.f32 %v27765_v49, %v28891_v42 }
 0x183   :  { %24810 = vmatmul.mubr.msk.f32.gmra.mrb[36].mxu0 %vm75_vm0, %v555_v59  ;;  %v524_v34 = vmul.f32 %v28929_v31, %v486_v55  ;;  %v27767_v20 = vpop.eup %27766 }
 0x184   :  { %859 = vmatprep.mubr.f32.mxu0 %v34412_v36  ;;  %v525_v3 = vmul.f32 %v28929_v31, %v487_v47  ;;  %v488_v16 = vmul.f32 %v27767_v20, %v28887_v22 }
 0x185   :  { %v562_v37 = vadd.f32 %v28935_v52, %v524_v34 }
 0x186   :  { %v27769_v60 = vpop.eup %27768  ;;  %v563_v42 = vadd.f32 %v28935_v52, %v525_v3  ;;  %v526_v40 = vmul.f32 %v28929_v31, %v488_v16 }
 0x187   :  { %24811 = vmatmul.mubr.msk.f32.gmra.mrb[38].mxu0 %vm75_vm0, %v556_v19  ;;  %v489_v23 = vmul.f32 %v27769_v60, %v28899_v54  ;;  %v27771_v45 = vpop.eup %27770 }
 0x188   :  { %865 = vmatprep.mubr.f32.mxu0 %v34412_v36  ;;  %v564_v6 = vadd.f32 %v28935_v52, %v526_v40  ;;  %v490_v7 = vmul.f32 %v27771_v45, %v28905_v5 }
 0x189   :  { %v527_v22 = vmul.f32 %v28929_v31, %v489_v23 }
 0x18a   :  { %v27773_v59 = vpop.eup %27772  ;;  %v528_v54 = vmul.f32 %v28929_v31, %v490_v7 }
 0x18b   :  { %24812 = vmatmul.mubr.msk.f32.gmra.mrb[40].mxu0 %vm75_vm0, %v557_v8  ;;  %v565_v21 = vadd.f32 %v28935_v52, %v527_v22  ;;  %v491_v11 = vmul.f32 %v27773_v59, %v28913_v46  ;;  %v27775_v44 = vpop.eup %27774 }
 0x18c   :  { %871 = vmatprep.mubr.f32.mxu0 %v34412_v36  ;;  %v566_v18 = vadd.f32 %v28935_v52, %v528_v54  ;;  %v492_v43 = vmul.f32 %v27775_v44, %v28920_v4 }
 0x18d   :  { %v529_v5 = vmul.f32 %v28929_v31, %v491_v11 }
 0x18e   :  { %v530_v19 = vmul.f32 %v28929_v31, %v492_v43 }
 0x18f   :  { %24813 = vmatmul.mubr.msk.f32.gmra.mrb[42].mxu0 %vm75_vm0, %v558_v48  ;;  %v567_v61 = vadd.f32 %v28935_v52, %v529_v5 }
 0x190   :  { %877 = vmatprep.mubr.f32.mxu0 %v34412_v36  ;;  %v568_v46 = vadd.f32 %v28935_v52, %v530_v19 }
 0x193   :  { %24814 = vmatmul.mubr.msk.f32.gmra.mrb[44].mxu0 %vm75_vm0, %v559_v53 }
 0x194   :  { %883 = vmatprep.mubr.f32.mxu0 %v34412_v36 }
 0x197   :  { %24815 = vmatmul.mubr.msk.f32.gmra.mrb[46].mxu0 %vm75_vm0, %v560_v63 }
 0x198   :  { %889 = vmatprep.mubr.f32.mxu0 %v34412_v36 }
 0x19b   :  { %24816 = vmatmul.mubr.msk.f32.gmra.mrb[48].mxu0 %vm75_vm0, %v561_v58 }
 0x19c   :  { %895 = vmatprep.mubr.f32.mxu0 %v34412_v36 }
 0x19f   :  { %24817 = vmatmul.mubr.msk.f32.gmra.mrb[50].mxu0 %vm75_vm0, %v562_v37 }
 0x1a0   :  { %901 = vmatprep.mubr.f32.mxu0 %v34412_v36 }
 0x1a3   :  { %24818 = vmatmul.mubr.msk.f32.gmra.mrb[52].mxu0 %vm75_vm0, %v563_v42 }
 0x1a4   :  { %907 = vmatprep.mubr.f32.mxu0 %v34412_v36 }
 0x1a7   :  { %24819 = vmatmul.mubr.msk.f32.gmra.mrb[54].mxu0 %vm75_vm0, %v564_v6 }
 0x1a8   :  { %913 = vmatprep.mubr.f32.mxu0 %v34412_v36 }
 0x1ab   :  { %24820 = vmatmul.mubr.msk.f32.gmra.mrb[56].mxu0 %vm75_vm0, %v565_v21 }
 0x1ac   :  { %919 = vmatprep.mubr.f32.mxu0 %v34412_v36 }
 0x1af   :  { %24821 = vmatmul.mubr.msk.f32.gmra.mrb[58].mxu0 %vm75_vm0, %v566_v18 }
 0x1b0   :  { %925 = vmatprep.mubr.f32.mxu0 %v34412_v36 }
 0x1b3   :  { %24822 = vmatmul.mubr.msk.f32.gmra.mrb[60].mxu0 %vm75_vm0, %v567_v61 }
 0x1b4   :  { %931 = vmatprep.mubr.f32.mxu0 %v34412_v36 }
 0x1b7   :  { %24823 = vmatmul.mubr.msk.f32.gmra.mrb[62].mxu0 %vm75_vm0, %v568_v46 }
 0x1b8   :  { %26197 = vmatprep.mubr.msk.f32.mxu0 %vm28385_vm1, %v34412_v36 }
 0x20e   :  { %v29099_v4 = vpop.f32.mrb[0].mxu0 }
 0x20f   :  { %34572 = vst [vmem:[#allocation2_spill] sm:$0xff] %v29099_v4  ;;  %939 = vrot.lane.b32.xlu0 %v29099_v4, %s28386_s1  ;;  %v29103_v31 = vpop.f32.mrb[1].mxu0 }
 0x210   :  { %34573 = vst [vmem:[#allocation3_spill] sm:$0xff] %v29103_v31 }
 0x212   :  { %v29105_v15 = vpop.f32.mrb[2].mxu0 }
 0x213   :  { %34574 = vst [vmem:[#allocation4_spill] sm:$0xff] %v29105_v15  ;;  %1017 = vrot.lane.b32.xlu1 %v29105_v15, %s28386_s1  ;;  %v29109_v52 = vpop.f32.mrb[3].mxu0 }
 0x214   :  { %34575 = vst [vmem:[#allocation5_spill] sm:$0xff] %v29109_v52 }
 0x216   :  { %v29111_v25 = vpop.f32.mrb[4].mxu0 }
 0x217   :  { %34576 = vst [vmem:[#allocation6_spill] sm:$0xff] %v29111_v25  ;;  %1094 = vrot.lane.b32.xlu1 %v29111_v25, %s28386_s1  ;;  %v29115_v62 = vpop.f32.mrb[5].mxu0 }
 0x218   :  { %34577 = vst [vmem:[#allocation7_spill] sm:$0xff] %v29115_v62 }
 0x21a   :  { %v29117_v9 = vpop.f32.mrb[6].mxu0 }
 0x21b   :  { %34578 = vst [vmem:[#allocation8_spill] sm:$0xff] %v29117_v9  ;;  %1171 = vrot.lane.b32.xlu1 %v29117_v9, %s28386_s1  ;;  %v29121_v27 = vpop.f32.mrb[7].mxu0 }
 0x21c   :  { %34579 = vst [vmem:[#allocation9_spill] sm:$0xff] %v29121_v27  ;;  %26196 = vmatpush3.msra.mxu0 %v29121_v27 }
 0x21d   :  { %26205 = vmatprep.subr.mxu0 %v34412_v36 }
 0x21e   :  { %v29125_v26 = vpop.f32.mrb[8].mxu0 }
 0x21f   :  { %34580 = vst [vmem:[#allocation10_spill] sm:$0xff] %v29125_v26  ;;  %1248 = vrot.lane.b32.xlu0 %v29125_v26, %s28386_s1  ;;  %v29129_v8 = vpop.f32.mrb[9].mxu0 }
 0x220   :  { %34581 = vst [vmem:[#allocation11_spill] sm:$0xff] %v29129_v8 }
 0x222   :  { %v29131_v30 = vpop.f32.mrb[10].mxu0 }
 0x223   :  { %34582 = vst [vmem:[#allocation12_spill] sm:$0xff] %v29131_v30  ;;  %1325 = vrot.lane.b32.xlu1 %v29131_v30, %s28386_s1  ;;  %v29135_v0 = vpop.f32.mrb[11].mxu0 }
 0x224   :  { %34583 = vst [vmem:[#allocation13_spill] sm:$0xff] %v29135_v0 }
 0x226   :  { %v29137_v29 = vpop.f32.mrb[12].mxu0 }
 0x227   :  { %34584 = vst [vmem:[#allocation14_spill] sm:$0xff] %v29137_v29  ;;  %1402 = vrot.lane.b32.xlu0 %v29137_v29, %s28386_s1  ;;  %v29141_v1 = vpop.f32.mrb[13].mxu0 }
 0x228   :  { %34585 = vst [vmem:[#allocation15_spill] sm:$0xff] %v29141_v1 }
 0x22a   :  { %v29143_v13 = vpop.f32.mrb[14].mxu0 }
 0x22b   :  { %34586 = vst [vmem:[#allocation16_spill] sm:$0xff] %v29143_v13  ;;  %1479 = vrot.lane.b32.xlu1 %v29143_v13, %s28386_s1  ;;  %v29147_v14 = vpop.f32.mrb[15].mxu0 }
 0x22c   :  { %34587 = vst [vmem:[#allocation17_spill] sm:$0xff] %v29147_v14 }
 0x22e   :  { %v29149_v48 = vpop.f32.mrb[16].mxu0 }
 0x22f   :  { %34588 = vst [vmem:[#allocation18_spill] sm:$0xff] %v29149_v48  ;;  %1556 = vrot.lane.b32.xlu0 %v29149_v48, %s28386_s1  ;;  %v29153_v39 = vpop.f32.mrb[17].mxu0 }
 0x230   :  { %34589 = vst [vmem:[#allocation19_spill] sm:$0xff] %v29153_v39 }
 0x232   :  { %v29155_v57 = vpop.f32.mrb[18].mxu0 }
 0x233   :  { %34590 = vst [vmem:[#allocation20_spill] sm:$0xff] %v29155_v57  ;;  %1633 = vrot.lane.b32.xlu1 %v29155_v57, %s28386_s1  ;;  %v29159_v38 = vpop.f32.mrb[19].mxu0 }
 0x234   :  { %34591 = vst [vmem:[#allocation21_spill] sm:$0xff] %v29159_v38 }
 0x236   :  { %v29161_v28 = vpop.f32.mrb[20].mxu0 }
 0x237   :  { %34592 = vst [vmem:[#allocation22_spill] sm:$0xff] %v29161_v28  ;;  %1710 = vrot.lane.b32.xlu0 %v29161_v28, %s28386_s1  ;;  %v29165_v24 = vpop.f32.mrb[21].mxu0 }
 0x238   :  { %34593 = vst [vmem:[#allocation23_spill] sm:$0xff] %v29165_v24 }
 0x23a   :  { %v29167_v2 = vpop.f32.mrb[22].mxu0 }
 0x23b   :  { %34594 = vst [vmem:[#allocation24_spill] sm:$0xff] %v29167_v2  ;;  %1787 = vrot.lane.b32.xlu1 %v29167_v2, %s28386_s1  ;;  %v29171_v53 = vpop.f32.mrb[23].mxu0 }
 0x23c   :  { %34595 = vst [vmem:[#allocation25_spill] sm:$0xff] %v29171_v53 }
 0x23e   :  { %v29173_v51 = vpop.f32.mrb[24].mxu0 }
 0x23f   :  { %34596 = vst [vmem:[#allocation26_spill] sm:$0xff] %v29173_v51  ;;  %1864 = vrot.lane.b32.xlu0 %v29173_v51, %s28386_s1  ;;  %v29177_v41 = vpop.f32.mrb[25].mxu0 }
 0x240   :  { %34597 = vst [vmem:[#allocation27_spill] sm:$0xff] %v29177_v41 }
 0x242   :  { %v29179_v33 = vpop.f32.mrb[26].mxu0 }
 0x243   :  { %34598 = vst [vmem:[#allocation28_spill] sm:$0xff] %v29179_v33  ;;  %1941 = vrot.lane.b32.xlu1 %v29179_v33, %s28386_s1  ;;  %v29183_v17 = vpop.f32.mrb[27].mxu0 }
 0x244   :  { %34599 = vst [vmem:[#allocation29_spill] sm:$0xff] %v29183_v17 }
 0x246   :  { %v29185_v35 = vpop.f32.mrb[28].mxu0 }
 0x247   :  { %34600 = vst [vmem:[#allocation30_spill] sm:$0xff] %v29185_v35  ;;  %2018 = vrot.lane.b32.xlu0 %v29185_v35, %s28386_s1  ;;  %v29189_v56 = vpop.f32.mrb[29].mxu0 }
 0x248   :  { %34601 = vst [vmem:[#allocation31_spill] sm:$0xff] %v29189_v56 }
 0x24a   :  { %v29191_v63 = vpop.f32.mrb[30].mxu0 }
 0x24b   :  { %34602 = vst [vmem:[#allocation32_spill] sm:$0xff] %v29191_v63  ;;  %2095 = vrot.lane.b32.xlu1 %v29191_v63, %s28386_s1  ;;  %v29195_v32 = vpop.f32.mrb[31].mxu0 }
 0x24c   :  { %34603 = vst [vmem:[#allocation33_spill] sm:$0xff] %v29195_v32 }
 0x24e   :  { %v29197_v55 = vpop.f32.mrb[32].mxu0 }
 0x24f   :  { %34604 = vst [vmem:[#allocation34_spill] sm:$0xff] %v29197_v55  ;;  %2172 = vrot.lane.b32.xlu0 %v29197_v55, %s28386_s1  ;;  %v29201_v49 = vpop.f32.mrb[33].mxu0 }
 0x250   :  { %34605 = vst [vmem:[#allocation35_spill] sm:$0xff] %v29201_v49 }
 0x252   :  { %v29203_v50 = vpop.f32.mrb[34].mxu0 }
 0x253   :  { %34606 = vst [vmem:[#allocation36_spill] sm:$0xff] %v29203_v50  ;;  %2249 = vrot.lane.b32.xlu1 %v29203_v50, %s28386_s1  ;;  %v29207_v10 = vpop.f32.mrb[35].mxu0 }
 0x254   :  { %34607 = vst [vmem:[#allocation37_spill] sm:$0xff] %v29207_v10 }
 0x256   :  { %v29209_v58 = vpop.f32.mrb[36].mxu0 }
 0x257   :  { %34608 = vst [vmem:[#allocation38_spill] sm:$0xff] %v29209_v58  ;;  %2326 = vrot.lane.b32.xlu0 %v29209_v58, %s28386_s1  ;;  %v29213_v34 = vpop.f32.mrb[37].mxu0 }
 0x258   :  { %34609 = vst [vmem:[#allocation39_spill] sm:$0xff] %v29213_v34 }
 0x25a   :  { %v29215_v47 = vpop.f32.mrb[38].mxu0 }
 0x25b   :  { %34610 = vst [vmem:[#allocation40_spill] sm:$0xff] %v29215_v47  ;;  %2403 = vrot.lane.b32.xlu1 %v29215_v47, %s28386_s1  ;;  %v29219_v20 = vpop.f32.mrb[39].mxu0 }
 0x25c   :  { %34611 = vst [vmem:[#allocation41_spill] sm:$0xff] %v29219_v20 }
 0x25e   :  { %v29221_v12 = vpop.f32.mrb[40].mxu0 }
 0x25f   :  { %34612 = vst [vmem:[#allocation42_spill] sm:$0xff] %v29221_v12  ;;  %2480 = vrot.lane.b32.xlu0 %v29221_v12, %s28386_s1  ;;  %v29225_v37 = vpop.f32.mrb[41].mxu0 }
 0x260   :  { %34613 = vst [vmem:[#allocation43_spill] sm:$0xff] %v29225_v37 }
 0x262   :  { %v29227_v3 = vpop.f32.mrb[42].mxu0 }
 0x263   :  { %34614 = vst [vmem:[#allocation44_spill] sm:$0xff] %v29227_v3  ;;  %2557 = vrot.lane.b32.xlu1 %v29227_v3, %s28386_s1  ;;  %v29231_v16 = vpop.f32.mrb[43].mxu0 }
 0x264   :  { %34615 = vst [vmem:[#allocation45_spill] sm:$0xff] %v29231_v16 }
 0x266   :  { %v29233_v60 = vpop.f32.mrb[44].mxu0 }
 0x267   :  { %34616 = vst [vmem:[#allocation46_spill] sm:$0xff] %v29233_v60  ;;  %2634 = vrot.lane.b32.xlu0 %v29233_v60, %s28386_s1  ;;  %v29237_v42 = vpop.f32.mrb[45].mxu0 }
 0x268   :  { %34617 = vst [vmem:[#allocation47_spill] sm:$0xff] %v29237_v42 }
 0x26a   :  { %v29239_v40 = vpop.f32.mrb[46].mxu0 }
 0x26b   :  { %34618 = vst [vmem:[#allocation48_spill] sm:$0xff] %v29239_v40  ;;  %2711 = vrot.lane.b32.xlu1 %v29239_v40, %s28386_s1  ;;  %v29243_v23 = vpop.f32.mrb[47].mxu0 }
 0x26c   :  { %34619 = vst [vmem:[#allocation49_spill] sm:$0xff] %v29243_v23 }
 0x26e   :  { %v29245_v45 = vpop.f32.mrb[48].mxu0 }
 0x26f   :  { %34620 = vst [vmem:[#allocation50_spill] sm:$0xff] %v29245_v45  ;;  %2788 = vrot.lane.b32.xlu0 %v29245_v45, %s28386_s1  ;;  %v29249_v6 = vpop.f32.mrb[49].mxu0 }
 0x270   :  { %34621 = vst [vmem:[#allocation51_spill] sm:$0xff] %v29249_v6 }
 0x272   :  { %v29251_v22 = vpop.f32.mrb[50].mxu0 }
 0x273   :  { %34622 = vst [vmem:[#allocation52_spill] sm:$0xff] %v29251_v22  ;;  %2865 = vrot.lane.b32.xlu1 %v29251_v22, %s28386_s1  ;;  %v29255_v7 = vpop.f32.mrb[51].mxu0 }
 0x274   :  { %34623 = vst [vmem:[#allocation53_spill] sm:$0xff] %v29255_v7 }
 0x276   :  { %v29257_v59 = vpop.f32.mrb[52].mxu0 }
 0x277   :  { %34624 = vst [vmem:[#allocation54_spill] sm:$0xff] %v29257_v59  ;;  %2942 = vrot.lane.b32.xlu0 %v29257_v59, %s28386_s1  ;;  %v29261_v21 = vpop.f32.mrb[53].mxu0 }
 0x278   :  { %34625 = vst [vmem:[#allocation55_spill] sm:$0xff] %v29261_v21 }
 0x27a   :  { %v29263_v54 = vpop.f32.mrb[54].mxu0 }
 0x27b   :  { %34626 = vst [vmem:[#allocation56_spill] sm:$0xff] %v29263_v54  ;;  %3019 = vrot.lane.b32.xlu1 %v29263_v54, %s28386_s1  ;;  %v29267_v11 = vpop.f32.mrb[55].mxu0 }
 0x27c   :  { %34627 = vst [vmem:[#allocation57_spill] sm:$0xff] %v29267_v11 }
 0x27e   :  { %v29269_v44 = vpop.f32.mrb[56].mxu0 }
 0x27f   :  { %34628 = vst [vmem:[#allocation58_spill] sm:$0xff] %v29269_v44  ;;  %3096 = vrot.lane.b32.xlu0 %v29269_v44, %s28386_s1  ;;  %v29273_v18 = vpop.f32.mrb[57].mxu0 }
 0x280   :  { %34629 = vst [vmem:[#allocation59_spill] sm:$0xff] %v29273_v18 }
 0x281   :  { %v940_v5 = vpop.permute.xlu0 %939 }
 0x282   :  { %26021 = vmatpush3.xpose.msk.msra.mxu1 %vm941_vm2, %v940_v5  ;;  %v29277_v43 = vpop.f32.mrb[58].mxu0 }
 0x283   :  { %26025 = vmatprep.subr.mxu1 %v34412_v36  ;;  %34630 = vst [vmem:[#allocation60_spill] sm:$0xff] %v29277_v43  ;;  %3173 = vrot.lane.b32.xlu1 %v29277_v43, %s28386_s1  ;;  %v29281_v61 = vpop.f32.mrb[59].mxu0 }
 0x284   :  { %34631 = vst [vmem:[#allocation61_spill] sm:$0xff] %v29281_v61 }
 0x285   :  { %v1018_v19 = vpop.permute.xlu1 %1017  ;;  %26023 = vmatmul.mubr.msk.f32.vlgmr.msra.gmra.mrb[0].mxu1 %vm941_vm2, %v29099_v4 }
 0x286   :  { %26026 = vmatpush3.xpose.msk.msra.mxu1 %vm941_vm2, %v1018_v19  ;;  %26027 = vmatprep.mubr.msk.f32.mxu1 %vm28385_vm1, %v34412_v36  ;;  %v29289_v46 = vpop.f32.mrb[60].mxu0 }
 0x287   :  { %26030 = vmatprep.subr.mxu1 %v34412_v36  ;;  %34632 = vst [vmem:[#allocation62_spill] sm:$0xff] %v29289_v46  ;;  %3250 = vrot.lane.b32.xlu0 %v29289_v46, %s28386_s1  ;;  %v29293_v5 = vpop.f32.mrb[61].mxu0 }
 0x288   :  { %34633 = vst [vmem:[#allocation63_spill] sm:$0xff] %v29293_v5 }
 0x289   :  { %v1095_v27 = vpop.permute.xlu1 %1094  ;;  %26028 = vmatmul.mubr.msk.f32.vlgmr.msra.gmra.mrb[2].mxu1 %vm941_vm2, %v29105_v15 }
 0x28a   :  { %26031 = vmatpush3.xpose.msk.msra.mxu1 %vm941_vm2, %v1095_v27  ;;  %26032 = vmatprep.mubr.msk.f32.mxu1 %vm28385_vm1, %v34412_v36  ;;  %v29301_v19 = vpop.f32.mrb[62].mxu0 }
 0x28b   :  { %26035 = vmatprep.subr.mxu1 %v34412_v36  ;;  %34634 = vst [vmem:[#allocation64_spill] sm:$0xff] %v29301_v19  ;;  %6128 = vrot.lane.b32.xlu0 %v29099_v4, %s28387_s2  ;;  %v29307_v5 = vpop.f32.mrb[63].mxu0 }
 0x28c   :  { %3327 = vrot.lane.b32.xlu1 %v29301_v19, %s28386_s1  ;;  %34635 = vst [vmem:[#allocation65_spill] sm:$0xff] %v29307_v5 }
 0x28d   :  { %v1172_v61 = vpop.permute.xlu1 %1171  ;;  %26033 = vmatmul.mubr.msk.f32.vlgmr.msra.gmra.mrb[4].mxu1 %vm941_vm2, %v29111_v25 }
 0x28e   :  { %26036 = vmatpush3.xpose.msk.msra.mxu1 %vm941_vm2, %v1172_v61  ;;  %26037 = vmatprep.mubr.msk.f32.mxu1 %vm28385_vm1, %v34412_v36 }
 0x28f   :  { %26040 = vmatprep.subr.mxu1 %v34412_v36  ;;  %6284 = vrot.lane.b32.xlu0 %v29111_v25, %s28387_s2 }
 0x290   :  { %6206 = vrot.lane.b32.xlu1 %v29105_v15, %s28387_s2 }
 0x291   :  { %v1249_v27 = vpop.permute.xlu0 %1248  ;;  %26038 = vmatmul.mubr.msk.f32.vlgmr.msra.gmra.mrb[6].mxu1 %vm941_vm2, %v29117_v9 }
 0x292   :  { %26041 = vmatpush3.xpose.msk.msra.mxu1 %vm941_vm2, %v1249_v27  ;;  %26042 = vmatprep.mubr.msk.f32.mxu1 %vm28385_vm1, %v34412_v36 }
 0x293   :  { %26045 = vmatprep.subr.mxu1 %v34412_v36  ;;  %6282 = vrot.lane.b32.xlu0 %v29111_v25, %s28388_s30 }
 0x294   :  { %6126 = vrot.lane.b32.xlu1 %v29099_v4, %s28388_s30 }
 0x295   :  { %v1326_v61 = vpop.permute.xlu1 %1325  ;;  %26043 = vmatmul.mubr.msk.f32.vlgmr.msra.gmra.mrb[8].mxu1 %vm941_vm2, %v29125_v26 }
 0x296   :  { %26046 = vmatpush3.xpose.msk.msra.mxu1 %vm941_vm2, %v1326_v61  ;;  %26047 = vmatprep.mubr.msk.f32.mxu1 %vm28385_vm1, %v34412_v36 }
 0x297   :  { %26050 = vmatprep.subr.mxu1 %v34412_v36  ;;  %6440 = vrot.lane.b32.xlu0 %v29125_v26, %s28387_s2 }
 0x298   :  { %6204 = vrot.lane.b32.xlu1 %v29105_v15, %s28388_s30 }
 0x299   :  { %26048 = vmatmul.mubr.msk.f32.vlgmr.msra.gmra.mrb[10].mxu1 %vm941_vm2, %v29131_v30  ;;  %v1403_v27 = vpop.permute.xlu0 %1402 }
 0x29a   :  { %26051 = vmatpush3.xpose.msk.msra.mxu1 %vm941_vm2, %v1403_v27  ;;  %26052 = vmatprep.mubr.msk.f32.mxu1 %vm28385_vm1, %v34412_v36 }
 0x29b   :  { %26055 = vmatprep.subr.mxu1 %v34412_v36  ;;  %6438 = vrot.lane.b32.xlu0 %v29125_v26, %s28388_s30 }
 0x29c   :  { %6362 = vrot.lane.b32.xlu1 %v29117_v9, %s28387_s2 }
 0x29d   :  { %26053 = vmatmul.mubr.msk.f32.vlgmr.msra.gmra.mrb[12].mxu1 %vm941_vm2, %v29137_v29  ;;  %v1480_v61 = vpop.permute.xlu1 %1479 }
 0x29e   :  { %26057 = vmatprep.mubr.msk.f32.mxu1 %vm28385_vm1, %v34412_v36  ;;  %26056 = vmatpush3.xpose.msk.msra.mxu1 %vm941_vm2, %v1480_v61 }
 0x29f   :  { %6596 = vrot.lane.b32.xlu0 %v29137_v29, %s28387_s2  ;;  %26060 = vmatprep.subr.mxu1 %v34412_v36 }
 0x2a0   :  { %6360 = vrot.lane.b32.xlu1 %v29117_v9, %s28388_s30 }
 0x2a1   :  { %26058 = vmatmul.mubr.msk.f32.vlgmr.msra.gmra.mrb[14].mxu1 %vm941_vm2, %v29143_v13  ;;  %v1557_v27 = vpop.permute.xlu0 %1556 }
 0x2a2   :  { %26061 = vmatpush3.xpose.msk.msra.mxu1 %vm941_vm2, %v1557_v27  ;;  %26062 = vmatprep.mubr.msk.f32.mxu1 %vm28385_vm1, %v34412_v36 }
 0x2a3   :  { %26065 = vmatprep.subr.mxu1 %v34412_v36 }
 0x2a4   :  { %6518 = vrot.lane.b32.xlu1 %v29131_v30, %s28387_s2 }
 0x2a5   :  { %v1634_v61 = vpop.permute.xlu1 %1633  ;;  %26063 = vmatmul.mubr.msk.f32.vlgmr.msra.gmra.mrb[16].mxu1 %vm941_vm2, %v29149_v48 }
 0x2a6   :  { %26066 = vmatpush3.xpose.msk.msra.mxu1 %vm941_vm2, %v1634_v61  ;;  %26067 = vmatprep.mubr.msk.f32.mxu1 %vm28385_vm1, %v34412_v36 }
 0x2a7   :  { %26070 = vmatprep.subr.mxu1 %v34412_v36 }
 0x2a8   :  { %6516 = vrot.lane.b32.xlu1 %v29131_v30, %s28388_s30 }
 0x2a9   :  { %26068 = vmatmul.mubr.msk.f32.vlgmr.msra.gmra.mrb[18].mxu1 %vm941_vm2, %v29155_v57  ;;  %v1711_v27 = vpop.permute.xlu0 %1710 }
 0x2aa   :  { %26071 = vmatpush3.xpose.msk.msra.mxu1 %vm941_vm2, %v1711_v27  ;;  %26072 = vmatprep.mubr.msk.f32.mxu1 %vm28385_vm1, %v34412_v36 }
 0x2ab   :  { %26075 = vmatprep.subr.mxu1 %v34412_v36 }
 0x2ad   :  { %v1788_v61 = vpop.permute.xlu1 %1787  ;;  %26073 = vmatmul.mubr.msk.f32.vlgmr.msra.gmra.mrb[20].mxu1 %vm941_vm2, %v29161_v28 }
 0x2ae   :  { %26076 = vmatpush3.xpose.msk.msra.mxu1 %vm941_vm2, %v1788_v61  ;;  %26077 = vmatprep.mubr.msk.f32.mxu1 %vm28385_vm1, %v34412_v36 }
 0x2af   :  { %26080 = vmatprep.subr.mxu1 %v34412_v36 }
 0x2b1   :  { %26078 = vmatmul.mubr.msk.f32.vlgmr.msra.gmra.mrb[22].mxu1 %vm941_vm2, %v29167_v2  ;;  %v1865_v27 = vpop.permute.xlu0 %1864 }
 0x2b2   :  { %26081 = vmatpush3.xpose.msk.msra.mxu1 %vm941_vm2, %v1865_v27  ;;  %26082 = vmatprep.mubr.msk.f32.mxu1 %vm28385_vm1, %v34412_v36 }
 0x2b3   :  { %26085 = vmatprep.subr.mxu1 %v34412_v36 }
 0x2b5   :  { %v1942_v30 = vpop.permute.xlu1 %1941  ;;  %26083 = vmatmul.mubr.msk.f32.vlgmr.msra.gmra.mrb[24].mxu1 %vm941_vm2, %v29173_v51 }
 0x2b6   :  { %26086 = vmatpush3.xpose.msk.msra.mxu1 %vm941_vm2, %v1942_v30  ;;  %26087 = vmatprep.mubr.msk.f32.mxu1 %vm28385_vm1, %v34412_v36 }
 0x2b7   :  { %26090 = vmatprep.subr.mxu1 %v34412_v36 }
 0x2b9   :  { %26088 = vmatmul.mubr.msk.f32.vlgmr.msra.gmra.mrb[26].mxu1 %vm941_vm2, %v29179_v33  ;;  %v2019_v61 = vpop.permute.xlu0 %2018 }
 0x2ba   :  { %26091 = vmatpush3.xpose.msk.msra.mxu1 %vm941_vm2, %v2019_v61  ;;  %26092 = vmatprep.mubr.msk.f32.mxu1 %vm28385_vm1, %v34412_v36 }
 0x2bb   :  { %26095 = vmatprep.subr.mxu1 %v34412_v36 }
 0x2bd   :  { %v2096_v27 = vpop.permute.xlu1 %2095  ;;  %26093 = vmatmul.mubr.msk.f32.vlgmr.msra.gmra.mrb[28].mxu1 %vm941_vm2, %v29185_v35 }
 0x2be   :  { %26096 = vmatpush3.xpose.msk.msra.mxu1 %vm941_vm2, %v2096_v27  ;;  %26097 = vmatprep.mubr.msk.f32.mxu1 %vm28385_vm1, %v34412_v36 }
 0x2bf   :  { %26100 = vmatprep.subr.mxu1 %v34412_v36 }
 0x2c1   :  { %26098 = vmatmul.mubr.msk.f32.vlgmr.msra.gmra.mrb[30].mxu1 %vm941_vm2, %v29191_v63  ;;  %v2173_v30 = vpop.permute.xlu0 %2172 }
 0x2c2   :  { %26101 = vmatpush3.xpose.msk.msra.mxu1 %vm941_vm2, %v2173_v30  ;;  %26102 = vmatprep.mubr.msk.f32.mxu1 %vm28385_vm1, %v34412_v36 }
 0x2c3   :  { %26105 = vmatprep.subr.mxu1 %v34412_v36 }
 0x2c5   :  { %v2250_v61 = vpop.permute.xlu1 %2249  ;;  %26103 = vmatmul.mubr.msk.f32.vlgmr.msra.gmra.mrb[32].mxu1 %vm941_vm2, %v29197_v55 }
 0x2c6   :  { %26106 = vmatpush3.xpose.msk.msra.mxu1 %vm941_vm2, %v2250_v61  ;;  %26107 = vmatprep.mubr.msk.f32.mxu1 %vm28385_vm1, %v34412_v36 }
 0x2c7   :  { %26110 = vmatprep.subr.mxu1 %v34412_v36 }
 0x2c9   :  { %26108 = vmatmul.mubr.msk.f32.vlgmr.msra.gmra.mrb[34].mxu1 %vm941_vm2, %v29203_v50  ;;  %v2327_v27 = vpop.permute.xlu0 %2326 }
 0x2ca   :  { %26111 = vmatpush3.xpose.msk.msra.mxu1 %vm941_vm2, %v2327_v27  ;;  %26112 = vmatprep.mubr.msk.f32.mxu1 %vm28385_vm1, %v34412_v36 }
 0x2cb   :  { %26115 = vmatprep.subr.mxu1 %v34412_v36 }
 0x2cd   :  { %v2404_v30 = vpop.permute.xlu1 %2403  ;;  %26113 = vmatmul.mubr.msk.f32.vlgmr.msra.gmra.mrb[36].mxu1 %vm941_vm2, %v29209_v58 }
 0x2ce   :  { %26116 = vmatpush3.xpose.msk.msra.mxu1 %vm941_vm2, %v2404_v30  ;;  %26117 = vmatprep.mubr.msk.f32.mxu1 %vm28385_vm1, %v34412_v36 }
 0x2cf   :  { %26120 = vmatprep.subr.mxu1 %v34412_v36 }
 0x2d1   :  { %26118 = vmatmul.mubr.msk.f32.vlgmr.msra.gmra.mrb[38].mxu1 %vm941_vm2, %v29215_v47  ;;  %v2481_v61 = vpop.permute.xlu0 %2480 }
 0x2d2   :  { %26121 = vmatpush3.xpose.msk.msra.mxu1 %vm941_vm2, %v2481_v61  ;;  %26122 = vmatprep.mubr.msk.f32.mxu1 %vm28385_vm1, %v34412_v36 }
 0x2d3   :  { %26125 = vmatprep.subr.mxu1 %v34412_v36 }
 0x2d5   :  { %v2558_v27 = vpop.permute.xlu1 %2557  ;;  %26123 = vmatmul.mubr.msk.f32.vlgmr.msra.gmra.mrb[40].mxu1 %vm941_vm2, %v29221_v12 }
 0x2d6   :  { %26126 = vmatpush3.xpose.msk.msra.mxu1 %vm941_vm2, %v2558_v27  ;;  %26127 = vmatprep.mubr.msk.f32.mxu1 %vm28385_vm1, %v34412_v36 }
 0x2d7   :  { %26130 = vmatprep.subr.mxu1 %v34412_v36 }
 0x2d9   :  { %26128 = vmatmul.mubr.msk.f32.vlgmr.msra.gmra.mrb[42].mxu1 %vm941_vm2, %v29227_v3  ;;  %v2635_v30 = vpop.permute.xlu0 %2634 }
 0x2da   :  { %26131 = vmatpush3.xpose.msk.msra.mxu1 %vm941_vm2, %v2635_v30  ;;  %26132 = vmatprep.mubr.msk.f32.mxu1 %vm28385_vm1, %v34412_v36 }
 0x2db   :  { %26135 = vmatprep.subr.mxu1 %v34412_v36 }
 0x2dd   :  { %v2712_v61 = vpop.permute.xlu1 %2711  ;;  %26133 = vmatmul.mubr.msk.f32.vlgmr.msra.gmra.mrb[44].mxu1 %vm941_vm2, %v29233_v60 }
 0x2de   :  { %26136 = vmatpush3.xpose.msk.msra.mxu1 %vm941_vm2, %v2712_v61  ;;  %26137 = vmatprep.mubr.msk.f32.mxu1 %vm28385_vm1, %v34412_v36 }
 0x2df   :  { %26140 = vmatprep.subr.mxu1 %v34412_v36 }
 0x2e1   :  { %26138 = vmatmul.mubr.msk.f32.vlgmr.msra.gmra.mrb[46].mxu1 %vm941_vm2, %v29239_v40  ;;  %v2789_v27 = vpop.permute.xlu0 %2788 }
 0x2e2   :  { %26141 = vmatpush3.xpose.msk.msra.mxu1 %vm941_vm2, %v2789_v27  ;;  %26142 = vmatprep.mubr.msk.f32.mxu1 %vm28385_vm1, %v34412_v36 }
 0x2e3   :  { %26145 = vmatprep.subr.mxu1 %v34412_v36 }
 0x2e5   :  { %v2866_v30 = vpop.permute.xlu1 %2865  ;;  %26143 = vmatmul.mubr.msk.f32.vlgmr.msra.gmra.mrb[48].mxu1 %vm941_vm2, %v29245_v45 }
 0x2e6   :  { %26146 = vmatpush3.xpose.msk.msra.mxu1 %vm941_vm2, %v2866_v30  ;;  %26147 = vmatprep.mubr.msk.f32.mxu1 %vm28385_vm1, %v34412_v36 }
 0x2e7   :  { %26150 = vmatprep.subr.mxu1 %v34412_v36 }
 0x2e9   :  { %26148 = vmatmul.mubr.msk.f32.vlgmr.msra.gmra.mrb[50].mxu1 %vm941_vm2, %v29251_v22  ;;  %v2943_v61 = vpop.permute.xlu0 %2942 }
 0x2ea   :  { %26151 = vmatpush3.xpose.msk.msra.mxu1 %vm941_vm2, %v2943_v61  ;;  %26152 = vmatprep.mubr.msk.f32.mxu1 %vm28385_vm1, %v34412_v36 }
 0x2eb   :  { %26155 = vmatprep.subr.mxu1 %v34412_v36 }
 0x2ed   :  { %v3020_v27 = vpop.permute.xlu1 %3019  ;;  %26153 = vmatmul.mubr.msk.f32.vlgmr.msra.gmra.mrb[52].mxu1 %vm941_vm2, %v29257_v59 }
 0x2ee   :  { %26156 = vmatpush3.xpose.msk.msra.mxu1 %vm941_vm2, %v3020_v27  ;;  %26157 = vmatprep.mubr.msk.f32.mxu1 %vm28385_vm1, %v34412_v36 }
 0x2ef   :  { %26160 = vmatprep.subr.mxu1 %v34412_v36 }
 0x2f1   :  { %26158 = vmatmul.mubr.msk.f32.vlgmr.msra.gmra.mrb[54].mxu1 %vm941_vm2, %v29263_v54  ;;  %v3097_v30 = vpop.permute.xlu0 %3096 }
 0x2f2   :  { %26161 = vmatpush3.xpose.msk.msra.mxu1 %vm941_vm2, %v3097_v30  ;;  %26162 = vmatprep.mubr.msk.f32.mxu1 %vm28385_vm1, %v34412_v36 }
 0x2f3   :  { %26165 = vmatprep.subr.mxu1 %v34412_v36 }
 0x2f5   :  { %v3174_v61 = vpop.permute.xlu1 %3173  ;;  %26163 = vmatmul.mubr.msk.f32.vlgmr.msra.gmra.mrb[56].mxu1 %vm941_vm2, %v29269_v44 }
 0x2f6   :  { %26166 = vmatpush3.xpose.msk.msra.mxu1 %vm941_vm2, %v3174_v61  ;;  %26167 = vmatprep.mubr.msk.f32.mxu1 %vm28385_vm1, %v34412_v36 }
 0x2f7   :  { %26170 = vmatprep.subr.mxu1 %v34412_v36 }
 0x2f9   :  { %26168 = vmatmul.mubr.msk.f32.vlgmr.msra.gmra.mrb[58].mxu1 %vm941_vm2, %v29277_v43  ;;  %v3251_v27 = vpop.permute.xlu0 %3250 }
 0x2fa   :  { %26171 = vmatpush3.xpose.msk.msra.mxu1 %vm941_vm2, %v3251_v27  ;;  %26172 = vmatprep.mubr.msk.f32.mxu1 %vm28385_vm1, %v34412_v36 }
 0x2fb   :  { %26175 = vmatprep.subr.mxu1 %v34412_v36 }
 0x2fd   :  { %26173 = vmatmul.mubr.msk.f32.vlgmr.msra.gmra.mrb[60].mxu1 %vm941_vm2, %v29289_v46 }
 0x2fe   :  { %v3328_v30 = vpop.permute.xlu1 %3327  ;;  %26177 = vmatprep.mubr.msk.f32.mxu1 %vm28385_vm1, %v34412_v36 }
 0x2ff   :  { %26176 = vmatpush3.xpose.msk.msra.mxu1 %vm941_vm2, %v3328_v30 }
 0x300   :  { %26180 = vmatprep.subr.mxu1 %v34412_v36 }
 0x302   :  { %26178 = vmatmul.mubr.msk.f32.vlgmr.msra.gmra.mrb[62].mxu1 %vm941_vm2, %v29301_v19  ;;  %v29619_v40 = vpop.permute.xlu1 %6206 }
 0x303   :  { %26181 = vmatpush3.msra.mxu1 %v29103_v31  ;;  %26182 = vmatprep.mubr.msk.f32.mxu1 %vm28385_vm1, %v34412_v36  ;;  %34636 = vst [vmem:[#allocation66_spill] sm:$0xff] %v29619_v40 }
 0x304   :  { %26185 = vmatprep.subr.mxu1 %v34412_v36 }
 0x358   :  { %v1012_v61 = vpop.f32.mrb[0].mxu1 }
 0x359   :  { %v29513_v27 = vmul.f32 0.125, %v1012_v61  ;;  %v26024_v30 = vpop.f32.mrb[1].mxu1 }
 0x35b   :  { %v3436_v26 = vsel %vm3435_vm3, %v29513_v27, -inf }
 0x35c   :  { %3437 = vmax.xlane.f32.xlu0 %v3436_v26  ;;  %v1089_v9 = vpop.f32.mrb[2].mxu1 }
 0x35d   :  { %v29517_v25 = vmul.f32 0.125, %v1089_v9  ;;  %v26029_v15 = vpop.f32.mrb[3].mxu1 }
 0x35f   :  { %v3439_v4 = vsel %vm3435_vm3, %v29517_v25, -inf }
 0x360   :  { %3440 = vmax.xlane.f32.xlu1 %v3439_v4  ;;  %v1166_v31 = vpop.f32.mrb[4].mxu1 }
 0x361   :  { %v29521_v46 = vmul.f32 0.125, %v1166_v31  ;;  %v26034_v36 = vpop.f32.mrb[5].mxu1 }
 0x363   :  { %v3442_v61 = vsel %vm3435_vm3, %v29521_v46, -inf }
 0x364   :  { %3443 = vmax.xlane.f32.xlu0 %v3442_v61  ;;  %v1243_v30 = vpop.f32.mrb[6].mxu1 }
 0x365   :  { %v29525_v44 = vmul.f32 0.125, %v1243_v30  ;;  %v26039_v26 = vpop.f32.mrb[7].mxu1 }
 0x367   :  { %v3445_v9 = vsel %vm3435_vm3, %v29525_v44, -inf }
 0x368   :  { %3446 = vmax.xlane.f32.xlu0 %v3445_v9  ;;  %v1320_v15 = vpop.f32.mrb[8].mxu1 }
 0x369   :  { %v29529_v5 = vmul.f32 0.125, %v1320_v15  ;;  %v26044_v4 = vpop.f32.mrb[9].mxu1 }
 0x36b   :  { %v3448_v31 = vsel %vm3435_vm3, %v29529_v5, -inf }
 0x36c   :  { %3449 = vmax.xlane.f32.xlu0 %v3448_v31  ;;  %v1397_v36 = vpop.f32.mrb[10].mxu1 }
 0x36d   :  { %v29533_v59 = vmul.f32 0.125, %v1397_v36  ;;  %v26049_v61 = vpop.f32.mrb[11].mxu1 }
 0x36f   :  { %v3451_v30 = vsel %vm3435_vm3, %v29533_v59, -inf }
 0x370   :  { %3452 = vmax.xlane.f32.xlu1 %v3451_v30  ;;  %v1474_v26 = vpop.f32.mrb[12].mxu1 }
 0x371   :  { %v29537_v45 = vmul.f32 0.125, %v1474_v26  ;;  %v26054_v9 = vpop.f32.mrb[13].mxu1 }
 0x373   :  { %v3454_v15 = vsel %vm3435_vm3, %v29537_v45, -inf }
 0x374   :  { %3455 = vmax.xlane.f32.xlu0 %v3454_v15  ;;  %v1551_v4 = vpop.f32.mrb[14].mxu1 }
 0x375   :  { %v29541_v60 = vmul.f32 0.125, %v1551_v4  ;;  %v26059_v31 = vpop.f32.mrb[15].mxu1 }
 0x377   :  { %v3457_v36 = vsel %vm3435_vm3, %v29541_v60, -inf }
 0x378   :  { %3458 = vmax.xlane.f32.xlu1 %v3457_v36  ;;  %v1628_v61 = vpop.f32.mrb[16].mxu1 }
 0x379   :  { %v29545_v18 = vmul.f32 0.125, %v1628_v61  ;;  %v26064_v30 = vpop.f32.mrb[17].mxu1 }
 0x37b   :  { %v3460_v26 = vsel %vm3435_vm3, %v29545_v18, -inf }
 0x37c   :  { %3461 = vmax.xlane.f32.xlu0 %v3460_v26  ;;  %v1705_v9 = vpop.f32.mrb[18].mxu1 }
 0x37d   :  { %v29549_v11 = vmul.f32 0.125, %v1705_v9  ;;  %v26069_v15 = vpop.f32.mrb[19].mxu1 }
 0x37f   :  { %v3463_v4 = vsel %vm3435_vm3, %v29549_v11, -inf }
 0x380   :  { %3464 = vmax.xlane.f32.xlu1 %v3463_v4  ;;  %v1782_v31 = vpop.f32.mrb[20].mxu1 }
 0x381   :  { %v29553_v12 = vmul.f32 0.125, %v1782_v31  ;;  %v26074_v36 = vpop.f32.mrb[21].mxu1 }
 0x383   :  { %v3466_v61 = vsel %vm3435_vm3, %v29553_v12, -inf }
 0x384   :  { %3467 = vmax.xlane.f32.xlu0 %v3466_v61  ;;  %v1859_v30 = vpop.f32.mrb[22].mxu1 }
 0x385   :  { %v29557_v21 = vmul.f32 0.125, %v1859_v30  ;;  %v26079_v26 = vpop.f32.mrb[23].mxu1 }
 0x387   :  { %v3469_v9 = vsel %vm3435_vm3, %v29557_v21, -inf }
 0x388   :  { %3470 = vmax.xlane.f32.xlu1 %v3469_v9  ;;  %v1936_v15 = vpop.f32.mrb[24].mxu1 }
 0x389   :  { %v29561_v58 = vmul.f32 0.125, %v1936_v15  ;;  %v26084_v4 = vpop.f32.mrb[25].mxu1 }
 0x38b   :  { %v3472_v31 = vsel %vm3435_vm3, %v29561_v58, -inf }
 0x38c   :  { %3473 = vmax.xlane.f32.xlu0 %v3472_v31  ;;  %v2013_v36 = vpop.f32.mrb[26].mxu1 }
 0x38d   :  { %v29565_v35 = vmul.f32 0.125, %v2013_v36  ;;  %v26089_v61 = vpop.f32.mrb[27].mxu1 }
 0x38f   :  { %v3475_v30 = vsel %vm3435_vm3, %v29565_v35, -inf }
 0x390   :  { %3476 = vmax.xlane.f32.xlu1 %v3475_v30  ;;  %v2090_v26 = vpop.f32.mrb[28].mxu1 }
 0x391   :  { %v29569_v7 = vmul.f32 0.125, %v2090_v26  ;;  %v26094_v9 = vpop.f32.mrb[29].mxu1 }
 0x393   :  { %v3478_v15 = vsel %vm3435_vm3, %v29569_v7, -inf }
 0x394   :  { %3479 = vmax.xlane.f32.xlu0 %v3478_v15  ;;  %v2167_v4 = vpop.f32.mrb[30].mxu1 }
 0x395   :  { %v29573_v55 = vmul.f32 0.125, %v2167_v4  ;;  %v26099_v31 = vpop.f32.mrb[31].mxu1 }
 0x397   :  { %v3481_v36 = vsel %vm3435_vm3, %v29573_v55, -inf }
 0x398   :  { %3482 = vmax.xlane.f32.xlu1 %v3481_v36  ;;  %v2244_v61 = vpop.f32.mrb[32].mxu1 }
 0x399   :  { %v29577_v6 = vmul.f32 0.125, %v2244_v61  ;;  %v26104_v30 = vpop.f32.mrb[33].mxu1 }
 0x39b   :  { %v3484_v26 = vsel %vm3435_vm3, %v29577_v6, -inf }
 0x39c   :  { %3485 = vmax.xlane.f32.xlu0 %v3484_v26  ;;  %v2321_v9 = vpop.f32.mrb[34].mxu1 }
 0x39d   :  { %v29581_v51 = vmul.f32 0.125, %v2321_v9  ;;  %v26109_v15 = vpop.f32.mrb[35].mxu1 }
 0x39f   :  { %v3487_v4 = vsel %vm3435_vm3, %v29581_v51, -inf }
 0x3a0   :  { %3488 = vmax.xlane.f32.xlu1 %v3487_v4  ;;  %v2398_v31 = vpop.f32.mrb[36].mxu1 }
 0x3a1   :  { %v29585_v23 = vmul.f32 0.125, %v2398_v31  ;;  %v26114_v36 = vpop.f32.mrb[37].mxu1 }
 0x3a3   :  { %v3490_v61 = vsel %vm3435_vm3, %v29585_v23, -inf }
 0x3a4   :  { %3491 = vmax.xlane.f32.xlu0 %v3490_v61  ;;  %v2475_v30 = vpop.f32.mrb[38].mxu1 }
 0x3a5   :  { %v29589_v19 = vmul.f32 0.125, %v2475_v30  ;;  %v26119_v26 = vpop.f32.mrb[39].mxu1 }
 0x3a7   :  { %v3493_v9 = vsel %vm3435_vm3, %v29589_v19, -inf }
 0x3a8   :  { %3494 = vmax.xlane.f32.xlu1 %v3493_v9  ;;  %v2552_v15 = vpop.f32.mrb[40].mxu1 }
 0x3a9   :  { %v29593_v42 = vmul.f32 0.125, %v2552_v15  ;;  %v26124_v4 = vpop.f32.mrb[41].mxu1 }
 0x3ab   :  { %v3496_v31 = vsel %vm3435_vm3, %v29593_v42, -inf }
 0x3ac   :  { %3497 = vmax.xlane.f32.xlu0 %v3496_v31  ;;  %v2629_v36 = vpop.f32.mrb[42].mxu1 }
 0x3ad   :  { %v29597_v43 = vmul.f32 0.125, %v2629_v36  ;;  %v26129_v61 = vpop.f32.mrb[43].mxu1 }
 0x3af   :  { %v3499_v30 = vsel %vm3435_vm3, %v29597_v43, -inf }
 0x3b0   :  { %3500 = vmax.xlane.f32.xlu1 %v3499_v30  ;;  %v2706_v26 = vpop.f32.mrb[44].mxu1 }
 0x3b1   :  { %v29601_v16 = vmul.f32 0.125, %v2706_v26  ;;  %v26134_v9 = vpop.f32.mrb[45].mxu1 }
 0x3b3   :  { %v3502_v15 = vsel %vm3435_vm3, %v29601_v16, -inf }
 0x3b4   :  { %3503 = vmax.xlane.f32.xlu0 %v3502_v15  ;;  %v2783_v4 = vpop.f32.mrb[46].mxu1 }
 0x3b5   :  { %v29605_v54 = vmul.f32 0.125, %v2783_v4  ;;  %v26139_v31 = vpop.f32.mrb[47].mxu1 }
 0x3b7   :  { %v3505_v36 = vsel %vm3435_vm3, %v29605_v54, -inf }
 0x3b8   :  { %3506 = vmax.xlane.f32.xlu1 %v3505_v36  ;;  %v2860_v61 = vpop.f32.mrb[48].mxu1 }
 0x3b9   :  { %v29609_v37 = vmul.f32 0.125, %v2860_v61  ;;  %v26144_v30 = vpop.f32.mrb[49].mxu1 }
 0x3bb   :  { %v3508_v26 = vsel %vm3435_vm3, %v29609_v37, -inf }
 0x3bc   :  { %3509 = vmax.xlane.f32.xlu0 %v3508_v26  ;;  %v2937_v9 = vpop.f32.mrb[50].mxu1  ;;  %v29623_v26 = vpop.permute.xlu0 %6128 }
 0x3bd   :  { %v29613_v22 = vmul.f32 0.125, %v2937_v9  ;;  %v26149_v15 = vpop.f32.mrb[51].mxu1  ;;  %34637 = vst [vmem:[#allocation67_spill] sm:$0xff] %v29623_v26 }
 0x3bf   :  { %v3511_v4 = vsel %vm3435_vm3, %v29613_v22, -inf }
 0x3c0   :  { %3512 = vmax.xlane.f32.xlu1 %v3511_v4  ;;  %v3014_v31 = vpop.f32.mrb[52].mxu1  ;;  %v29633_v3 = vpop.permute.xlu0 %6284 }
 0x3c1   :  { %v29617_v20 = vmul.f32 0.125, %v3014_v31  ;;  %v26154_v36 = vpop.f32.mrb[53].mxu1  ;;  %v29629_v31 = vpop.permute.xlu1 %6126  ;;  %34639 = vst [vmem:[#allocation69_spill] sm:$0xff] %v29633_v3 }
 0x3c2   :  { %34638 = vst [vmem:[#allocation68_spill] sm:$0xff] %v29629_v31 }
 0x3c3   :  { %v3514_v61 = vsel %vm3435_vm3, %v29617_v20, -inf }
 0x3c4   :  { %3515 = vmax.xlane.f32.xlu0 %v3514_v61  ;;  %v3091_v30 = vpop.f32.mrb[54].mxu1 }
 0x3c5   :  { %v29625_v9 = vmul.f32 0.125, %v3091_v30  ;;  %v26159_v15 = vpop.f32.mrb[55].mxu1  ;;  %v29639_v10 = vpop.permute.xlu1 %6204 }
 0x3c6   :  { %34640 = vst [vmem:[#allocation70_spill] sm:$0xff] %v29639_v10 }
 0x3c7   :  { %v3517_v34 = vsel %vm3435_vm3, %v29625_v9, -inf }
 0x3c8   :  { %3518 = vmax.xlane.f32.xlu1 %v3517_v34  ;;  %v3168_v4 = vpop.f32.mrb[56].mxu1 }
 0x3c9   :  { %v29631_v36 = vmul.f32 0.125, %v3168_v4  ;;  %v26164_v40 = vpop.f32.mrb[57].mxu1  ;;  %v29643_v4 = vpop.permute.xlu0 %6282 }
 0x3ca   :  { %34641 = vst [vmem:[#allocation71_spill] sm:$0xff] %v29643_v4 }
 0x3cb   :  { %v3520_v61 = vsel %vm3435_vm3, %v29631_v36, -inf }
 0x3cc   :  { %3521 = vmax.xlane.f32.xlu0 %v3520_v61  ;;  %v3245_v26 = vpop.f32.mrb[58].mxu1 }
 0x3cd   :  { %v29637_v30 = vmul.f32 0.125, %v3245_v26  ;;  %v26169_v15 = vpop.f32.mrb[59].mxu1  ;;  %v29649_v26 = vpop.permute.xlu1 %6362 }
 0x3ce   :  { %34642 = vst [vmem:[#allocation72_spill] sm:$0xff] %v29649_v26  ;;  %v29653_v49 = vpop.permute.xlu0 %6440 }
 0x3cf   :  { %v3523_v34 = vsel %vm3435_vm3, %v29637_v30, -inf  ;;  %34643 = vst [vmem:[#allocation73_spill] sm:$0xff] %v29653_v49 }
 0x3d0   :  { %3524 = vmax.xlane.f32.xlu1 %v3523_v34  ;;  %v3322_v31 = vpop.f32.mrb[60].mxu1 }
 0x3d1   :  { %v29645_v40 = vmul.f32 0.125, %v3322_v31  ;;  %v26174_v3 = vpop.f32.mrb[61].mxu1  ;;  %v29657_v4 = vpop.permute.xlu1 %6360 }
 0x3d2   :  { %34644 = vst [vmem:[#allocation74_spill] sm:$0xff] %v29657_v4  ;;  %v29659_v31 = vpop.permute.xlu0 %6438 }
 0x3d3   :  { %v3526_v47 = vsel %vm3435_vm3, %v29645_v40, -inf  ;;  %34645 = vst [vmem:[#allocation75_spill] sm:$0xff] %v29659_v31 }
 0x3d4   :  { %3527 = vmax.xlane.f32.xlu0 %v3526_v47 }
 0x3d5   :  { %v3399_v61 = vpop.f32.mrb[62].mxu1  ;;  %v29661_v3 = vpop.permute.xlu1 %6518 }
 0x3d6   :  { %v29651_v15 = vmul.f32 0.125, %v3399_v61  ;;  %v26179_v10 = vpop.f32.mrb[63].mxu1  ;;  %34646 = vst [vmem:[#allocation76_spill] sm:$0xff] %v29661_v3  ;;  %v29663_v50 = vpop.permute.xlu0 %6596 }
 0x3d7   :  { %34647 = vst [vmem:[#allocation77_spill] sm:$0xff] %v29663_v50 }
 0x3d8   :  { %v3529_v34 = vsel %vm3435_vm3, %v29651_v15, -inf }
 0x3d9   :  { %3530 = vmax.xlane.f32.xlu1 %v3529_v34  ;;  %v29665_v47 = vpop.permute.xlu1 %6516 }
 0x3da   :  { %34648 = vst [vmem:[#allocation78_spill] sm:$0xff] %v29665_v47 }
 0x3e9   :  { %v3438_v26 = vpop.xlane.xlu0 %3437 }
 0x3ea   :  { %v3532_v61 = vsub.f32 %v29513_v27, %v3438_v26 }
 0x3ec   :  { %v3564_v10 = vmul.f32 1.442695, %v3532_v61 }
 0x3ed   :  { %v3441_v32 = vpop.xlane.xlu1 %3440 }
 0x3ee   :  { %27776 = vpow2.f32 %v3564_v10  ;;  %v3533_v49 = vsub.f32 %v29517_v25, %v3441_v32 }
 0x3f0   :  { %v3566_v63 = vmul.f32 1.442695, %v3533_v49 }
 0x3f1   :  { %v3444_v34 = vpop.xlane.xlu0 %3443 }
 0x3f2   :  { %27778 = vpow2.f32 %v3566_v63  ;;  %v3534_v4 = vsub.f32 %v29521_v46, %v3444_v34 }
 0x3f4   :  { %v3568_v31 = vmul.f32 1.442695, %v3534_v4 }
 0x3f5   :  { %v3447_v56 = vpop.xlane.xlu0 %3446 }
 0x3f6   :  { %27780 = vpow2.f32 %v3568_v31  ;;  %v3535_v50 = vsub.f32 %v29525_v44, %v3447_v56 }
 0x3f8   :  { %v29671_v3 = vpop.eup %27776  ;;  %v3570_v47 = vmul.f32 1.442695, %v3535_v50 }
 0x3f9   :  { %v3628_v27 = vsel %vm3435_vm3, %v29671_v3, 0.0  ;;  %v3450_v26 = vpop.xlane.xlu0 %3449 }
 0x3fa   :  { %3629 = vadd.xlane.f32.xlu0 %v3628_v27  ;;  %27782 = vpow2.f32 %v3570_v47  ;;  %v3536_v25 = vsub.f32 %v29529_v5, %v3450_v26 }
 0x3fc   :  { %v29676_v63 = vpop.eup %27778  ;;  %v3572_v32 = vmul.f32 1.442695, %v3536_v25 }
 0x3fd   :  { %v3631_v49 = vsel %vm3435_vm3, %v29676_v63, 0.0  ;;  %v3453_v46 = vpop.xlane.xlu1 %3452 }
 0x3fe   :  { %3632 = vadd.xlane.f32.xlu1 %v3631_v49  ;;  %27784 = vpow2.f32 %v3572_v32  ;;  %v3537_v56 = vsub.f32 %v29533_v59, %v3453_v46 }
 0x400   :  { %v29681_v50 = vpop.eup %27780  ;;  %v3574_v44 = vmul.f32 1.442695, %v3537_v56 }
 0x401   :  { %v3456_v4 = vpop.xlane.xlu0 %3455  ;;  %v3634_v31 = vsel %vm3435_vm3, %v29681_v50, 0.0 }
 0x402   :  { %27786 = vpow2.f32 %v3574_v44  ;;  %v3538_v5 = vsub.f32 %v29537_v45, %v3456_v4  ;;  %3635 = vadd.xlane.f32.xlu0 %v3634_v31 }
 0x404   :  { %v29686_v47 = vpop.eup %27782  ;;  %v3576_v61 = vmul.f32 1.442695, %v3538_v5 }
 0x405   :  { %v3637_v10 = vsel %vm3435_vm3, %v29686_v47, 0.0  ;;  %v3459_v34 = vpop.xlane.xlu1 %3458 }
 0x406   :  { %27788 = vpow2.f32 %v3576_v61  ;;  %3638 = vadd.xlane.f32.xlu1 %v3637_v10  ;;  %v3539_v59 = vsub.f32 %v29541_v60, %v3459_v34 }
 0x408   :  { %v29691_v27 = vpop.eup %27784  ;;  %v3578_v26 = vmul.f32 1.442695, %v3539_v59 }
 0x409   :  { %v3640_v25 = vsel %vm3435_vm3, %v29691_v27, 0.0  ;;  %v3462_v32 = vpop.xlane.xlu0 %3461 }
 0x40a   :  { %3641 = vadd.xlane.f32.xlu0 %v3640_v25  ;;  %27790 = vpow2.f32 %v3578_v26  ;;  %v3540_v45 = vsub.f32 %v29545_v18, %v3462_v32 }
 0x40c   :  { %v29696_v49 = vpop.eup %27786  ;;  %v3580_v46 = vmul.f32 1.442695, %v3540_v45 }
 0x40d   :  { %v3643_v56 = vsel %vm3435_vm3, %v29696_v49, 0.0  ;;  %v3465_v44 = vpop.xlane.xlu1 %3464 }
 0x40e   :  { %3644 = vadd.xlane.f32.xlu1 %v3643_v56  ;;  %27792 = vpow2.f32 %v3580_v46  ;;  %v3541_v60 = vsub.f32 %v29549_v11, %v3465_v44 }
 0x410   :  { %v29701_v4 = vpop.eup %27788  ;;  %v3582_v31 = vmul.f32 1.442695, %v3541_v60 }
 0x411   :  { %v3646_v5 = vsel %vm3435_vm3, %v29701_v4, 0.0  ;;  %v3468_v61 = vpop.xlane.xlu0 %3467 }
 0x412   :  { %3647 = vadd.xlane.f32.xlu0 %v3646_v5  ;;  %27794 = vpow2.f32 %v3582_v31  ;;  %v3542_v18 = vsub.f32 %v29553_v12, %v3468_v61 }
 0x414   :  { %v29706_v10 = vpop.eup %27790  ;;  %v3584_v34 = vmul.f32 1.442695, %v3542_v18 }
 0x415   :  { %v3471_v59 = vpop.xlane.xlu1 %3470  ;;  %v3649_v26 = vsel %vm3435_vm3, %v29706_v10, 0.0 }
 0x416   :  { %27796 = vpow2.f32 %v3584_v34  ;;  %v3543_v11 = vsub.f32 %v29557_v21, %v3471_v59  ;;  %3650 = vadd.xlane.f32.xlu1 %v3649_v26 }
 0x418   :  { %v29711_v25 = vpop.eup %27792  ;;  %v3586_v32 = vmul.f32 1.442695, %v3543_v11 }
 0x419   :  { %v3474_v45 = vpop.xlane.xlu0 %3473  ;;  %v3652_v46 = vsel %vm3435_vm3, %v29711_v25, 0.0 }
 0x41a   :  { %27798 = vpow2.f32 %v3586_v32  ;;  %v3544_v12 = vsub.f32 %v29561_v58, %v3474_v45  ;;  %3653 = vadd.xlane.f32.xlu0 %v3652_v46 }
 0x41c   :  { %v29716_v56 = vpop.eup %27794  ;;  %v3588_v44 = vmul.f32 1.442695, %v3544_v12 }
 0x41d   :  { %v3477_v60 = vpop.xlane.xlu1 %3476  ;;  %v3655_v31 = vsel %vm3435_vm3, %v29716_v56, 0.0 }
 0x41e   :  { %27800 = vpow2.f32 %v3588_v44  ;;  %v3545_v21 = vsub.f32 %v29565_v35, %v3477_v60  ;;  %3656 = vadd.xlane.f32.xlu1 %v3655_v31 }
 0x420   :  { %v29721_v5 = vpop.eup %27796  ;;  %v3590_v61 = vmul.f32 1.442695, %v3545_v21 }
 0x421   :  { %v3480_v18 = vpop.xlane.xlu0 %3479  ;;  %v3658_v34 = vsel %vm3435_vm3, %v29721_v5, 0.0 }
 0x422   :  { %27802 = vpow2.f32 %v3590_v61  ;;  %v3546_v58 = vsub.f32 %v29569_v7, %v3480_v18  ;;  %3659 = vadd.xlane.f32.xlu0 %v3658_v34 }
 0x424   :  { %v29726_v59 = vpop.eup %27798  ;;  %v3592_v26 = vmul.f32 1.442695, %v3546_v58 }
 0x425   :  { %v3483_v11 = vpop.xlane.xlu1 %3482  ;;  %v3661_v32 = vsel %vm3435_vm3, %v29726_v59, 0.0 }
 0x426   :  { %27804 = vpow2.f32 %v3592_v26  ;;  %v3547_v35 = vsub.f32 %v29573_v55, %v3483_v11  ;;  %3662 = vadd.xlane.f32.xlu1 %v3661_v32 }
 0x428   :  { %v29731_v45 = vpop.eup %27800  ;;  %v3594_v46 = vmul.f32 1.442695, %v3547_v35 }
 0x429   :  { %v3486_v12 = vpop.xlane.xlu0 %3485  ;;  %v3664_v44 = vsel %vm3435_vm3, %v29731_v45, 0.0 }
 0x42a   :  { %27806 = vpow2.f32 %v3594_v46  ;;  %v3548_v7 = vsub.f32 %v29577_v6, %v3486_v12  ;;  %3665 = vadd.xlane.f32.xlu0 %v3664_v44 }
 0x42c   :  { %v29736_v60 = vpop.eup %27802  ;;  %v3596_v31 = vmul.f32 1.442695, %v3548_v7 }
 0x42d   :  { %v3489_v21 = vpop.xlane.xlu1 %3488  ;;  %v3667_v61 = vsel %vm3435_vm3, %v29736_v60, 0.0 }
 0x42e   :  { %27808 = vpow2.f32 %v3596_v31  ;;  %v3549_v55 = vsub.f32 %v29581_v51, %v3489_v21  ;;  %3668 = vadd.xlane.f32.xlu1 %v3667_v61 }
 0x430   :  { %v29741_v18 = vpop.eup %27804  ;;  %v3598_v34 = vmul.f32 1.442695, %v3549_v55 }
 0x431   :  { %v3492_v58 = vpop.xlane.xlu0 %3491  ;;  %v3670_v26 = vsel %vm3435_vm3, %v29741_v18, 0.0 }
 0x432   :  { %27810 = vpow2.f32 %v3598_v34  ;;  %v3550_v6 = vsub.f32 %v29585_v23, %v3492_v58  ;;  %3671 = vadd.xlane.f32.xlu0 %v3670_v26 }
 0x434   :  { %v29746_v11 = vpop.eup %27806  ;;  %v3600_v32 = vmul.f32 1.442695, %v3550_v6 }
 0x435   :  { %v3495_v35 = vpop.xlane.xlu1 %3494  ;;  %v3673_v46 = vsel %vm3435_vm3, %v29746_v11, 0.0 }
 0x436   :  { %27812 = vpow2.f32 %v3600_v32  ;;  %v3551_v51 = vsub.f32 %v29589_v19, %v3495_v35  ;;  %3674 = vadd.xlane.f32.xlu1 %v3673_v46 }
 0x438   :  { %v29751_v12 = vpop.eup %27808  ;;  %v3602_v44 = vmul.f32 1.442695, %v3551_v51 }
 0x439   :  { %v3498_v7 = vpop.xlane.xlu0 %3497  ;;  %v3676_v31 = vsel %vm3435_vm3, %v29751_v12, 0.0 }
 0x43a   :  { %27814 = vpow2.f32 %v3602_v44  ;;  %v3552_v23 = vsub.f32 %v29593_v42, %v3498_v7  ;;  %3677 = vadd.xlane.f32.xlu0 %v3676_v31 }
 0x43c   :  { %v29756_v21 = vpop.eup %27810  ;;  %v3604_v61 = vmul.f32 1.442695, %v3552_v23 }
 0x43d   :  { %v3501_v55 = vpop.xlane.xlu1 %3500  ;;  %v3679_v34 = vsel %vm3435_vm3, %v29756_v21, 0.0 }
 0x43e   :  { %27816 = vpow2.f32 %v3604_v61  ;;  %v3553_v19 = vsub.f32 %v29597_v43, %v3501_v55  ;;  %3680 = vadd.xlane.f32.xlu1 %v3679_v34 }
 0x440   :  { %v29761_v58 = vpop.eup %27812  ;;  %v3606_v26 = vmul.f32 1.442695, %v3553_v19 }
 0x441   :  { %v3504_v6 = vpop.xlane.xlu0 %3503  ;;  %v3682_v32 = vsel %vm3435_vm3, %v29761_v58, 0.0 }
 0x442   :  { %27818 = vpow2.f32 %v3606_v26  ;;  %v3554_v42 = vsub.f32 %v29601_v16, %v3504_v6  ;;  %3683 = vadd.xlane.f32.xlu0 %v3682_v32 }
 0x444   :  { %v29766_v35 = vpop.eup %27814  ;;  %v3608_v46 = vmul.f32 1.442695, %v3554_v42 }
 0x445   :  { %v3507_v51 = vpop.xlane.xlu1 %3506  ;;  %v3685_v44 = vsel %vm3435_vm3, %v29766_v35, 0.0 }
 0x446   :  { %27820 = vpow2.f32 %v3608_v46  ;;  %v3555_v43 = vsub.f32 %v29605_v54, %v3507_v51  ;;  %3686 = vadd.xlane.f32.xlu1 %v3685_v44 }
 0x448   :  { %v29771_v7 = vpop.eup %27816  ;;  %v3610_v31 = vmul.f32 1.442695, %v3555_v43 }
 0x449   :  { %v3510_v23 = vpop.xlane.xlu0 %3509  ;;  %v3688_v61 = vsel %vm3435_vm3, %v29771_v7, 0.0 }
 0x44a   :  { %27822 = vpow2.f32 %v3610_v31  ;;  %v3556_v16 = vsub.f32 %v29609_v37, %v3510_v23  ;;  %3689 = vadd.xlane.f32.xlu0 %v3688_v61 }
 0x44c   :  { %v29776_v55 = vpop.eup %27818  ;;  %v3612_v34 = vmul.f32 1.442695, %v3556_v16 }
 0x44d   :  { %v3513_v19 = vpop.xlane.xlu1 %3512  ;;  %v3691_v26 = vsel %vm3435_vm3, %v29776_v55, 0.0 }
 0x44e   :  { %27824 = vpow2.f32 %v3612_v34  ;;  %v3557_v54 = vsub.f32 %v29613_v22, %v3513_v19  ;;  %3692 = vadd.xlane.f32.xlu1 %v3691_v26 }
 0x450   :  { %v29781_v6 = vpop.eup %27820  ;;  %v3614_v32 = vmul.f32 1.442695, %v3557_v54 }
 0x451   :  { %v3516_v42 = vpop.xlane.xlu0 %3515  ;;  %v3694_v46 = vsel %vm3435_vm3, %v29781_v6, 0.0 }
 0x452   :  { %27826 = vpow2.f32 %v3614_v32  ;;  %v3558_v37 = vsub.f32 %v29617_v20, %v3516_v42  ;;  %3695 = vadd.xlane.f32.xlu0 %v3694_v46 }
 0x454   :  { %v29786_v51 = vpop.eup %27822  ;;  %v3616_v44 = vmul.f32 1.442695, %v3558_v37 }
 0x455   :  { %v3519_v43 = vpop.xlane.xlu1 %3518  ;;  %v3697_v31 = vsel %vm3435_vm3, %v29786_v51, 0.0 }
 0x456   :  { %27828 = vpow2.f32 %v3616_v44  ;;  %v3559_v22 = vsub.f32 %v29625_v9, %v3519_v43  ;;  %3698 = vadd.xlane.f32.xlu1 %v3697_v31 }
 0x458   :  { %v29791_v23 = vpop.eup %27824  ;;  %v3618_v61 = vmul.f32 1.442695, %v3559_v22 }
 0x459   :  { %v3522_v16 = vpop.xlane.xlu0 %3521  ;;  %v3700_v34 = vsel %vm3435_vm3, %v29791_v23, 0.0 }
 0x45a   :  { %27830 = vpow2.f32 %v3618_v61  ;;  %v3560_v20 = vsub.f32 %v29631_v36, %v3522_v16  ;;  %3701 = vadd.xlane.f32.xlu0 %v3700_v34 }
 0x45c   :  { %v29796_v19 = vpop.eup %27826  ;;  %v3620_v26 = vmul.f32 1.442695, %v3560_v20 }
 0x45d   :  { %v3525_v54 = vpop.xlane.xlu1 %3524  ;;  %v3703_v32 = vsel %vm3435_vm3, %v29796_v19, 0.0 }
 0x45e   :  { %27832 = vpow2.f32 %v3620_v26  ;;  %v3561_v9 = vsub.f32 %v29637_v30, %v3525_v54  ;;  %3704 = vadd.xlane.f32.xlu1 %v3703_v32 }
 0x460   :  { %v29801_v42 = vpop.eup %27828  ;;  %v3622_v46 = vmul.f32 1.442695, %v3561_v9 }
 0x461   :  { %v3706_v37 = vsel %vm3435_vm3, %v29801_v42, 0.0  ;;  %v3528_v61 = vpop.xlane.xlu0 %3527 }
 0x462   :  { %27834 = vpow2.f32 %v3622_v46  ;;  %3707 = vadd.xlane.f32.xlu0 %v3706_v37  ;;  %v3562_v20 = vsub.f32 %v29645_v40, %v3528_v61  ;;  %v34649_v40 = vmov 0.0  }
 0x464   :  { %v29805_v36 = vpop.eup %27830  ;;  %v3624_v54 = vmul.f32 1.442695, %v3562_v20 }
 0x465   :  { %v3709_v44 = vsel %vm3435_vm3, %v29805_v36, 0.0 }
 0x466   :  { %3710 = vadd.xlane.f32.xlu1 %v3709_v44  ;;  %v3531_v16 = vpop.xlane.xlu1 %3530 }
 0x467   :  { %v3563_v32 = vsub.f32 %v29651_v15, %v3531_v16 }
 0x468   :  { %v29809_v43 = vpop.eup %27832 }
 0x469   :  { %v3712_v30 = vsel %vm3435_vm3, %v29809_v43, 0.0  ;;  %v3626_v37 = vmul.f32 1.442695, %v3563_v32 }
 0x46a   :  { %3713 = vadd.xlane.f32.xlu0 %v3712_v30 }
 0x46c   :  { %v29813_v31 = vpop.eup %27834 }
 0x46d   :  { %v3715_v22 = vsel %vm3435_vm3, %v29813_v31, 0.0 }
 0x46e   :  { %3716 = vadd.xlane.f32.xlu1 %v3715_v22 }
 0x47f   :  { %6674 = vrot.lane.b32.xlu1 %v29143_v13, %s28387_s2 }
 0x480   :  { %6594 = vrot.lane.b32.xlu0 %v29137_v29, %s28388_s30 }
 0x487   :  { %v3630_v34 = vpop.xlane.xlu0 %3629 }
 0x488   :  { %27836 = vrcp.f32 %v3630_v34 }
 0x48b   :  { %v3633_v26 = vpop.xlane.xlu1 %3632 }
 0x48c   :  { %27838 = vrcp.f32 %v3633_v26 }
 0x48f   :  { %v3636_v9 = vpop.xlane.xlu0 %3635 }
 0x490   :  { %27840 = vrcp.f32 %v3636_v9 }
 0x491   :  { %27842 = vpow2.f32 %v3624_v54 }
 0x492   :  { %v27837_v46 = vpop.eup %27836 }
 0x493   :  { %v3756_v44 = vmul.f32 %v27837_v46, %v29671_v3  ;;  %v3639_v30 = vpop.xlane.xlu1 %3638 }
 0x494   :  { %27844 = vrcp.f32 %v3639_v30 }
 0x495   :  { %26183 = vmatmul.mubr.msk.f32.vlgmr.msra.gmra.mrb[64].mxu1 %vm3435_vm3, %v3756_v44  ;;  %27846 = vpow2.f32 %v3626_v37 }
 0x496   :  { %v27839_v22 = vpop.eup %27838  ;;  %26186 = vmatpush3.msra.mxu1 %v29109_v52  ;;  %26187 = vmatprep.mubr.msk.f32.mxu1 %vm28385_vm1, %v34649_v40 }
 0x497   :  { %26190 = vmatprep.subr.mxu1 %v34649_v40  ;;  %v3757_v15 = vmul.f32 %v27839_v22, %v29676_v63  ;;  %v3642_v61 = vpop.xlane.xlu0 %3641 }
 0x498   :  { %27848 = vrcp.f32 %v3642_v61 }
 0x499   :  { %26188 = vmatmul.mubr.msk.f32.vlgmr.msra.gmra.mrb[66].mxu1 %vm3435_vm3, %v3757_v15 }
 0x49a   :  { %26191 = vmatpush3.msra.mxu1 %v29115_v62  ;;  %26192 = vmatprep.mubr.msk.f32.mxu1 %vm28385_vm1, %v34649_v40  ;;  %v27841_v3 = vpop.eup %27840 }
 0x49b   :  { %26200 = vmatprep.subr.mxu1 %v34649_v40  ;;  %v3645_v16 = vpop.xlane.xlu1 %3644  ;;  %v3758_v34 = vmul.f32 %v27841_v3, %v29681_v50  ;;  %v29836_v20 = vpop.eup %27842 }
 0x49c   :  { %27850 = vrcp.f32 %v3645_v16  ;;  %v3718_v54 = vsel %vm3435_vm3, %v29836_v20, 0.0 }
 0x49d   :  { %26193 = vmatmul.mubr.msk.f32.vlgmr.msra.gmra.mrb[68].mxu1 %vm3435_vm3, %v3758_v34 }
 0x49e   :  { %v27845_v63 = vpop.eup %27844  ;;  %26201 = vmatpush3.msra.mxu1 %v29129_v8  ;;  %26202 = vmatprep.mubr.msk.f32.mxu1 %vm28385_vm1, %v34649_v40 }
 0x49f   :  { %v3759_v26 = vmul.f32 %v27845_v63, %v29686_v47  ;;  %v3648_v32 = vpop.xlane.xlu0 %3647  ;;  %26210 = vmatprep.subr.mxu1 %v34649_v40  ;;  %v29846_v50 = vpop.eup %27846  ;;  %3719 = vadd.xlane.f32.xlu0 %v3718_v54 }
 0x4a0   :  { %27852 = vrcp.f32 %v3648_v32  ;;  %v3721_v47 = vsel %vm3435_vm3, %v29846_v50, 0.0 }
 0x4a1   :  { %26198 = vmatmul.mubr.msk.f32.vlgmr.msra.gmra.mrb[64].mxu0 %vm3435_vm3, %v3759_v26 }
 0x4a2   :  { %v27849_v9 = vpop.eup %27848  ;;  %26206 = vmatpush3.msra.mxu0 %v29135_v0  ;;  %26207 = vmatprep.mubr.msk.f32.mxu0 %vm28385_vm1, %v34649_v40 }
 0x4a3   :  { %v3760_v46 = vmul.f32 %v27849_v9, %v29691_v27  ;;  %26215 = vmatprep.subr.mxu0 %v34649_v40  ;;  %3722 = vadd.xlane.f32.xlu1 %v3721_v47  ;;  %v3651_v37 = vpop.xlane.xlu1 %3650 }
 0x4a4   :  { %27854 = vrcp.f32 %v3651_v37 }
 0x4a5   :  { %26203 = vmatmul.mubr.msk.f32.vlgmr.msra.gmra.mrb[70].mxu1 %vm3435_vm3, %v3760_v46 }
 0x4a6   :  { %v27851_v44 = vpop.eup %27850  ;;  %26211 = vmatpush3.msra.mxu1 %v29141_v1  ;;  %26212 = vmatprep.mubr.msk.f32.mxu1 %vm28385_vm1, %v34649_v40 }
 0x4a7   :  { %v3761_v30 = vmul.f32 %v27851_v44, %v29696_v49  ;;  %26220 = vmatprep.subr.mxu1 %v34649_v40  ;;  %v3654_v22 = vpop.xlane.xlu0 %3653 }
 0x4a8   :  { %27856 = vrcp.f32 %v3654_v22 }
 0x4a9   :  { %26208 = vmatmul.mubr.msk.f32.vlgmr.msra.gmra.mrb[66].mxu0 %vm3435_vm3, %v3761_v30  ;;  %v34650_v30 = vld [vmem:[#allocation31_spill] sm:$0xff] }
 0x4aa   :  { %v27853_v27 = vpop.eup %27852  ;;  %26216 = vmatpush3.msra.mxu0 %v29147_v14  ;;  %26217 = vmatprep.mubr.msk.f32.mxu0 %vm28385_vm1, %v34649_v40 }
 0x4ab   :  { %v3762_v15 = vmul.f32 %v27853_v27, %v29701_v4  ;;  %26225 = vmatprep.subr.mxu0 %v34649_v40  ;;  %v3657_v61 = vpop.xlane.xlu1 %3656  ;;  %v34651_v27 = vld [vmem:[#allocation32_spill] sm:$0xff] }
 0x4ac   :  { %27858 = vrcp.f32 %v3657_v61  ;;  %v34652_v61 = vld [vmem:[#allocation33_spill] sm:$0xff] }
 0x4ad   :  { %26213 = vmatmul.mubr.msk.f32.vlgmr.msra.gmra.mrb[72].mxu1 %vm3435_vm3, %v3762_v15 }
 0x4ae   :  { %26221 = vmatpush3.msra.mxu1 %v29153_v39  ;;  %26222 = vmatprep.mubr.msk.f32.mxu1 %vm28385_vm1, %v34649_v40  ;;  %v27855_v49 = vpop.eup %27854 }
 0x4af   :  { %26230 = vmatprep.subr.mxu1 %v34649_v40  ;;  %v3660_v3 = vpop.xlane.xlu0 %3659  ;;  %v3763_v16 = vmul.f32 %v27855_v49, %v29706_v10 }
 0x4b0   :  { %27860 = vrcp.f32 %v3660_v3  ;;  %v34653_v3 = vld [vmem:[#allocation36_spill] sm:$0xff] }
 0x4b1   :  { %26218 = vmatmul.mubr.msk.f32.vlgmr.msra.gmra.mrb[68].mxu0 %vm3435_vm3, %v3763_v16 }
 0x4b2   :  { %v27857_v4 = vpop.eup %27856  ;;  %26226 = vmatpush3.msra.mxu0 %v29159_v38  ;;  %26227 = vmatprep.mubr.msk.f32.mxu0 %vm28385_vm1, %v34649_v40 }
 0x4b3   :  { %v3663_v34 = vpop.xlane.xlu1 %3662  ;;  %v3764_v63 = vmul.f32 %v27857_v4, %v29711_v25  ;;  %26235 = vmatprep.subr.mxu0 %v34649_v40  ;;  %v34654_v4 = vld [vmem:[#allocation35_spill] sm:$0xff] }
 0x4b4   :  { %27862 = vrcp.f32 %v3663_v34  ;;  %6672 = vrot.lane.b32.xlu1 %v29143_v13, %s28388_s30 }
 0x4b5   :  { %6752 = vrot.lane.b32.xlu0 %v29149_v48, %s28387_s2  ;;  %26223 = vmatmul.mubr.msk.f32.vlgmr.msra.gmra.mrb[74].mxu1 %vm3435_vm3, %v3764_v63  ;;  %v34655_v63 = vld [vmem:[#allocation40_spill] sm:$0xff] }
 0x4b6   :  { %v27859_v10 = vpop.eup %27858  ;;  %26231 = vmatpush3.msra.mxu1 %v29165_v24  ;;  %26232 = vmatprep.mubr.msk.f32.mxu1 %vm28385_vm1, %v34649_v40 }
 0x4b7   :  { %v3666_v26 = vpop.xlane.xlu0 %3665  ;;  %v3765_v25 = vmul.f32 %v27859_v10, %v29716_v56  ;;  %26240 = vmatprep.subr.mxu1 %v34649_v40 }
 0x4b8   :  { %27864 = vrcp.f32 %v3666_v26  ;;  %6830 = vrot.lane.b32.xlu1 %v29155_v57, %s28387_s2  ;;  %v34656_v26 = vld [vmem:[#allocation37_spill] sm:$0xff] }
 0x4b9   :  { %26228 = vmatmul.mubr.msk.f32.vlgmr.msra.gmra.mrb[70].mxu0 %vm3435_vm3, %v3765_v25  ;;  %6750 = vrot.lane.b32.xlu0 %v29149_v48, %s28388_s30 }
 0x4ba   :  { %v27861_v54 = vpop.eup %27860  ;;  %26236 = vmatpush3.msra.mxu0 %v29171_v53  ;;  %26237 = vmatprep.mubr.msk.f32.mxu0 %vm28385_vm1, %v34649_v40 }
 0x4bb   :  { %v3669_v32 = vpop.xlane.xlu1 %3668  ;;  %v3766_v56 = vmul.f32 %v27861_v54, %v29721_v5  ;;  %26245 = vmatprep.subr.mxu0 %v34649_v40  ;;  %v34657_v54 = vld [vmem:[#allocation44_spill] sm:$0xff] }
 0x4bc   :  { %27866 = vrcp.f32 %v3669_v32  ;;  %6828 = vrot.lane.b32.xlu1 %v29155_v57, %s28388_s30 }
 0x4bd   :  { %6908 = vrot.lane.b32.xlu0 %v29161_v28, %s28387_s2  ;;  %26233 = vmatmul.mubr.msk.f32.vlgmr.msra.gmra.mrb[76].mxu1 %vm3435_vm3, %v3766_v56  ;;  %v34658_v56 = vld [vmem:[#allocation39_spill] sm:$0xff] }
 0x4be   :  { %v27863_v9 = vpop.eup %27862  ;;  %26241 = vmatpush3.msra.mxu1 %v29177_v41  ;;  %26242 = vmatprep.mubr.msk.f32.mxu1 %vm28385_vm1, %v34649_v40 }
 0x4bf   :  { %v3672_v47 = vpop.xlane.xlu0 %3671  ;;  %v3767_v5 = vmul.f32 %v27863_v9, %v29726_v59  ;;  %26250 = vmatprep.subr.mxu1 %v34649_v40 }
 0x4c0   :  { %27868 = vrcp.f32 %v3672_v47  ;;  %6986 = vrot.lane.b32.xlu1 %v29167_v2, %s28387_s2  ;;  %v34659_v47 = vld [vmem:[#allocation48_spill] sm:$0xff] }
 0x4c1   :  { %26238 = vmatmul.mubr.msk.f32.vlgmr.msra.gmra.mrb[72].mxu0 %vm3435_vm3, %v3767_v5  ;;  %6906 = vrot.lane.b32.xlu0 %v29161_v28, %s28388_s30 }
 0x4c2   :  { %v27865_v46 = vpop.eup %27864  ;;  %26246 = vmatpush3.msra.mxu0 %v29183_v17  ;;  %26247 = vmatprep.mubr.msk.f32.mxu0 %vm28385_vm1, %v34649_v40 }
 0x4c3   :  { %v3675_v37 = vpop.xlane.xlu1 %3674  ;;  %v3768_v59 = vmul.f32 %v27865_v46, %v29731_v45  ;;  %26255 = vmatprep.subr.mxu0 %v34649_v40  ;;  %v34660_v46 = vld [vmem:[#allocation41_spill] sm:$0xff] }
 0x4c4   :  { %27870 = vrcp.f32 %v3675_v37  ;;  %6984 = vrot.lane.b32.xlu1 %v29167_v2, %s28388_s30 }
 0x4c5   :  { %7142 = vrot.lane.b32.xlu0 %v29179_v33, %s28387_s2  ;;  %26243 = vmatmul.mubr.msk.f32.vlgmr.msra.gmra.mrb[78].mxu1 %vm3435_vm3, %v3768_v59  ;;  %v34661_v59 = vld [vmem:[#allocation52_spill] sm:$0xff] }
 0x4c6   :  { %v27867_v44 = vpop.eup %27866  ;;  %26251 = vmatpush3.msra.mxu1 %v34650_v30  ;;  %26252 = vmatprep.mubr.msk.f32.mxu1 %vm28385_vm1, %v34649_v40 }
 0x4c7   :  { %v3678_v22 = vpop.xlane.xlu0 %3677  ;;  %v3769_v45 = vmul.f32 %v27867_v44, %v29736_v60  ;;  %26260 = vmatprep.subr.mxu1 %v34649_v40 }
 0x4c8   :  { %27872 = vrcp.f32 %v3678_v22  ;;  %7140 = vrot.lane.b32.xlu1 %v29179_v33, %s28388_s30  ;;  %v34662_v22 = vld [vmem:[#allocation43_spill] sm:$0xff] }
 0x4c9   :  { %26248 = vmatmul.mubr.msk.f32.vlgmr.msra.gmra.mrb[74].mxu0 %vm3435_vm3, %v3769_v45  ;;  %7298 = vrot.lane.b32.xlu0 %v34651_v27, %s28387_s2 }
 0x4ca   :  { %v27869_v15 = vpop.eup %27868  ;;  %26256 = vmatpush3.msra.mxu0 %v34652_v61  ;;  %26257 = vmatprep.mubr.msk.f32.mxu0 %vm28385_vm1, %v34649_v40 }
 0x4cb   :  { %v3681_v49 = vpop.xlane.xlu1 %3680  ;;  %v3770_v60 = vmul.f32 %v27869_v15, %v29741_v18  ;;  %26265 = vmatprep.subr.mxu0 %v34649_v40  ;;  %v34663_v15 = vld [vmem:[#allocation56_spill] sm:$0xff] }
 0x4cc   :  { %27874 = vrcp.f32 %v3681_v49  ;;  %7296 = vrot.lane.b32.xlu1 %v34651_v27, %s28388_s30 }
 0x4cd   :  { %7454 = vrot.lane.b32.xlu0 %v34653_v3, %s28387_s2  ;;  %26253 = vmatmul.mubr.msk.f32.vlgmr.msra.gmra.mrb[80].mxu1 %vm3435_vm3, %v3770_v60  ;;  %v34664_v60 = vld [vmem:[#allocation45_spill] sm:$0xff] }
 0x4ce   :  { %v27871_v16 = vpop.eup %27870  ;;  %26261 = vmatpush3.msra.mxu1 %v34654_v4  ;;  %26262 = vmatprep.mubr.msk.f32.mxu1 %vm28385_vm1, %v34649_v40 }
 0x4cf   :  { %v3684_v34 = vpop.xlane.xlu0 %3683  ;;  %v3771_v18 = vmul.f32 %v27871_v16, %v29746_v11  ;;  %26270 = vmatprep.subr.mxu1 %v34649_v40 }
 0x4d0   :  { %27876 = vrcp.f32 %v3684_v34  ;;  %7452 = vrot.lane.b32.xlu1 %v34653_v3, %s28388_s30  ;;  %v34665_v34 = vld [vmem:[#allocation60_spill] sm:$0xff] }
 0x4d1   :  { %26258 = vmatmul.mubr.msk.f32.vlgmr.msra.gmra.mrb[76].mxu0 %vm3435_vm3, %v3771_v18  ;;  %7610 = vrot.lane.b32.xlu0 %v34655_v63, %s28387_s2 }
 0x4d2   :  { %v27873_v10 = vpop.eup %27872  ;;  %26266 = vmatpush3.msra.mxu0 %v34656_v26  ;;  %26267 = vmatprep.mubr.msk.f32.mxu0 %vm28385_vm1, %v34649_v40 }
 0x4d3   :  { %v3687_v25 = vpop.xlane.xlu1 %3686  ;;  %v3772_v11 = vmul.f32 %v27873_v10, %v29751_v12  ;;  %26275 = vmatprep.subr.mxu0 %v34649_v40  ;;  %v34666_v10 = vld [vmem:[#allocation47_spill] sm:$0xff] }
 0x4d4   :  { %27878 = vrcp.f32 %v3687_v25  ;;  %7608 = vrot.lane.b32.xlu1 %v34655_v63, %s28388_s30 }
 0x4d5   :  { %7766 = vrot.lane.b32.xlu0 %v34657_v54, %s28387_s2  ;;  %26263 = vmatmul.mubr.msk.f32.vlgmr.msra.gmra.mrb[82].mxu1 %vm3435_vm3, %v3772_v11  ;;  %v34667_v11 = vld [vmem:[#allocation64_spill] sm:$0xff] }
 0x4d6   :  { %v27875_v32 = vpop.eup %27874  ;;  %26271 = vmatpush3.msra.mxu1 %v34658_v56  ;;  %26272 = vmatprep.mubr.msk.f32.mxu1 %vm28385_vm1, %v34649_v40 }
 0x4d7   :  { %v3690_v9 = vpop.xlane.xlu0 %3689  ;;  %v3773_v12 = vmul.f32 %v27875_v32, %v29756_v21  ;;  %26280 = vmatprep.subr.mxu1 %v34649_v40 }
 0x4d8   :  { %27880 = vrcp.f32 %v3690_v9  ;;  %7764 = vrot.lane.b32.xlu1 %v34657_v54, %s28388_s30  ;;  %v34668_v9 = vld [vmem:[#allocation49_spill] sm:$0xff] }
 0x4d9   :  { %26268 = vmatmul.mubr.msk.f32.vlgmr.msra.gmra.mrb[78].mxu0 %vm3435_vm3, %v3773_v12  ;;  %7922 = vrot.lane.b32.xlu0 %v34659_v47, %s28387_s2 }
 0x4da   :  { %v27877_v5 = vpop.eup %27876  ;;  %26276 = vmatpush3.msra.mxu0 %v34660_v46  ;;  %26277 = vmatprep.mubr.msk.f32.mxu0 %vm28385_vm1, %v34649_v40 }
 0x4db   :  { %v3693_v37 = vpop.xlane.xlu1 %3692  ;;  %v3774_v21 = vmul.f32 %v27877_v5, %v29761_v58  ;;  %26285 = vmatprep.subr.mxu0 %v34649_v40  ;;  %v34669_v5 = vld [vmem:[#allocation26_spill] sm:$0xff] }
 0x4dc   :  { %27882 = vrcp.f32 %v3693_v37  ;;  %7920 = vrot.lane.b32.xlu1 %v34659_v47, %s28388_s30 }
 0x4dd   :  { %8078 = vrot.lane.b32.xlu0 %v34661_v59, %s28387_s2  ;;  %26273 = vmatmul.mubr.msk.f32.vlgmr.msra.gmra.mrb[84].mxu1 %vm3435_vm3, %v3774_v21  ;;  %v34670_v21 = vld [vmem:[#allocation51_spill] sm:$0xff] }
 0x4de   :  { %v27879_v44 = vpop.eup %27878  ;;  %26281 = vmatpush3.msra.mxu1 %v34662_v22  ;;  %26282 = vmatprep.mubr.msk.f32.mxu1 %vm28385_vm1, %v34649_v40 }
 0x4df   :  { %v3696_v45 = vpop.xlane.xlu0 %3695  ;;  %v3775_v58 = vmul.f32 %v27879_v44, %v29766_v35  ;;  %26290 = vmatprep.subr.mxu1 %v34649_v40 }
 0x4e0   :  { %27884 = vrcp.f32 %v3696_v45  ;;  %8076 = vrot.lane.b32.xlu1 %v34661_v59, %s28388_s30  ;;  %v34671_v45 = vld [vmem:[#allocation34_spill] sm:$0xff] }
 0x4e1   :  { %26278 = vmatmul.mubr.msk.f32.vlgmr.msra.gmra.mrb[80].mxu0 %vm3435_vm3, %v3775_v58  ;;  %8234 = vrot.lane.b32.xlu0 %v34663_v15, %s28387_s2 }
 0x4e2   :  { %v27881_v49 = vpop.eup %27880  ;;  %26286 = vmatpush3.msra.mxu0 %v34664_v60  ;;  %26287 = vmatprep.mubr.msk.f32.mxu0 %vm28385_vm1, %v34649_v40 }
 0x4e3   :  { %v3699_v16 = vpop.xlane.xlu1 %3698  ;;  %v3776_v35 = vmul.f32 %v27881_v49, %v29771_v7  ;;  %26295 = vmatprep.subr.mxu0 %v34649_v40  ;;  %v34672_v49 = vld [vmem:[#allocation53_spill] sm:$0xff] }
 0x4e4   :  { %27886 = vrcp.f32 %v3699_v16  ;;  %8232 = vrot.lane.b32.xlu1 %v34663_v15, %s28388_s30 }
 0x4e5   :  { %8390 = vrot.lane.b32.xlu0 %v34665_v34, %s28387_s2  ;;  %26283 = vmatmul.mubr.msk.f32.vlgmr.msra.gmra.mrb[86].mxu1 %vm3435_vm3, %v3776_v35  ;;  %v34673_v35 = vld [vmem:[#allocation30_spill] sm:$0xff] }
 0x4e6   :  { %v27883_v18 = vpop.eup %27882  ;;  %26291 = vmatpush3.msra.mxu1 %v34666_v10  ;;  %26292 = vmatprep.mubr.msk.f32.mxu1 %vm28385_vm1, %v34649_v40 }
 0x4e7   :  { %v3702_v25 = vpop.xlane.xlu0 %3701  ;;  %v3777_v7 = vmul.f32 %v27883_v18, %v29776_v55  ;;  %26300 = vmatprep.subr.mxu1 %v34649_v40  ;;  %v34674_v18 = vld [vmem:[#allocation38_spill] sm:$0xff] }
 0x4e8   :  { %27888 = vrcp.f32 %v3702_v25  ;;  %8388 = vrot.lane.b32.xlu1 %v34665_v34, %s28388_s30 }
 0x4e9   :  { %26288 = vmatmul.mubr.msk.f32.vlgmr.msra.gmra.mrb[82].mxu0 %vm3435_vm3, %v3777_v7  ;;  %8546 = vrot.lane.b32.xlu0 %v34667_v11, %s28387_s2  ;;  %v34675_v7 = vld [vmem:[#allocation55_spill] sm:$0xff] }
 0x4ea   :  { %v27885_v32 = vpop.eup %27884  ;;  %26296 = vmatpush3.msra.mxu0 %v34668_v9  ;;  %26297 = vmatprep.mubr.msk.f32.mxu0 %vm28385_vm1, %v34649_v40 }
 0x4eb   :  { %v3705_v12 = vpop.xlane.xlu1 %3704  ;;  %v3778_v55 = vmul.f32 %v27885_v32, %v29781_v6  ;;  %26305 = vmatprep.subr.mxu0 %v34649_v40 }
 0x4ec   :  { %27890 = vrcp.f32 %v3705_v12  ;;  %8544 = vrot.lane.b32.xlu1 %v34667_v11, %s28388_s30  ;;  %v34676_v12 = vld [vmem:[#allocation42_spill] sm:$0xff] }
 0x4ed   :  { %7064 = vrot.lane.b32.xlu0 %v34669_v5, %s28387_s2  ;;  %26293 = vmatmul.mubr.msk.f32.vlgmr.msra.gmra.mrb[88].mxu1 %vm3435_vm3, %v3778_v55  ;;  %v34707_v11 = vld [vmem:[#allocation78_spill] sm:$0xff] }
 0x4ee   :  { %v27887_v37 = vpop.eup %27886  ;;  %26301 = vmatpush3.msra.mxu1 %v34670_v21  ;;  %26302 = vmatprep.mubr.msk.f32.mxu1 %vm28385_vm1, %v34649_v40 }
 0x4ef   :  { %v3708_v44 = vpop.xlane.xlu0 %3707  ;;  %v3779_v6 = vmul.f32 %v27887_v37, %v29786_v51  ;;  %26310 = vmatprep.subr.mxu1 %v34649_v40  ;;  %v34677_v37 = vld [vmem:[#allocation57_spill] sm:$0xff] }
 0x4f0   :  { %27892 = vrcp.f32 %v3708_v44  ;;  %7062 = vrot.lane.b32.xlu1 %v34669_v5, %s28388_s30 }
 0x4f1   :  { %26298 = vmatmul.mubr.msk.f32.vlgmr.msra.gmra.mrb[84].mxu0 %vm3435_vm3, %v3779_v6  ;;  %7376 = vrot.lane.b32.xlu0 %v34671_v45, %s28387_s2 }
 0x4f2   :  { %v27889_v58 = vpop.eup %27888  ;;  %26306 = vmatpush3.msra.mxu0 %v34672_v49  ;;  %26307 = vmatprep.mubr.msk.f32.mxu0 %vm28385_vm1, %v34649_v40 }
 0x4f3   :  { %v3711_v16 = vpop.xlane.xlu1 %3710  ;;  %v3780_v51 = vmul.f32 %v27889_v58, %v29791_v23  ;;  %26315 = vmatprep.subr.mxu0 %v34649_v40  ;;  %v34678_v58 = vld [vmem:[#allocation59_spill] sm:$0xff] }
 0x4f4   :  { %27894 = vrcp.f32 %v3711_v16  ;;  %7220 = vrot.lane.b32.xlu1 %v34673_v35, %s28387_s2 }
 0x4f5   :  { %7532 = vrot.lane.b32.xlu0 %v34674_v18, %s28387_s2  ;;  %26303 = vmatmul.mubr.msk.f32.vlgmr.msra.gmra.mrb[90].mxu1 %vm3435_vm3, %v3780_v51 }
 0x4f6   :  { %v27891_v25 = vpop.eup %27890  ;;  %26311 = vmatpush3.msra.mxu1 %v34675_v7  ;;  %26312 = vmatprep.mubr.msk.f32.mxu1 %vm28385_vm1, %v34649_v40 }
 0x4f7   :  { %v3714_v32 = vpop.xlane.xlu0 %3713  ;;  %v3781_v23 = vmul.f32 %v27891_v25, %v29796_v19  ;;  %26320 = vmatprep.subr.mxu1 %v34649_v40  ;;  %v34680_v25 = vld [vmem:[#allocation61_spill] sm:$0xff] }
 0x4f8   :  { %27896 = vrcp.f32 %v3714_v32  ;;  %7218 = vrot.lane.b32.xlu1 %v34673_v35, %s28388_s30 }
 0x4f9   :  { %26308 = vmatmul.mubr.msk.f32.vlgmr.msra.gmra.mrb[86].mxu0 %vm3435_vm3, %v3781_v23  ;;  %7688 = vrot.lane.b32.xlu0 %v34676_v12, %s28387_s2 }
 0x4fa   :  { %v27893_v55 = vpop.eup %27892  ;;  %26316 = vmatpush3.msra.mxu0 %v34677_v37  ;;  %26317 = vmatprep.mubr.msk.f32.mxu0 %vm28385_vm1, %v34649_v40 }
 0x4fb   :  { %v3717_v44 = vpop.xlane.xlu1 %3716  ;;  %v3782_v19 = vmul.f32 %v27893_v55, %v29801_v42  ;;  %26325 = vmatprep.subr.mxu0 %v34649_v40  ;;  %v34679_v42 = vld [vmem:[#allocation46_spill] sm:$0xff]  ;;  %v34682_v55 = vld [vmem:[#allocation63_spill] sm:$0xff] }
 0x4fc   :  { %27898 = vrcp.f32 %v3717_v44  ;;  %7374 = vrot.lane.b32.xlu1 %v34671_v45, %s28388_s30 }
 0x4fd   :  { %7686 = vrot.lane.b32.xlu0 %v34676_v12, %s28388_s30  ;;  %26313 = vmatmul.mubr.msk.f32.vlgmr.msra.gmra.mrb[92].mxu1 %vm3435_vm3, %v3782_v19  ;;  %v34684_v19 = vld [vmem:[#allocation65_spill] sm:$0xff] }
 0x4fe   :  { %v27895_v6 = vpop.eup %27894  ;;  %26321 = vmatpush3.msra.mxu1 %v34678_v58  ;;  %26322 = vmatprep.mubr.msk.f32.mxu1 %vm28385_vm1, %v34649_v40 }
 0x4ff   :  { %v3783_v16 = vmul.f32 %v27895_v6, %v29805_v36  ;;  %26330 = vmatprep.subr.mxu1 %v34649_v40  ;;  %v34681_v36 = vld [vmem:[#allocation50_spill] sm:$0xff] }
 0x500   :  { %7530 = vrot.lane.b32.xlu1 %v34674_v18, %s28388_s30  ;;  %v34686_v6 = vld [vmem:[#allocation62_spill] sm:$0xff] }
 0x501   :  { %26318 = vmatmul.mubr.msk.f32.vlgmr.msra.gmra.mrb[88].mxu0 %vm3435_vm3, %v3783_v16  ;;  %7842 = vrot.lane.b32.xlu0 %v34679_v42, %s28388_s30  ;;  %v34687_v16 = vld [vmem:[#allocation3_spill] sm:$0xff] }
 0x502   :  { %v27897_v51 = vpop.eup %27896  ;;  %26326 = vmatpush3.msra.mxu0 %v34680_v25  ;;  %26327 = vmatprep.mubr.msk.f32.mxu0 %vm28385_vm1, %v34649_v40 }
 0x503   :  { %v3784_v32 = vmul.f32 %v27897_v51, %v29809_v43  ;;  %26335 = vmatprep.subr.mxu0 %v34649_v40  ;;  %v34683_v43 = vld [vmem:[#allocation54_spill] sm:$0xff]  ;;  %v34688_v51 = vld [vmem:[#allocation9_spill] sm:$0xff] }
 0x504   :  { %7844 = vrot.lane.b32.xlu1 %v34679_v42, %s28387_s2 }
 0x505   :  { %7998 = vrot.lane.b32.xlu0 %v34681_v36, %s28388_s30  ;;  %26323 = vmatmul.mubr.msk.f32.vlgmr.msra.gmra.mrb[94].mxu1 %vm3435_vm3, %v3784_v32  ;;  %v30127_v32 = vpop.permute.xlu0 %6594 }
 0x506   :  { %v27899_v23 = vpop.eup %27898  ;;  %26331 = vmatpush3.msra.mxu1 %v34682_v55  ;;  %26332 = vmatprep.mubr.msk.f32.mxu1 %vm28385_vm1, %v34649_v40 }
 0x507   :  { %v3785_v44 = vmul.f32 %v27899_v23, %v29813_v31  ;;  %26340 = vmatprep.subr.mxu1 %v34649_v40  ;;  %v34685_v31 = vld [vmem:[#allocation58_spill] sm:$0xff]  ;;  %v30133_v23 = vpop.permute.xlu1 %6674 }
 0x508   :  { %8000 = vrot.lane.b32.xlu1 %v34681_v36, %s28387_s2 }
 0x509   :  { %26328 = vmatmul.mubr.msk.f32.vlgmr.msra.gmra.mrb[90].mxu0 %vm3435_vm3, %v3785_v44  ;;  %8154 = vrot.lane.b32.xlu0 %v34683_v43, %s28388_s30 }
 0x50a   :  { %26336 = vmatpush3.msra.mxu0 %v34684_v19  ;;  %26337 = vmatprep.mubr.msk.f32.mxu0 %vm28385_vm1, %v34649_v40 }
 0x50b   :  { %26345 = vmatprep.subr.mxu0 %v34649_v40 }
 0x50c   :  { %8156 = vrot.lane.b32.xlu1 %v34683_v43, %s28387_s2 }
 0x50d   :  { %8310 = vrot.lane.b32.xlu0 %v34685_v31, %s28388_s30 }
 0x510   :  { %8312 = vrot.lane.b32.xlu1 %v34685_v31, %s28387_s2 }
 0x511   :  { %8466 = vrot.lane.b32.xlu0 %v34686_v6, %s28388_s30 }
 0x514   :  { %8468 = vrot.lane.b32.xlu1 %v34686_v6, %s28387_s2 }
 0x515   :  { %9161 = vrot.lane.b32.xlu0 %v29115_v62, %s28388_s30 }
 0x518   :  { %9007 = vrot.lane.b32.xlu1 %v34687_v16, %s28388_s30 }
 0x519   :  { %9315 = vrot.lane.b32.xlu0 %v29129_v8, %s28388_s30  ;;  %v34705_v8 = vld [vmem:[#allocation77_spill] sm:$0xff] }
 0x51c   :  { %9084 = vrot.lane.b32.xlu1 %v29109_v52, %s28388_s30 }
 0x51d   :  { %9469 = vrot.lane.b32.xlu0 %v29141_v1, %s28388_s30  ;;  %v34704_v1 = vld [vmem:[#allocation76_spill] sm:$0xff] }
 0x520   :  { %9238 = vrot.lane.b32.xlu1 %v34688_v51, %s28388_s30 }
 0x521   :  { %9623 = vrot.lane.b32.xlu0 %v29153_v39, %s28388_s30 }
 0x524   :  { %9392 = vrot.lane.b32.xlu1 %v29135_v0, %s28388_s30 }
 0x525   :  { %9777 = vrot.lane.b32.xlu0 %v29165_v24, %s28388_s30 }
 0x528   :  { %9546 = vrot.lane.b32.xlu1 %v29147_v14, %s28388_s30 }
 0x529   :  { %10162 = vrot.lane.b32.xlu0 %v34652_v61, %s28388_s30 }
 0x52c   :  { %9700 = vrot.lane.b32.xlu1 %v29159_v38, %s28388_s30  ;;  %v3720_v44 = vpop.xlane.xlu0 %3719 }
 0x52d   :  { %27900 = vrcp.f32 %v3720_v44  ;;  %10316 = vrot.lane.b32.xlu0 %v34656_v26, %s28388_s30  ;;  %v34689_v44 = vld [vmem:[#allocation2_spill] sm:$0xff] }
 0x530   :  { %9854 = vrot.lane.b32.xlu1 %v29171_v53, %s28388_s30  ;;  %v3723_v0 = vpop.xlane.xlu1 %3722  ;;  %v30141_v51 = vpop.permute.xlu0 %6752 }
 0x531   :  { %27902 = vrcp.f32 %v3723_v0  ;;  %10624 = vrot.lane.b32.xlu0 %v34664_v60, %s28388_s30  ;;  %v34691_v60 = vld [vmem:[#allocation67_spill] sm:$0xff] }
 0x534   :  { %10008 = vrot.lane.b32.xlu1 %v29183_v17, %s28388_s30  ;;  %v30147_v61 = vpop.permute.xlu1 %6672  ;;  %v30149_v38 = vpop.permute.xlu0 %6750  ;;  %v34690_v17 = vld [vmem:[#allocation4_spill] sm:$0xff] }
 0x535   :  { %12116 = vrot.lane.b32.xlu0 %v34689_v44, %s28389_s13 }
 0x537   :  { %v27901_v26 = vpop.eup %27900 }
 0x538   :  { %10470 = vrot.lane.b32.xlu1 %v34660_v46, %s28388_s30  ;;  %v30155_v53 = vpop.permute.xlu1 %6830  ;;  %v30157_v0 = vpop.permute.xlu0 %6908  ;;  %v3786_v14 = vmul.f32 %v27901_v26, %v29836_v20  ;;  %v34693_v26 = vld [vmem:[#allocation68_spill] sm:$0xff] }
 0x539   :  { %12194 = vrot.lane.b32.xlu0 %v34690_v17, %s28389_s13 }
 0x53a   :  { %26333 = vmatmul.mubr.msk.f32.vlgmr.msra.gmra.mrb[96].mxu1 %vm3435_vm3, %v3786_v14  ;;  %v34692_v14 = vld [vmem:[#allocation6_spill] sm:$0xff] }
 0x53b   :  { %v27903_v52 = vpop.eup %27902  ;;  %26341 = vmatpush3.xpose.msk.msra.mxu1 %vm941_vm2, %v34691_v60  ;;  %26342 = vmatprep.mubr.msk.f32.mxu1 %vm28385_vm1, %v34649_v40  ;;  %v34694_v60 = vld [vmem:[#allocation66_spill] sm:$0xff] }
 0x53c   :  { %10778 = vrot.lane.b32.xlu1 %v34668_v9, %s28388_s30  ;;  %v30169_v46 = vpop.permute.xlu1 %6828  ;;  %v30171_v22 = vpop.permute.xlu0 %6906  ;;  %26350 = vmatprep.subr.mxu1 %v34649_v40  ;;  %v3787_v20 = vmul.f32 %v27903_v52, %v29846_v50  ;;  %v34695_v9 = vld [vmem:[#allocation69_spill] sm:$0xff]  ;;  %v34696_v52 = vld [vmem:[#allocation8_spill] sm:$0xff]  ;;  %v34697_v50 = vld [vmem:[#allocation70_spill] sm:$0xff] }
 0x53d   :  { %12272 = vrot.lane.b32.xlu0 %v34692_v14, %s28389_s13 }
 0x53e   :  { %26338 = vmatmul.mubr.msk.f32.vlgmr.msra.gmra.mrb[92].mxu0 %vm3435_vm3, %v3787_v20  ;;  %26343 = vmatmul.mubr.msk.f32.vlgmr.msra.gmra.mrb[98].mxu1 %vm941_vm2, %v34693_v26  ;;  %v34699_v20 = vld [vmem:[#allocation72_spill] sm:$0xff]  ;;  %v34700_v26 = vld [vmem:[#allocation73_spill] sm:$0xff] }
 0x53f   :  { %26346 = vmatpush3.xpose.msk.msra.mxu0 %vm941_vm2, %v34694_v60  ;;  %26351 = vmatpush3.xpose.msk.msra.mxu1 %vm941_vm2, %v34695_v9  ;;  %v34698_v9 = vld [vmem:[#allocation71_spill] sm:$0xff] }
 0x540   :  { %10932 = vrot.lane.b32.xlu1 %v34672_v49, %s28388_s30  ;;  %v6987_v24 = vpop.permute.xlu1 %6986  ;;  %v30186_v39 = vpop.permute.xlu0 %7142  ;;  %26347 = vmatprep.mubr.msk.f32.mxu0 %vm28385_vm1, %v34649_v40 }
 0x541   :  { %26355 = vmatprep.subr.mxu0 %v34649_v40  ;;  %12350 = vrot.lane.b32.xlu0 %v34696_v52, %s28389_s13 }
 0x542   :  { %26352 = vmatprep.mubr.msk.f32.mxu1 %vm28385_vm1, %v34649_v40  ;;  %26360 = vmatprep.subr.mxu1 %v34649_v40 }
 0x543   :  { %26348 = vmatmul.mubr.msk.f32.vlgmr.msra.gmra.mrb[94].mxu0 %vm941_vm2, %v34697_v50  ;;  %26353 = vmatmul.mubr.msk.f32.vlgmr.msra.gmra.mrb[100].mxu1 %vm941_vm2, %v34698_v9  ;;  %v34701_v50 = vld [vmem:[#allocation10_spill] sm:$0xff] }
 0x544   :  { %26356 = vmatpush3.xpose.msk.msra.mxu0 %vm941_vm2, %v34699_v20  ;;  %26361 = vmatpush3.xpose.msk.msra.mxu1 %vm941_vm2, %v34700_v26  ;;  %v6985_v60 = vpop.permute.xlu1 %6984  ;;  %v30204_v49 = vpop.permute.xlu0 %7298  ;;  %v34702_v9 = vld [vmem:[#allocation74_spill] sm:$0xff]  ;;  %v34703_v20 = vld [vmem:[#allocation75_spill] sm:$0xff] }
 0x545   :  { %11086 = vrot.lane.b32.xlu1 %v34677_v37, %s28388_s30  ;;  %26357 = vmatprep.mubr.msk.f32.mxu0 %vm28385_vm1, %v34649_v40 }
 0x546   :  { %26365 = vmatprep.subr.mxu0 %v34649_v40  ;;  %12428 = vrot.lane.b32.xlu0 %v34701_v50, %s28389_s13 }
 0x547   :  { %26362 = vmatprep.mubr.msk.f32.mxu1 %vm28385_vm1, %v34649_v40  ;;  %26370 = vmatprep.subr.mxu1 %v34649_v40 }
 0x548   :  { %26358 = vmatmul.mubr.msk.f32.vlgmr.msra.gmra.mrb[96].mxu0 %vm941_vm2, %v34702_v9  ;;  %26363 = vmatmul.mubr.msk.f32.vlgmr.msra.gmra.mrb[102].mxu1 %vm941_vm2, %v34703_v20  ;;  %v7141_v26 = vpop.permute.xlu1 %7140  ;;  %v30220_v37 = vpop.permute.xlu0 %7454  ;;  %v34706_v9 = vld [vmem:[#allocation12_spill] sm:$0xff] }
 0x549   :  { %26366 = vmatpush3.xpose.msk.msra.mxu0 %vm941_vm2, %v34704_v1  ;;  %26371 = vmatpush3.xpose.msk.msra.mxu1 %vm941_vm2, %v34705_v8 }
 0x54a   :  { %11240 = vrot.lane.b32.xlu1 %v34680_v25, %s28388_s30  ;;  %26367 = vmatprep.mubr.msk.f32.mxu0 %vm28385_vm1, %v34649_v40 }
 0x54b   :  { %26375 = vmatprep.subr.mxu0 %v34649_v40  ;;  %12506 = vrot.lane.b32.xlu0 %v34706_v9, %s28389_s13 }
 0x54c   :  { %26372 = vmatprep.mubr.msk.f32.mxu1 %vm28385_vm1, %v34649_v40  ;;  %26380 = vmatprep.subr.mxu1 %v34649_v40  ;;  %v7297_v1 = vpop.permute.xlu1 %7296  ;;  %v7611_v20 = vpop.permute.xlu0 %7610 }
 0x54d   :  { %26368 = vmatmul.mubr.msk.f32.vlgmr.msra.gmra.mrb[98].mxu0 %vm941_vm2, %v34707_v11  ;;  %26373 = vmatmul.mubr.msk.f32.vlgmr.msra.gmra.mrb[104].mxu1 %vm941_vm2, %v30127_v32 }
 0x54e   :  { %26376 = vmatpush3.xpose.msk.msra.mxu0 %vm941_vm2, %v30133_v23  ;;  %26381 = vmatpush3.xpose.msk.msra.mxu1 %vm941_vm2, %v30141_v51 }
 0x54f   :  { %11394 = vrot.lane.b32.xlu1 %v34684_v19, %s28388_s30  ;;  %26377 = vmatprep.mubr.msk.f32.mxu0 %vm28385_vm1, %v34649_v40 }
 0x550   :  { %26385 = vmatprep.subr.mxu0 %v34649_v40  ;;  %12504 = vrot.lane.b32.xlu0 %v34706_v9, %s28390_s14  ;;  %v7453_v8 = vpop.permute.xlu1 %7452  ;;  %v30251_v11 = vpop.permute.xlu0 %7766 }
 0x551   :  { %26382 = vmatprep.mubr.msk.f32.mxu1 %vm28385_vm1, %v34649_v40  ;;  %26390 = vmatprep.subr.mxu1 %v34649_v40 }
 0x552   :  { %26378 = vmatmul.mubr.msk.f32.vlgmr.msra.gmra.mrb[100].mxu0 %vm941_vm2, %v30147_v61  ;;  %26383 = vmatmul.mubr.msk.f32.vlgmr.msra.gmra.mrb[106].mxu1 %vm941_vm2, %v30149_v38 }
 0x553   :  { %26386 = vmatpush3.xpose.msk.msra.mxu0 %vm941_vm2, %v30155_v53  ;;  %26391 = vmatpush3.xpose.msk.msra.mxu1 %vm941_vm2, %v30157_v0 }
 0x554   :  { %12114 = vrot.lane.b32.xlu1 %v34689_v44, %s28390_s14  ;;  %26387 = vmatprep.mubr.msk.f32.mxu0 %vm28385_vm1, %v34649_v40  ;;  %v7609_v51 = vpop.permute.xlu1 %7608  ;;  %v7923_v32 = vpop.permute.xlu0 %7922 }
 0x555   :  { %26395 = vmatprep.subr.mxu0 %v34649_v40  ;;  %12584 = vrot.lane.b32.xlu0 %v29137_v29, %s28389_s13 }
 0x556   :  { %26392 = vmatprep.mubr.msk.f32.mxu1 %vm28385_vm1, %v34649_v40  ;;  %26388 = vmatmul.mubr.msk.f32.vlgmr.msra.gmra.mrb[102].mxu0 %vm941_vm2, %v30169_v46 }
 0x557   :  { %26393 = vmatmul.mubr.msk.f32.vlgmr.msra.gmra.mrb[108].mxu1 %vm941_vm2, %v30171_v22  ;;  %26396 = vmatpush3.xpose.msk.msra.mxu0 %vm941_vm2, %v6987_v24 }
 0x558   :  { %12192 = vrot.lane.b32.xlu1 %v34690_v17, %s28390_s14  ;;  %26397 = vmatprep.mubr.msk.f32.mxu0 %vm28385_vm1, %v34649_v40  ;;  %v7765_v38 = vpop.permute.xlu1 %7764  ;;  %v30282_v53 = vpop.permute.xlu0 %8078 }
 0x559   :  { %26405 = vmatprep.subr.mxu0 %v34649_v40  ;;  %12662 = vrot.lane.b32.xlu0 %v29143_v13, %s28389_s13 }
 0x55a   :  { %26398 = vmatmul.mubr.msk.f32.vlgmr.msra.gmra.mrb[104].mxu0 %vm941_vm2, %v6985_v60  ;;  %26400 = vmatprep.subr.mxu1 %v34649_v40 }
 0x55b   :  { %26406 = vmatpush3.xpose.msk.msra.mxu0 %vm941_vm2, %v30186_v39  ;;  %26407 = vmatprep.mubr.msk.f32.mxu0 %vm28385_vm1, %v34649_v40 }
 0x55c   :  { %12270 = vrot.lane.b32.xlu1 %v34692_v14, %s28390_s14  ;;  %26415 = vmatprep.subr.mxu0 %v34649_v40  ;;  %v7921_v24 = vpop.permute.xlu1 %7920  ;;  %v30296_v61 = vpop.permute.xlu0 %8234 }
 0x55d   :  { %12660 = vrot.lane.b32.xlu0 %v29143_v13, %s28390_s14  ;;  %26402 = vmatprep.mubr.msk.f32.mxu1 %vm28385_vm1, %v34649_v40 }
 0x55e   :  { %26408 = vmatmul.mubr.msk.f32.vlgmr.msra.gmra.mrb[106].mxu0 %vm941_vm2, %v7141_v26 }
 0x55f   :  { %26416 = vmatpush3.xpose.msk.msra.mxu0 %vm941_vm2, %v30204_v49  ;;  %26417 = vmatprep.mubr.msk.f32.mxu0 %vm28385_vm1, %v34649_v40 }
 0x560   :  { %12348 = vrot.lane.b32.xlu1 %v34696_v52, %s28390_s14  ;;  %26425 = vmatprep.subr.mxu0 %v34649_v40  ;;  %v8077_v39 = vpop.permute.xlu1 %8076  ;;  %v30310_v46 = vpop.permute.xlu0 %8390 }
 0x561   :  { %12740 = vrot.lane.b32.xlu0 %v29149_v48, %s28389_s13 }
 0x562   :  { %26418 = vmatmul.mubr.msk.f32.vlgmr.msra.gmra.mrb[108].mxu0 %vm941_vm2, %v7297_v1 }
 0x563   :  { %26426 = vmatpush3.xpose.msk.msra.mxu0 %vm941_vm2, %v30220_v37  ;;  %26427 = vmatprep.mubr.msk.f32.mxu0 %vm28385_vm1, %v34649_v40 }
 0x564   :  { %12426 = vrot.lane.b32.xlu1 %v34701_v50, %s28390_s14  ;;  %26435 = vmatprep.subr.mxu0 %v34649_v40  ;;  %v8233_v22 = vpop.permute.xlu1 %8232  ;;  %v30322_v49 = vpop.permute.xlu0 %8546 }
 0x565   :  { %12818 = vrot.lane.b32.xlu0 %v29155_v57, %s28389_s13 }
 0x566   :  { %26428 = vmatmul.mubr.msk.f32.vlgmr.msra.gmra.mrb[110].mxu0 %vm941_vm2, %v7453_v8 }
 0x567   :  { %26436 = vmatpush3.xpose.msk.msra.mxu0 %vm941_vm2, %v7611_v20  ;;  %26437 = vmatprep.mubr.msk.f32.mxu0 %vm28385_vm1, %v34649_v40 }
 0x568   :  { %v30327_v23 = vpop.f32.mrb[64].mxu1  ;;  %12582 = vrot.lane.b32.xlu1 %v29137_v29, %s28390_s14  ;;  %26445 = vmatprep.subr.mxu0 %v34649_v40  ;;  %v8389_v0 = vpop.permute.xlu1 %8388 }
 0x569   :  { %34708 = vst [vmem:[#allocation67_spill] sm:$0xff] %v30327_v23  ;;  %v26184_v37 = vpop.f32.mrb[65].mxu1  ;;  %v7065_v60 = vpop.permute.xlu0 %7064  ;;  %12816 = vrot.lane.b32.xlu0 %v29155_v57, %s28390_s14 }
 0x56a   :  { %26401 = vmatpush3.xpose.msk.msra.mxu1 %vm941_vm2, %v7065_v60  ;;  %26438 = vmatmul.mubr.msk.f32.vlgmr.msra.gmra.mrb[112].mxu0 %vm941_vm2, %v7609_v51 }
 0x56b   :  { %26410 = vmatprep.subr.mxu1 %v34649_v40  ;;  %26446 = vmatpush3.xpose.msk.msra.mxu0 %vm941_vm2, %v30251_v11 }
 0x56c   :  { %v30339_v26 = vpop.f32.mrb[66].mxu1  ;;  %26447 = vmatprep.mubr.msk.f32.mxu0 %vm28385_vm1, %v34649_v40  ;;  %12738 = vrot.lane.b32.xlu1 %v29149_v48, %s28390_s14  ;;  %v8545_v20 = vpop.permute.xlu1 %8544 }
 0x56d   :  { %34709 = vst [vmem:[#allocation68_spill] sm:$0xff] %v30339_v26  ;;  %v26189_v1 = vpop.f32.mrb[67].mxu1  ;;  %26455 = vmatprep.subr.mxu0 %v34649_v40  ;;  %v7377_v8 = vpop.permute.xlu0 %7376  ;;  %12896 = vrot.lane.b32.xlu0 %v29161_v28, %s28389_s13 }
 0x56e   :  { %26448 = vmatmul.mubr.msk.f32.vlgmr.msra.gmra.mrb[114].mxu0 %vm941_vm2, %v7765_v38 }
 0x56f   :  { %26456 = vmatpush3.xpose.msk.msra.mxu0 %vm941_vm2, %v7923_v32  ;;  %26457 = vmatprep.mubr.msk.f32.mxu0 %vm28385_vm1, %v34649_v40 }
 0x570   :  { %v30355_v11 = vpop.f32.mrb[68].mxu1  ;;  %12894 = vrot.lane.b32.xlu1 %v29161_v28, %s28390_s14  ;;  %26465 = vmatprep.subr.mxu0 %v34649_v40  ;;  %v7063_v51 = vpop.permute.xlu1 %7062 }
 0x571   :  { %34710 = vst [vmem:[#allocation66_spill] sm:$0xff] %v30355_v11  ;;  %v7533_v37 = vpop.permute.xlu0 %7532  ;;  %13052 = vrot.lane.b32.xlu0 %v34669_v5, %s28389_s13  ;;  %v26194_v60 = vpop.f32.mrb[69].mxu1  ;;  %26403 = vmatmul.mubr.msk.f32.vlgmr.msra.gmra.mrb[110].mxu1 %vm941_vm2, %v7063_v51 }
 0x572   :  { %26458 = vmatmul.mubr.msk.f32.vlgmr.msra.gmra.mrb[116].mxu0 %vm941_vm2, %v7921_v24  ;;  %26412 = vmatprep.mubr.msk.f32.mxu1 %vm28385_vm1, %v34649_v40 }
 0x573   :  { %26466 = vmatpush3.xpose.msk.msra.mxu0 %vm941_vm2, %v30282_v53  ;;  %26467 = vmatprep.mubr.msk.f32.mxu0 %vm28385_vm1, %v34649_v40 }
 0x574   :  { %v30370_v32 = vpop.f32.mrb[64].mxu0  ;;  %12974 = vrot.lane.b32.xlu1 %v29167_v2, %s28389_s13  ;;  %26475 = vmatprep.subr.mxu0 %v34649_v40  ;;  %v7221_v38 = vpop.permute.xlu1 %7220 }
 0x575   :  { %34711 = vst [vmem:[#allocation69_spill] sm:$0xff] %v30370_v32  ;;  %v7689_v1 = vpop.permute.xlu0 %7688  ;;  %13050 = vrot.lane.b32.xlu0 %v34669_v5, %s28390_s14  ;;  %v26199_v24 = vpop.f32.mrb[65].mxu0  ;;  %26411 = vmatpush3.xpose.msk.msra.mxu1 %vm941_vm2, %v7221_v38 }
 0x576   :  { %26468 = vmatmul.mubr.msk.f32.vlgmr.msra.gmra.mrb[118].mxu0 %vm941_vm2, %v8077_v39  ;;  %26420 = vmatprep.subr.mxu1 %v34649_v40 }
 0x577   :  { %26476 = vmatpush3.xpose.msk.msra.mxu0 %vm941_vm2, %v30296_v61  ;;  %26477 = vmatprep.mubr.msk.f32.mxu0 %vm28385_vm1, %v34649_v40 }
 0x578   :  { %v30384_v53 = vpop.f32.mrb[70].mxu1  ;;  %12972 = vrot.lane.b32.xlu1 %v29167_v2, %s28390_s14  ;;  %26485 = vmatprep.subr.mxu0 %v34649_v40  ;;  %v7219_v51 = vpop.permute.xlu1 %7218 }
 0x579   :  { %34712 = vst [vmem:[#allocation70_spill] sm:$0xff] %v30384_v53  ;;  %13130 = vrot.lane.b32.xlu0 %v29179_v33, %s28389_s13  ;;  %v7687_v39 = vpop.permute.xlu0 %7686  ;;  %v26204_v60 = vpop.f32.mrb[71].mxu1  ;;  %26413 = vmatmul.mubr.msk.f32.vlgmr.msra.gmra.mrb[112].mxu1 %vm941_vm2, %v7219_v51 }
 0x57a   :  { %26478 = vmatmul.mubr.msk.f32.vlgmr.msra.gmra.mrb[120].mxu0 %vm941_vm2, %v8233_v22  ;;  %26421 = vmatpush3.xpose.msk.msra.mxu1 %vm941_vm2, %v7377_v8 }
 0x57b   :  { %26486 = vmatpush3.xpose.msk.msra.mxu0 %vm941_vm2, %v30310_v46  ;;  %26487 = vmatprep.mubr.msk.f32.mxu0 %vm28385_vm1, %v34649_v40 }
 0x57c   :  { %v30398_v61 = vpop.f32.mrb[66].mxu0  ;;  %26495 = vmatprep.subr.mxu0 %v34649_v40  ;;  %v7375_v38 = vpop.permute.xlu1 %7374  ;;  %26422 = vmatprep.mubr.msk.f32.mxu1 %vm28385_vm1, %v34649_v40 }
 0x57d   :  { %34713 = vst [vmem:[#allocation71_spill] sm:$0xff] %v30398_v61  ;;  %26430 = vmatprep.subr.mxu1 %v34649_v40  ;;  %v26209_v24 = vpop.f32.mrb[67].mxu0  ;;  %26423 = vmatmul.mubr.msk.f32.vlgmr.msra.gmra.mrb[114].mxu1 %vm941_vm2, %v7375_v38  ;;  %v7843_v46 = vpop.permute.xlu0 %7842 }
 0x57e   :  { %26488 = vmatmul.mubr.msk.f32.vlgmr.msra.gmra.mrb[122].mxu0 %vm941_vm2, %v8389_v0  ;;  %26431 = vmatpush3.xpose.msk.msra.mxu1 %vm941_vm2, %v7533_v37 }
 0x57f   :  { %26496 = vmatpush3.xpose.msk.msra.mxu0 %vm941_vm2, %v30322_v49  ;;  %26497 = vmatprep.mubr.msk.f32.mxu0 %vm28385_vm1, %v34649_v40 }
 0x580   :  { %v30411_v22 = vpop.f32.mrb[72].mxu1  ;;  %v7531_v8 = vpop.permute.xlu1 %7530  ;;  %26432 = vmatprep.mubr.msk.f32.mxu1 %vm28385_vm1, %v34649_v40  ;;  %26440 = vmatprep.subr.mxu1 %v34649_v40 }
 0x581   :  { %34714 = vst [vmem:[#allocation72_spill] sm:$0xff] %v30411_v22  ;;  %v26214_v51 = vpop.f32.mrb[73].mxu1  ;;  %26433 = vmatmul.mubr.msk.f32.vlgmr.msra.gmra.mrb[116].mxu1 %vm941_vm2, %v7531_v8  ;;  %26505 = vmatprep.subr.mxu0 %v34649_v40  ;;  %v7999_v37 = vpop.permute.xlu0 %7998 }
 0x582   :  { %26498 = vmatmul.mubr.msk.f32.vlgmr.msra.gmra.mrb[124].mxu0 %vm941_vm2, %v8545_v20  ;;  %26441 = vmatpush3.xpose.msk.msra.mxu1 %vm941_vm2, %v7689_v1 }
 0x583   :  { %26442 = vmatprep.mubr.msk.f32.mxu1 %vm28385_vm1, %v34649_v40  ;;  %26450 = vmatprep.subr.mxu1 %v34649_v40 }
 0x584   :  { %v30423_v49 = vpop.f32.mrb[68].mxu0  ;;  %v7845_v0 = vpop.permute.xlu1 %7844  ;;  %26507 = vmatprep.mubr.msk.f32.mxu0 %vm28385_vm1, %v34649_v40 }
 0x585   :  { %34715 = vst [vmem:[#allocation73_spill] sm:$0xff] %v30423_v49  ;;  %v26219_v60 = vpop.f32.mrb[69].mxu0  ;;  %26443 = vmatmul.mubr.msk.f32.vlgmr.msra.gmra.mrb[118].mxu1 %vm941_vm2, %v7687_v39  ;;  %v8155_v24 = vpop.permute.xlu0 %8154 }
 0x586   :  { %26451 = vmatpush3.xpose.msk.msra.mxu1 %vm941_vm2, %v7845_v0  ;;  %26452 = vmatprep.mubr.msk.f32.mxu1 %vm28385_vm1, %v34649_v40 }
 0x587   :  { %26460 = vmatprep.subr.mxu1 %v34649_v40 }
 0x588   :  { %v8001_v20 = vpop.permute.xlu1 %8000  ;;  %v30432_v1 = vpop.f32.mrb[74].mxu1 }
 0x589   :  { %34716 = vst [vmem:[#allocation74_spill] sm:$0xff] %v30432_v1  ;;  %v26224_v38 = vpop.f32.mrb[75].mxu1  ;;  %26453 = vmatmul.mubr.msk.f32.vlgmr.msra.gmra.mrb[120].mxu1 %vm941_vm2, %v7843_v46  ;;  %v8311_v60 = vpop.permute.xlu0 %8310 }
 0x58a   :  { %26461 = vmatpush3.xpose.msk.msra.mxu1 %vm941_vm2, %v8001_v20  ;;  %26462 = vmatprep.mubr.msk.f32.mxu1 %vm28385_vm1, %v34649_v40 }
 0x58b   :  { %26470 = vmatprep.subr.mxu1 %v34649_v40 }
 0x58c   :  { %v30439_v39 = vpop.f32.mrb[70].mxu0  ;;  %v8157_v8 = vpop.permute.xlu1 %8156 }
 0x58d   :  { %34717 = vst [vmem:[#allocation75_spill] sm:$0xff] %v30439_v39  ;;  %v26229_v51 = vpop.f32.mrb[71].mxu0  ;;  %26463 = vmatmul.mubr.msk.f32.vlgmr.msra.gmra.mrb[122].mxu1 %vm941_vm2, %v7999_v37 }
 0x58e   :  { %26471 = vmatpush3.xpose.msk.msra.mxu1 %vm941_vm2, %v8157_v8  ;;  %26472 = vmatprep.mubr.msk.f32.mxu1 %vm28385_vm1, %v34649_v40  ;;  %v8467_v51 = vpop.permute.xlu0 %8466 }
 0x58f   :  { %26480 = vmatprep.subr.mxu1 %v34649_v40 }
 0x590   :  { %v8313_v46 = vpop.permute.xlu1 %8312  ;;  %v30446_v0 = vpop.f32.mrb[76].mxu1 }
 0x591   :  { %34718 = vst [vmem:[#allocation76_spill] sm:$0xff] %v30446_v0  ;;  %v26234_v20 = vpop.f32.mrb[77].mxu1  ;;  %26473 = vmatmul.mubr.msk.f32.vlgmr.msra.gmra.mrb[124].mxu1 %vm941_vm2, %v8155_v24 }
 0x592   :  { %26481 = vmatpush3.xpose.msk.msra.mxu1 %vm941_vm2, %v8313_v46  ;;  %26482 = vmatprep.mubr.msk.f32.mxu1 %vm28385_vm1, %v34649_v40 }
 0x593   :  { %26490 = vmatprep.subr.mxu1 %v34649_v40 }
 0x594   :  { %v30453_v37 = vpop.f32.mrb[72].mxu0  ;;  %v8469_v38 = vpop.permute.xlu1 %8468 }
 0x595   :  { %34719 = vst [vmem:[#allocation77_spill] sm:$0xff] %v30453_v37  ;;  %v26239_v8 = vpop.f32.mrb[73].mxu0  ;;  %26483 = vmatmul.mubr.msk.f32.vlgmr.msra.gmra.mrb[126].mxu1 %vm941_vm2, %v8311_v60 }
 0x596   :  { %26491 = vmatpush3.xpose.msk.msra.mxu1 %vm941_vm2, %v8469_v38  ;;  %26492 = vmatprep.mubr.msk.f32.mxu1 %vm28385_vm1, %v34649_v40 }
 0x597   :  { %26500 = vmatprep.subr.mxu1 %v34649_v40 }
 0x598   :  { %v9008_v24 = vpop.permute.xlu1 %9007  ;;  %v30460_v46 = vpop.f32.mrb[78].mxu1 }
 0x599   :  { %34720 = vst [vmem:[#allocation78_spill] sm:$0xff] %v30460_v46  ;;  %v26244_v20 = vpop.f32.mrb[79].mxu1  ;;  %26493 = vmatmul.mubr.msk.f32.vlgmr.msra.gmra.mrb[128].mxu1 %vm941_vm2, %v8467_v51 }
 0x59a   :  { %26501 = vmatpush3.msra.mxu1 %v9008_v24  ;;  %26502 = vmatprep.mubr.msk.f32.mxu1 %vm28385_vm1, %v34649_v40 }
 0x59b   :  { %26510 = vmatprep.subr.mxu1 %v34649_v40 }
 0x59c   :  { %v30466_v60 = vpop.f32.mrb[74].mxu0  ;;  %v9085_v38 = vpop.permute.xlu1 %9084 }
 0x59d   :  { %34721 = vst [vmem:[#allocation79_spill] sm:$0xff] %v30466_v60  ;;  %v26249_v8 = vpop.f32.mrb[75].mxu0  ;;  %26506 = vmatpush3.msra.mxu0 %v9085_v38 }
 0x59e   :  { %26515 = vmatprep.subr.mxu0 %v34649_v40 }
 0x5a0   :  { %v30469_v5 = vpop.f32.mrb[80].mxu1 }
 0x5a1   :  { %34722 = vst [vmem:[#allocation80_spill] sm:$0xff] %v30469_v5  ;;  %v26254_v2 = vpop.f32.mrb[81].mxu1 }
 0x5a4   :  { %v30471_v28 = vpop.f32.mrb[76].mxu0 }
 0x5a5   :  { %34723 = vst [vmem:[#allocation81_spill] sm:$0xff] %v30471_v28  ;;  %v26259_v20 = vpop.f32.mrb[77].mxu0 }
 0x5a8   :  { %v30473_v51 = vpop.f32.mrb[82].mxu1 }
 0x5a9   :  { %34724 = vst [vmem:[#allocation82_spill] sm:$0xff] %v30473_v51  ;;  %v26264_v24 = vpop.f32.mrb[83].mxu1 }
 0x5ac   :  { %v30475_v57 = vpop.f32.mrb[78].mxu0 }
 0x5ad   :  { %34725 = vst [vmem:[#allocation83_spill] sm:$0xff] %v30475_v57  ;;  %v26269_v48 = vpop.f32.mrb[79].mxu0 }
 0x5b0   :  { %v30477_v13 = vpop.f32.mrb[84].mxu1 }
 0x5b1   :  { %34726 = vst [vmem:[#allocation84_spill] sm:$0xff] %v30477_v13  ;;  %v26274_v29 = vpop.f32.mrb[85].mxu1 }
 0x5b4   :  { %v30479_v9 = vpop.f32.mrb[80].mxu0 }
 0x5b5   :  { %34727 = vst [vmem:[#allocation85_spill] sm:$0xff] %v30479_v9  ;;  %v26279_v38 = vpop.f32.mrb[81].mxu0 }
 0x5b8   :  { %v30481_v8 = vpop.f32.mrb[86].mxu1 }
 0x5b9   :  { %34728 = vst [vmem:[#allocation86_spill] sm:$0xff] %v30481_v8  ;;  %v26284_v50 = vpop.f32.mrb[87].mxu1 }
 0x5bc   :  { %v30483_v52 = vpop.f32.mrb[82].mxu0 }
 0x5bd   :  { %34729 = vst [vmem:[#allocation87_spill] sm:$0xff] %v30483_v52  ;;  %v26289_v2 = vpop.f32.mrb[83].mxu0 }
 0x5c0   :  { %v30485_v14 = vpop.f32.mrb[88].mxu1 }
 0x5c1   :  { %34730 = vst [vmem:[#allocation88_spill] sm:$0xff] %v30485_v14  ;;  %v26294_v20 = vpop.f32.mrb[89].mxu1 }
 0x5c4   :  { %v30487_v17 = vpop.f32.mrb[84].mxu0 }
 0x5c5   :  { %34731 = vst [vmem:[#allocation89_spill] sm:$0xff] %v30487_v17  ;;  %v26299_v24 = vpop.f32.mrb[85].mxu0  ;;  %v30501_v17 = vpop.permute.xlu0 %9161 }
 0x5c8   :  { %v30489_v44 = vpop.f32.mrb[90].mxu1 }
 0x5c9   :  { %34732 = vst [vmem:[#allocation90_spill] sm:$0xff] %v30489_v44  ;;  %v26304_v48 = vpop.f32.mrb[91].mxu1  ;;  %v30505_v44 = vpop.permute.xlu0 %9315 }
 0x5cc   :  { %v30491_v19 = vpop.f32.mrb[86].mxu0 }
 0x5cd   :  { %34733 = vst [vmem:[#allocation91_spill] sm:$0xff] %v30491_v19  ;;  %v26309_v29 = vpop.f32.mrb[87].mxu0  ;;  %v30517_v13 = vpop.permute.xlu0 %9469 }
 0x5d0   :  { %v30493_v9 = vpop.f32.mrb[92].mxu1 }
 0x5d1   :  { %34734 = vst [vmem:[#allocation92_spill] sm:$0xff] %v30493_v9  ;;  %v26314_v38 = vpop.f32.mrb[93].mxu1 }
 0x5d4   :  { %v30495_v8 = vpop.f32.mrb[88].mxu0 }
 0x5d5   :  { %34735 = vst [vmem:[#allocation93_spill] sm:$0xff] %v30495_v8  ;;  %v26319_v50 = vpop.f32.mrb[89].mxu0 }
 0x5d8   :  { %v30497_v52 = vpop.f32.mrb[94].mxu1 }
 0x5d9   :  { %34736 = vst [vmem:[#allocation94_spill] sm:$0xff] %v30497_v52  ;;  %v26324_v2 = vpop.f32.mrb[95].mxu1 }
 0x5dc   :  { %v30499_v14 = vpop.f32.mrb[90].mxu0 }
 0x5dd   :  { %34737 = vst [vmem:[#allocation95_spill] sm:$0xff] %v30499_v14  ;;  %v26329_v20 = vpop.f32.mrb[91].mxu0 }
 0x60d   :  { %v30503_v24 = vpop.f32.mrb[96].mxu1 }
 0x60e   :  { %34738 = vst [vmem:[#allocation96_spill] sm:$0xff] %v30503_v24  ;;  %v26334_v48 = vpop.f32.mrb[97].mxu1 }
 0x611   :  { %v30507_v29 = vpop.f32.mrb[92].mxu0  ;;  %v6200_v9 = vpop.f32.mrb[98].mxu1 }
 0x612   :  { %34739 = vst [vmem:[#allocation97_spill] sm:$0xff] %v30507_v29  ;;  %v30509_v38 = vmul.f32 0.125, %v6200_v9  ;;  %v26339_v8 = vpop.f32.mrb[93].mxu0  ;;  %v26344_v50 = vpop.f32.mrb[99].mxu1 }
 0x614   :  { %v8654_v2 = vsel %vm3435_vm3, %v30509_v38, -inf }
 0x615   :  { %8655 = vmax.xlane.f32.xlu0 %v8654_v2 }
 0x616   :  { %v6278_v14 = vpop.f32.mrb[94].mxu0  ;;  %v6356_v20 = vpop.f32.mrb[100].mxu1 }
 0x617   :  { %v30513_v52 = vmul.f32 0.125, %v6278_v14  ;;  %v30515_v19 = vmul.f32 0.125, %v6356_v20  ;;  %v26349_v48 = vpop.f32.mrb[95].mxu0  ;;  %v26354_v24 = vpop.f32.mrb[101].mxu1 }
 0x618   :  { %v30525_v20 = vpop.permute.xlu0 %9623 }
 0x619   :  { %v8657_v9 = vsel %vm3435_vm3, %v30513_v52, -inf  ;;  %v8660_v8 = vsel %vm3435_vm3, %v30515_v19, -inf }
 0x61a   :  { %8658 = vmax.xlane.f32.xlu1 %v8657_v9  ;;  %8661 = vmax.xlane.f32.xlu0 %v8660_v8 }
 0x61b   :  { %v6434_v50 = vpop.f32.mrb[96].mxu0  ;;  %v6512_v2 = vpop.f32.mrb[102].mxu1 }
 0x61c   :  { %v30523_v29 = vmul.f32 0.125, %v6434_v50  ;;  %v26359_v14 = vpop.f32.mrb[97].mxu0  ;;  %v26364_v57 = vpop.f32.mrb[103].mxu1  ;;  %v30527_v48 = vmul.f32 0.125, %v6512_v2 }
 0x61d   :  { %v30537_v57 = vpop.permute.xlu1 %9238  ;;  %v30541_v14 = vpop.permute.xlu0 %9777 }
 0x61e   :  { %v8663_v24 = vsel %vm3435_vm3, %v30523_v29, -inf  ;;  %v8666_v50 = vsel %vm3435_vm3, %v30527_v48, -inf }
 0x61f   :  { %8664 = vmax.xlane.f32.xlu0 %v8663_v24 }
 0x620   :  { %v6590_v51 = vpop.f32.mrb[98].mxu0  ;;  %v6668_v28 = vpop.f32.mrb[104].mxu1 }
 0x621   :  { %v30531_v5 = vmul.f32 0.125, %v6590_v51  ;;  %v26369_v9 = vpop.f32.mrb[99].mxu0  ;;  %v26374_v8 = vpop.f32.mrb[105].mxu1  ;;  %v30533_v60 = vmul.f32 0.125, %v6668_v28 }
 0x622   :  { %v30551_v39 = vpop.permute.xlu1 %9392  ;;  %v30559_v49 = vpop.permute.xlu0 %10162 }
 0x623   :  { %v8669_v2 = vsel %vm3435_vm3, %v30531_v5, -inf  ;;  %8667 = vmax.xlane.f32.xlu0 %v8666_v50  ;;  %v8672_v37 = vsel %vm3435_vm3, %v30533_v60, -inf  ;;  %34740 = vst [vmem:[#allocation98_spill] sm:$0xff] %v30559_v49 }
 0x624   :  { %8670 = vmax.xlane.f32.xlu1 %v8669_v2 }
 0x625   :  { %v6746_v24 = vpop.f32.mrb[100].mxu0  ;;  %v6824_v46 = vpop.f32.mrb[106].mxu1 }
 0x626   :  { %v30543_v51 = vmul.f32 0.125, %v6746_v24  ;;  %v30545_v9 = vmul.f32 0.125, %v6824_v46  ;;  %v26379_v28 = vpop.f32.mrb[101].mxu0  ;;  %v26384_v8 = vpop.f32.mrb[107].mxu1 }
 0x627   :  { %8673 = vmax.xlane.f32.xlu0 %v8672_v37 }
 0x628   :  { %v8675_v0 = vsel %vm3435_vm3, %v30543_v51, -inf  ;;  %v8678_v46 = vsel %vm3435_vm3, %v30545_v9, -inf }
 0x629   :  { %v6902_v50 = vpop.f32.mrb[102].mxu0  ;;  %8676 = vmax.xlane.f32.xlu1 %v8675_v0 }
 0x62a   :  { %v30553_v2 = vmul.f32 0.125, %v6902_v50  ;;  %v6980_v1 = vpop.f32.mrb[108].mxu1  ;;  %v26389_v24 = vpop.f32.mrb[103].mxu0 }
 0x62b   :  { %v30557_v28 = vmul.f32 0.125, %v6980_v1  ;;  %v26394_v8 = vpop.f32.mrb[109].mxu1  ;;  %8679 = vmax.xlane.f32.xlu0 %v8678_v46  ;;  %v30567_v24 = vpop.permute.xlu1 %9546 }
 0x62c   :  { %v8681_v37 = vsel %vm3435_vm3, %v30553_v2, -inf  ;;  %v30571_v8 = vpop.permute.xlu0 %10316 }
 0x62d   :  { %8682 = vmax.xlane.f32.xlu1 %v8681_v37  ;;  %v7058_v22 = vpop.f32.mrb[104].mxu0  ;;  %v8684_v50 = vsel %vm3435_vm3, %v30557_v28, -inf  ;;  %34741 = vst [vmem:[#allocation99_spill] sm:$0xff] %v30571_v8 }
 0x62e   :  { %v30563_v61 = vmul.f32 0.125, %v7058_v22  ;;  %v26399_v0 = vpop.f32.mrb[105].mxu0 }
 0x62f   :  { %8685 = vmax.xlane.f32.xlu0 %v8684_v50  ;;  %v30579_v32 = vpop.permute.xlu1 %9700 }
 0x630   :  { %v8687_v1 = vsel %vm3435_vm3, %v30563_v61, -inf  ;;  %v30581_v11 = vpop.permute.xlu0 %10624 }
 0x631   :  { %8688 = vmax.xlane.f32.xlu1 %v8687_v1  ;;  %v7214_v46 = vpop.f32.mrb[106].mxu0  ;;  %34742 = vst [vmem:[#allocation100_spill] sm:$0xff] %v30581_v11 }
 0x632   :  { %v30573_v53 = vmul.f32 0.125, %v7214_v46  ;;  %v26409_v37 = vpop.f32.mrb[107].mxu0 }
 0x633   :  { %v30583_v1 = vpop.permute.xlu1 %9854 }
 0x634   :  { %v8693_v22 = vsel %vm3435_vm3, %v30573_v53, -inf  ;;  %v30585_v62 = vpop.permute.xlu0 %12116 }
 0x635   :  { %v30577_v0 = vpop.f32.mrb[108].mxu0  ;;  %8694 = vmax.xlane.f32.xlu0 %v8693_v22  ;;  %34743 = vst [vmem:[#allocation101_spill] sm:$0xff] %v30585_v62 }
 0x636   :  { %v26419_v50 = vpop.f32.mrb[109].mxu0 }
 0x637   :  { %v30587_v16 = vpop.permute.xlu1 %10008 }
 0x638   :  { %v30591_v55 = vpop.permute.xlu0 %12194 }
 0x639   :  { %v7526_v26 = vpop.f32.mrb[110].mxu0  ;;  %34744 = vst [vmem:[#allocation102_spill] sm:$0xff] %v30591_v55 }
 0x63a   :  { %v26429_v23 = vpop.f32.mrb[111].mxu0  ;;  %v30605_v41 = vmul.f32 0.125, %v7526_v26 }
 0x63b   :  { %v30595_v21 = vpop.permute.xlu1 %10470 }
 0x63c   :  { %34745 = vst [vmem:[#allocation103_spill] sm:$0xff] %v30595_v21  ;;  %v30597_v56 = vpop.permute.xlu0 %12272 }
 0x63d   :  { %v7682_v25 = vpop.f32.mrb[112].mxu0  ;;  %34746 = vst [vmem:[#allocation104_spill] sm:$0xff] %v30597_v56 }
 0x63e   :  { %v26439_v46 = vpop.f32.mrb[113].mxu0 }
 0x641   :  { %v7838_v37 = vpop.f32.mrb[114].mxu0 }
 0x642   :  { %13128 = vrot.lane.b32.xlu1 %v29179_v33, %s28390_s14  ;;  %v26449_v22 = vpop.f32.mrb[115].mxu0 }
 0x643   :  { %v30603_v22 = vpop.permute.xlu1 %10778 }
 0x644   :  { %v7136_v50 = vpop.f32.mrb[110].mxu1  ;;  %34748 = vst [vmem:[#allocation106_spill] sm:$0xff] %v30603_v22 }
 0x645   :  { %v30593_v58 = vpop.f32.mrb[116].mxu0  ;;  %v26404_v7 = vpop.f32.mrb[111].mxu1 }
 0x646   :  { %v26459_v23 = vpop.f32.mrb[117].mxu0 }
 0x647   :  { %v30609_v23 = vpop.permute.xlu0 %12350  ;;  %v30613_v21 = vpop.permute.xlu1 %10932 }
 0x648   :  { %34749 = vst [vmem:[#allocation107_spill] sm:$0xff] %v30609_v23  ;;  %34750 = vst [vmem:[#allocation108_spill] sm:$0xff] %v30613_v21 }
 0x649   :  { %v8150_v10 = vpop.f32.mrb[118].mxu0 }
 0x64a   :  { %v26469_v46 = vpop.f32.mrb[119].mxu0 }
 0x64b   :  { %v30619_v8 = vpop.permute.xlu0 %12428  ;;  %v30625_v49 = vpop.permute.xlu1 %11086 }
 0x64c   :  { %v7292_v62 = vpop.f32.mrb[112].mxu1  ;;  %34752 = vst [vmem:[#allocation110_spill] sm:$0xff] %v30619_v8  ;;  %34753 = vst [vmem:[#allocation111_spill] sm:$0xff] %v30625_v49  ;;  %v30639_v49 = vmul.f32 0.125, %v7136_v50 }
 0x64d   :  { %v30599_v4 = vpop.f32.mrb[120].mxu0  ;;  %v30601_v30 = vmul.f32 0.125, %v7292_v62  ;;  %v26414_v33 = vpop.f32.mrb[113].mxu1  ;;  %v8705_v62 = vsel %vm3435_vm3, %v30605_v41, -inf }
 0x64e   :  { %v26479_v55 = vpop.f32.mrb[121].mxu0 }
 0x64f   :  { %34747 = vst [vmem:[#allocation105_spill] sm:$0xff] %v30601_v30  ;;  %v8696_v7 = vsel %vm3435_vm3, %v30601_v30, -inf  ;;  %v30631_v21 = vpop.permute.xlu0 %12506 }
 0x650   :  { %8697 = vmax.xlane.f32.xlu0 %v8696_v7  ;;  %v7448_v34 = vpop.f32.mrb[114].mxu1  ;;  %v30621_v7 = vmul.f32 0.125, %v7682_v25  ;;  %34754 = vst [vmem:[#allocation112_spill] sm:$0xff] %v30631_v21 }
 0x651   :  { %v8462_v56 = vpop.f32.mrb[122].mxu0  ;;  %v26424_v46 = vpop.f32.mrb[115].mxu1 }
 0x652   :  { %v26489_v11 = vpop.f32.mrb[123].mxu0 }
 0x654   :  { %8706 = vmax.xlane.f32.xlu0 %v8705_v62  ;;  %v7604_v33 = vpop.f32.mrb[116].mxu1  ;;  %v30627_v62 = vmul.f32 0.125, %v7838_v37 }
 0x655   :  { %v30615_v55 = vpop.f32.mrb[124].mxu0  ;;  %v30617_v26 = vmul.f32 0.125, %v7604_v33  ;;  %v26434_v22 = vpop.f32.mrb[117].mxu1  ;;  %v8711_v33 = vsel %vm3435_vm3, %v30621_v7, -inf }
 0x656   :  { %v26499_v23 = vpop.f32.mrb[125].mxu0  ;;  %v8717_v8 = vsel %vm3435_vm3, %v30627_v62, -inf }
 0x657   :  { %34751 = vst [vmem:[#allocation109_spill] sm:$0xff] %v30617_v26  ;;  %v8708_v11 = vsel %vm3435_vm3, %v30617_v26, -inf  ;;  %v30641_v26 = vpop.permute.xlu0 %12504 }
 0x658   :  { %8709 = vmax.xlane.f32.xlu0 %v8708_v11  ;;  %v7760_v46 = vpop.f32.mrb[118].mxu1  ;;  %34757 = vst [vmem:[#allocation115_spill] sm:$0xff] %v30641_v26 }
 0x659   :  { %v26444_v6 = vpop.f32.mrb[119].mxu1 }
 0x65a   :  { %v30637_v6 = vpop.permute.xlu1 %11240 }
 0x65b   :  { %34756 = vst [vmem:[#allocation114_spill] sm:$0xff] %v30637_v6  ;;  %v30658_v26 = vpop.permute.xlu0 %12584 }
 0x65c   :  { %8712 = vmax.xlane.f32.xlu0 %v8711_v33  ;;  %v7916_v22 = vpop.f32.mrb[120].mxu1  ;;  %34760 = vst [vmem:[#allocation118_spill] sm:$0xff] %v30658_v26  ;;  %v30672_v26 = vmul.f32 0.125, %v7760_v46 }
 0x65d   :  { %v26454_v23 = vpop.f32.mrb[121].mxu1  ;;  %v30633_v25 = vmul.f32 0.125, %v7916_v22 }
 0x65e   :  { %v30648_v23 = vmul.f32 0.125, %v30577_v0  ;;  %v30652_v50 = vpop.permute.xlu1 %11394  ;;  %34764 = vst [vmem:[#allocation122_spill] sm:$0xff] %v30672_v26  ;;  %v8714_v46 = vsel %vm3435_vm3, %v30672_v26, -inf }
 0x65f   :  { %34755 = vst [vmem:[#allocation113_spill] sm:$0xff] %v30633_v25  ;;  %v8720_v33 = vsel %vm3435_vm3, %v30633_v25, -inf  ;;  %34759 = vst [vmem:[#allocation117_spill] sm:$0xff] %v30652_v50  ;;  %v30660_v25 = vmul.f32 0.125, %v7448_v34 }
 0x660   :  { %8718 = vmax.xlane.f32.xlu0 %v8717_v8  ;;  %v8072_v11 = vpop.f32.mrb[122].mxu1  ;;  %v8690_v8 = vsel %vm3435_vm3, %v30639_v49, -inf  ;;  %v8699_v0 = vsel %vm3435_vm3, %v30648_v23, -inf }
 0x661   :  { %v26464_v37 = vpop.f32.mrb[123].mxu1  ;;  %v30643_v30 = vmul.f32 0.125, %v8072_v11  ;;  %34761 = vst [vmem:[#allocation119_spill] sm:$0xff] %v30660_v25  ;;  %v8702_v34 = vsel %vm3435_vm3, %v30660_v25, -inf }
 0x662   :  { %v30654_v37 = vmul.f32 0.125, %v8150_v10  ;;  %v30670_v50 = vpop.permute.xlu1 %12114 }
 0x663   :  { %34758 = vst [vmem:[#allocation116_spill] sm:$0xff] %v30643_v30  ;;  %v8726_v11 = vsel %vm3435_vm3, %v30643_v30, -inf  ;;  %34763 = vst [vmem:[#allocation121_spill] sm:$0xff] %v30670_v50  ;;  %v30676_v30 = vpop.permute.xlu0 %12662 }
 0x664   :  { %8721 = vmax.xlane.f32.xlu0 %v8720_v33  ;;  %v8228_v22 = vpop.f32.mrb[124].mxu1  ;;  %v8729_v10 = vsel %vm3435_vm3, %v30654_v37, -inf  ;;  %34765 = vst [vmem:[#allocation123_spill] sm:$0xff] %v30676_v30 }
 0x665   :  { %v26474_v21 = vpop.f32.mrb[125].mxu1 }
 0x666   :  { %8691 = vmax.xlane.f32.xlu1 %v8690_v8 }
 0x667   :  { %v30691_v30 = vpop.permute.xlu0 %12660 }
 0x668   :  { %8727 = vmax.xlane.f32.xlu0 %v8726_v11  ;;  %v8384_v33 = vpop.f32.mrb[126].mxu1  ;;  %34767 = vst [vmem:[#allocation125_spill] sm:$0xff] %v30691_v30  ;;  %v30707_v30 = vmul.f32 0.125, %v30615_v55 }
 0x669   :  { %v26484_v6 = vpop.f32.mrb[127].mxu1  ;;  %v30664_v21 = vmul.f32 0.125, %v8384_v33 }
 0x66a   :  { %8700 = vmax.xlane.f32.xlu1 %v8699_v0  ;;  %v30678_v6 = vmul.f32 0.125, %v8462_v56  ;;  %v30683_v0 = vmul.f32 0.125, %v30593_v58  ;;  %v30693_v56 = vmul.f32 0.125, %v8228_v22 }
 0x66b   :  { %34762 = vst [vmem:[#allocation120_spill] sm:$0xff] %v30664_v21  ;;  %v8738_v33 = vsel %vm3435_vm3, %v30664_v21, -inf }
 0x66c   :  { %8730 = vmax.xlane.f32.xlu0 %v8729_v10  ;;  %v30668_v8 = vpop.f32.mrb[128].mxu1  ;;  %v30687_v10 = vpop.permute.xlu1 %12192  ;;  %34768 = vst [vmem:[#allocation126_spill] sm:$0xff] %v30693_v56 }
 0x66d   :  { %v26494_v11 = vpop.f32.mrb[129].mxu1  ;;  %34766 = vst [vmem:[#allocation124_spill] sm:$0xff] %v30687_v10  ;;  %v30704_v10 = vpop.permute.xlu0 %12740 }
 0x66e   :  { %8703 = vmax.xlane.f32.xlu1 %v8702_v34  ;;  %v8741_v11 = vsel %vm3435_vm3, %v30678_v6, -inf  ;;  %v8723_v34 = vsel %vm3435_vm3, %v30683_v0, -inf  ;;  %34770 = vst [vmem:[#allocation128_spill] sm:$0xff] %v30704_v10 }
 0x670   :  { %8739 = vmax.xlane.f32.xlu0 %v8738_v33  ;;  %v30697_v58 = vpop.permute.xlu1 %12270  ;;  %v30700_v33 = vmul.f32 0.125, %v30599_v4  ;;  %v8747_v4 = vsel %vm3435_vm3, %v30707_v30, -inf }
 0x671   :  { %34769 = vst [vmem:[#allocation127_spill] sm:$0xff] %v30697_v58 }
 0x672   :  { %8715 = vmax.xlane.f32.xlu1 %v8714_v46  ;;  %v8732_v46 = vsel %vm3435_vm3, %v30693_v56, -inf  ;;  %v8735_v22 = vsel %vm3435_vm3, %v30700_v33, -inf }
 0x674   :  { %8742 = vmax.xlane.f32.xlu0 %v8741_v11  ;;  %v30711_v11 = vpop.permute.xlu1 %12348 }
 0x675   :  { %34771 = vst [vmem:[#allocation129_spill] sm:$0xff] %v30711_v11 }
 0x676   :  { %8724 = vmax.xlane.f32.xlu1 %v8723_v34  ;;  %v30713_v34 = vpop.permute.xlu0 %12818 }
 0x677   :  { %34772 = vst [vmem:[#allocation130_spill] sm:$0xff] %v30713_v34 }
 0x678   :  { %v30717_v58 = vpop.permute.xlu1 %12426 }
 0x679   :  { %34773 = vst [vmem:[#allocation131_spill] sm:$0xff] %v30717_v58 }
 0x67a   :  { %8733 = vmax.xlane.f32.xlu1 %v8732_v46  ;;  %v30719_v50 = vpop.permute.xlu0 %12816 }
 0x67b   :  { %34774 = vst [vmem:[#allocation132_spill] sm:$0xff] %v30719_v50 }
 0x67c   :  { %v30721_v46 = vpop.permute.xlu1 %12582 }
 0x67d   :  { %34775 = vst [vmem:[#allocation133_spill] sm:$0xff] %v30721_v46 }
 0x67e   :  { %8736 = vmax.xlane.f32.xlu1 %v8735_v22  ;;  %v30723_v55 = vpop.permute.xlu0 %12896 }
 0x67f   :  { %34776 = vst [vmem:[#allocation134_spill] sm:$0xff] %v30723_v55 }
 0x680   :  { %v30725_v10 = vpop.permute.xlu1 %12738 }
 0x681   :  { %34777 = vst [vmem:[#allocation135_spill] sm:$0xff] %v30725_v10 }
 0x682   :  { %8748 = vmax.xlane.f32.xlu1 %v8747_v4  ;;  %v30727_v21 = vpop.permute.xlu0 %13052 }
 0x683   :  { %34778 = vst [vmem:[#allocation136_spill] sm:$0xff] %v30727_v21 }
 0x684   :  { %v30729_v22 = vpop.permute.xlu1 %12894 }
 0x685   :  { %34779 = vst [vmem:[#allocation137_spill] sm:$0xff] %v30729_v22 }
 0x686   :  { %v30731_v11 = vpop.permute.xlu0 %13050 }
 0x687   :  { %34780 = vst [vmem:[#allocation138_spill] sm:$0xff] %v30731_v11 }
 0x688   :  { %v30733_v34 = vpop.permute.xlu1 %12974 }
 0x689   :  { %34781 = vst [vmem:[#allocation139_spill] sm:$0xff] %v30733_v34 }
 0x68a   :  { %v30735_v56 = vpop.permute.xlu0 %13130 }
 0x68b   :  { %34782 = vst [vmem:[#allocation140_spill] sm:$0xff] %v30735_v56 }
 0x68c   :  { %v30737_v58 = vpop.permute.xlu1 %12972 }
 0x68d   :  { %34783 = vst [vmem:[#allocation141_spill] sm:$0xff] %v30737_v58 }
 0x6a2   :  { %v8656_v4 = vpop.xlane.xlu0 %8655 }
 0x6a3   :  { %v8750_v50 = vsub.f32 %v30509_v38, %v8656_v4 }
 0x6a5   :  { %v8782_v46 = vmul.f32 1.442695, %v8750_v50 }
 0x6a7   :  { %27904 = vpow2.f32 %v8782_v46  ;;  %v8659_v55 = vpop.xlane.xlu1 %8658  ;;  %v8662_v26 = vpop.xlane.xlu0 %8661 }
 0x6a8   :  { %v8751_v10 = vsub.f32 %v30513_v52, %v8659_v55  ;;  %v8752_v21 = vsub.f32 %v30515_v19, %v8662_v26 }
 0x6aa   :  { %v8784_v22 = vmul.f32 1.442695, %v8751_v10  ;;  %v8786_v25 = vmul.f32 1.442695, %v8752_v21 }
 0x6ac   :  { %27906 = vpow2.f32 %v8784_v22  ;;  %v8665_v11 = vpop.xlane.xlu0 %8664 }
 0x6ad   :  { %27908 = vpow2.f32 %v8786_v25  ;;  %v8753_v56 = vsub.f32 %v30523_v29, %v8665_v11 }
 0x6af   :  { %v8788_v34 = vmul.f32 1.442695, %v8753_v56 }
 0x6b0   :  { %v8668_v31 = vpop.xlane.xlu0 %8667 }
 0x6b1   :  { %v30743_v58 = vpop.eup %27904  ;;  %27910 = vpow2.f32 %v8788_v34  ;;  %v8671_v38 = vpop.xlane.xlu1 %8670  ;;  %v8754_v50 = vsub.f32 %v30527_v48, %v8668_v31 }
 0x6b2   :  { %v8755_v46 = vsub.f32 %v30531_v5, %v8671_v38  ;;  %v8846_v19 = vsel %vm3435_vm3, %v30743_v58, 0.0 }
 0x6b3   :  { %v8790_v52 = vmul.f32 1.442695, %v8754_v50  ;;  %8847 = vadd.xlane.f32.xlu1 %v8846_v19 }
 0x6b4   :  { %v8792_v26 = vmul.f32 1.442695, %v8755_v46  ;;  %v8674_v21 = vpop.xlane.xlu0 %8673 }
 0x6b5   :  { %27912 = vpow2.f32 %v8790_v52  ;;  %v8756_v29 = vsub.f32 %v30533_v60, %v8674_v21 }
 0x6b6   :  { %v30750_v25 = vpop.eup %27906  ;;  %27914 = vpow2.f32 %v8792_v26  ;;  %v8677_v10 = vpop.xlane.xlu1 %8676 }
 0x6b7   :  { %v30752_v56 = vpop.eup %27908  ;;  %v8757_v31 = vsub.f32 %v30543_v51, %v8677_v10  ;;  %v8794_v48 = vmul.f32 1.442695, %v8756_v29  ;;  %v8849_v5 = vsel %vm3435_vm3, %v30750_v25, 0.0 }
 0x6b8   :  { %v8680_v11 = vpop.xlane.xlu0 %8679  ;;  %8850 = vadd.xlane.f32.xlu0 %v8849_v5  ;;  %v8852_v34 = vsel %vm3435_vm3, %v30752_v56, 0.0 }
 0x6b9   :  { %v8796_v55 = vmul.f32 1.442695, %v8757_v31  ;;  %27916 = vpow2.f32 %v8794_v48  ;;  %v8758_v60 = vsub.f32 %v30545_v9, %v8680_v11  ;;  %8853 = vadd.xlane.f32.xlu1 %v8852_v34 }
 0x6ba   :  { %v8683_v22 = vpop.xlane.xlu1 %8682 }
 0x6bb   :  { %v30760_v4 = vpop.eup %27910  ;;  %27918 = vpow2.f32 %v8796_v55  ;;  %v8759_v51 = vsub.f32 %v30553_v2, %v8683_v22  ;;  %v8798_v38 = vmul.f32 1.442695, %v8758_v60 }
 0x6bc   :  { %v8686_v50 = vpop.xlane.xlu0 %8685  ;;  %v8855_v46 = vsel %vm3435_vm3, %v30760_v4, 0.0 }
 0x6bd   :  { %v8800_v19 = vmul.f32 1.442695, %v8759_v51  ;;  %27920 = vpow2.f32 %v8798_v38  ;;  %v8760_v52 = vsub.f32 %v30557_v28, %v8686_v50  ;;  %8856 = vadd.xlane.f32.xlu0 %v8855_v46  ;;  %v30811_v51 = vmul.f32 0.125, %v30668_v8 }
 0x6be   :  { %v8689_v46 = vpop.xlane.xlu1 %8688 }
 0x6bf   :  { %v30766_v26 = vpop.eup %27912  ;;  %27922 = vpow2.f32 %v8800_v19  ;;  %v8802_v9 = vmul.f32 1.442695, %v8760_v52  ;;  %34784 = vst [vmem:[#allocation142_spill] sm:$0xff] %v30811_v51  ;;  %v8744_v38 = vsel %vm3435_vm3, %v30811_v51, -inf }
 0x6c0   :  { %v30768_v21 = vpop.eup %27914  ;;  %v8858_v29 = vsel %vm3435_vm3, %v30766_v26, 0.0 }
 0x6c1   :  { %27924 = vpow2.f32 %v8802_v9  ;;  %v8861_v2 = vsel %vm3435_vm3, %v30768_v21, 0.0  ;;  %8859 = vadd.xlane.f32.xlu1 %v8858_v29 }
 0x6c2   :  { %8862 = vadd.xlane.f32.xlu0 %v8861_v2  ;;  %v30821_v50 = vpop.xlane.xlu0 %8694  ;;  %v30829_v19 = vpop.permute.xlu1 %13128 }
 0x6c3   :  { %v30774_v10 = vpop.eup %27916  ;;  %34785 = vst [vmem:[#allocation143_spill] sm:$0xff] %v30829_v19 }
 0x6c4   :  { %v8864_v28 = vsel %vm3435_vm3, %v30774_v10, 0.0 }
 0x6c5   :  { %v30778_v31 = vpop.eup %27918  ;;  %8865 = vadd.xlane.f32.xlu1 %v8864_v28  ;;  %v8761_v28 = vsub.f32 %v30563_v61, %v8689_v46 }
 0x6c6   :  { %v8867_v48 = vsel %vm3435_vm3, %v30778_v31, 0.0 }
 0x6c7   :  { %v30782_v5 = vpop.eup %27920  ;;  %8868 = vadd.xlane.f32.xlu0 %v8867_v48 }
 0x6c8   :  { %v8870_v11 = vsel %vm3435_vm3, %v30782_v5, 0.0 }
 0x6c9   :  { %v30786_v34 = vpop.eup %27922  ;;  %8871 = vadd.xlane.f32.xlu1 %v8870_v11  ;;  %v8804_v11 = vmul.f32 1.442695, %v8761_v28 }
 0x6ca   :  { %v8873_v55 = vsel %vm3435_vm3, %v30786_v34, 0.0 }
 0x6cb   :  { %v30790_v60 = vpop.eup %27924  ;;  %8874 = vadd.xlane.f32.xlu0 %v8873_v55  ;;  %27926 = vpow2.f32 %v8804_v11 }
 0x6cc   :  { %v8876_v22 = vsel %vm3435_vm3, %v30790_v60, 0.0 }
 0x6cd   :  { %8877 = vadd.xlane.f32.xlu1 %v8876_v22 }
 0x6d5   :  { %v30862_v28 = vpop.eup %27926 }
 0x6d6   :  { %v8879_v11 = vsel %vm3435_vm3, %v30862_v28, 0.0 }
 0x6dd   :  { %v30825_v8 = vpop.xlane.xlu0 %8697 }
 0x6de   :  { %13208 = vrot.lane.b32.xlu1 %v34673_v35, %s28389_s13 }
 0x6e1   :  { %13206 = vrot.lane.b32.xlu0 %v34673_v35, %s28390_s14  ;;  %v30831_v52 = vpop.xlane.xlu0 %8706 }
 0x6e5   :  { %13286 = vrot.lane.b32.xlu0 %v34651_v27, %s28389_s13  ;;  %v30839_v29 = vpop.xlane.xlu0 %8709 }
 0x6e9   :  { %13284 = vrot.lane.b32.xlu0 %v34651_v27, %s28390_s14  ;;  %v8713_v48 = vpop.xlane.xlu0 %8712 }
 0x6ea   :  { %v8769_v27 = vsub.f32 %v30621_v7, %v8713_v48 }
 0x6ec   :  { %v8820_v19 = vmul.f32 1.442695, %v8769_v27 }
 0x6ed   :  { %13364 = vrot.lane.b32.xlu0 %v34671_v45, %s28389_s13  ;;  %v30850_v22 = vpop.xlane.xlu0 %8718 }
 0x6f1   :  { %13442 = vrot.lane.b32.xlu0 %v34653_v3, %s28389_s13  ;;  %v30858_v61 = vpop.xlane.xlu0 %8721 }
 0x6f2   :  { %34786 = vst [vmem:[#allocation144_spill] sm:$0xff] %v30858_v61 }
 0x6f3   :  { %v30835_v9 = vpop.xlane.xlu1 %8691 }
 0x6f5   :  { %13440 = vrot.lane.b32.xlu0 %v34653_v3, %s28390_s14 }
 0x6f7   :  { %v8701_v2 = vpop.xlane.xlu1 %8700 }
 0x6f9   :  { %13520 = vrot.lane.b32.xlu0 %v34674_v18, %s28389_s13 }
 0x6fb   :  { %v30846_v55 = vpop.xlane.xlu1 %8703 }
 0x6fd   :  { %13518 = vrot.lane.b32.xlu0 %v34674_v18, %s28390_s14 }
 0x701   :  { %13598 = vrot.lane.b32.xlu0 %v34655_v63, %s28389_s13 }
 0x702   :  { %8745 = vmax.xlane.f32.xlu1 %v8744_v38  ;;  %v30854_v38 = vpop.xlane.xlu1 %8715 }
 0x705   :  { %13676 = vrot.lane.b32.xlu0 %v34676_v12, %s28389_s13 }
 0x706   :  { %v8725_v46 = vpop.xlane.xlu1 %8724 }
 0x707   :  { %v8773_v51 = vsub.f32 %v30683_v0, %v8725_v46 }
 0x709   :  { %13754 = vrot.lane.b32.xlu0 %v34657_v54, %s28389_s13 }
 0x70a   :  { %v30868_v18 = vpop.xlane.xlu1 %8733 }
 0x70b   :  { %34787 = vst [vmem:[#allocation145_spill] sm:$0xff] %v30868_v18 }
 0x70d   :  { %13832 = vrot.lane.b32.xlu0 %v34679_v42, %s28389_s13 }
 0x711   :  { %13910 = vrot.lane.b32.xlu0 %v34659_v47, %s28389_s13 }
 0x713   :  { %13362 = vrot.lane.b32.xlu1 %v34671_v45, %s28390_s14 }
 0x717   :  { %13596 = vrot.lane.b32.xlu1 %v34655_v63, %s28390_s14 }
 0x71b   :  { %13674 = vrot.lane.b32.xlu1 %v34676_v12, %s28390_s14  ;;  %v30864_v12 = vpop.xlane.xlu0 %8727 }
 0x71f   :  { %13752 = vrot.lane.b32.xlu1 %v34657_v54, %s28390_s14  ;;  %v30872_v54 = vpop.xlane.xlu1 %8736 }
 0x723   :  { %13830 = vrot.lane.b32.xlu1 %v34679_v42, %s28390_s14  ;;  %v30870_v42 = vpop.xlane.xlu0 %8730  ;;  %v30877_v3 = vpop.xlane.xlu1 %8748 }
 0x727   :  { %13908 = vrot.lane.b32.xlu1 %v34659_v47, %s28390_s14  ;;  %v8765_v47 = vsub.f32 %v30648_v23, %v8701_v2  ;;  %v30875_v45 = vpop.xlane.xlu0 %8739 }
 0x729   :  { %v8812_v63 = vmul.f32 1.442695, %v8765_v47 }
 0x72b   :  { %13986 = vrot.lane.b32.xlu1 %v34681_v36, %s28390_s14  ;;  %27928 = vpow2.f32 %v8812_v63  ;;  %v30881_v18 = vpop.xlane.xlu0 %8742 }
 0x730   :  { %8880 = vadd.xlane.f32.xlu0 %v8879_v11  ;;  %v8828_v11 = vmul.f32 1.442695, %v8773_v51 }
 0x735   :  { %v30885_v47 = vpop.eup %27928 }
 0x736   :  { %v8891_v0 = vsel %vm3435_vm3, %v30885_v47, 0.0 }
 0x740   :  { %v8848_v35 = vpop.xlane.xlu1 %8847 }
 0x741   :  { %27930 = vrcp.f32 %v8848_v35 }
 0x742   :  { %27932 = vpow2.f32 %v8820_v19 }
 0x745   :  { %v8851_v61 = vpop.xlane.xlu0 %8850 }
 0x746   :  { %13988 = vrot.lane.b32.xlu0 %v34681_v36, %s28389_s13  ;;  %v8854_v23 = vpop.xlane.xlu1 %8853  ;;  %27934 = vrcp.f32 %v8851_v61  ;;  %v8763_v61 = vsub.f32 %v30573_v53, %v30821_v50  ;;  %v34822_v36 = vld [vmem:[#allocation11_spill] sm:$0xff] }
 0x747   :  { %27936 = vrcp.f32 %v8854_v23 }
 0x748   :  { %27938 = vpow2.f32 %v8828_v11  ;;  %v8808_v53 = vmul.f32 1.442695, %v8763_v61 }
 0x74a   :  { %14066 = vrot.lane.b32.xlu0 %v34661_v59, %s28389_s13  ;;  %v8857_v27 = vpop.xlane.xlu0 %8856 }
 0x74b   :  { %v27931_v63 = vpop.eup %27930  ;;  %27940 = vrcp.f32 %v8857_v27 }
 0x74c   :  { %v8974_v35 = vmul.f32 %v27931_v63, %v30743_v58  ;;  %v30893_v51 = vpop.eup %27932 }
 0x74d   :  { %v8903_v11 = vsel %vm3435_vm3, %v30893_v51, 0.0 }
 0x74e   :  { %v8860_v7 = vpop.xlane.xlu1 %8859  ;;  %26503 = vmatmul.mubr.msk.f32.vlgmr.msra.gmra.mrb[130].mxu1 %vm3435_vm3, %v8974_v35 }
 0x74f   :  { %27942 = vrcp.f32 %v8860_v7  ;;  %v8863_v19 = vpop.xlane.xlu0 %8862  ;;  %8892 = vadd.xlane.f32.xlu1 %v8891_v0  ;;  %26511 = vmatpush3.msra.mxu1 %v30501_v17  ;;  %v8771_v0 = vsub.f32 %v30627_v62, %v30850_v22 }
 0x750   :  { %v27935_v2 = vpop.eup %27934  ;;  %27944 = vrcp.f32 %v8863_v19  ;;  %26512 = vmatprep.mubr.msk.f32.mxu1 %vm28385_vm1, %v34649_v40  ;;  %26520 = vmatprep.subr.mxu1 %v34649_v40 }
 0x751   :  { %v27937_v58 = vpop.eup %27936  ;;  %v8975_v48 = vmul.f32 %v27935_v2, %v30750_v25  ;;  %v8824_v62 = vmul.f32 1.442695, %v8771_v0 }
 0x752   :  { %v8866_v46 = vpop.xlane.xlu1 %8865  ;;  %v8976_v23 = vmul.f32 %v27937_v58, %v30752_v56  ;;  %v30905_v17 = vpop.eup %27938 }
 0x753   :  { %27946 = vrcp.f32 %v8866_v46  ;;  %8904 = vadd.xlane.f32.xlu1 %v8903_v11  ;;  %26508 = vmatmul.mubr.msk.f32.vlgmr.msra.gmra.mrb[126].mxu0 %vm3435_vm3, %v8975_v48  ;;  %v8915_v50 = vsel %vm3435_vm3, %v30905_v17, 0.0  ;;  %v8779_v48 = vsub.f32 %v30678_v6, %v30881_v18  ;;  %v8775_v6 = vsub.f32 %v30654_v37, %v30870_v42 }
 0x754   :  { %v8869_v27 = vpop.xlane.xlu0 %8868  ;;  %26513 = vmatmul.mubr.msk.f32.vlgmr.msra.gmra.mrb[132].mxu1 %vm3435_vm3, %v8976_v23  ;;  %26516 = vmatpush3.msra.mxu0 %v30537_v57  ;;  %v8767_v57 = vsub.f32 %v30605_v41, %v30831_v52 }
 0x755   :  { %v27941_v25 = vpop.eup %27940  ;;  %27948 = vrcp.f32 %v8869_v27  ;;  %26521 = vmatpush3.msra.mxu1 %v30505_v44  ;;  %26517 = vmatprep.mubr.msk.f32.mxu0 %vm28385_vm1, %v34649_v40  ;;  %v8840_v46 = vmul.f32 1.442695, %v8779_v48 }
 0x756   :  { %v8872_v56 = vpop.xlane.xlu1 %8871  ;;  %26525 = vmatprep.subr.mxu0 %v34649_v40  ;;  %v8977_v63 = vmul.f32 %v27941_v25, %v30760_v4  ;;  %26522 = vmatprep.mubr.msk.f32.mxu1 %vm28385_vm1, %v34649_v40  ;;  %v8816_v52 = vmul.f32 1.442695, %v8767_v57 }
 0x757   :  { %27950 = vrcp.f32 %v8872_v56  ;;  %8916 = vadd.xlane.f32.xlu1 %v8915_v50  ;;  %26530 = vmatprep.subr.mxu1 %v34649_v40  ;;  %v8832_v56 = vmul.f32 1.442695, %v8775_v6  ;;  %v8777_v50 = vsub.f32 %v30700_v33, %v30872_v54 }
 0x758   :  { %v8875_v44 = vpop.xlane.xlu0 %8874  ;;  %26518 = vmatmul.mubr.msk.f32.vlgmr.msra.gmra.mrb[128].mxu0 %vm3435_vm3, %v8977_v63 }
 0x759   :  { %v27943_v35 = vpop.eup %27942  ;;  %27952 = vrcp.f32 %v8875_v44  ;;  %26526 = vmatpush3.msra.mxu0 %v30551_v39  ;;  %26527 = vmatprep.mubr.msk.f32.mxu0 %vm28385_vm1, %v34649_v40  ;;  %v8836_v57 = vmul.f32 1.442695, %v8777_v50 }
 0x75a   :  { %v27945_v4 = vpop.eup %27944  ;;  %27954 = vpow2.f32 %v8808_v53  ;;  %v8878_v7 = vpop.xlane.xlu1 %8877  ;;  %26535 = vmatprep.subr.mxu0 %v34649_v40  ;;  %v8978_v41 = vmul.f32 %v27943_v35, %v30766_v26 }
 0x75b   :  { %27956 = vrcp.f32 %v8878_v7  ;;  %v8979_v19 = vmul.f32 %v27945_v4, %v30768_v21  ;;  %v8762_v7 = vsub.f32 %v30639_v49, %v30835_v9 }
 0x75c   :  { %26523 = vmatmul.mubr.msk.f32.vlgmr.msra.gmra.mrb[134].mxu1 %vm3435_vm3, %v8978_v41  ;;  %27958 = vpow2.f32 %v8816_v52  ;;  %v30983_v58 = vpop.permute.xlu0 %13206 }
 0x75d   :  { %v27947_v39 = vpop.eup %27946  ;;  %26528 = vmatmul.mubr.msk.f32.vlgmr.msra.gmra.mrb[130].mxu0 %vm3435_vm3, %v8979_v19  ;;  %26531 = vmatpush3.msra.mxu1 %v30517_v13  ;;  %27960 = vpow2.f32 %v8824_v62  ;;  %v8806_v52 = vmul.f32 1.442695, %v8762_v7 }
 0x75e   :  { %26536 = vmatpush3.msra.mxu0 %v30567_v24  ;;  %26532 = vmatprep.mubr.msk.f32.mxu1 %vm28385_vm1, %v34649_v40  ;;  %v8980_v26 = vmul.f32 %v27947_v39, %v30774_v10  ;;  %27962 = vpow2.f32 %v8840_v46  ;;  %v31039_v49 = vpop.permute.xlu1 %13208 }
 0x75f   :  { %v27949_v2 = vpop.eup %27948  ;;  %26537 = vmatprep.mubr.msk.f32.mxu0 %vm28385_vm1, %v34649_v40  ;;  %26540 = vmatprep.subr.mxu1 %v34649_v40  ;;  %27964 = vpow2.f32 %v8832_v56 }
 0x760   :  { %26545 = vmatprep.subr.mxu0 %v34649_v40  ;;  %26533 = vmatmul.mubr.msk.f32.vlgmr.msra.gmra.mrb[136].mxu1 %vm3435_vm3, %v8980_v26  ;;  %v8981_v13 = vmul.f32 %v27949_v2, %v30778_v31  ;;  %v30987_v61 = vpop.permute.xlu0 %13286  ;;  %27966 = vpow2.f32 %v8836_v57 }
 0x761   :  { %v27951_v24 = vpop.eup %27950  ;;  %26541 = vmatpush3.msra.mxu1 %v30525_v20  ;;  %26542 = vmatprep.mubr.msk.f32.mxu1 %vm28385_vm1, %v34649_v40  ;;  %27968 = vpow2.f32 %v8806_v52  ;;  %v34790_v52 = vld [vmem:[#allocation105_spill] sm:$0xff] }
 0x762   :  { %26538 = vmatmul.mubr.msk.f32.vlgmr.msra.gmra.mrb[132].mxu0 %vm3435_vm3, %v8981_v13  ;;  %26550 = vmatprep.subr.mxu1 %v34649_v40  ;;  %v8982_v21 = vmul.f32 %v27951_v24, %v30782_v5  ;;  %v8781_v24 = vsub.f32 %v30707_v30, %v30877_v3 }
 0x763   :  { %v27953_v10 = vpop.eup %27952  ;;  %26546 = vmatpush3.msra.mxu0 %v30579_v32  ;;  %26547 = vmatprep.mubr.msk.f32.mxu0 %vm28385_vm1, %v34649_v40 }
 0x764   :  { %v30953_v31 = vpop.eup %27954  ;;  %26555 = vmatprep.subr.mxu0 %v34649_v40  ;;  %26543 = vmatmul.mubr.msk.f32.vlgmr.msra.gmra.mrb[138].mxu1 %vm3435_vm3, %v8982_v21  ;;  %v8983_v20 = vmul.f32 %v27953_v10, %v30786_v34  ;;  %v30989_v11 = vpop.permute.xlu0 %13284  ;;  %v8844_v10 = vmul.f32 1.442695, %v8781_v24  ;;  %v34791_v24 = vld [vmem:[#allocation98_spill] sm:$0xff] }
 0x765   :  { %v27957_v22 = vpop.eup %27956  ;;  %26551 = vmatpush3.msra.mxu1 %v30541_v14  ;;  %26552 = vmatprep.mubr.msk.f32.mxu1 %vm28385_vm1, %v34649_v40  ;;  %v8885_v5 = vsel %vm3435_vm3, %v30953_v31, 0.0 }
 0x766   :  { %26548 = vmatmul.mubr.msk.f32.vlgmr.msra.gmra.mrb[134].mxu0 %vm3435_vm3, %v8983_v20  ;;  %v8984_v32 = vmul.f32 %v27957_v22, %v30790_v60  ;;  %26560 = vmatprep.subr.mxu1 %v34649_v40  ;;  %v30972_v14 = vpop.eup %27958  ;;  %v34788_v20 = vld [vmem:[#allocation58_spill] sm:$0xff] }
 0x767   :  { %26556 = vmatpush3.msra.mxu0 %v30583_v1  ;;  %26557 = vmatprep.mubr.msk.f32.mxu0 %vm28385_vm1, %v34649_v40  ;;  %v8897_v1 = vsel %vm3435_vm3, %v30972_v14, 0.0  ;;  %v30979_v34 = vpop.eup %27960 }
 0x768   :  { %26553 = vmatmul.mubr.msk.f32.vlgmr.msra.gmra.mrb[140].mxu1 %vm3435_vm3, %v8984_v32  ;;  %14064 = vrot.lane.b32.xlu1 %v34661_v59, %s28390_s14  ;;  %v8909_v60 = vsel %vm3435_vm3, %v30979_v34, 0.0  ;;  %v30991_v23 = vpop.permute.xlu0 %13364  ;;  %v30995_v27 = vpop.eup %27962  ;;  %v34789_v32 = vld [vmem:[#allocation119_spill] sm:$0xff] }
 0x769   :  { %8886 = vadd.xlane.f32.xlu0 %v8885_v5  ;;  %26565 = vmatprep.subr.mxu0 %v34649_v40  ;;  %v8933_v53 = vsel %vm3435_vm3, %v30995_v27, 0.0  ;;  %v31015_v4 = vpop.eup %27964  ;;  %v8766_v5 = vsub.f32 %v34789_v32, %v30846_v55  ;;  %v34823_v59 = vld [vmem:[#allocation15_spill] sm:$0xff] }
 0x76a   :  { %26562 = vmatprep.mubr.msk.f32.mxu1 %vm28385_vm1, %v34649_v40  ;;  %v8921_v42 = vsel %vm3435_vm3, %v31015_v4, 0.0  ;;  %v31019_v37 = vpop.eup %27966 }
 0x76b   :  { %v8927_v33 = vsel %vm3435_vm3, %v31019_v37, 0.0  ;;  %v31033_v39 = vpop.eup %27968  ;;  %v8814_v3 = vmul.f32 1.442695, %v8766_v5 }
 0x76c   :  { %v30997_v25 = vpop.permute.xlu0 %13442  ;;  %v8882_v2 = vsel %vm3435_vm3, %v31033_v39, 0.0 }
 0x76d   :  { %8898 = vadd.xlane.f32.xlu0 %v8897_v1 }
 0x770   :  { %v31001_v18 = vpop.permute.xlu0 %13440 }
 0x771   :  { %8910 = vadd.xlane.f32.xlu0 %v8909_v60 }
 0x774   :  { %v31007_v63 = vpop.permute.xlu0 %13520 }
 0x778   :  { %v31009_v44 = vpop.permute.xlu0 %13518 }
 0x77c   :  { %v31013_v35 = vpop.permute.xlu0 %13598 }
 0x780   :  { %v31021_v54 = vpop.permute.xlu0 %13676 }
 0x784   :  { %v31027_v41 = vpop.permute.xlu0 %13754 }
 0x787   :  { %14144 = vrot.lane.b32.xlu0 %v34683_v43, %s28389_s13 }
 0x788   :  { %v31029_v0 = vpop.permute.xlu0 %13832 }
 0x78c   :  { %8934 = vadd.xlane.f32.xlu1 %v8933_v53  ;;  %v31031_v19 = vpop.permute.xlu0 %13910 }
 0x78f   :  { %v31043_v62 = vpop.xlane.xlu1 %8745 }
 0x793   :  { %v31053_v21 = vpop.permute.xlu1 %13362 }
 0x797   :  { %v31057_v22 = vpop.permute.xlu1 %13596 }
 0x79d   :  { %14142 = vrot.lane.b32.xlu1 %v34683_v43, %s28390_s14 }
 0x7a6   :  { %8922 = vadd.xlane.f32.xlu0 %v8921_v42 }
 0x7aa   :  { %8928 = vadd.xlane.f32.xlu0 %v8927_v33 }
 0x7bd   :  { %v8881_v26 = vpop.xlane.xlu0 %8880 }
 0x7be   :  { %27970 = vrcp.f32 %v8881_v26  ;;  %v8764_v26 = vsub.f32 %v34790_v52, %v30825_v8  ;;  %v34792_v8 = vld [vmem:[#allocation62_spill] sm:$0xff] }
 0x7bf   :  { %27972 = vpow2.f32 %v8844_v10  ;;  %v34796_v52 = vld [vmem:[#allocation122_spill] sm:$0xff] }
 0x7c0   :  { %14222 = vrot.lane.b32.xlu0 %v34663_v15, %s28389_s13  ;;  %27974 = vpow2.f32 %v8814_v3  ;;  %v8810_v10 = vmul.f32 1.442695, %v8764_v26  ;;  %v34797_v26 = vld [vmem:[#allocation106_spill] sm:$0xff] }
 0x7c1   :  { %8883 = vadd.xlane.f32.xlu1 %v8882_v2  ;;  %v31073_v46 = vpop.permute.xlu0 %13988 }
 0x7c4   :  { %14220 = vrot.lane.b32.xlu0 %v34663_v15, %s28390_s14 }
 0x7c5   :  { %v31079_v56 = vpop.permute.xlu0 %14066 }
 0x7c8   :  { %v27971_v9 = vpop.eup %27970 }
 0x7c9   :  { %v8985_v13 = vmul.f32 %v27971_v9, %v30862_v28  ;;  %v31059_v28 = vpop.permute.xlu1 %13674 }
 0x7cb   :  { %26558 = vmatmul.mubr.msk.f32.vlgmr.msra.gmra.mrb[136].mxu0 %vm3435_vm3, %v8985_v13 }
 0x7cc   :  { %26566 = vmatpush3.msra.mxu0 %v30587_v16  ;;  %26567 = vmatprep.mubr.msk.f32.mxu0 %vm28385_vm1, %v34649_v40  ;;  %v31061_v16 = vpop.eup %27972 }
 0x7cd   :  { %26575 = vmatprep.subr.mxu0 %v34649_v40  ;;  %v31065_v1 = vpop.permute.xlu1 %13752  ;;  %v8939_v30 = vsel %vm3435_vm3, %v31061_v16, 0.0  ;;  %v31075_v53 = vpop.eup %27974 }
 0x7ce   :  { %v8894_v55 = vsel %vm3435_vm3, %v31075_v53, 0.0 }
 0x7d1   :  { %v31069_v60 = vpop.permute.xlu1 %13830 }
 0x7d2   :  { %14298 = vrot.lane.b32.xlu1 %v34788_v20, %s28390_s14 }
 0x7d5   :  { %v31071_v48 = vpop.permute.xlu1 %13908 }
 0x7d9   :  { %v31077_v6 = vpop.permute.xlu1 %13986 }
 0x7dd   :  { %v8893_v50 = vpop.xlane.xlu1 %8892 }
 0x7e1   :  { %v8905_v33 = vpop.xlane.xlu1 %8904 }
 0x7e3   :  { %8940 = vadd.xlane.f32.xlu0 %v8939_v30 }
 0x7e5   :  { %v8917_v32 = vpop.xlane.xlu1 %8916 }
 0x7f6   :  { %v8887_v57 = vpop.xlane.xlu0 %8886  ;;  %8895 = vadd.xlane.f32.xlu1 %v8894_v55 }
 0x7f7   :  { %27976 = vrcp.f32 %v8887_v57 }
 0x7f8   :  { %27978 = vrcp.f32 %v8893_v50 }
 0x7f9   :  { %14300 = vrot.lane.b32.xlu0 %v34788_v20, %s28389_s13 }
 0x7fa   :  { %v8899_v42 = vpop.xlane.xlu0 %8898 }
 0x7fb   :  { %27980 = vrcp.f32 %v8899_v42  ;;  %v34795_v42 = vld [vmem:[#allocation100_spill] sm:$0xff] }
 0x7fc   :  { %27982 = vrcp.f32 %v8905_v33 }
 0x7fe   :  { %v8911_v2 = vpop.xlane.xlu0 %8910 }
 0x7ff   :  { %27984 = vrcp.f32 %v8911_v2 }
 0x800   :  { %27986 = vrcp.f32 %v8917_v32 }
 0x801   :  { %v27977_v7 = vpop.eup %27976  ;;  %27988 = vpow2.f32 %v8810_v10 }
 0x802   :  { %v8987_v9 = vmul.f32 %v27977_v7, %v30953_v31  ;;  %v27979_v13 = vpop.eup %27978  ;;  %v34793_v31 = vld [vmem:[#allocation99_spill] sm:$0xff] }
 0x803   :  { %v8989_v5 = vmul.f32 %v27979_v13, %v30885_v47  ;;  %v34794_v47 = vld [vmem:[#allocation103_spill] sm:$0xff] }
 0x804   :  { %26568 = vmatmul.mubr.msk.f32.vlgmr.msra.gmra.mrb[138].mxu0 %vm3435_vm3, %v8987_v9  ;;  %v34798_v9 = vld [vmem:[#allocation116_spill] sm:$0xff] }
 0x805   :  { %26576 = vmatpush3.msra.mxu0 %v34791_v24  ;;  %26577 = vmatprep.mubr.msk.f32.mxu0 %vm28385_vm1, %v34649_v40  ;;  %v27981_v30 = vpop.eup %27980  ;;  %v8774_v13 = vsub.f32 %v34798_v9, %v30864_v12 }
 0x806   :  { %26585 = vmatprep.subr.mxu0 %v34649_v40  ;;  %v8991_v3 = vmul.f32 %v27981_v30, %v30972_v14  ;;  %v27983_v55 = vpop.eup %27982 }
 0x807   :  { %14454 = vrot.lane.b32.xlu1 %v34792_v8, %s28390_s14  ;;  %v8993_v50 = vmul.f32 %v27983_v55, %v30893_v51  ;;  %v8770_v51 = vsub.f32 %v34796_v52, %v30854_v38  ;;  %v34799_v38 = vld [vmem:[#allocation108_spill] sm:$0xff]  ;;  %v8830_v10 = vmul.f32 1.442695, %v8774_v13 }
 0x808   :  { %26578 = vmatmul.mubr.msk.f32.vlgmr.msra.gmra.mrb[140].mxu0 %vm3435_vm3, %v8989_v5 }
 0x809   :  { %26586 = vmatpush3.msra.mxu0 %v34793_v31  ;;  %26587 = vmatprep.mubr.msk.f32.mxu0 %vm28385_vm1, %v34649_v40  ;;  %v27985_v57 = vpop.eup %27984  ;;  %v8822_v24 = vmul.f32 1.442695, %v8770_v51 }
 0x80a   :  { %26595 = vmatprep.subr.mxu0 %v34649_v40  ;;  %v8995_v14 = vmul.f32 %v27985_v57, %v30979_v34  ;;  %v27987_v33 = vpop.eup %27986 }
 0x80b   :  { %v31114_v7 = vpop.eup %27988  ;;  %v8997_v2 = vmul.f32 %v27987_v33, %v30905_v17  ;;  %27990 = vpow2.f32 %v8822_v24  ;;  %v31151_v33 = vpop.permute.xlu0 %14144 }
 0x80c   :  { %26588 = vmatmul.mubr.msk.f32.vlgmr.msra.gmra.mrb[142].mxu0 %vm3435_vm3, %v8991_v3  ;;  %v8888_v34 = vsel %vm3435_vm3, %v31114_v7, 0.0  ;;  %27992 = vpow2.f32 %v8830_v10  ;;  %34803 = vst [vmem:[#allocation98_spill] sm:$0xff] %v31151_v33 }
 0x80d   :  { %26596 = vmatpush3.msra.mxu0 %v34794_v47  ;;  %26597 = vmatprep.mubr.msk.f32.mxu0 %vm28385_vm1, %v34649_v40 }
 0x80e   :  { %26605 = vmatprep.subr.mxu0 %v34649_v40 }
 0x810   :  { %26598 = vmatmul.mubr.msk.f32.vlgmr.msra.gmra.mrb[144].mxu0 %vm3435_vm3, %v8993_v50 }
 0x811   :  { %26606 = vmatpush3.msra.mxu0 %v34795_v42  ;;  %26607 = vmatprep.mubr.msk.f32.mxu0 %vm28385_vm1, %v34649_v40  ;;  %v34802_v42 = vld [vmem:[#allocation60_spill] sm:$0xff] }
 0x812   :  { %26615 = vmatprep.subr.mxu0 %v34649_v40 }
 0x814   :  { %26608 = vmatmul.mubr.msk.f32.vlgmr.msra.gmra.mrb[146].mxu0 %vm3435_vm3, %v8995_v14 }
 0x815   :  { %26616 = vmatpush3.msra.mxu0 %v34797_v26  ;;  %26617 = vmatprep.mubr.msk.f32.mxu0 %vm28385_vm1, %v34649_v40  ;;  %v31137_v30 = vpop.eup %27990 }
 0x816   :  { %26625 = vmatprep.subr.mxu0 %v34649_v40  ;;  %34800 = vst [vmem:[#allocation119_spill] sm:$0xff] %v31137_v30  ;;  %v8906_v55 = vsel %vm3435_vm3, %v31137_v30, 0.0  ;;  %v31143_v47 = vpop.eup %27992 }
 0x817   :  { %34801 = vst [vmem:[#allocation105_spill] sm:$0xff] %v31143_v47  ;;  %v8918_v14 = vsel %vm3435_vm3, %v31143_v47, 0.0  ;;  %v34827_v47 = vld [vmem:[#allocation23_spill] sm:$0xff] }
 0x818   :  { %8889 = vadd.xlane.f32.xlu0 %v8888_v34  ;;  %26618 = vmatmul.mubr.msk.f32.vlgmr.msra.gmra.mrb[148].mxu0 %vm3435_vm3, %v8997_v2  ;;  %v31157_v34 = vpop.permute.xlu1 %14064 }
 0x819   :  { %26626 = vmatpush3.msra.mxu0 %v34799_v38  ;;  %26627 = vmatprep.mubr.msk.f32.mxu0 %vm28385_vm1, %v34649_v40 }
 0x81a   :  { %26635 = vmatprep.subr.mxu0 %v34649_v40 }
 0x81c   :  { %v8935_v10 = vpop.xlane.xlu1 %8934 }
 0x821   :  { %v31133_v17 = vpop.f32.mrb[130].mxu1 }
 0x822   :  { %v26504_v32 = vpop.f32.mrb[131].mxu1 }
 0x826   :  { %v31135_v5 = vpop.f32.mrb[126].mxu0 }
 0x827   :  { %v31139_v31 = vpop.f32.mrb[132].mxu1  ;;  %v26509_v12 = vpop.f32.mrb[127].mxu0 }
 0x828   :  { %v26514_v3 = vpop.f32.mrb[133].mxu1 }
 0x82b   :  { %8907 = vadd.xlane.f32.xlu1 %v8906_v55  ;;  %v31145_v50 = vpop.f32.mrb[128].mxu0 }
 0x82c   :  { %v26519_v57 = vpop.f32.mrb[129].mxu0 }
 0x82e   :  { %14378 = vrot.lane.b32.xlu0 %v34802_v42, %s28389_s13 }
 0x82f   :  { %v31153_v52 = vpop.f32.mrb[134].mxu1  ;;  %8919 = vadd.xlane.f32.xlu1 %v8918_v14 }
 0x830   :  { %v31155_v51 = vpop.f32.mrb[130].mxu0  ;;  %v26524_v26 = vpop.f32.mrb[135].mxu1 }
 0x831   :  { %v26529_v2 = vpop.f32.mrb[131].mxu0 }
 0x832   :  { %14376 = vrot.lane.b32.xlu0 %v34802_v42, %s28390_s14  ;;  %v34820_v42 = vld [vmem:[#allocation64_spill] sm:$0xff] }
 0x833   :  { %v8923_v9 = vpop.xlane.xlu0 %8922  ;;  %v31161_v13 = vpop.f32.mrb[136].mxu1 }
 0x834   :  { %27994 = vrcp.f32 %v8923_v9  ;;  %v26534_v24 = vpop.f32.mrb[137].mxu1 }
 0x835   :  { %v31163_v38 = vpop.f32.mrb[132].mxu0  ;;  %v34804_v24 = vld [vmem:[#allocation109_spill] sm:$0xff] }
 0x836   :  { %14456 = vrot.lane.b32.xlu0 %v34792_v8, %s28389_s13  ;;  %v26539_v32 = vpop.f32.mrb[133].mxu0  ;;  %v8768_v20 = vsub.f32 %v34804_v24, %v30839_v29  ;;  %v34807_v29 = vld [vmem:[#allocation31_spill] sm:$0xff] }
 0x837   :  { %v8929_v12 = vpop.xlane.xlu0 %8928  ;;  %v31167_v3 = vpop.f32.mrb[138].mxu1  ;;  %v34805_v32 = vld [vmem:[#allocation27_spill] sm:$0xff] }
 0x838   :  { %27996 = vrcp.f32 %v8929_v12  ;;  %v26544_v55 = vpop.f32.mrb[139].mxu1  ;;  %v34809_v24 = vld [vmem:[#allocation35_spill] sm:$0xff] }
 0x839   :  { %v31169_v57 = vpop.f32.mrb[134].mxu0  ;;  %27998 = vrcp.f32 %v8935_v10  ;;  %v34806_v55 = vld [vmem:[#allocation111_spill] sm:$0xff]  ;;  %v8818_v10 = vmul.f32 1.442695, %v8768_v20 }
 0x83a   :  { %v26549_v14 = vpop.f32.mrb[135].mxu0  ;;  %v34819_v8 = vld [vmem:[#allocation7_spill] sm:$0xff] }
 0x83b   :  { %v31171_v26 = vpop.f32.mrb[140].mxu1  ;;  %28000 = vpow2.f32 %v8818_v10  ;;  %v34812_v10 = vld [vmem:[#allocation47_spill] sm:$0xff] }
 0x83c   :  { %v26554_v2 = vpop.f32.mrb[141].mxu1 }
 0x83e   :  { %v27995_v9 = vpop.eup %27994 }
 0x83f   :  { %v8999_v43 = vmul.f32 %v27995_v9, %v31015_v4  ;;  %v11470_v4 = vld [vmem:[%s34383_s4 + $0x10] sm:$0xff]  ;;  %v34808_v9 = vld [vmem:[#allocation114_spill] sm:$0xff] }
 0x840   :  { %9931 = vrot.lane.b32.xlu1 %v34805_v32, %s28388_s30 }
 0x841   :  { %26628 = vmatmul.mubr.msk.f32.vlgmr.msra.gmra.mrb[150].mxu0 %vm3435_vm3, %v8999_v43  ;;  %v11471_v43 = vld [vmem:[%s34383_s4 + $0x18] sm:$0xff] }
 0x842   :  { %v27997_v12 = vpop.eup %27996  ;;  %26636 = vmatpush3.msra.mxu0 %v34806_v55  ;;  %26637 = vmatprep.mubr.msk.f32.mxu0 %vm28385_vm1, %v34649_v40  ;;  %v31198_v20 = vpack.c.bf16 %v11471_v43, %v11470_v4  ;;  %v34811_v55 = vld [vmem:[#allocation39_spill] sm:$0xff] }
 0x843   :  { %26645 = vmatprep.subr.mxu0 %v34649_v40  ;;  %v9001_v14 = vmul.f32 %v27997_v12, %v31019_v37  ;;  %v27999_v2 = vpop.eup %27998  ;;  %v34810_v12 = vld [vmem:[#allocation117_spill] sm:$0xff]  ;;  %v34814_v4 = vld [vmem:[#allocation55_spill] sm:$0xff] }
 0x844   :  { %10085 = vrot.lane.b32.xlu1 %v34807_v29, %s28388_s30  ;;  %v9003_v37 = vmul.f32 %v27999_v2, %v30995_v27  ;;  %v34813_v2 = vld [vmem:[#allocation51_spill] sm:$0xff] }
 0x845   :  { %26638 = vmatmul.mubr.msk.f32.vlgmr.msra.gmra.mrb[152].mxu0 %vm3435_vm3, %v9001_v14  ;;  %v31211_v27 = vpop.eup %28000  ;;  %v34815_v43 = vld [vmem:[#allocation59_spill] sm:$0xff] }
 0x846   :  { %26646 = vmatpush3.msra.mxu0 %v34808_v9  ;;  %26647 = vmatprep.mubr.msk.f32.mxu0 %vm28385_vm1, %v34649_v40  ;;  %v8900_v14 = vsel %vm3435_vm3, %v31211_v27, 0.0  ;;  %v34816_v9 = vld [vmem:[#allocation63_spill] sm:$0xff] }
 0x847   :  { %26655 = vmatprep.subr.mxu0 %v34649_v40 }
 0x848   :  { %10239 = vrot.lane.b32.xlu1 %v34809_v24, %s28388_s30 }
 0x849   :  { %26648 = vmatmul.mubr.msk.f32.vlgmr.msra.gmra.mrb[154].mxu0 %vm3435_vm3, %v9003_v37  ;;  %v34817_v37 = vld [vmem:[#allocation3_spill] sm:$0xff] }
 0x84a   :  { %26656 = vmatpush3.msra.mxu0 %v34810_v12  ;;  %26657 = vmatprep.mubr.msk.f32.mxu0 %vm28385_vm1, %v34649_v40  ;;  %v31225_v12 = vpop.permute.xlu0 %14222 }
 0x84b   :  { %27525 = vmatprep.subr.bf16.mxu0 %v31198_v20  ;;  %34818 = vst [vmem:[#allocation99_spill] sm:$0xff] %v31225_v12  ;;  %v34829_v12 = vld [vmem:[#allocation126_spill] sm:$0xff] }
 0x84c   :  { %10393 = vrot.lane.b32.xlu1 %v34811_v55, %s28388_s30 }
 0x850   :  { %10701 = vrot.lane.b32.xlu1 %v34812_v10, %s28388_s30 }
 0x854   :  { %10855 = vrot.lane.b32.xlu1 %v34813_v2, %s28388_s30 }
 0x855   :  { %8901 = vadd.xlane.f32.xlu0 %v8900_v14  ;;  %v31231_v14 = vpop.permute.xlu0 %14220 }
 0x856   :  { %34821 = vst [vmem:[#allocation103_spill] sm:$0xff] %v31231_v14 }
 0x858   :  { %11009 = vrot.lane.b32.xlu1 %v34814_v4, %s28388_s30 }
 0x85c   :  { %11163 = vrot.lane.b32.xlu1 %v34815_v43, %s28388_s30 }
 0x860   :  { %11317 = vrot.lane.b32.xlu1 %v34816_v9, %s28388_s30  ;;  %v34826_v9 = vld [vmem:[#allocation113_spill] sm:$0xff] }
 0x864   :  { %14994 = vrot.lane.b32.xlu1 %v34817_v37, %s28390_s14  ;;  %v34824_v37 = vld [vmem:[#allocation19_spill] sm:$0xff] }
 0x868   :  { %15146 = vrot.lane.b32.xlu1 %v34819_v8, %s28390_s14  ;;  %v34825_v8 = vld [vmem:[#allocation144_spill] sm:$0xff] }
 0x869   :  { %v8772_v43 = vsub.f32 %v34826_v9, %v34825_v8 }
 0x86b   :  { %14534 = vrot.lane.b32.xlu0 %v34820_v42, %s28389_s13  ;;  %v8826_v14 = vmul.f32 1.442695, %v8772_v43 }
 0x86c   :  { %15298 = vrot.lane.b32.xlu1 %v34822_v36, %s28390_s14  ;;  %v34828_v36 = vld [vmem:[#allocation145_spill] sm:$0xff] }
 0x86d   :  { %v8776_v33 = vsub.f32 %v34829_v12, %v34828_v36  ;;  %v34831_v36 = vld [vmem:[#allocation142_spill] sm:$0xff] }
 0x86f   :  { %14532 = vrot.lane.b32.xlu0 %v34820_v42, %s28390_s14  ;;  %v8834_v43 = vmul.f32 1.442695, %v8776_v33 }
 0x870   :  { %v8941_v15 = vpop.xlane.xlu0 %8940  ;;  %15450 = vrot.lane.b32.xlu1 %v34823_v59, %s28390_s14 }
 0x871   :  { %28002 = vrcp.f32 %v8941_v15  ;;  %v34830_v15 = vld [vmem:[#allocation120_spill] sm:$0xff] }
 0x872   :  { %28004 = vpow2.f32 %v8826_v14  ;;  %v8778_v8 = vsub.f32 %v34830_v15, %v30875_v45  ;;  %v31315_v14 = vpop.permute.xlu1 %14142  ;;  %v34838_v15 = vld [vmem:[#allocation121_spill] sm:$0xff] }
 0x873   :  { %28006 = vpow2.f32 %v8834_v43  ;;  %v34839_v43 = vld [vmem:[#allocation102_spill] sm:$0xff] }
 0x874   :  { %15602 = vrot.lane.b32.xlu1 %v34824_v37, %s28390_s14 }
 0x878   :  { %15754 = vrot.lane.b32.xlu1 %v34827_v47, %s28390_s14 }
 0x87b   :  { %v28003_v30 = vpop.eup %28002 }
 0x87c   :  { %15906 = vrot.lane.b32.xlu1 %v34805_v32, %s28390_s14  ;;  %v9005_v59 = vmul.f32 %v28003_v30, %v31061_v16  ;;  %v8780_v16 = vsub.f32 %v34831_v36, %v31043_v62  ;;  %v31276_v62 = vpop.eup %28004  ;;  %v34841_v36 = vld [vmem:[#allocation104_spill] sm:$0xff] }
 0x87d   :  { %v8912_v30 = vsel %vm3435_vm3, %v31276_v62, 0.0 }
 0x87e   :  { %26658 = vmatmul.mubr.msk.f32.vlgmr.msra.gmra.mrb[156].mxu0 %vm3435_vm3, %v9005_v59  ;;  %v8838_v59 = vmul.f32 1.442695, %v8778_v8  ;;  %v8842_v45 = vmul.f32 1.442695, %v8780_v16  ;;  %v8884_v8 = vpop.xlane.xlu1 %8883 }
 0x87f   :  { %27527 = vmatpush3.bf16.msra.mxu0 %v31198_v20  ;;  %26664 = vmatprep.mubr.msk.f32.mxu0 %vm941_vm2, %v31133_v17  ;;  %v34832_v17 = vld [vmem:[#allocation101_spill] sm:$0xff] }
 0x880   :  { %16058 = vrot.lane.b32.xlu1 %v34807_v29, %s28390_s14  ;;  %26764 = vmatprep.subr.mxu0 %v34649_v40  ;;  %28008 = vpow2.f32 %v8838_v59  ;;  %v34840_v59 = vld [vmem:[#allocation124_spill] sm:$0xff] }
 0x881   :  { %28010 = vpow2.f32 %v8842_v45  ;;  %v34842_v45 = vld [vmem:[#allocation127_spill] sm:$0xff] }
 0x882   :  { %26665 = vmatmul.mubr.msk.f32.vlgmr.msra.gmra.mrb[158].mxu0 %vm941_vm2, %v31135_v5  ;;  %v34833_v5 = vld [vmem:[#allocation43_spill] sm:$0xff]  ;;  %v31333_v16 = vpop.permute.xlu1 %14298  ;;  %28012 = vrcp.f32 %v8884_v8  ;;  %v34851_v8 = vld [vmem:[#allocation9_spill] sm:$0xff] }
 0x883   :  { %26667 = vmatprep.mubr.msk.f32.mxu0 %vm941_vm2, %v31139_v31  ;;  %v31286_v31 = vpop.eup %28006 }
 0x884   :  { %16210 = vrot.lane.b32.xlu1 %v34809_v24, %s28390_s14  ;;  %v8924_v33 = vsel %vm3435_vm3, %v31286_v31, 0.0 }
 0x886   :  { %26668 = vmatmul.mubr.msk.f32.gmra.mrb[160].mxu0 %vm941_vm2, %v31145_v50  ;;  %v34834_v50 = vld [vmem:[#allocation45_spill] sm:$0xff] }
 0x887   :  { %26670 = vmatprep.mubr.msk.f32.mxu0 %vm941_vm2, %v31153_v52 }
 0x888   :  { %26765 = vmatpush3.xpose.msk.msra.mxu0 %vm941_vm2, %v34832_v17  ;;  %16362 = vrot.lane.b32.xlu1 %v34811_v55, %s28390_s14  ;;  %v34843_v17 = vld [vmem:[#allocation107_spill] sm:$0xff] }
 0x889   :  { %26769 = vmatprep.subr.mxu0 %v34649_v40 }
 0x88a   :  { %26671 = vmatmul.mubr.msk.f32.gmra.mrb[162].mxu0 %vm941_vm2, %v31155_v51  ;;  %v31296_v52 = vpop.eup %28008  ;;  %v34835_v51 = vld [vmem:[#allocation49_spill] sm:$0xff] }
 0x88b   :  { %26673 = vmatprep.mubr.msk.f32.mxu0 %vm941_vm2, %v31161_v13  ;;  %v8930_v13 = vsel %vm3435_vm3, %v31296_v52, 0.0 }
 0x88c   :  { %16514 = vrot.lane.b32.xlu1 %v34833_v5, %s28390_s14 }
 0x88e   :  { %8913 = vadd.xlane.f32.xlu0 %v8912_v30  ;;  %26674 = vmatmul.mubr.msk.f32.gmra.mrb[164].mxu0 %vm941_vm2, %v31163_v38  ;;  %v31306_v38 = vpop.eup %28010  ;;  %v8896_v30 = vpop.xlane.xlu1 %8895 }
 0x88f   :  { %26676 = vmatprep.mubr.msk.f32.mxu0 %vm941_vm2, %v31167_v3  ;;  %v34836_v3 = vld [vmem:[#allocation53_spill] sm:$0xff]  ;;  %v8936_v9 = vsel %vm3435_vm3, %v31306_v38, 0.0 }
 0x890   :  { %16590 = vrot.lane.b32.xlu1 %v34834_v50, %s28390_s14 }
 0x892   :  { %8925 = vadd.xlane.f32.xlu0 %v8924_v33  ;;  %26677 = vmatmul.mubr.msk.f32.gmra.mrb[166].mxu0 %vm941_vm2, %v31169_v57  ;;  %v34837_v57 = vld [vmem:[#allocation57_spill] sm:$0xff] }
 0x893   :  { %26679 = vmatprep.mubr.msk.f32.mxu0 %vm941_vm2, %v31171_v26  ;;  %v34844_v33 = vld [vmem:[#allocation129_spill] sm:$0xff] }
 0x894   :  { %16742 = vrot.lane.b32.xlu1 %v34835_v51, %s28390_s14  ;;  %v34858_v51 = vld [vmem:[#allocation135_spill] sm:$0xff] }
 0x896   :  { %8931 = vadd.xlane.f32.xlu0 %v8930_v13  ;;  %v34845_v13 = vld [vmem:[#allocation110_spill] sm:$0xff] }
 0x898   :  { %16894 = vrot.lane.b32.xlu1 %v34836_v3, %s28390_s14 }
 0x89a   :  { %8937 = vadd.xlane.f32.xlu0 %v8936_v9  ;;  %v31351_v9 = vpop.permute.xlu0 %14300 }
 0x89c   :  { %17046 = vrot.lane.b32.xlu1 %v34837_v57, %s28390_s14 }
 0x89e   :  { %v9926_v26 = vpop.f32.mrb[136].mxu0 }
 0x89f   :  { %v26559_v12 = vpop.f32.mrb[137].mxu0  ;;  %26680 = vmatmul.mubr.msk.f32.gmra.mrb[168].mxu0 %vm941_vm2, %v9926_v26  ;;  %v34846_v26 = vld [vmem:[#allocation131_spill] sm:$0xff] }
 0x8a0   :  { %26766 = vmatprep.mubr.msk.f32.mxu0 %vm28385_vm1, %v34649_v40  ;;  %v31355_v12 = vpop.permute.xlu1 %14454 }
 0x8a3   :  { %26767 = vmatmul.mubr.msk.f32.vlgmr.msra.gmra.mrb[170].mxu0 %vm941_vm2, %v34838_v15  ;;  %v34847_v15 = vld [vmem:[#allocation112_spill] sm:$0xff] }
 0x8a4   :  { %26770 = vmatpush3.xpose.msk.msra.mxu0 %vm941_vm2, %v34839_v43  ;;  %26771 = vmatprep.mubr.msk.f32.mxu0 %vm28385_vm1, %v34649_v40  ;;  %v34848_v43 = vld [vmem:[#allocation5_spill] sm:$0xff] }
 0x8a5   :  { %26774 = vmatprep.subr.mxu0 %v34649_v40 }
 0x8a7   :  { %26772 = vmatmul.mubr.msk.f32.vlgmr.msra.gmra.mrb[172].mxu0 %vm941_vm2, %v34840_v59  ;;  %v8890_v59 = vpop.xlane.xlu0 %8889 }
 0x8a8   :  { %26775 = vmatpush3.xpose.msk.msra.mxu0 %vm941_vm2, %v34841_v36  ;;  %26776 = vmatprep.mubr.msk.f32.mxu0 %vm28385_vm1, %v34649_v40  ;;  %v34849_v36 = vld [vmem:[#allocation115_spill] sm:$0xff]  ;;  %28014 = vrcp.f32 %v8890_v59  ;;  %v34856_v59 = vld [vmem:[#allocation128_spill] sm:$0xff] }
 0x8a9   :  { %26779 = vmatprep.subr.mxu0 %v34649_v40  ;;  %28016 = vrcp.f32 %v8896_v30 }
 0x8ab   :  { %26777 = vmatmul.mubr.msk.f32.vlgmr.msra.gmra.mrb[174].mxu0 %vm941_vm2, %v34842_v45  ;;  %v34850_v45 = vld [vmem:[#allocation118_spill] sm:$0xff] }
 0x8ac   :  { %26780 = vmatpush3.xpose.msk.msra.mxu0 %vm941_vm2, %v34843_v17  ;;  %26781 = vmatprep.mubr.msk.f32.mxu0 %vm28385_vm1, %v34649_v40 }
 0x8ad   :  { %26784 = vmatprep.subr.mxu0 %v34649_v40 }
 0x8af   :  { %26782 = vmatmul.mubr.msk.f32.vlgmr.msra.gmra.mrb[176].mxu0 %vm941_vm2, %v34844_v33  ;;  %v34852_v33 = vld [vmem:[#allocation133_spill] sm:$0xff] }
 0x8b0   :  { %26785 = vmatpush3.xpose.msk.msra.mxu0 %vm941_vm2, %v34845_v13  ;;  %10547 = vrot.lane.b32.xlu0 %v34833_v5, %s28388_s30  ;;  %v34853_v13 = vld [vmem:[#allocation123_spill] sm:$0xff] }
 0x8b1   :  { %26786 = vmatprep.mubr.msk.f32.mxu0 %vm28385_vm1, %v34649_v40  ;;  %26789 = vmatprep.subr.mxu0 %v34649_v40 }
 0x8b3   :  { %26787 = vmatmul.mubr.msk.f32.vlgmr.msra.gmra.mrb[178].mxu0 %vm941_vm2, %v34846_v26  ;;  %v34854_v26 = vld [vmem:[#allocation13_spill] sm:$0xff] }
 0x8b4   :  { %26790 = vmatpush3.xpose.msk.msra.mxu0 %vm941_vm2, %v34847_v15  ;;  %15070 = vrot.lane.b32.xlu0 %v34848_v43, %s28390_s14 }
 0x8b5   :  { %26791 = vmatprep.mubr.msk.f32.mxu0 %vm28385_vm1, %v34649_v40  ;;  %26794 = vmatprep.subr.mxu0 %v34649_v40 }
 0x8b7   :  { %26792 = vmatmul.mubr.msk.f32.vlgmr.msra.gmra.mrb[180].mxu0 %vm941_vm2, %v34849_v36  ;;  %v28013_v36 = vpop.eup %28012 }
 0x8b8   :  { %26795 = vmatpush3.xpose.msk.msra.mxu0 %vm941_vm2, %v34850_v45  ;;  %15222 = vrot.lane.b32.xlu0 %v34851_v8, %s28390_s14  ;;  %v31370_v17 = vpop.xlane.xlu1 %8907  ;;  %v34855_v45 = vld [vmem:[#allocation125_spill] sm:$0xff]  ;;  %v8986_v3 = vmul.f32 %v28013_v36, %v31033_v39  ;;  %v28015_v30 = vpop.eup %28014  ;;  %v34861_v39 = vld [vmem:[#allocation132_spill] sm:$0xff]  ;;  %v34862_v36 = vld [vmem:[#allocation134_spill] sm:$0xff] }
 0x8b9   :  { %26796 = vmatprep.mubr.msk.f32.mxu0 %vm28385_vm1, %v34649_v40  ;;  %26799 = vmatprep.subr.mxu0 %v34649_v40 }
 0x8bb   :  { %26797 = vmatmul.mubr.msk.f32.vlgmr.msra.gmra.mrb[182].mxu0 %vm941_vm2, %v34852_v33  ;;  %v34857_v33 = vld [vmem:[#allocation17_spill] sm:$0xff] }
 0x8bc   :  { %26800 = vmatpush3.xpose.msk.msra.mxu0 %vm941_vm2, %v34853_v13  ;;  %15374 = vrot.lane.b32.xlu0 %v34854_v26, %s28390_s14  ;;  %v31381_v15 = vpop.xlane.xlu1 %8919 }
 0x8bd   :  { %26801 = vmatprep.mubr.msk.f32.mxu0 %vm28385_vm1, %v34649_v40  ;;  %26804 = vmatprep.subr.mxu0 %v34649_v40 }
 0x8bf   :  { %26802 = vmatmul.mubr.msk.f32.vlgmr.msra.gmra.mrb[184].mxu0 %vm941_vm2, %v34855_v45  ;;  %v34859_v45 = vld [vmem:[#allocation130_spill] sm:$0xff] }
 0x8c0   :  { %26805 = vmatpush3.xpose.msk.msra.mxu0 %vm941_vm2, %v34856_v59  ;;  %15526 = vrot.lane.b32.xlu0 %v34857_v33, %s28390_s14  ;;  %v9932_v13 = vpop.permute.xlu1 %9931  ;;  %v34860_v59 = vld [vmem:[#allocation21_spill] sm:$0xff] }
 0x8c1   :  { %26806 = vmatprep.mubr.msk.f32.mxu0 %vm28385_vm1, %v34649_v40  ;;  %26809 = vmatprep.subr.mxu0 %v34649_v40 }
 0x8c2   :  { %26561 = vmatpush3.msra.mxu1 %v9932_v13  ;;  %v34863_v13 = vld [vmem:[#allocation25_spill] sm:$0xff] }
 0x8c3   :  { %26807 = vmatmul.mubr.msk.f32.vlgmr.msra.gmra.mrb[186].mxu0 %vm941_vm2, %v34858_v51  ;;  %26563 = vmatmul.mubr.msk.f32.vlgmr.msra.gmra.mrb[142].mxu1 %vm3435_vm3, %v8986_v3  ;;  %v8988_v51 = vmul.f32 %v28015_v30, %v31114_v7  ;;  %v28017_v3 = vpop.eup %28016  ;;  %v34865_v30 = vld [vmem:[#allocation29_spill] sm:$0xff] }
 0x8c4   :  { %26810 = vmatpush3.xpose.msk.msra.mxu0 %vm941_vm2, %v34859_v45  ;;  %15678 = vrot.lane.b32.xlu0 %v34860_v59, %s28390_s14  ;;  %v10086_v57 = vpop.permute.xlu1 %10085  ;;  %v8990_v7 = vmul.f32 %v28017_v3, %v31075_v53  ;;  %v34867_v53 = vld [vmem:[#allocation141_spill] sm:$0xff] }
 0x8c5   :  { %26570 = vmatprep.subr.mxu1 %v34649_v40  ;;  %26811 = vmatprep.mubr.msk.f32.mxu0 %vm28385_vm1, %v34649_v40  ;;  %v34868_v3 = vld [vmem:[#allocation33_spill] sm:$0xff] }
 0x8c6   :  { %26814 = vmatprep.subr.mxu0 %v34649_v40  ;;  %26571 = vmatpush3.msra.mxu1 %v10086_v57  ;;  %v34864_v57 = vld [vmem:[#allocation137_spill] sm:$0xff] }
 0x8c7   :  { %26572 = vmatprep.mubr.msk.f32.mxu1 %vm28385_vm1, %v34649_v40  ;;  %26812 = vmatmul.mubr.msk.f32.vlgmr.msra.gmra.mrb[188].mxu0 %vm941_vm2, %v34861_v39 }
 0x8c8   :  { %26815 = vmatpush3.xpose.msk.msra.mxu0 %vm941_vm2, %v34862_v36  ;;  %15830 = vrot.lane.b32.xlu0 %v34863_v13, %s28390_s14  ;;  %v10240_v45 = vpop.permute.xlu1 %10239  ;;  %v34869_v36 = vld [vmem:[#allocation136_spill] sm:$0xff] }
 0x8c9   :  { %26573 = vmatmul.mubr.msk.f32.vlgmr.msra.gmra.mrb[144].mxu1 %vm3435_vm3, %v8988_v51  ;;  %26580 = vmatprep.subr.mxu1 %v34649_v40  ;;  %v34866_v51 = vld [vmem:[#allocation139_spill] sm:$0xff] }
 0x8ca   :  { %26816 = vmatprep.mubr.msk.f32.mxu0 %vm28385_vm1, %v34649_v40  ;;  %26819 = vmatprep.subr.mxu0 %v34649_v40 }
 0x8cb   :  { %26581 = vmatpush3.msra.mxu1 %v10240_v45  ;;  %26582 = vmatprep.mubr.msk.f32.mxu1 %vm28385_vm1, %v34649_v40  ;;  %v31443_v45 = vpop.permute.xlu0 %14378 }
 0x8cc   :  { %26817 = vmatmul.mubr.msk.f32.vlgmr.msra.gmra.mrb[190].mxu0 %vm941_vm2, %v34864_v57  ;;  %15982 = vrot.lane.b32.xlu0 %v34865_v30, %s28390_s14  ;;  %v10394_v39 = vpop.permute.xlu1 %10393  ;;  %v34871_v57 = vld [vmem:[#allocation37_spill] sm:$0xff] }
 0x8cd   :  { %26820 = vmatpush3.xpose.msk.msra.mxu0 %vm941_vm2, %v34866_v51  ;;  %26583 = vmatmul.mubr.msk.f32.vlgmr.msra.gmra.mrb[146].mxu1 %vm3435_vm3, %v8990_v7  ;;  %v34870_v7 = vld [vmem:[#allocation138_spill] sm:$0xff] }
 0x8ce   :  { %26590 = vmatprep.subr.mxu1 %v34649_v40  ;;  %26821 = vmatprep.mubr.msk.f32.mxu0 %vm28385_vm1, %v34649_v40 }
 0x8cf   :  { %26824 = vmatprep.subr.mxu0 %v34649_v40  ;;  %26591 = vmatpush3.msra.mxu1 %v10394_v39  ;;  %v34872_v39 = vld [vmem:[#allocation140_spill] sm:$0xff] }
 0x8d0   :  { %26822 = vmatmul.mubr.msk.f32.vlgmr.msra.gmra.mrb[192].mxu0 %vm941_vm2, %v34867_v53  ;;  %16134 = vrot.lane.b32.xlu0 %v34868_v3, %s28390_s14  ;;  %v31460_v53 = vpop.permute.xlu0 %14376 }
 0x8d1   :  { %26825 = vmatpush3.xpose.msk.msra.mxu0 %vm941_vm2, %v34869_v36  ;;  %26826 = vmatprep.mubr.msk.f32.mxu0 %vm28385_vm1, %v34649_v40  ;;  %v34873_v36 = vld [vmem:[#allocation143_spill] sm:$0xff] }
 0x8d2   :  { %26829 = vmatprep.subr.mxu0 %v34649_v40  ;;  %26592 = vmatprep.mubr.msk.f32.mxu1 %vm28385_vm1, %v34649_v40 }
 0x8d3   :  { %26600 = vmatprep.subr.mxu1 %v34649_v40 }
 0x8d4   :  { %26827 = vmatmul.mubr.msk.f32.vlgmr.msra.gmra.mrb[194].mxu0 %vm941_vm2, %v34870_v7  ;;  %16286 = vrot.lane.b32.xlu0 %v34871_v57, %s28390_s14  ;;  %v34874_v7 = vld [vmem:[#allocation41_spill] sm:$0xff] }
 0x8d5   :  { %26830 = vmatpush3.xpose.msk.msra.mxu0 %vm941_vm2, %v34872_v39  ;;  %26831 = vmatprep.mubr.msk.f32.mxu0 %vm28385_vm1, %v34649_v40 }
 0x8d6   :  { %26834 = vmatprep.subr.mxu0 %v34649_v40 }
 0x8d7   :  { %v31458_v51 = vpop.f32.mrb[138].mxu0 }
 0x8d8   :  { %26832 = vmatmul.mubr.msk.f32.vlgmr.msra.gmra.mrb[196].mxu0 %vm941_vm2, %v34873_v36  ;;  %16438 = vrot.lane.b32.xlu0 %v34874_v7, %s28390_s14  ;;  %v26569_v5 = vpop.f32.mrb[139].mxu0 }
 0x8d9   :  { %26835 = vmatpush3.xpose.msk.msra.mxu0 %vm941_vm2, %v31039_v49  ;;  %26836 = vmatprep.mubr.msk.f32.mxu0 %vm28385_vm1, %v34649_v40  ;;  %v31481_v49 = vpop.permute.xlu0 %14456 }
 0x8da   :  { %26839 = vmatprep.subr.mxu0 %v34649_v40 }
 0x8db   :  { %v31471_v39 = vpop.f32.mrb[140].mxu0 }
 0x8dc   :  { %26837 = vmatmul.mubr.msk.f32.vlgmr.msra.gmra.mrb[198].mxu0 %vm941_vm2, %v30983_v58  ;;  %16666 = vrot.lane.b32.xlu0 %v34812_v10, %s28390_s14  ;;  %v26579_v36 = vpop.f32.mrb[141].mxu0 }
 0x8dd   :  { %26840 = vmatpush3.xpose.msk.msra.mxu0 %vm941_vm2, %v30987_v61  ;;  %26841 = vmatprep.mubr.msk.f32.mxu0 %vm28385_vm1, %v34649_v40 }
 0x8de   :  { %26844 = vmatprep.subr.mxu0 %v34649_v40 }
 0x8df   :  { %v31484_v5 = vpop.f32.mrb[142].mxu0 }
 0x8e0   :  { %26842 = vmatmul.mubr.msk.f32.vlgmr.msra.gmra.mrb[200].mxu0 %vm941_vm2, %v30989_v11  ;;  %16818 = vrot.lane.b32.xlu0 %v34813_v2, %s28390_s14  ;;  %v26589_v58 = vpop.f32.mrb[143].mxu0 }
 0x8e1   :  { %26845 = vmatpush3.xpose.msk.msra.mxu0 %vm941_vm2, %v30991_v23  ;;  %26846 = vmatprep.mubr.msk.f32.mxu0 %vm28385_vm1, %v34649_v40 }
 0x8e2   :  { %26849 = vmatprep.subr.mxu0 %v34649_v40  ;;  %v8902_v61 = vpop.xlane.xlu0 %8901 }
 0x8e3   :  { %28018 = vrcp.f32 %v8902_v61  ;;  %v31495_v36 = vpop.f32.mrb[144].mxu0 }
 0x8e4   :  { %26847 = vmatmul.mubr.msk.f32.vlgmr.msra.gmra.mrb[202].mxu0 %vm941_vm2, %v31053_v21  ;;  %16970 = vrot.lane.b32.xlu0 %v34814_v4, %s28390_s14  ;;  %v26599_v11 = vpop.f32.mrb[145].mxu0  ;;  %28020 = vrcp.f32 %v31370_v17 }
 0x8e5   :  { %26850 = vmatpush3.xpose.msk.msra.mxu0 %vm941_vm2, %v30997_v25  ;;  %26851 = vmatprep.mubr.msk.f32.mxu0 %vm28385_vm1, %v34649_v40  ;;  %v34879_v11 = vld [vmem:[#allocation105_spill] sm:$0xff] }
 0x8e6   :  { %26854 = vmatprep.subr.mxu0 %v34649_v40 }
 0x8e7   :  { %v31506_v23 = vpop.f32.mrb[146].mxu0 }
 0x8e8   :  { %26852 = vmatmul.mubr.msk.f32.vlgmr.msra.gmra.mrb[204].mxu0 %vm941_vm2, %v31001_v18  ;;  %v26609_v58 = vpop.f32.mrb[147].mxu0 }
 0x8e9   :  { %26855 = vmatpush3.xpose.msk.msra.mxu0 %vm941_vm2, %v31007_v63  ;;  %26856 = vmatprep.mubr.msk.f32.mxu0 %vm28385_vm1, %v34649_v40  ;;  %v34875_v63 = vld [vmem:[#allocation98_spill] sm:$0xff] }
 0x8ea   :  { %26859 = vmatprep.subr.mxu0 %v34649_v40 }
 0x8eb   :  { %v31515_v25 = vpop.f32.mrb[148].mxu0 }
 0x8ec   :  { %26857 = vmatmul.mubr.msk.f32.vlgmr.msra.gmra.mrb[206].mxu0 %vm941_vm2, %v31009_v44  ;;  %v26619_v21 = vpop.f32.mrb[149].mxu0  ;;  %v34876_v44 = vld [vmem:[#allocation99_spill] sm:$0xff] }
 0x8ed   :  { %v28019_v61 = vpop.eup %28018  ;;  %26860 = vmatpush3.xpose.msk.msra.mxu0 %vm941_vm2, %v31013_v35  ;;  %26861 = vmatprep.mubr.msk.f32.mxu0 %vm28385_vm1, %v34649_v40  ;;  %v34877_v35 = vld [vmem:[#allocation103_spill] sm:$0xff] }
 0x8ee   :  { %26864 = vmatprep.subr.mxu0 %v34649_v40  ;;  %v8992_v18 = vmul.f32 %v28019_v61, %v31211_v27  ;;  %v28021_v27 = vpop.eup %28020 }
 0x8f0   :  { %26862 = vmatmul.mubr.msk.f32.vlgmr.msra.gmra.mrb[208].mxu0 %vm941_vm2, %v31057_v22  ;;  %26593 = vmatmul.mubr.msk.f32.vlgmr.msra.gmra.mrb[148].mxu1 %vm3435_vm3, %v8992_v18 }
 0x8f1   :  { %26865 = vmatpush3.xpose.msk.msra.mxu0 %vm941_vm2, %v31021_v54  ;;  %26866 = vmatprep.mubr.msk.f32.mxu0 %vm28385_vm1, %v34649_v40  ;;  %v14535_v54 = vpop.permute.xlu0 %14534 }
 0x8f2   :  { %26869 = vmatprep.subr.mxu0 %v34649_v40  ;;  %26602 = vmatprep.mubr.msk.f32.mxu1 %vm28385_vm1, %v34649_v40 }
 0x8f4   :  { %26867 = vmatmul.mubr.msk.f32.vlgmr.msra.gmra.mrb[210].mxu0 %vm941_vm2, %v31059_v28 }
 0x8f5   :  { %26870 = vmatpush3.xpose.msk.msra.mxu0 %vm941_vm2, %v31027_v41  ;;  %26871 = vmatprep.mubr.msk.f32.mxu0 %vm28385_vm1, %v34649_v40 }
 0x8f6   :  { %26874 = vmatprep.subr.mxu0 %v34649_v40 }
 0x8f8   :  { %26872 = vmatmul.mubr.msk.f32.vlgmr.msra.gmra.mrb[212].mxu0 %vm941_vm2, %v31065_v1 }
 0x8f9   :  { %26875 = vmatpush3.xpose.msk.msra.mxu0 %vm941_vm2, %v31029_v0  ;;  %26876 = vmatprep.mubr.msk.f32.mxu0 %vm28385_vm1, %v34649_v40 }
 0x8fa   :  { %26879 = vmatprep.subr.mxu0 %v34649_v40 }
 0x8fc   :  { %26877 = vmatmul.mubr.msk.f32.vlgmr.msra.gmra.mrb[214].mxu0 %vm941_vm2, %v31069_v60 }
 0x8fd   :  { %26880 = vmatpush3.xpose.msk.msra.mxu0 %vm941_vm2, %v31031_v19  ;;  %26881 = vmatprep.mubr.msk.f32.mxu0 %vm28385_vm1, %v34649_v40  ;;  %v14533_v19 = vpop.permute.xlu0 %14532 }
 0x8fe   :  { %26884 = vmatprep.subr.mxu0 %v34649_v40 }
 0x900   :  { %26882 = vmatmul.mubr.msk.f32.vlgmr.msra.gmra.mrb[216].mxu0 %vm941_vm2, %v31071_v48 }
 0x901   :  { %26885 = vmatpush3.xpose.msk.msra.mxu0 %vm941_vm2, %v31073_v46  ;;  %26886 = vmatprep.mubr.msk.f32.mxu0 %vm28385_vm1, %v34649_v40 }
 0x902   :  { %26889 = vmatprep.subr.mxu0 %v34649_v40 }
 0x904   :  { %26887 = vmatmul.mubr.msk.f32.vlgmr.msra.gmra.mrb[218].mxu0 %vm941_vm2, %v31077_v6 }
 0x905   :  { %26890 = vmatpush3.xpose.msk.msra.mxu0 %vm941_vm2, %v31079_v56  ;;  %26891 = vmatprep.mubr.msk.f32.mxu0 %vm28385_vm1, %v34649_v40  ;;  %v10702_v56 = vpop.permute.xlu1 %10701 }
 0x906   :  { %26894 = vmatprep.subr.mxu0 %v34649_v40 }
 0x908   :  { %26892 = vmatmul.mubr.msk.f32.vlgmr.msra.gmra.mrb[220].mxu0 %vm941_vm2, %v31157_v34 }
 0x909   :  { %26895 = vmatpush3.xpose.msk.msra.mxu0 %vm941_vm2, %v34875_v63  ;;  %26896 = vmatprep.mubr.msk.f32.mxu0 %vm28385_vm1, %v34649_v40 }
 0x90a   :  { %26899 = vmatprep.subr.mxu0 %v34649_v40 }
 0x90c   :  { %26897 = vmatmul.mubr.msk.f32.vlgmr.msra.gmra.mrb[222].mxu0 %vm941_vm2, %v31315_v14  ;;  %v10856_v14 = vpop.permute.xlu1 %10855 }
 0x90d   :  { %26900 = vmatpush3.xpose.msk.msra.mxu0 %vm941_vm2, %v34876_v44  ;;  %26901 = vmatprep.mubr.msk.f32.mxu0 %vm28385_vm1, %v34649_v40 }
 0x90e   :  { %26904 = vmatprep.subr.mxu0 %v34649_v40 }
 0x910   :  { %26902 = vmatmul.mubr.msk.f32.vlgmr.msra.gmra.mrb[224].mxu0 %vm941_vm2, %v34877_v35 }
 0x911   :  { %26905 = vmatpush3.xpose.msk.msra.mxu0 %vm941_vm2, %v31351_v9  ;;  %26906 = vmatprep.mubr.msk.f32.mxu0 %vm28385_vm1, %v34649_v40  ;;  %v34878_v9 = vld [vmem:[#allocation119_spill] sm:$0xff] }
 0x912   :  { %26909 = vmatprep.subr.mxu0 %v34649_v40 }
 0x914   :  { %26907 = vmatmul.mubr.msk.f32.vlgmr.msra.gmra.mrb[226].mxu0 %vm941_vm2, %v31333_v16  ;;  %v31593_v41 = vpop.f32.mrb[150].mxu0 }
 0x915   :  { %26910 = vmatpush3.xpose.msk.msra.mxu0 %vm941_vm2, %v31443_v45  ;;  %v26629_v0 = vpop.f32.mrb[151].mxu0  ;;  %26911 = vmatprep.mubr.msk.f32.mxu0 %vm28385_vm1, %v34649_v40 }
 0x916   :  { %26914 = vmatprep.subr.mxu0 %v34649_v40 }
 0x918   :  { %26912 = vmatmul.mubr.msk.f32.vlgmr.msra.gmra.mrb[228].mxu0 %vm941_vm2, %v31460_v53  ;;  %v31602_v22 = vpop.f32.mrb[152].mxu0 }
 0x919   :  { %26915 = vmatpush3.xpose.msk.msra.mxu0 %vm941_vm2, %v31481_v49  ;;  %v26639_v28 = vpop.f32.mrb[153].mxu0  ;;  %26916 = vmatprep.mubr.msk.f32.mxu0 %vm28385_vm1, %v34649_v40  ;;  %v11010_v49 = vpop.permute.xlu1 %11009 }
 0x91a   :  { %26919 = vmatprep.subr.mxu0 %v34649_v40 }
 0x91b   :  { %v8914_v1 = vpop.xlane.xlu0 %8913 }
 0x91c   :  { %26917 = vmatmul.mubr.msk.f32.vlgmr.msra.gmra.mrb[230].mxu0 %vm941_vm2, %v31355_v12  ;;  %v31611_v60 = vpop.f32.mrb[154].mxu0  ;;  %28022 = vrcp.f32 %v8914_v1  ;;  %v8994_v12 = vmul.f32 %v28021_v27, %v34878_v9 }
 0x91d   :  { %26920 = vmatpush3.xpose.msk.msra.mxu0 %vm941_vm2, %v14535_v54  ;;  %v26649_v48 = vpop.f32.mrb[155].mxu0  ;;  %26921 = vmatprep.mubr.msk.f32.mxu0 %vm28385_vm1, %v34649_v40  ;;  %28024 = vrcp.f32 %v31381_v15 }
 0x91e   :  { %26929 = vmatprep.subr.mxu0 %v34649_v40 }
 0x91f   :  { %v8926_v46 = vpop.xlane.xlu0 %8925 }
 0x920   :  { %26922 = vmatmul.mubr.msk.f32.vlgmr.msra.gmra.mrb[232].mxu0 %vm941_vm2, %v14533_v19  ;;  %28026 = vrcp.f32 %v8926_v46 }
 0x921   :  { %26931 = vmatprep.mubr.msk.f32.mxu0 %vm28385_vm1, %v34649_v40 }
 0x923   :  { %v8932_v6 = vpop.xlane.xlu0 %8931 }
 0x924   :  { %28028 = vrcp.f32 %v8932_v6 }
 0x926   :  { %v28023_v17 = vpop.eup %28022 }
 0x927   :  { %v8938_v34 = vpop.xlane.xlu0 %8937  ;;  %v8996_v15 = vmul.f32 %v28023_v17, %v31276_v62  ;;  %v28025_v53 = vpop.eup %28024 }
 0x928   :  { %28030 = vrcp.f32 %v8938_v34  ;;  %v8998_v58 = vmul.f32 %v28025_v53, %v34879_v11  ;;  %v11164_v62 = vpop.permute.xlu1 %11163 }
 0x92a   :  { %v28027_v21 = vpop.eup %28026 }
 0x92b   :  { %v10548_v16 = vpop.permute.xlu0 %10547  ;;  %v9000_v61 = vmul.f32 %v28027_v21, %v31286_v31 }
 0x92c   :  { %26601 = vmatpush3.msra.mxu1 %v10548_v16  ;;  %v11318_v35 = vpop.permute.xlu1 %11317 }
 0x92d   :  { %26603 = vmatmul.mubr.msk.f32.vlgmr.msra.gmra.mrb[150].mxu1 %vm3435_vm3, %v8994_v12  ;;  %26610 = vmatprep.subr.mxu1 %v34649_v40 }
 0x92e   :  { %26611 = vmatpush3.msra.mxu1 %v10702_v56  ;;  %26612 = vmatprep.mubr.msk.f32.mxu1 %vm28385_vm1, %v34649_v40  ;;  %v28029_v18 = vpop.eup %28028 }
 0x92f   :  { %v15071_v45 = vpop.permute.xlu0 %15070  ;;  %26620 = vmatprep.subr.mxu1 %v34649_v40  ;;  %v9002_v63 = vmul.f32 %v28029_v18, %v31296_v52 }
 0x930   :  { %26930 = vmatpush3.msra.mxu0 %v15071_v45 }
 0x931   :  { %26613 = vmatmul.mubr.msk.f32.vlgmr.msra.gmra.mrb[152].mxu1 %vm3435_vm3, %v8996_v15  ;;  %26939 = vmatprep.subr.mxu0 %v34649_v40 }
 0x932   :  { %26621 = vmatpush3.msra.mxu1 %v10856_v14  ;;  %26622 = vmatprep.mubr.msk.f32.mxu1 %vm28385_vm1, %v34649_v40  ;;  %v28031_v44 = vpop.eup %28030 }
 0x933   :  { %26630 = vmatprep.subr.mxu1 %v34649_v40  ;;  %v9004_v31 = vmul.f32 %v28031_v44, %v31306_v38 }
 0x935   :  { %26623 = vmatmul.mubr.msk.f32.vlgmr.msra.gmra.mrb[154].mxu1 %vm3435_vm3, %v8998_v58 }
 0x936   :  { %26631 = vmatpush3.msra.mxu1 %v11010_v49  ;;  %26632 = vmatprep.mubr.msk.f32.mxu1 %vm28385_vm1, %v34649_v40 }
 0x937   :  { %26640 = vmatprep.subr.mxu1 %v34649_v40 }
 0x939   :  { %26633 = vmatmul.mubr.msk.f32.vlgmr.msra.gmra.mrb[156].mxu1 %vm3435_vm3, %v9000_v61 }
 0x93a   :  { %26641 = vmatpush3.msra.mxu1 %v11164_v62  ;;  %26642 = vmatprep.mubr.msk.f32.mxu1 %vm28385_vm1, %v34649_v40 }
 0x93b   :  { %26650 = vmatprep.subr.mxu1 %v34649_v40 }
 0x93d   :  { %26643 = vmatmul.mubr.msk.f32.vlgmr.msra.gmra.mrb[158].mxu1 %vm3435_vm3, %v9002_v63 }
 0x93e   :  { %26651 = vmatpush3.msra.mxu1 %v11318_v35  ;;  %26652 = vmatprep.mubr.msk.f32.mxu1 %vm28385_vm1, %v34649_v40 }
 0x93f   :  { %27604 = vmatprep.subr.bf16.mxu1 %v31198_v20 }
 0x941   :  { %26653 = vmatmul.mubr.msk.f32.vlgmr.msra.gmra.mrb[160].mxu1 %vm3435_vm3, %v9004_v31 }
 0x942   :  { %27605 = vmatpush3.bf16.msra.mxu1 %v31198_v20 }
 0x951   :  { %v31652_v54 = vpop.f32.mrb[156].mxu0 }
 0x952   :  { %v26659_v0 = vpop.f32.mrb[157].mxu0 }
 0x955   :  { %v31654_v52 = vpop.f32.mrb[158].mxu0 }
 0x956   :  { %34880 = vst [vmem:[#allocation100_spill] sm:$0xff] %v31654_v52  ;;  %v31656_v19 = vpop.f32.mrb[159].mxu0 }
 0x957   :  { %34881 = vst [vmem:[#allocation122_spill] sm:$0xff] %v31656_v19 }
 0x959   :  { %v31658_v28 = vpop.f32.mrb[160].mxu0 }
 0x95a   :  { %34882 = vst [vmem:[#allocation106_spill] sm:$0xff] %v31658_v28  ;;  %v31660_v1 = vpop.f32.mrb[161].mxu0 }
 0x95b   :  { %34883 = vst [vmem:[#allocation116_spill] sm:$0xff] %v31660_v1 }
 0x95d   :  { %v31662_v48 = vpop.f32.mrb[162].mxu0 }
 0x95e   :  { %34884 = vst [vmem:[#allocation108_spill] sm:$0xff] %v31662_v48  ;;  %v31664_v38 = vpop.f32.mrb[163].mxu0 }
 0x95f   :  { %34885 = vst [vmem:[#allocation109_spill] sm:$0xff] %v31664_v38 }
 0x961   :  { %v31666_v46 = vpop.f32.mrb[164].mxu0 }
 0x962   :  { %34886 = vst [vmem:[#allocation111_spill] sm:$0xff] %v31666_v46  ;;  %v31668_v6 = vpop.f32.mrb[165].mxu0 }
 0x963   :  { %34887 = vst [vmem:[#allocation114_spill] sm:$0xff] %v31668_v6 }
 0x965   :  { %v31670_v20 = vpop.f32.mrb[166].mxu0 }
 0x966   :  { %34888 = vst [vmem:[#allocation117_spill] sm:$0xff] %v31670_v20  ;;  %v31672_v56 = vpop.f32.mrb[167].mxu0 }
 0x967   :  { %34889 = vst [vmem:[#allocation144_spill] sm:$0xff] %v31672_v56  ;;  %v31760_v56 = vpop.permute.xlu1 %14994 }
 0x96b   :  { %v31768_v20 = vpop.permute.xlu1 %15146 }
 0x96f   :  { %v31777_v48 = vpop.permute.xlu1 %15298 }
 0x972   :  { %v31674_v34 = vpop.f32.mrb[168].mxu0 }
 0x973   :  { %34890 = vst [vmem:[#allocation113_spill] sm:$0xff] %v31674_v34  ;;  %v31676_v27 = vpop.f32.mrb[169].mxu0 }
 0x974   :  { %34891 = vst [vmem:[#allocation145_spill] sm:$0xff] %v31676_v27 }
 0x976   :  { %v12188_v14 = vpop.f32.mrb[170].mxu0 }
 0x977   :  { %v31678_v16 = vmul.f32 0.125, %v12188_v14  ;;  %v26768_v9 = vpop.f32.mrb[171].mxu0 }
 0x979   :  { %v14642_v12 = vsel %vm3435_vm3, %v31678_v16, -inf }
 0x97a   :  { %14643 = vmax.xlane.f32.xlu0 %v14642_v12  ;;  %v12266_v17 = vpop.f32.mrb[172].mxu0 }
 0x97b   :  { %v31682_v45 = vmul.f32 0.125, %v12266_v17  ;;  %v26773_v15 = vpop.f32.mrb[173].mxu0 }
 0x97d   :  { %v14645_v53 = vsel %vm3435_vm3, %v31682_v45, -inf }
 0x97e   :  { %14646 = vmax.xlane.f32.xlu1 %v14645_v53  ;;  %v12344_v49 = vpop.f32.mrb[174].mxu0 }
 0x97f   :  { %v31686_v11 = vmul.f32 0.125, %v12344_v49  ;;  %v26778_v58 = vpop.f32.mrb[175].mxu0 }
 0x981   :  { %v14648_v21 = vsel %vm3435_vm3, %v31686_v11, -inf }
 0x982   :  { %14649 = vmax.xlane.f32.xlu0 %v14648_v21  ;;  %v12422_v62 = vpop.f32.mrb[176].mxu0 }
 0x983   :  { %v31690_v61 = vmul.f32 0.125, %v12422_v62  ;;  %v26783_v18 = vpop.f32.mrb[177].mxu0 }
 0x985   :  { %v14651_v63 = vsel %vm3435_vm3, %v31690_v61, -inf }
 0x986   :  { %14652 = vmax.xlane.f32.xlu0 %v14651_v63  ;;  %v12500_v44 = vpop.f32.mrb[178].mxu0  ;;  %v6124_v63 = vld [vmem:[%s34383_s4] sm:$0xff] }
 0x987   :  { %v31694_v35 = vmul.f32 0.125, %v12500_v44  ;;  %v26788_v31 = vpop.f32.mrb[179].mxu0  ;;  %v6125_v44 = vld [vmem:[%s34383_s4 + $0x8] sm:$0xff] }
 0x989   :  { %v14654_v0 = vsel %vm3435_vm3, %v31694_v35, -inf }
 0x98a   :  { %14655 = vmax.xlane.f32.xlu1 %v14654_v0  ;;  %v12578_v14 = vpop.f32.mrb[180].mxu0  ;;  %v27528_v0 = vpack.c.bf16 %v6125_v44, %v6124_v63 }
 0x98b   :  { %v31698_v9 = vmul.f32 0.125, %v12578_v14  ;;  %v26793_v12 = vpop.f32.mrb[181].mxu0 }
 0x98c   :  { %27529 = vmatprep.subr.bf16.mxu1 %v27528_v0 }
 0x98d   :  { %v14657_v17 = vsel %vm3435_vm3, %v31698_v9, -inf }
 0x98e   :  { %14658 = vmax.xlane.f32.xlu0 %v14657_v17  ;;  %v12656_v15 = vpop.f32.mrb[182].mxu0 }
 0x98f   :  { %v31702_v53 = vmul.f32 0.125, %v12656_v15  ;;  %v26798_v49 = vpop.f32.mrb[183].mxu0 }
 0x991   :  { %v14660_v58 = vsel %vm3435_vm3, %v31702_v53, -inf }
 0x992   :  { %14661 = vmax.xlane.f32.xlu1 %v14660_v58  ;;  %v12734_v21 = vpop.f32.mrb[184].mxu0 }
 0x993   :  { %v31706_v62 = vmul.f32 0.125, %v12734_v21  ;;  %v26803_v18 = vpop.f32.mrb[185].mxu0 }
 0x995   :  { %v14663_v31 = vsel %vm3435_vm3, %v31706_v62, -inf }
 0x996   :  { %14664 = vmax.xlane.f32.xlu0 %v14663_v31  ;;  %v12812_v14 = vpop.f32.mrb[186].mxu0  ;;  %v10003_v12 = vpop.f32.mrb[142].mxu1 }
 0x997   :  { %v31716_v17 = vmul.f32 0.125, %v12812_v14  ;;  %v26808_v15 = vpop.f32.mrb[187].mxu0  ;;  %v26564_v49 = vpop.f32.mrb[143].mxu1  ;;  %26682 = vmatprep.mubr.msk.f32.mxu1 %vm941_vm2, %v10003_v12 }
 0x998   :  { %26683 = vmatmul.mubr.msk.f32.vlgmr.msra.gmra.mrb[162].mxu1 %vm941_vm2, %v31458_v51 }
 0x999   :  { %v14666_v58 = vsel %vm3435_vm3, %v31716_v17, -inf  ;;  %27531 = vmatpush3.bf16.msra.mxu1 %v27528_v0 }
 0x99a   :  { %14667 = vmax.xlane.f32.xlu1 %v14666_v58  ;;  %v12890_v21 = vpop.f32.mrb[188].mxu0  ;;  %26924 = vmatprep.subr.mxu1 %v34649_v40 }
 0x99b   :  { %v31724_v18 = vmul.f32 0.125, %v12890_v21  ;;  %v26813_v63 = vpop.f32.mrb[189].mxu0 }
 0x99c   :  { %v10157_v44 = vpop.f32.mrb[144].mxu1 }
 0x99d   :  { %v26574_v31 = vpop.f32.mrb[145].mxu1  ;;  %26685 = vmatprep.mubr.msk.f32.mxu1 %vm941_vm2, %v10157_v44  ;;  %v14669_v14 = vsel %vm3435_vm3, %v31724_v18, -inf }
 0x99e   :  { %26686 = vmatmul.mubr.msk.f32.gmra.mrb[164].mxu1 %vm941_vm2, %v31471_v39  ;;  %14670 = vmax.xlane.f32.xlu0 %v14669_v14 }
 0x99f   :  { %v12968_v51 = vpop.f32.mrb[190].mxu0 }
 0x9a0   :  { %v31731_v0 = vmul.f32 0.125, %v12968_v51  ;;  %v10311_v12 = vpop.f32.mrb[146].mxu1  ;;  %v26818_v15 = vpop.f32.mrb[191].mxu0 }
 0x9a1   :  { %v26584_v49 = vpop.f32.mrb[147].mxu1  ;;  %26688 = vmatprep.mubr.msk.f32.mxu1 %vm941_vm2, %v10311_v12 }
 0x9a2   :  { %26689 = vmatmul.mubr.msk.f32.gmra.mrb[166].mxu1 %vm941_vm2, %v31484_v5  ;;  %v14672_v58 = vsel %vm3435_vm3, %v31731_v0, -inf }
 0x9a3   :  { %14673 = vmax.xlane.f32.xlu1 %v14672_v58  ;;  %v13046_v21 = vpop.f32.mrb[192].mxu0 }
 0x9a4   :  { %v31738_v63 = vmul.f32 0.125, %v13046_v21  ;;  %v26823_v39 = vpop.f32.mrb[193].mxu0 }
 0x9a6   :  { %v14675_v44 = vsel %vm3435_vm3, %v31738_v63, -inf }
 0x9a7   :  { %14676 = vmax.xlane.f32.xlu0 %v14675_v44  ;;  %v13124_v31 = vpop.f32.mrb[194].mxu0 }
 0x9a8   :  { %v31742_v14 = vmul.f32 0.125, %v13124_v31  ;;  %v26828_v51 = vpop.f32.mrb[195].mxu0 }
 0x9aa   :  { %v14678_v12 = vsel %vm3435_vm3, %v31742_v14, -inf }
 0x9ab   :  { %14679 = vmax.xlane.f32.xlu1 %v14678_v12  ;;  %v13202_v5 = vpop.f32.mrb[196].mxu0 }
 0x9ac   :  { %v31746_v15 = vmul.f32 0.125, %v13202_v5  ;;  %v26833_v49 = vpop.f32.mrb[197].mxu0 }
 0x9ae   :  { %v14681_v58 = vsel %vm3435_vm3, %v31746_v15, -inf }
 0x9af   :  { %14682 = vmax.xlane.f32.xlu0 %v14681_v58  ;;  %v13280_v21 = vpop.f32.mrb[198].mxu0 }
 0x9b0   :  { %v31750_v39 = vmul.f32 0.125, %v13280_v21  ;;  %v26838_v44 = vpop.f32.mrb[199].mxu0 }
 0x9b2   :  { %v14684_v31 = vsel %vm3435_vm3, %v31750_v39, -inf }
 0x9b3   :  { %14685 = vmax.xlane.f32.xlu1 %v14684_v31  ;;  %v13358_v51 = vpop.f32.mrb[200].mxu0 }
 0x9b4   :  { %v31754_v27 = vmul.f32 0.125, %v13358_v51  ;;  %v26843_v12 = vpop.f32.mrb[201].mxu0 }
 0x9b6   :  { %v14687_v5 = vsel %vm3435_vm3, %v31754_v27, -inf }
 0x9b7   :  { %14688 = vmax.xlane.f32.xlu0 %v14687_v5  ;;  %v13436_v49 = vpop.f32.mrb[202].mxu0 }
 0x9b8   :  { %v31758_v34 = vmul.f32 0.125, %v13436_v49  ;;  %v26848_v58 = vpop.f32.mrb[203].mxu0 }
 0x9ba   :  { %v14690_v21 = vsel %vm3435_vm3, %v31758_v34, -inf }
 0x9bb   :  { %14691 = vmax.xlane.f32.xlu1 %v14690_v21  ;;  %v13514_v44 = vpop.f32.mrb[204].mxu0 }
 0x9bc   :  { %v31764_v31 = vmul.f32 0.125, %v13514_v44  ;;  %v26853_v51 = vpop.f32.mrb[205].mxu0 }
 0x9be   :  { %v14693_v12 = vsel %vm3435_vm3, %v31764_v31, -inf }
 0x9bf   :  { %14694 = vmax.xlane.f32.xlu0 %v14693_v12  ;;  %v13592_v5 = vpop.f32.mrb[206].mxu0  ;;  %v31781_v12 = vpop.permute.xlu0 %15222 }
 0x9c0   :  { %v31770_v49 = vmul.f32 0.125, %v13592_v5  ;;  %v26858_v58 = vpop.f32.mrb[207].mxu0 }
 0x9c2   :  { %v14696_v6 = vsel %vm3435_vm3, %v31770_v49, -inf }
 0x9c3   :  { %14697 = vmax.xlane.f32.xlu1 %v14696_v6  ;;  %v13670_v46 = vpop.f32.mrb[208].mxu0  ;;  %v10465_v21 = vpop.f32.mrb[148].mxu1 }
 0x9c4   :  { %v31774_v38 = vmul.f32 0.125, %v13670_v46  ;;  %v26863_v44 = vpop.f32.mrb[209].mxu0  ;;  %v26594_v51 = vpop.f32.mrb[149].mxu1  ;;  %26691 = vmatprep.mubr.msk.f32.mxu1 %vm941_vm2, %v10465_v21 }
 0x9c5   :  { %26692 = vmatmul.mubr.msk.f32.gmra.mrb[168].mxu1 %vm941_vm2, %v31495_v36  ;;  %v31789_v51 = vpop.permute.xlu1 %15450  ;;  %v31791_v1 = vpop.permute.xlu0 %15374 }
 0x9c6   :  { %v14699_v5 = vsel %vm3435_vm3, %v31774_v38, -inf }
 0x9c7   :  { %14700 = vmax.xlane.f32.xlu0 %v14699_v5  ;;  %v13748_v6 = vpop.f32.mrb[210].mxu0 }
 0x9c8   :  { %v31785_v58 = vmul.f32 0.125, %v13748_v6  ;;  %v26868_v46 = vpop.f32.mrb[211].mxu0 }
 0x9c9   :  { %v31799_v52 = vpop.permute.xlu1 %15602  ;;  %v31801_v4 = vpop.permute.xlu0 %15526 }
 0x9ca   :  { %v14702_v44 = vsel %vm3435_vm3, %v31785_v58, -inf }
 0x9cb   :  { %14703 = vmax.xlane.f32.xlu1 %v14702_v44  ;;  %v13826_v21 = vpop.f32.mrb[212].mxu0 }
 0x9cc   :  { %v31793_v36 = vmul.f32 0.125, %v13826_v21  ;;  %v26873_v28 = vpop.f32.mrb[213].mxu0 }
 0x9ce   :  { %v14705_v19 = vsel %vm3435_vm3, %v31793_v36, -inf }
 0x9cf   :  { %14706 = vmax.xlane.f32.xlu0 %v14705_v19  ;;  %v13904_v5 = vpop.f32.mrb[214].mxu0  ;;  %v31809_v19 = vpop.permute.xlu1 %15754 }
 0x9d0   :  { %v31797_v6 = vmul.f32 0.125, %v13904_v5  ;;  %v26878_v46 = vpop.f32.mrb[215].mxu0 }
 0x9d1   :  { %v31811_v46 = vpop.permute.xlu0 %15678 }
 0x9d2   :  { %v14708_v44 = vsel %vm3435_vm3, %v31797_v6, -inf }
 0x9d3   :  { %14709 = vmax.xlane.f32.xlu1 %v14708_v44  ;;  %v13982_v2 = vpop.f32.mrb[216].mxu0  ;;  %v31819_v24 = vpop.permute.xlu1 %15906 }
 0x9d4   :  { %v31805_v21 = vmul.f32 0.125, %v13982_v2  ;;  %v26883_v28 = vpop.f32.mrb[217].mxu0 }
 0x9d5   :  { %v31821_v57 = vpop.permute.xlu0 %15830 }
 0x9d6   :  { %v14711_v10 = vsel %vm3435_vm3, %v31805_v21, -inf }
 0x9d7   :  { %14712 = vmax.xlane.f32.xlu0 %v14711_v10  ;;  %v14060_v5 = vpop.f32.mrb[218].mxu0 }
 0x9d8   :  { %v31813_v50 = vmul.f32 0.125, %v14060_v5  ;;  %v26888_v55 = vpop.f32.mrb[219].mxu0 }
 0x9da   :  { %v14714_v7 = vsel %vm3435_vm3, %v31813_v50, -inf }
 0x9db   :  { %14715 = vmax.xlane.f32.xlu1 %v14714_v7  ;;  %v14138_v44 = vpop.f32.mrb[220].mxu0  ;;  %v31829_v7 = vpop.permute.xlu1 %16058 }
 0x9dc   :  { %v31817_v2 = vmul.f32 0.125, %v14138_v44  ;;  %v26893_v28 = vpop.f32.mrb[221].mxu0 }
 0x9dd   :  { %v31831_v28 = vpop.permute.xlu0 %15982 }
 0x9de   :  { %v14717_v10 = vsel %vm3435_vm3, %v31817_v2, -inf }
 0x9df   :  { %14718 = vmax.xlane.f32.xlu0 %v14717_v10  ;;  %v14216_v29 = vpop.f32.mrb[222].mxu0  ;;  %v31839_v13 = vpop.permute.xlu1 %16210 }
 0x9e0   :  { %v31825_v5 = vmul.f32 0.125, %v14216_v29  ;;  %v26898_v55 = vpop.f32.mrb[223].mxu0  ;;  %34892 = vst [vmem:[#allocation126_spill] sm:$0xff] %v31839_v13 }
 0x9e1   :  { %v31841_v33 = vpop.permute.xlu0 %16134 }
 0x9e2   :  { %v14720_v3 = vsel %vm3435_vm3, %v31825_v5, -inf }
 0x9e3   :  { %14721 = vmax.xlane.f32.xlu1 %v14720_v3  ;;  %v14294_v44 = vpop.f32.mrb[224].mxu0 }
 0x9e4   :  { %v31833_v32 = vmul.f32 0.125, %v14294_v44  ;;  %v26903_v30 = vpop.f32.mrb[225].mxu0 }
 0x9e6   :  { %v14723_v47 = vsel %vm3435_vm3, %v31833_v32, -inf }
 0x9e7   :  { %14724 = vmax.xlane.f32.xlu0 %v14723_v47  ;;  %v14372_v10 = vpop.f32.mrb[226].mxu0  ;;  %v31849_v47 = vpop.permute.xlu1 %16362 }
 0x9e8   :  { %v31837_v29 = vmul.f32 0.125, %v14372_v10  ;;  %v26908_v55 = vpop.f32.mrb[227].mxu0  ;;  %34893 = vst [vmem:[#allocation120_spill] sm:$0xff] %v31849_v47 }
 0x9e9   :  { %v31851_v55 = vpop.permute.xlu0 %16286 }
 0x9ea   :  { %v14726_v3 = vsel %vm3435_vm3, %v31837_v29, -inf  ;;  %34894 = vst [vmem:[#allocation142_spill] sm:$0xff] %v31851_v55 }
 0x9eb   :  { %14727 = vmax.xlane.f32.xlu1 %v14726_v3  ;;  %v14450_v59 = vpop.f32.mrb[228].mxu0  ;;  %v31859_v42 = vpop.permute.xlu1 %16514 }
 0x9ec   :  { %v31845_v44 = vmul.f32 0.125, %v14450_v59  ;;  %v26913_v30 = vpop.f32.mrb[229].mxu0  ;;  %34895 = vst [vmem:[#allocation101_spill] sm:$0xff] %v31859_v42 }
 0x9ed   :  { %v31861_v13 = vpop.permute.xlu0 %16438 }
 0x9ee   :  { %v14729_v37 = vsel %vm3435_vm3, %v31845_v44, -inf }
 0x9ef   :  { %14730 = vmax.xlane.f32.xlu0 %v14729_v37  ;;  %v14528_v10 = vpop.f32.mrb[230].mxu0  ;;  %v31865_v47 = vpop.permute.xlu1 %16590 }
 0x9f0   :  { %v31853_v26 = vmul.f32 0.125, %v14528_v10  ;;  %v26918_v8 = vpop.f32.mrb[231].mxu0 }
 0x9f1   :  { %v31867_v10 = vpop.permute.xlu0 %16666 }
 0x9f2   :  { %v14732_v43 = vsel %vm3435_vm3, %v31853_v26, -inf  ;;  %34896 = vst [vmem:[#allocation121_spill] sm:$0xff] %v31867_v10 }
 0x9f3   :  { %14733 = vmax.xlane.f32.xlu1 %v14732_v43  ;;  %v14606_v3 = vpop.f32.mrb[232].mxu0  ;;  %v31869_v55 = vpop.permute.xlu1 %16742 }
 0x9f4   :  { %v31857_v59 = vmul.f32 0.125, %v14606_v3  ;;  %v26923_v30 = vpop.f32.mrb[233].mxu0  ;;  %34897 = vst [vmem:[#allocation102_spill] sm:$0xff] %v31869_v55 }
 0x9f5   :  { %v31872_v3 = vpop.permute.xlu0 %16818  ;;  %v34899_v30 = vld [vmem:[#allocation61_spill] sm:$0xff] }
 0x9f6   :  { %v14735_v37 = vsel %vm3435_vm3, %v31857_v59, -inf  ;;  %34898 = vst [vmem:[#allocation124_spill] sm:$0xff] %v31872_v3 }
 0x9f7   :  { %14736 = vmax.xlane.f32.xlu0 %v14735_v37  ;;  %v31881_v10 = vpop.permute.xlu1 %16894 }
 0x9f8   :  { %34900 = vst [vmem:[#allocation104_spill] sm:$0xff] %v31881_v10 }
 0xa00   :  { %v10619_v8 = vpop.f32.mrb[150].mxu1 }
 0xa01   :  { %v26604_v43 = vpop.f32.mrb[151].mxu1  ;;  %26694 = vmatprep.mubr.msk.f32.mxu1 %vm941_vm2, %v10619_v8 }
 0xa02   :  { %26695 = vmatmul.mubr.msk.f32.gmra.mrb[170].mxu1 %vm941_vm2, %v31506_v23  ;;  %v31883_v43 = vpop.permute.xlu0 %16970 }
 0xa03   :  { %34901 = vst [vmem:[#allocation127_spill] sm:$0xff] %v31883_v43 }
 0xa04   :  { %17198 = vrot.lane.b32.xlu1 %v34899_v30, %s28390_s14  ;;  %v10773_v42 = vpop.f32.mrb[152].mxu1 }
 0xa05   :  { %v26614_v37 = vpop.f32.mrb[153].mxu1  ;;  %26697 = vmatprep.mubr.msk.f32.mxu1 %vm941_vm2, %v10773_v42 }
 0xa06   :  { %26698 = vmatmul.mubr.msk.f32.gmra.mrb[172].mxu1 %vm941_vm2, %v31515_v25  ;;  %v34902_v37 = vld [vmem:[#allocation59_spill] sm:$0xff]  ;;  %v31891_v25 = vpop.permute.xlu1 %17046 }
 0xa07   :  { %v14644_v23 = vpop.xlane.xlu0 %14643  ;;  %34903 = vst [vmem:[#allocation107_spill] sm:$0xff] %v31891_v25 }
 0xa08   :  { %v10927_v8 = vpop.f32.mrb[154].mxu1 }
 0xa09   :  { %v26624_v55 = vpop.f32.mrb[155].mxu1  ;;  %26700 = vmatprep.mubr.msk.f32.mxu1 %vm941_vm2, %v10927_v8 }
 0xa0a   :  { %26701 = vmatmul.mubr.msk.f32.gmra.mrb[174].mxu1 %vm941_vm2, %v31593_v41  ;;  %v14738_v41 = vsub.f32 %v31678_v16, %v14644_v23 }
 0xa0b   :  { %v14647_v8 = vpop.xlane.xlu1 %14646 }
 0xa0c   :  { %v11081_v30 = vpop.f32.mrb[156].mxu1  ;;  %v14770_v25 = vmul.f32 1.442695, %v14738_v41 }
 0xa0d   :  { %17122 = vrot.lane.b32.xlu0 %v34902_v37, %s28390_s14  ;;  %v26634_v42 = vpop.f32.mrb[157].mxu1  ;;  %26703 = vmatprep.mubr.msk.f32.mxu1 %vm941_vm2, %v11081_v30 }
 0xa0e   :  { %26704 = vmatmul.mubr.msk.f32.gmra.mrb[176].mxu1 %vm941_vm2, %v31602_v22  ;;  %v14739_v42 = vsub.f32 %v31682_v45, %v14647_v8  ;;  %28032 = vpow2.f32 %v14770_v25  ;;  %v34905_v8 = vld [vmem:[#allocation68_spill] sm:$0xff]  ;;  %v34908_v25 = vld [vmem:[#allocation70_spill] sm:$0xff] }
 0xa0f   :  { %v14650_v43 = vpop.xlane.xlu0 %14649 }
 0xa10   :  { %v11235_v55 = vpop.f32.mrb[158].mxu1  ;;  %v14740_v22 = vsub.f32 %v31686_v11, %v14650_v43  ;;  %v14772_v16 = vmul.f32 1.442695, %v14739_v42  ;;  %v34906_v11 = vld [vmem:[#allocation66_spill] sm:$0xff] }
 0xa11   :  { %v26644_v10 = vpop.f32.mrb[159].mxu1  ;;  %26706 = vmatprep.mubr.msk.f32.mxu1 %vm941_vm2, %v11235_v55  ;;  %v34904_v55 = vld [vmem:[#allocation67_spill] sm:$0xff] }
 0xa12   :  { %26707 = vmatmul.mubr.msk.f32.gmra.mrb[178].mxu1 %vm941_vm2, %v31611_v60  ;;  %v14774_v23 = vmul.f32 1.442695, %v14740_v22  ;;  %28034 = vpow2.f32 %v14772_v16  ;;  %v34910_v22 = vld [vmem:[#allocation72_spill] sm:$0xff] }
 0xa13   :  { %v14653_v3 = vpop.xlane.xlu0 %14652 }
 0xa14   :  { %v11389_v37 = vpop.f32.mrb[160].mxu1  ;;  %v14741_v60 = vsub.f32 %v31690_v61, %v14653_v3  ;;  %28036 = vpow2.f32 %v14774_v23  ;;  %v34907_v3 = vld [vmem:[#allocation69_spill] sm:$0xff] }
 0xa15   :  { %v26654_v30 = vpop.f32.mrb[161].mxu1  ;;  %26709 = vmatprep.mubr.msk.f32.mxu1 %vm941_vm2, %v11389_v37 }
 0xa16   :  { %26710 = vmatmul.mubr.msk.f32.gmra.mrb[180].mxu1 %vm941_vm2, %v31652_v54  ;;  %v14776_v43 = vmul.f32 1.442695, %v14741_v60  ;;  %v34909_v30 = vld [vmem:[#allocation71_spill] sm:$0xff]  ;;  %v34911_v60 = vld [vmem:[#allocation73_spill] sm:$0xff] }
 0xa17   :  { %v14656_v10 = vpop.xlane.xlu1 %14655  ;;  %26716 = vmatprep.mubr.msk.f32.mxu1 %vm941_vm2, %v34904_v55 }
 0xa18   :  { %v14742_v45 = vsub.f32 %v31694_v35, %v14656_v10  ;;  %28038 = vpow2.f32 %v14776_v43  ;;  %v31924_v10 = vpop.eup %28032  ;;  %v34913_v43 = vld [vmem:[#allocation75_spill] sm:$0xff] }
 0xa1a   :  { %26717 = vmatmul.mubr.msk.f32.vlgmr.msra.gmra.mrb[182].mxu1 %vm941_vm2, %v34905_v8  ;;  %v14778_v61 = vmul.f32 1.442695, %v14742_v45  ;;  %v34912_v45 = vld [vmem:[#allocation74_spill] sm:$0xff]  ;;  %v14834_v8 = vsel %vm3435_vm3, %v31924_v10, 0.0 }
 0xa1b   :  { %26925 = vmatpush3.msra.mxu1 %v31760_v56  ;;  %26719 = vmatprep.mubr.msk.f32.mxu1 %vm941_vm2, %v34906_v11  ;;  %v14659_v54 = vpop.xlane.xlu0 %14658 }
 0xa1c   :  { %26934 = vmatprep.subr.mxu1 %v34649_v40  ;;  %v14743_v37 = vsub.f32 %v31698_v9, %v14659_v54  ;;  %28040 = vpow2.f32 %v14778_v61 }
 0xa1e   :  { %26720 = vmatmul.mubr.msk.f32.gmra.mrb[184].mxu1 %vm941_vm2, %v34907_v3  ;;  %v14780_v41 = vmul.f32 1.442695, %v14743_v37  ;;  %v34914_v3 = vld [vmem:[#allocation76_spill] sm:$0xff] }
 0xa1f   :  { %v14662_v35 = vpop.xlane.xlu1 %14661  ;;  %26722 = vmatprep.mubr.msk.f32.mxu1 %vm941_vm2, %v34908_v25 }
 0xa20   :  { %v14744_v56 = vsub.f32 %v31702_v53, %v14662_v35  ;;  %28042 = vpow2.f32 %v14780_v41  ;;  %v31929_v53 = vpop.eup %28034 }
 0xa21   :  { %v31935_v11 = vpop.eup %28036  ;;  %v14837_v61 = vsel %vm3435_vm3, %v31929_v53, 0.0 }
 0xa22   :  { %v14782_v42 = vmul.f32 1.442695, %v14744_v56  ;;  %26723 = vmatmul.mubr.msk.f32.gmra.mrb[186].mxu1 %vm941_vm2, %v34909_v30  ;;  %v31940_v37 = vpop.eup %28038  ;;  %v14840_v35 = vsel %vm3435_vm3, %v31935_v11, 0.0 }
 0xa23   :  { %26725 = vmatprep.mubr.msk.f32.mxu1 %vm941_vm2, %v34910_v22  ;;  %v14665_v9 = vpop.xlane.xlu0 %14664  ;;  %v34916_v22 = vld [vmem:[#allocation78_spill] sm:$0xff] }
 0xa24   :  { %v14745_v55 = vsub.f32 %v31706_v62, %v14665_v9  ;;  %28044 = vpow2.f32 %v14782_v42  ;;  %v34915_v42 = vld [vmem:[#allocation77_spill] sm:$0xff] }
 0xa26   :  { %v14784_v16 = vmul.f32 1.442695, %v14745_v55  ;;  %26726 = vmatmul.mubr.msk.f32.gmra.mrb[188].mxu1 %vm941_vm2, %v34911_v60  ;;  %v31948_v56 = vpop.eup %28040  ;;  %v14843_v55 = vsel %vm3435_vm3, %v31940_v37, 0.0 }
 0xa27   :  { %v14668_v23 = vpop.xlane.xlu1 %14667  ;;  %26728 = vmatprep.mubr.msk.f32.mxu1 %vm941_vm2, %v34912_v45  ;;  %v14846_v9 = vsel %vm3435_vm3, %v31948_v56, 0.0 }
 0xa28   :  { %v14746_v54 = vsub.f32 %v31716_v17, %v14668_v23  ;;  %14835 = vadd.xlane.f32.xlu1 %v14834_v8  ;;  %28046 = vpow2.f32 %v14784_v16  ;;  %v34917_v23 = vld [vmem:[#allocation79_spill] sm:$0xff]  ;;  %v34918_v8 = vld [vmem:[#allocation80_spill] sm:$0xff] }
 0xa2a   :  { %v14786_v62 = vmul.f32 1.442695, %v14746_v54  ;;  %26729 = vmatmul.mubr.msk.f32.gmra.mrb[190].mxu1 %vm941_vm2, %v34913_v43  ;;  %v31953_v30 = vpop.eup %28042 }
 0xa2b   :  { %26731 = vmatprep.mubr.msk.f32.mxu1 %vm941_vm2, %v34914_v3  ;;  %v14671_v25 = vpop.xlane.xlu0 %14670 }
 0xa2c   :  { %28048 = vpow2.f32 %v14786_v62  ;;  %14838 = vadd.xlane.f32.xlu0 %v14837_v61  ;;  %14841 = vadd.xlane.f32.xlu1 %v14840_v35  ;;  %v14747_v17 = vsub.f32 %v31724_v18, %v14671_v25  ;;  %v14849_v62 = vsel %vm3435_vm3, %v31953_v30, 0.0  ;;  %v34919_v35 = vld [vmem:[#allocation81_spill] sm:$0xff] }
 0xa2e   :  { %v14788_v41 = vmul.f32 1.442695, %v14747_v17  ;;  %26732 = vmatmul.mubr.msk.f32.gmra.mrb[192].mxu1 %vm941_vm2, %v34915_v42  ;;  %v31961_v16 = vpop.eup %28044  ;;  %v34920_v17 = vld [vmem:[#allocation82_spill] sm:$0xff] }
 0xa2f   :  { %26734 = vmatprep.mubr.msk.f32.mxu1 %vm941_vm2, %v34916_v22  ;;  %v14852_v54 = vsel %vm3435_vm3, %v31961_v16, 0.0 }
 0xa30   :  { %28050 = vpow2.f32 %v14788_v41  ;;  %v14674_v60 = vpop.xlane.xlu1 %14673  ;;  %14847 = vadd.xlane.f32.xlu1 %v14846_v9  ;;  %14844 = vadd.xlane.f32.xlu0 %v14843_v55  ;;  %v34921_v55 = vld [vmem:[#allocation83_spill] sm:$0xff] }
 0xa31   :  { %v14748_v18 = vsub.f32 %v31731_v0, %v14674_v60 }
 0xa32   :  { %26735 = vmatmul.mubr.msk.f32.gmra.mrb[162].mxu1 %vm941_vm2, %v34917_v23  ;;  %v31972_v43 = vpop.eup %28046 }
 0xa33   :  { %v14790_v45 = vmul.f32 1.442695, %v14748_v18  ;;  %26737 = vmatprep.mubr.msk.f32.mxu1 %vm941_vm2, %v34918_v8  ;;  %v14855_v41 = vsel %vm3435_vm3, %v31972_v43, 0.0  ;;  %v34922_v18 = vld [vmem:[#allocation84_spill] sm:$0xff] }
 0xa34   :  { %14853 = vadd.xlane.f32.xlu1 %v14852_v54  ;;  %14850 = vadd.xlane.f32.xlu0 %v14849_v62  ;;  %v14677_v61 = vpop.xlane.xlu0 %14676  ;;  %v34923_v54 = vld [vmem:[#allocation85_spill] sm:$0xff] }
 0xa35   :  { %28052 = vpow2.f32 %v14790_v45  ;;  %v14749_v0 = vsub.f32 %v31738_v63, %v14677_v61  ;;  %v34924_v61 = vld [vmem:[#allocation86_spill] sm:$0xff] }
 0xa36   :  { %v31975_v3 = vpop.eup %28048  ;;  %26738 = vmatmul.mubr.msk.f32.gmra.mrb[164].mxu1 %vm941_vm2, %v34919_v35 }
 0xa37   :  { %v14792_v25 = vmul.f32 1.442695, %v14749_v0  ;;  %26740 = vmatprep.mubr.msk.f32.mxu1 %vm941_vm2, %v34920_v17  ;;  %v14858_v42 = vsel %vm3435_vm3, %v31975_v3, 0.0  ;;  %v34925_v17 = vld [vmem:[#allocation87_spill] sm:$0xff] }
 0xa38   :  { %v14680_v22 = vpop.xlane.xlu1 %14679  ;;  %14856 = vadd.xlane.f32.xlu0 %v14855_v41  ;;  %14859 = vadd.xlane.f32.xlu1 %v14858_v42  ;;  %v34926_v42 = vld [vmem:[#allocation88_spill] sm:$0xff] }
 0xa39   :  { %28054 = vpow2.f32 %v14792_v25  ;;  %v14750_v63 = vsub.f32 %v31742_v14, %v14680_v22 }
 0xa3a   :  { %v31986_v9 = vpop.eup %28050  ;;  %26741 = vmatmul.mubr.msk.f32.gmra.mrb[166].mxu1 %vm941_vm2, %v34921_v55 }
 0xa3b   :  { %v14794_v60 = vmul.f32 1.442695, %v14750_v63  ;;  %26743 = vmatprep.mubr.msk.f32.mxu1 %vm941_vm2, %v34922_v18  ;;  %v14861_v23 = vsel %vm3435_vm3, %v31986_v9, 0.0 }
 0xa3c   :  { %v14683_v45 = vpop.xlane.xlu0 %14682  ;;  %14862 = vadd.xlane.f32.xlu0 %v14861_v23  ;;  %v34928_v23 = vld [vmem:[#allocation90_spill] sm:$0xff] }
 0xa3d   :  { %28056 = vpow2.f32 %v14794_v60  ;;  %v14751_v8 = vsub.f32 %v31746_v15, %v14683_v45  ;;  %v34927_v60 = vld [vmem:[#allocation89_spill] sm:$0xff] }
 0xa3e   :  { %26744 = vmatmul.mubr.msk.f32.gmra.mrb[168].mxu1 %vm941_vm2, %v34923_v54 }
 0xa3f   :  { %v31997_v14 = vpop.eup %28052  ;;  %v14796_v62 = vmul.f32 1.442695, %v14751_v8  ;;  %26746 = vmatprep.mubr.msk.f32.mxu1 %vm941_vm2, %v34924_v61 }
 0xa40   :  { %v14686_v0 = vpop.xlane.xlu1 %14685  ;;  %v14864_v35 = vsel %vm3435_vm3, %v31997_v14, 0.0 }
 0xa41   :  { %28058 = vpow2.f32 %v14796_v62  ;;  %v14752_v25 = vsub.f32 %v31750_v39, %v14686_v0  ;;  %14865 = vadd.xlane.f32.xlu1 %v14864_v35  ;;  %v34929_v62 = vld [vmem:[#allocation91_spill] sm:$0xff]  ;;  %v34930_v0 = vld [vmem:[#allocation92_spill] sm:$0xff] }
 0xa42   :  { %26747 = vmatmul.mubr.msk.f32.gmra.mrb[170].mxu1 %vm941_vm2, %v34925_v17 }
 0xa43   :  { %v32006_v15 = vpop.eup %28054  ;;  %v14798_v41 = vmul.f32 1.442695, %v14752_v25  ;;  %26749 = vmatprep.mubr.msk.f32.mxu1 %vm941_vm2, %v34926_v42 }
 0xa44   :  { %v14689_v22 = vpop.xlane.xlu0 %14688  ;;  %v14867_v63 = vsel %vm3435_vm3, %v32006_v15, 0.0 }
 0xa45   :  { %28060 = vpow2.f32 %v14798_v41  ;;  %v14753_v55 = vsub.f32 %v31754_v27, %v14689_v22  ;;  %14868 = vadd.xlane.f32.xlu0 %v14867_v63  ;;  %v34931_v41 = vld [vmem:[#allocation93_spill] sm:$0xff]  ;;  %v34932_v22 = vld [vmem:[#allocation94_spill] sm:$0xff] }
 0xa46   :  { %26750 = vmatmul.mubr.msk.f32.gmra.mrb[172].mxu1 %vm941_vm2, %v34927_v60 }
 0xa47   :  { %v32015_v39 = vpop.eup %28056  ;;  %v14800_v18 = vmul.f32 1.442695, %v14753_v55  ;;  %26752 = vmatprep.mubr.msk.f32.mxu1 %vm941_vm2, %v34928_v23 }
 0xa48   :  { %v14692_v45 = vpop.xlane.xlu1 %14691  ;;  %v14870_v8 = vsel %vm3435_vm3, %v32015_v39, 0.0 }
 0xa49   :  { %28062 = vpow2.f32 %v14800_v18  ;;  %v14754_v54 = vsub.f32 %v31758_v34, %v14692_v45  ;;  %14871 = vadd.xlane.f32.xlu1 %v14870_v8  ;;  %v34933_v18 = vld [vmem:[#allocation95_spill] sm:$0xff]  ;;  %v34934_v45 = vld [vmem:[#allocation96_spill] sm:$0xff] }
 0xa4a   :  { %26753 = vmatmul.mubr.msk.f32.gmra.mrb[174].mxu1 %vm941_vm2, %v34929_v62 }
 0xa4b   :  { %v32024_v27 = vpop.eup %28058  ;;  %v14802_v61 = vmul.f32 1.442695, %v14754_v54  ;;  %26755 = vmatprep.mubr.msk.f32.mxu1 %vm941_vm2, %v34930_v0 }
 0xa4c   :  { %v14695_v35 = vpop.xlane.xlu0 %14694  ;;  %v14873_v25 = vsel %vm3435_vm3, %v32024_v27, 0.0 }
 0xa4d   :  { %28064 = vpow2.f32 %v14802_v61  ;;  %v14755_v17 = vsub.f32 %v31764_v31, %v14695_v35  ;;  %14874 = vadd.xlane.f32.xlu0 %v14873_v25  ;;  %v34935_v61 = vld [vmem:[#allocation97_spill] sm:$0xff] }
 0xa4e   :  { %26756 = vmatmul.mubr.msk.f32.gmra.mrb[176].mxu1 %vm941_vm2, %v34931_v41 }
 0xa4f   :  { %v32033_v34 = vpop.eup %28060  ;;  %v14804_v42 = vmul.f32 1.442695, %v14755_v17  ;;  %26758 = vmatprep.mubr.msk.f32.mxu1 %vm941_vm2, %v34932_v22 }
 0xa50   :  { %v14698_v63 = vpop.xlane.xlu1 %14697  ;;  %v14876_v55 = vsel %vm3435_vm3, %v32033_v34, 0.0 }
 0xa51   :  { %28066 = vpow2.f32 %v14804_v42  ;;  %v14756_v60 = vsub.f32 %v31770_v49, %v14698_v63  ;;  %14877 = vadd.xlane.f32.xlu1 %v14876_v55 }
 0xa52   :  { %26759 = vmatmul.mubr.msk.f32.gmra.mrb[178].mxu1 %vm941_vm2, %v34933_v18 }
 0xa53   :  { %v32042_v31 = vpop.eup %28062  ;;  %v14806_v23 = vmul.f32 1.442695, %v14756_v60  ;;  %26761 = vmatprep.mubr.msk.f32.mxu1 %vm941_vm2, %v34934_v45 }
 0xa54   :  { %v14701_v8 = vpop.xlane.xlu0 %14700  ;;  %v14879_v54 = vsel %vm3435_vm3, %v32042_v31, 0.0 }
 0xa55   :  { %28068 = vpow2.f32 %v14806_v23  ;;  %v14757_v62 = vsub.f32 %v31774_v38, %v14701_v8  ;;  %14880 = vadd.xlane.f32.xlu0 %v14879_v54 }
 0xa56   :  { %26762 = vmatmul.mubr.msk.f32.gmra.mrb[180].mxu1 %vm941_vm2, %v34935_v61 }
 0xa57   :  { %v32051_v49 = vpop.eup %28064  ;;  %v14808_v0 = vmul.f32 1.442695, %v14757_v62  ;;  %26926 = vmatprep.mubr.msk.f32.mxu1 %vm28385_vm1, %v34649_v40 }
 0xa58   :  { %v14704_v35 = vpop.xlane.xlu1 %14703  ;;  %v14882_v25 = vsel %vm3435_vm3, %v32051_v49, 0.0 }
 0xa59   :  { %28070 = vpow2.f32 %v14808_v0  ;;  %v14758_v17 = vsub.f32 %v31785_v58, %v14704_v35  ;;  %14883 = vadd.xlane.f32.xlu1 %v14882_v25 }
 0xa5b   :  { %v32058_v41 = vpop.eup %28066  ;;  %v14810_v38 = vmul.f32 1.442695, %v14758_v17 }
 0xa5c   :  { %v14707_v42 = vpop.xlane.xlu0 %14706  ;;  %v14885_v22 = vsel %vm3435_vm3, %v32058_v41, 0.0 }
 0xa5d   :  { %28072 = vpow2.f32 %v14810_v38  ;;  %v14759_v63 = vsub.f32 %v31793_v36, %v14707_v42  ;;  %14886 = vadd.xlane.f32.xlu0 %v14885_v22 }
 0xa5f   :  { %v32063_v55 = vpop.eup %28068  ;;  %v14812_v60 = vmul.f32 1.442695, %v14759_v63 }
 0xa60   :  { %v14710_v18 = vpop.xlane.xlu1 %14709  ;;  %v14888_v23 = vsel %vm3435_vm3, %v32063_v55, 0.0 }
 0xa61   :  { %28074 = vpow2.f32 %v14812_v60  ;;  %v14760_v58 = vsub.f32 %v31797_v6, %v14710_v18  ;;  %14889 = vadd.xlane.f32.xlu1 %v14888_v23 }
 0xa63   :  { %v32068_v45 = vpop.eup %28070  ;;  %v14814_v8 = vmul.f32 1.442695, %v14760_v58 }
 0xa64   :  { %v14713_v54 = vpop.xlane.xlu0 %14712  ;;  %v14891_v62 = vsel %vm3435_vm3, %v32068_v45, 0.0 }
 0xa65   :  { %28076 = vpow2.f32 %v14814_v8  ;;  %v14761_v36 = vsub.f32 %v31805_v21, %v14713_v54  ;;  %14892 = vadd.xlane.f32.xlu0 %v14891_v62 }
 0xa67   :  { %v32073_v61 = vpop.eup %28072  ;;  %v14816_v0 = vmul.f32 1.442695, %v14761_v36 }
 0xa68   :  { %v14716_v35 = vpop.xlane.xlu1 %14715  ;;  %v14894_v25 = vsel %vm3435_vm3, %v32073_v61, 0.0 }
 0xa69   :  { %28078 = vpow2.f32 %v14816_v0  ;;  %v14762_v6 = vsub.f32 %v31813_v50, %v14716_v35  ;;  %14895 = vadd.xlane.f32.xlu1 %v14894_v25 }
 0xa6b   :  { %v32078_v17 = vpop.eup %28074  ;;  %v14818_v38 = vmul.f32 1.442695, %v14762_v6 }
 0xa6c   :  { %v14719_v42 = vpop.xlane.xlu0 %14718  ;;  %v14897_v22 = vsel %vm3435_vm3, %v32078_v17, 0.0 }
 0xa6d   :  { %28080 = vpow2.f32 %v14818_v38  ;;  %v14763_v21 = vsub.f32 %v31817_v2, %v14719_v42  ;;  %14898 = vadd.xlane.f32.xlu0 %v14897_v22 }
 0xa6f   :  { %v32083_v63 = vpop.eup %28076  ;;  %v14820_v60 = vmul.f32 1.442695, %v14763_v21 }
 0xa70   :  { %v14722_v18 = vpop.xlane.xlu1 %14721  ;;  %v14900_v23 = vsel %vm3435_vm3, %v32083_v63, 0.0 }
 0xa71   :  { %28082 = vpow2.f32 %v14820_v60  ;;  %v14764_v50 = vsub.f32 %v31825_v5, %v14722_v18  ;;  %14901 = vadd.xlane.f32.xlu1 %v14900_v23 }
 0xa73   :  { %v32088_v58 = vpop.eup %28078  ;;  %v14822_v8 = vmul.f32 1.442695, %v14764_v50 }
 0xa74   :  { %v14725_v54 = vpop.xlane.xlu0 %14724  ;;  %v14903_v62 = vsel %vm3435_vm3, %v32088_v58, 0.0 }
 0xa75   :  { %28084 = vpow2.f32 %v14822_v8  ;;  %v14765_v2 = vsub.f32 %v31833_v32, %v14725_v54  ;;  %14904 = vadd.xlane.f32.xlu0 %v14903_v62 }
 0xa77   :  { %v32093_v36 = vpop.eup %28080  ;;  %v14824_v0 = vmul.f32 1.442695, %v14765_v2 }
 0xa78   :  { %v14728_v35 = vpop.xlane.xlu1 %14727  ;;  %v14906_v25 = vsel %vm3435_vm3, %v32093_v36, 0.0 }
 0xa79   :  { %28086 = vpow2.f32 %v14824_v0  ;;  %v14766_v5 = vsub.f32 %v31837_v29, %v14728_v35  ;;  %14907 = vadd.xlane.f32.xlu1 %v14906_v25 }
 0xa7b   :  { %v32098_v6 = vpop.eup %28082  ;;  %v14826_v38 = vmul.f32 1.442695, %v14766_v5 }
 0xa7c   :  { %v14731_v42 = vpop.xlane.xlu0 %14730  ;;  %v14909_v22 = vsel %vm3435_vm3, %v32098_v6, 0.0 }
 0xa7d   :  { %28088 = vpow2.f32 %v14826_v38  ;;  %v14767_v32 = vsub.f32 %v31845_v44, %v14731_v42  ;;  %14910 = vadd.xlane.f32.xlu0 %v14909_v22  ;;  %v34936_v22 = vld [vmem:[#allocation65_spill] sm:$0xff] }
 0xa7f   :  { %v32103_v21 = vpop.eup %28084  ;;  %v14828_v60 = vmul.f32 1.442695, %v14767_v32  ;;  %v34937_v32 = vld [vmem:[#allocation2_spill] sm:$0xff] }
 0xa80   :  { %v14734_v18 = vpop.xlane.xlu1 %14733  ;;  %v14912_v23 = vsel %vm3435_vm3, %v32103_v21, 0.0 }
 0xa81   :  { %28090 = vpow2.f32 %v14828_v60  ;;  %v14768_v29 = vsub.f32 %v31853_v26, %v14734_v18  ;;  %14913 = vadd.xlane.f32.xlu1 %v14912_v23  ;;  %v34938_v60 = vld [vmem:[#allocation4_spill] sm:$0xff]  ;;  %v34939_v18 = vld [vmem:[#allocation63_spill] sm:$0xff]  ;;  %v34940_v23 = vld [vmem:[#allocation6_spill] sm:$0xff] }
 0xa83   :  { %v32108_v50 = vpop.eup %28086  ;;  %v14830_v8 = vmul.f32 1.442695, %v14768_v29 }
 0xa84   :  { %v14737_v54 = vpop.xlane.xlu0 %14736  ;;  %v14915_v62 = vsel %vm3435_vm3, %v32108_v50, 0.0  ;;  %v32141_v29 = vpop.permute.xlu1 %17198 }
 0xa85   :  { %28092 = vpow2.f32 %v14830_v8  ;;  %v14769_v44 = vsub.f32 %v31857_v59, %v14737_v54  ;;  %14916 = vadd.xlane.f32.xlu0 %v14915_v62  ;;  %v34941_v8 = vld [vmem:[#allocation8_spill] sm:$0xff] }
 0xa87   :  { %v32113_v2 = vpop.eup %28088  ;;  %v14832_v0 = vmul.f32 1.442695, %v14769_v44  ;;  %v34942_v44 = vld [vmem:[#allocation10_spill] sm:$0xff] }
 0xa88   :  { %v14918_v35 = vsel %vm3435_vm3, %v32113_v2, 0.0  ;;  %v32147_v54 = vpop.permute.xlu0 %17122 }
 0xa89   :  { %28094 = vpow2.f32 %v14832_v0  ;;  %14919 = vadd.xlane.f32.xlu1 %v14918_v35 }
 0xa8b   :  { %v32117_v26 = vpop.eup %28090 }
 0xa8c   :  { %v14921_v25 = vsel %vm3435_vm3, %v32117_v26, 0.0 }
 0xa8d   :  { %14922 = vadd.xlane.f32.xlu0 %v14921_v25  ;;  %v34943_v25 = vld [vmem:[#allocation12_spill] sm:$0xff] }
 0xa8f   :  { %v32121_v5 = vpop.eup %28092 }
 0xa90   :  { %v14924_v59 = vsel %vm3435_vm3, %v32121_v5, 0.0 }
 0xa91   :  { %14925 = vadd.xlane.f32.xlu1 %v14924_v59 }
 0xa93   :  { %v32125_v38 = vpop.eup %28094 }
 0xa94   :  { %v14927_v42 = vsel %vm3435_vm3, %v32125_v38, 0.0 }
 0xa95   :  { %14928 = vadd.xlane.f32.xlu0 %v14927_v42 }
 0xaa2   :  { %17350 = vrot.lane.b32.xlu1 %v34936_v22, %s28390_s14 }
 0xaa6   :  { %17781 = vrot.lane.b32.xlu1 %v34937_v32, %s28391_s23 }
 0xaaa   :  { %17859 = vrot.lane.b32.xlu1 %v34938_v60, %s28391_s23 }
 0xaab   :  { %17274 = vrot.lane.b32.xlu0 %v34939_v18, %s28390_s14 }
 0xaae   :  { %17937 = vrot.lane.b32.xlu1 %v34940_v23, %s28391_s23 }
 0xaaf   :  { %17783 = vrot.lane.b32.xlu0 %v34937_v32, %s28392_s24  ;;  %v34944_v32 = vld [vmem:[#allocation14_spill] sm:$0xff] }
 0xab2   :  { %18015 = vrot.lane.b32.xlu1 %v34941_v8, %s28391_s23 }
 0xab3   :  { %17861 = vrot.lane.b32.xlu0 %v34938_v60, %s28392_s24 }
 0xab5   :  { %v14836_v62 = vpop.xlane.xlu1 %14835 }
 0xab6   :  { %28096 = vrcp.f32 %v14836_v62  ;;  %18093 = vrot.lane.b32.xlu1 %v34942_v44, %s28391_s23 }
 0xab7   :  { %17939 = vrot.lane.b32.xlu0 %v34940_v23, %s28392_s24 }
 0xab9   :  { %v14842_v0 = vpop.xlane.xlu1 %14841  ;;  %v14839_v35 = vpop.xlane.xlu0 %14838 }
 0xaba   :  { %28098 = vrcp.f32 %v14842_v0  ;;  %18171 = vrot.lane.b32.xlu1 %v34943_v25, %s28391_s23 }
 0xabb   :  { %28100 = vrcp.f32 %v14839_v35  ;;  %18017 = vrot.lane.b32.xlu0 %v34941_v8, %s28392_s24  ;;  %v34945_v35 = vld [vmem:[#allocation16_spill] sm:$0xff] }
 0xabd   :  { %v14848_v59 = vpop.xlane.xlu1 %14847  ;;  %v14845_v42 = vpop.xlane.xlu0 %14844 }
 0xabe   :  { %28102 = vrcp.f32 %v14848_v59  ;;  %18249 = vrot.lane.b32.xlu1 %v34944_v32, %s28391_s23 }
 0xabf   :  { %28104 = vrcp.f32 %v14845_v42  ;;  %18095 = vrot.lane.b32.xlu0 %v34942_v44, %s28392_s24 }
 0xac0   :  { %v28097_v60 = vpop.eup %28096 }
 0xac1   :  { %v14962_v23 = vmul.f32 %v28097_v60, %v31924_v10  ;;  %v14854_v62 = vpop.xlane.xlu1 %14853  ;;  %v14851_v0 = vpop.xlane.xlu0 %14850  ;;  %v34946_v60 = vld [vmem:[#allocation18_spill] sm:$0xff] }
 0xac2   :  { %28106 = vrcp.f32 %v14854_v62  ;;  %18327 = vrot.lane.b32.xlu1 %v34945_v35, %s28391_s23  ;;  %v34947_v62 = vld [vmem:[#allocation20_spill] sm:$0xff] }
 0xac3   :  { %28108 = vrcp.f32 %v14851_v0  ;;  %26927 = vmatmul.mubr.msk.f32.vlgmr.msra.gmra.mrb[194].mxu1 %vm3435_vm3, %v14962_v23  ;;  %18173 = vrot.lane.b32.xlu0 %v34943_v25, %s28392_s24 }
 0xac4   :  { %v28099_v8 = vpop.eup %28098  ;;  %26935 = vmatpush3.msra.mxu1 %v31768_v20  ;;  %26936 = vmatprep.mubr.msk.f32.mxu1 %vm28385_vm1, %v34649_v40 }
 0xac5   :  { %v28101_v44 = vpop.eup %28100  ;;  %v14857_v10 = vpop.xlane.xlu0 %14856  ;;  %26944 = vmatprep.subr.mxu1 %v34649_v40  ;;  %v14964_v42 = vmul.f32 %v28099_v8, %v31935_v11 }
 0xac6   :  { %v14860_v59 = vpop.xlane.xlu1 %14859  ;;  %28110 = vrcp.f32 %v14857_v10  ;;  %18405 = vrot.lane.b32.xlu1 %v34946_v60, %s28391_s23  ;;  %v14963_v23 = vmul.f32 %v28101_v44, %v31929_v53 }
 0xac7   :  { %28112 = vrcp.f32 %v14860_v59  ;;  %26937 = vmatmul.mubr.msk.f32.vlgmr.msra.gmra.mrb[196].mxu1 %vm3435_vm3, %v14964_v42  ;;  %18251 = vrot.lane.b32.xlu0 %v34944_v32, %s28392_s24  ;;  %v34952_v42 = vld [vmem:[#allocation30_spill] sm:$0xff] }
 0xac8   :  { %v28103_v20 = vpop.eup %28102  ;;  %26945 = vmatpush3.msra.mxu1 %v31777_v48  ;;  %26932 = vmatmul.mubr.msk.f32.vlgmr.msra.gmra.mrb[234].mxu0 %vm3435_vm3, %v14963_v23  ;;  %v34953_v23 = vld [vmem:[#allocation32_spill] sm:$0xff] }
 0xac9   :  { %v28105_v25 = vpop.eup %28104  ;;  %26940 = vmatpush3.msra.mxu0 %v31781_v12  ;;  %26941 = vmatprep.mubr.msk.f32.mxu0 %vm28385_vm1, %v34649_v40  ;;  %v14863_v11 = vpop.xlane.xlu0 %14862  ;;  %v14966_v53 = vmul.f32 %v28103_v20, %v31948_v56 }
 0xaca   :  { %18483 = vrot.lane.b32.xlu1 %v34947_v62, %s28391_s23  ;;  %26946 = vmatprep.mubr.msk.f32.mxu1 %vm28385_vm1, %v34649_v40  ;;  %28114 = vrcp.f32 %v14863_v11  ;;  %v14965_v48 = vmul.f32 %v28105_v25, %v31940_v37  ;;  %v34948_v37 = vld [vmem:[#allocation22_spill] sm:$0xff]  ;;  %v34954_v25 = vld [vmem:[#allocation36_spill] sm:$0xff] }
 0xacb   :  { %26949 = vmatprep.subr.mxu0 %v34649_v40  ;;  %26954 = vmatprep.subr.mxu1 %v34649_v40 }
 0xacc   :  { %v28107_v12 = vpop.eup %28106  ;;  %26947 = vmatmul.mubr.msk.f32.vlgmr.msra.gmra.mrb[198].mxu1 %vm3435_vm3, %v14966_v53  ;;  %18329 = vrot.lane.b32.xlu0 %v34945_v35, %s28392_s24 }
 0xacd   :  { %v28109_v56 = vpop.eup %28108  ;;  %26955 = vmatpush3.msra.mxu1 %v31789_v51  ;;  %26942 = vmatmul.mubr.msk.f32.vlgmr.msra.gmra.mrb[236].mxu0 %vm3435_vm3, %v14965_v48  ;;  %v14968_v32 = vmul.f32 %v28107_v12, %v31961_v16  ;;  %v34949_v16 = vld [vmem:[#allocation24_spill] sm:$0xff] }
 0xace   :  { %26950 = vmatpush3.msra.mxu0 %v31791_v1  ;;  %18561 = vrot.lane.b32.xlu1 %v34948_v37, %s28391_s23  ;;  %v14866_v0 = vpop.xlane.xlu1 %14865  ;;  %v14967_v8 = vmul.f32 %v28109_v56, %v31953_v30  ;;  %v34956_v48 = vld [vmem:[#allocation40_spill] sm:$0xff]  ;;  %v34957_v56 = vld [vmem:[#allocation142_spill] sm:$0xff] }
 0xacf   :  { %26956 = vmatprep.mubr.msk.f32.mxu1 %vm28385_vm1, %v34649_v40  ;;  %26964 = vmatprep.subr.mxu1 %v34649_v40  ;;  %28116 = vrcp.f32 %v14866_v0 }
 0xad0   :  { %v28111_v35 = vpop.eup %28110  ;;  %26951 = vmatprep.mubr.msk.f32.mxu0 %vm28385_vm1, %v34649_v40  ;;  %26959 = vmatprep.subr.mxu0 %v34649_v40 }
 0xad1   :  { %v28113_v51 = vpop.eup %28112  ;;  %26957 = vmatmul.mubr.msk.f32.vlgmr.msra.gmra.mrb[200].mxu1 %vm3435_vm3, %v14968_v32  ;;  %18407 = vrot.lane.b32.xlu0 %v34946_v60, %s28392_s24  ;;  %v14969_v30 = vmul.f32 %v28111_v35, %v31972_v43  ;;  %v34950_v43 = vld [vmem:[#allocation26_spill] sm:$0xff] }
 0xad2   :  { %26965 = vmatpush3.msra.mxu1 %v31799_v52  ;;  %26952 = vmatmul.mubr.msk.f32.vlgmr.msra.gmra.mrb[238].mxu0 %vm3435_vm3, %v14967_v8  ;;  %v14869_v1 = vpop.xlane.xlu0 %14868  ;;  %v14970_v44 = vmul.f32 %v28113_v51, %v31975_v3  ;;  %v34958_v32 = vld [vmem:[#allocation34_spill] sm:$0xff]  ;;  %v34959_v8 = vld [vmem:[#allocation120_spill] sm:$0xff] }
 0xad3   :  { %26960 = vmatpush3.msra.mxu0 %v31801_v4  ;;  %18639 = vrot.lane.b32.xlu1 %v34949_v16, %s28391_s23  ;;  %28118 = vrcp.f32 %v14869_v1  ;;  %v34960_v51 = vld [vmem:[#allocation44_spill] sm:$0xff] }
 0xad4   :  { %v28115_v10 = vpop.eup %28114  ;;  %26961 = vmatprep.mubr.msk.f32.mxu0 %vm28385_vm1, %v34649_v40  ;;  %26969 = vmatprep.subr.mxu0 %v34649_v40 }
 0xad5   :  { %26966 = vmatprep.mubr.msk.f32.mxu1 %vm28385_vm1, %v34649_v40  ;;  %26974 = vmatprep.subr.mxu1 %v34649_v40  ;;  %v14971_v52 = vmul.f32 %v28115_v10, %v31986_v9  ;;  %v34962_v10 = vld [vmem:[#allocation101_spill] sm:$0xff] }
 0xad6   :  { %18485 = vrot.lane.b32.xlu0 %v34947_v62, %s28392_s24  ;;  %26962 = vmatmul.mubr.msk.f32.vlgmr.msra.gmra.mrb[240].mxu0 %vm3435_vm3, %v14969_v30  ;;  %v14872_v4 = vpop.xlane.xlu1 %14871  ;;  %v34955_v62 = vld [vmem:[#allocation126_spill] sm:$0xff] }
 0xad7   :  { %26970 = vmatpush3.msra.mxu0 %v31811_v46  ;;  %26967 = vmatmul.mubr.msk.f32.vlgmr.msra.gmra.mrb[202].mxu1 %vm3435_vm3, %v14970_v44  ;;  %28120 = vrcp.f32 %v14872_v4  ;;  %v34961_v30 = vld [vmem:[#allocation38_spill] sm:$0xff]  ;;  %v34963_v4 = vld [vmem:[#allocation48_spill] sm:$0xff] }
 0xad8   :  { %26975 = vmatpush3.msra.mxu1 %v31809_v19  ;;  %18717 = vrot.lane.b32.xlu1 %v34950_v43, %s28391_s23  ;;  %v34951_v19 = vld [vmem:[#allocation28_spill] sm:$0xff] }
 0xad9   :  { %v28117_v3 = vpop.eup %28116  ;;  %26971 = vmatprep.mubr.msk.f32.mxu0 %vm28385_vm1, %v34649_v40  ;;  %26979 = vmatprep.subr.mxu0 %v34649_v40 }
 0xada   :  { %18563 = vrot.lane.b32.xlu0 %v34948_v37, %s28392_s24  ;;  %26972 = vmatmul.mubr.msk.f32.vlgmr.msra.gmra.mrb[242].mxu0 %vm3435_vm3, %v14971_v52  ;;  %v14875_v46 = vpop.xlane.xlu0 %14874  ;;  %v14972_v9 = vmul.f32 %v28117_v3, %v31997_v14 }
 0xadb   :  { %26980 = vmatpush3.msra.mxu0 %v31821_v57  ;;  %28122 = vrcp.f32 %v14875_v46  ;;  %26976 = vmatprep.mubr.msk.f32.mxu1 %vm28385_vm1, %v34649_v40 }
 0xadc   :  { %18795 = vrot.lane.b32.xlu1 %v34951_v19, %s28391_s23  ;;  %26984 = vmatprep.subr.mxu1 %v34649_v40 }
 0xadd   :  { %v28119_v59 = vpop.eup %28118  ;;  %26977 = vmatmul.mubr.msk.f32.vlgmr.msra.gmra.mrb[204].mxu1 %vm3435_vm3, %v14972_v9  ;;  %26981 = vmatprep.mubr.msk.f32.mxu0 %vm28385_vm1, %v34649_v40  ;;  %v34965_v9 = vld [vmem:[#allocation121_spill] sm:$0xff] }
 0xade   :  { %18641 = vrot.lane.b32.xlu0 %v34949_v16, %s28392_s24  ;;  %26985 = vmatpush3.msra.mxu1 %v31819_v24  ;;  %v14878_v57 = vpop.xlane.xlu1 %14877  ;;  %v14973_v14 = vmul.f32 %v28119_v59, %v32006_v15 }
 0xadf   :  { %28124 = vrcp.f32 %v14878_v57  ;;  %26989 = vmatprep.subr.mxu0 %v34649_v40  ;;  %26986 = vmatprep.mubr.msk.f32.mxu1 %vm28385_vm1, %v34649_v40  ;;  %v34967_v57 = vld [vmem:[#allocation102_spill] sm:$0xff] }
 0xae0   :  { %18873 = vrot.lane.b32.xlu1 %v34952_v42, %s28391_s23  ;;  %26982 = vmatmul.mubr.msk.f32.vlgmr.msra.gmra.mrb[244].mxu0 %vm3435_vm3, %v14973_v14  ;;  %v34968_v14 = vld [vmem:[#allocation46_spill] sm:$0xff] }
 0xae1   :  { %v28121_v60 = vpop.eup %28120  ;;  %26990 = vmatpush3.msra.mxu0 %v31831_v28  ;;  %26994 = vmatprep.subr.mxu1 %v34649_v40 }
 0xae2   :  { %18719 = vrot.lane.b32.xlu0 %v34950_v43, %s28392_s24  ;;  %v14881_v24 = vpop.xlane.xlu0 %14880  ;;  %v14974_v15 = vmul.f32 %v28121_v60, %v32015_v39  ;;  %26991 = vmatprep.mubr.msk.f32.mxu0 %vm28385_vm1, %v34649_v40  ;;  %v34964_v43 = vld [vmem:[#allocation42_spill] sm:$0xff] }
 0xae3   :  { %28126 = vrcp.f32 %v14881_v24  ;;  %26999 = vmatprep.subr.mxu0 %v34649_v40  ;;  %v34969_v24 = vld [vmem:[#allocation124_spill] sm:$0xff] }
 0xae4   :  { %18951 = vrot.lane.b32.xlu1 %v34953_v23, %s28391_s23  ;;  %26987 = vmatmul.mubr.msk.f32.vlgmr.msra.gmra.mrb[206].mxu1 %vm3435_vm3, %v14974_v15 }
 0xae5   :  { %v28123_v28 = vpop.eup %28122  ;;  %26995 = vmatpush3.msra.mxu1 %v31829_v7  ;;  %26996 = vmatprep.mubr.msk.f32.mxu1 %vm28385_vm1, %v34649_v40 }
 0xae6   :  { %18797 = vrot.lane.b32.xlu0 %v34951_v19, %s28392_s24  ;;  %v14884_v39 = vpop.xlane.xlu1 %14883  ;;  %v14975_v20 = vmul.f32 %v28123_v28, %v32024_v27  ;;  %27004 = vmatprep.subr.mxu1 %v34649_v40  ;;  %v34966_v19 = vld [vmem:[#allocation52_spill] sm:$0xff] }
 0xae7   :  { %28128 = vrcp.f32 %v14884_v39  ;;  %v34971_v39 = vld [vmem:[#allocation104_spill] sm:$0xff] }
 0xae8   :  { %19109 = vrot.lane.b32.xlu1 %v34954_v25, %s28392_s24  ;;  %26992 = vmatmul.mubr.msk.f32.vlgmr.msra.gmra.mrb[246].mxu0 %vm3435_vm3, %v14975_v20 }
 0xae9   :  { %v28125_v11 = vpop.eup %28124  ;;  %27000 = vmatpush3.msra.mxu0 %v31841_v33  ;;  %27001 = vmatprep.mubr.msk.f32.mxu0 %vm28385_vm1, %v34649_v40 }
 0xaea   :  { %18875 = vrot.lane.b32.xlu0 %v34952_v42, %s28392_s24  ;;  %v14887_v7 = vpop.xlane.xlu0 %14886  ;;  %v14976_v27 = vmul.f32 %v28125_v11, %v32033_v34  ;;  %27009 = vmatprep.subr.mxu0 %v34649_v40 }
 0xaeb   :  { %28130 = vrcp.f32 %v14887_v7  ;;  %v34973_v7 = vld [vmem:[#allocation127_spill] sm:$0xff] }
 0xaec   :  { %19107 = vrot.lane.b32.xlu1 %v34954_v25, %s28391_s23  ;;  %26997 = vmatmul.mubr.msk.f32.vlgmr.msra.gmra.mrb[208].mxu1 %vm3435_vm3, %v14976_v27 }
 0xaed   :  { %v28127_v53 = vpop.eup %28126  ;;  %27005 = vmatpush3.msra.mxu1 %v34955_v62  ;;  %27006 = vmatprep.mubr.msk.f32.mxu1 %vm28385_vm1, %v34649_v40 }
 0xaee   :  { %18953 = vrot.lane.b32.xlu0 %v34953_v23, %s28392_s24  ;;  %v14890_v33 = vpop.xlane.xlu1 %14889  ;;  %v14977_v34 = vmul.f32 %v28127_v53, %v32042_v31  ;;  %27014 = vmatprep.subr.mxu1 %v34649_v40  ;;  %v34970_v23 = vld [vmem:[#allocation56_spill] sm:$0xff] }
 0xaef   :  { %28132 = vrcp.f32 %v14890_v33  ;;  %v34974_v53 = vld [vmem:[#allocation60_spill] sm:$0xff]  ;;  %v34975_v33 = vld [vmem:[#allocation107_spill] sm:$0xff] }
 0xaf0   :  { %19265 = vrot.lane.b32.xlu1 %v34956_v48, %s28392_s24  ;;  %27002 = vmatmul.mubr.msk.f32.vlgmr.msra.gmra.mrb[248].mxu0 %vm3435_vm3, %v14977_v34 }
 0xaf1   :  { %v28129_v12 = vpop.eup %28128  ;;  %27010 = vmatpush3.msra.mxu0 %v34957_v56  ;;  %27011 = vmatprep.mubr.msk.f32.mxu0 %vm28385_vm1, %v34649_v40 }
 0xaf2   :  { %19031 = vrot.lane.b32.xlu0 %v34958_v32, %s28392_s24  ;;  %v14893_v37 = vpop.xlane.xlu0 %14892  ;;  %v14978_v31 = vmul.f32 %v28129_v12, %v32051_v49  ;;  %27019 = vmatprep.subr.mxu0 %v34649_v40 }
 0xaf3   :  { %28134 = vrcp.f32 %v14893_v37 }
 0xaf4   :  { %19263 = vrot.lane.b32.xlu1 %v34956_v48, %s28391_s23  ;;  %27007 = vmatmul.mubr.msk.f32.vlgmr.msra.gmra.mrb[210].mxu1 %vm3435_vm3, %v14978_v31 }
 0xaf5   :  { %v28131_v0 = vpop.eup %28130  ;;  %27015 = vmatpush3.msra.mxu1 %v34959_v8  ;;  %27016 = vmatprep.mubr.msk.f32.mxu1 %vm28385_vm1, %v34649_v40  ;;  %v17427_v8 = vld [vmem:[%s34383_s4 + $0x28] sm:$0xff] }
 0xaf6   :  { %19029 = vrot.lane.b32.xlu0 %v34958_v32, %s28391_s23  ;;  %v14896_v35 = vpop.xlane.xlu1 %14895  ;;  %v14979_v49 = vmul.f32 %v28131_v0, %v32058_v41  ;;  %27024 = vmatprep.subr.mxu1 %v34649_v40  ;;  %v34977_v32 = vld [vmem:[#allocation64_spill] sm:$0xff] }
 0xaf7   :  { %28136 = vrcp.f32 %v14896_v35 }
 0xaf8   :  { %19421 = vrot.lane.b32.xlu1 %v34960_v51, %s28392_s24  ;;  %27012 = vmatmul.mubr.msk.f32.vlgmr.msra.gmra.mrb[250].mxu0 %vm3435_vm3, %v14979_v49 }
 0xaf9   :  { %v28133_v1 = vpop.eup %28132  ;;  %27020 = vmatpush3.msra.mxu0 %v31861_v13  ;;  %27021 = vmatprep.mubr.msk.f32.mxu0 %vm28385_vm1, %v34649_v40 }
 0xafa   :  { %19187 = vrot.lane.b32.xlu0 %v34961_v30, %s28392_s24  ;;  %v14899_v16 = vpop.xlane.xlu0 %14898  ;;  %v14980_v41 = vmul.f32 %v28133_v1, %v32063_v55  ;;  %27029 = vmatprep.subr.mxu0 %v34649_v40 }
 0xafb   :  { %28138 = vrcp.f32 %v14899_v16 }
 0xafc   :  { %19419 = vrot.lane.b32.xlu1 %v34960_v51, %s28391_s23  ;;  %27017 = vmatmul.mubr.msk.f32.vlgmr.msra.gmra.mrb[212].mxu1 %vm3435_vm3, %v14980_v41  ;;  %v34980_v41 = vld [vmem:[#allocation62_spill] sm:$0xff] }
 0xafd   :  { %v28135_v44 = vpop.eup %28134  ;;  %27025 = vmatpush3.msra.mxu1 %v34962_v10  ;;  %27026 = vmatprep.mubr.msk.f32.mxu1 %vm28385_vm1, %v34649_v40 }
 0xafe   :  { %19185 = vrot.lane.b32.xlu0 %v34961_v30, %s28391_s23  ;;  %v14902_v13 = vpop.xlane.xlu1 %14901  ;;  %v14981_v55 = vmul.f32 %v28135_v44, %v32068_v45  ;;  %27034 = vmatprep.subr.mxu1 %v34649_v40  ;;  %v34979_v30 = vld [vmem:[#allocation5_spill] sm:$0xff] }
 0xaff   :  { %28140 = vrcp.f32 %v14902_v13  ;;  %v34981_v13 = vld [vmem:[#allocation9_spill] sm:$0xff] }
 0xb00   :  { %19577 = vrot.lane.b32.xlu1 %v34963_v4, %s28392_s24  ;;  %27022 = vmatmul.mubr.msk.f32.vlgmr.msra.gmra.mrb[252].mxu0 %vm3435_vm3, %v14981_v55 }
 0xb01   :  { %v28137_v52 = vpop.eup %28136  ;;  %27030 = vmatpush3.msra.mxu0 %v31865_v47  ;;  %27031 = vmatprep.mubr.msk.f32.mxu0 %vm28385_vm1, %v34649_v40 }
 0xb02   :  { %19343 = vrot.lane.b32.xlu0 %v34964_v43, %s28392_s24  ;;  %v14905_v3 = vpop.xlane.xlu0 %14904  ;;  %v14982_v45 = vmul.f32 %v28137_v52, %v32073_v61  ;;  %27039 = vmatprep.subr.mxu0 %v34649_v40 }
 0xb03   :  { %28142 = vrcp.f32 %v14905_v3  ;;  %v34983_v3 = vld [vmem:[#allocation3_spill] sm:$0xff] }
 0xb04   :  { %19575 = vrot.lane.b32.xlu1 %v34963_v4, %s28391_s23  ;;  %27027 = vmatmul.mubr.msk.f32.vlgmr.msra.gmra.mrb[214].mxu1 %vm3435_vm3, %v14982_v45 }
 0xb05   :  { %v28139_v46 = vpop.eup %28138  ;;  %27035 = vmatpush3.msra.mxu1 %v34965_v9  ;;  %27036 = vmatprep.mubr.msk.f32.mxu1 %vm28385_vm1, %v34649_v40  ;;  %v34985_v9 = vld [vmem:[#allocation7_spill] sm:$0xff] }
 0xb06   :  { %19341 = vrot.lane.b32.xlu0 %v34964_v43, %s28391_s23  ;;  %v14908_v47 = vpop.xlane.xlu1 %14907  ;;  %v14983_v61 = vmul.f32 %v28139_v46, %v32078_v17  ;;  %27044 = vmatprep.subr.mxu1 %v34649_v40  ;;  %v34984_v46 = vld [vmem:[#allocation15_spill] sm:$0xff] }
 0xb07   :  { %28144 = vrcp.f32 %v14908_v47 }
 0xb08   :  { %19733 = vrot.lane.b32.xlu1 %v34966_v19, %s28392_s24  ;;  %27032 = vmatmul.mubr.msk.f32.vlgmr.msra.gmra.mrb[254].mxu0 %vm3435_vm3, %v14983_v61 }
 0xb09   :  { %v28141_v59 = vpop.eup %28140  ;;  %27040 = vmatpush3.msra.mxu0 %v34967_v57  ;;  %27041 = vmatprep.mubr.msk.f32.mxu0 %vm28385_vm1, %v34649_v40 }
 0xb0a   :  { %19499 = vrot.lane.b32.xlu0 %v34968_v14, %s28392_s24  ;;  %v14911_v42 = vpop.xlane.xlu0 %14910  ;;  %v14984_v17 = vmul.f32 %v28141_v59, %v32083_v63  ;;  %27049 = vmatprep.subr.mxu0 %v34649_v40  ;;  %v34987_v59 = vld [vmem:[#allocation11_spill] sm:$0xff] }
 0xb0b   :  { %28146 = vrcp.f32 %v14911_v42  ;;  %v34988_v42 = vld [vmem:[#allocation21_spill] sm:$0xff] }
 0xb0c   :  { %19731 = vrot.lane.b32.xlu1 %v34966_v19, %s28391_s23  ;;  %27037 = vmatmul.mubr.msk.f32.vlgmr.msra.gmra.mrb[216].mxu1 %vm3435_vm3, %v14984_v17  ;;  %v34986_v19 = vld [vmem:[#allocation19_spill] sm:$0xff]  ;;  %v34989_v17 = vld [vmem:[#allocation17_spill] sm:$0xff] }
 0xb0d   :  { %v28143_v60 = vpop.eup %28142  ;;  %27045 = vmatpush3.msra.mxu1 %v34969_v24  ;;  %27046 = vmatprep.mubr.msk.f32.mxu1 %vm28385_vm1, %v34649_v40 }
 0xb0e   :  { %v14985_v15 = vmul.f32 %v28143_v60, %v32088_v58  ;;  %19497 = vrot.lane.b32.xlu0 %v34968_v14, %s28391_s23  ;;  %v14914_v63 = vpop.xlane.xlu1 %14913  ;;  %27054 = vmatprep.subr.mxu1 %v34649_v40  ;;  %v34972_v58 = vld [vmem:[#allocation50_spill] sm:$0xff] }
 0xb0f   :  { %28148 = vrcp.f32 %v14914_v63  ;;  %v34991_v63 = vld [vmem:[#allocation23_spill] sm:$0xff] }
 0xb10   :  { %19889 = vrot.lane.b32.xlu1 %v34970_v23, %s28392_s24  ;;  %27042 = vmatmul.mubr.msk.f32.vlgmr.msra.gmra.mrb[0].mxu0 %vm3435_vm3, %v14985_v15  ;;  %v34990_v15 = vld [vmem:[#allocation25_spill] sm:$0xff] }
 0xb11   :  { %v28145_v28 = vpop.eup %28144  ;;  %27050 = vmatpush3.msra.mxu0 %v34971_v39  ;;  %27051 = vmatprep.mubr.msk.f32.mxu0 %vm28385_vm1, %v34649_v40  ;;  %v34992_v39 = vld [vmem:[#allocation29_spill] sm:$0xff] }
 0xb12   :  { %19655 = vrot.lane.b32.xlu0 %v34972_v58, %s28392_s24  ;;  %v14917_v20 = vpop.xlane.xlu0 %14916  ;;  %v14986_v25 = vmul.f32 %v28145_v28, %v32093_v36  ;;  %27059 = vmatprep.subr.mxu0 %v34649_v40 }
 0xb13   :  { %28150 = vrcp.f32 %v14917_v20 }
 0xb14   :  { %19887 = vrot.lane.b32.xlu1 %v34970_v23, %s28391_s23  ;;  %27047 = vmatmul.mubr.msk.f32.vlgmr.msra.gmra.mrb[218].mxu1 %vm3435_vm3, %v14986_v25 }
 0xb15   :  { %v28147_v11 = vpop.eup %28146  ;;  %27055 = vmatpush3.msra.mxu1 %v34973_v7  ;;  %27056 = vmatprep.mubr.msk.f32.mxu1 %vm28385_vm1, %v34649_v40  ;;  %v34995_v7 = vld [vmem:[#allocation31_spill] sm:$0xff] }
 0xb16   :  { %v14987_v27 = vmul.f32 %v28147_v11, %v32098_v6  ;;  %19653 = vrot.lane.b32.xlu0 %v34972_v58, %s28391_s23  ;;  %v14920_v36 = vpop.xlane.xlu1 %14919  ;;  %27064 = vmatprep.subr.mxu1 %v34649_v40  ;;  %v34976_v6 = vld [vmem:[#allocation54_spill] sm:$0xff]  ;;  %v34993_v58 = vld [vmem:[#allocation27_spill] sm:$0xff]  ;;  %v34994_v11 = vld [vmem:[#allocation33_spill] sm:$0xff] }
 0xb17   :  { %28152 = vrcp.f32 %v14920_v36 }
 0xb18   :  { %20045 = vrot.lane.b32.xlu1 %v34974_v53, %s28392_s24  ;;  %27052 = vmatmul.mubr.msk.f32.vlgmr.msra.gmra.mrb[2].mxu0 %vm3435_vm3, %v14987_v27 }
 0xb19   :  { %v28149_v62 = vpop.eup %28148  ;;  %27060 = vmatpush3.msra.mxu0 %v34975_v33  ;;  %27061 = vmatprep.mubr.msk.f32.mxu0 %vm28385_vm1, %v34649_v40 }
 0xb1a   :  { %19811 = vrot.lane.b32.xlu0 %v34976_v6, %s28392_s24  ;;  %v14923_v34 = vpop.xlane.xlu0 %14922  ;;  %v14988_v48 = vmul.f32 %v28149_v62, %v32103_v21  ;;  %27069 = vmatprep.subr.mxu0 %v34649_v40  ;;  %v34997_v62 = vld [vmem:[#allocation35_spill] sm:$0xff] }
 0xb1b   :  { %28154 = vrcp.f32 %v14923_v34  ;;  %v34998_v34 = vld [vmem:[#allocation41_spill] sm:$0xff] }
 0xb1c   :  { %20043 = vrot.lane.b32.xlu1 %v34974_v53, %s28391_s23  ;;  %27057 = vmatmul.mubr.msk.f32.vlgmr.msra.gmra.mrb[220].mxu1 %vm3435_vm3, %v14988_v48  ;;  %v34996_v53 = vld [vmem:[#allocation37_spill] sm:$0xff]  ;;  %v34999_v48 = vld [vmem:[#allocation39_spill] sm:$0xff] }
 0xb1d   :  { %v28151_v12 = vpop.eup %28150  ;;  %27065 = vmatpush3.msra.mxu1 %v32147_v54  ;;  %27066 = vmatprep.mubr.msk.f32.mxu1 %vm28385_vm1, %v34649_v40 }
 0xb1e   :  { %v14989_v56 = vmul.f32 %v28151_v12, %v32108_v50  ;;  %19809 = vrot.lane.b32.xlu0 %v34976_v6, %s28391_s23  ;;  %v14926_v21 = vpop.xlane.xlu1 %14925  ;;  %27074 = vmatprep.subr.mxu1 %v34649_v40  ;;  %v34978_v50 = vld [vmem:[#allocation58_spill] sm:$0xff] }
 0xb1f   :  { %28156 = vrcp.f32 %v14926_v21  ;;  %v35000_v21 = vld [vmem:[#allocation45_spill] sm:$0xff] }
 0xb20   :  { %20201 = vrot.lane.b32.xlu1 %v34977_v32, %s28392_s24  ;;  %27062 = vmatmul.mubr.msk.f32.vlgmr.msra.gmra.mrb[4].mxu0 %vm3435_vm3, %v14989_v56 }
 0xb21   :  { %v28153_v37 = vpop.eup %28152  ;;  %27070 = vmatpush3.msra.mxu0 %v32141_v29  ;;  %27071 = vmatprep.mubr.msk.f32.mxu0 %vm28385_vm1, %v34649_v40  ;;  %v17426_v29 = vld [vmem:[%s34383_s4 + $0x20] sm:$0xff] }
 0xb22   :  { %19967 = vrot.lane.b32.xlu0 %v34978_v50, %s28392_s24  ;;  %v17351_v54 = vpop.permute.xlu1 %17350  ;;  %v14929_v31 = vpop.xlane.xlu0 %14928  ;;  %v14990_v0 = vmul.f32 %v28153_v37, %v32113_v2  ;;  %27079 = vmatprep.subr.mxu0 %v34649_v40  ;;  %v27532_v1 = vpack.c.bf16 %v17427_v8, %v17426_v29 }
 0xb23   :  { %28158 = vrcp.f32 %v14929_v31 }
 0xb24   :  { %20199 = vrot.lane.b32.xlu1 %v34977_v32, %s28391_s23  ;;  %27067 = vmatmul.mubr.msk.f32.vlgmr.msra.gmra.mrb[222].mxu1 %vm3435_vm3, %v14990_v0  ;;  %v35001_v32 = vld [vmem:[#allocation43_spill] sm:$0xff] }
 0xb25   :  { %v28155_v35 = vpop.eup %28154  ;;  %27076 = vmatprep.mubr.msk.f32.mxu1 %vm28385_vm1, %v34649_v40 }
 0xb26   :  { %v14991_v2 = vmul.f32 %v28155_v35, %v32117_v26  ;;  %19965 = vrot.lane.b32.xlu0 %v34978_v50, %s28391_s23  ;;  %v17782_v49 = vpop.permute.xlu1 %17781  ;;  %v17275_v51 = vpop.permute.xlu0 %17274 }
 0xb27   :  { %27075 = vmatpush3.msra.mxu1 %v17275_v51 }
 0xb28   :  { %20737 = vrot.lane.b32.xlu1 %v34979_v30, %s28391_s23  ;;  %27072 = vmatmul.mubr.msk.f32.vlgmr.msra.gmra.mrb[6].mxu0 %vm3435_vm3, %v14991_v2 }
 0xb29   :  { %v28157_v16 = vpop.eup %28156  ;;  %27080 = vmatpush3.msra.mxu0 %v17351_v54  ;;  %27081 = vmatprep.mubr.msk.f32.mxu0 %vm28385_vm1, %v34649_v40  ;;  %v35002_v54 = vld [vmem:[#allocation47_spill] sm:$0xff] }
 0xb2a   :  { %20123 = vrot.lane.b32.xlu0 %v34980_v41, %s28392_s24  ;;  %v17860_v26 = vpop.permute.xlu1 %17859  ;;  %v17784_v44 = vpop.permute.xlu0 %17783  ;;  %v14992_v10 = vmul.f32 %v28157_v16, %v32121_v5  ;;  %27136 = vmatprep.subr.mxu0 %v34649_v40  ;;  %v34982_v5 = vld [vmem:[#allocation13_spill] sm:$0xff] }
 0xb2b   :  { %27533 = vmatprep.subr.bf16.mxu1 %v27532_v1 }
 0xb2c   :  { %20889 = vrot.lane.b32.xlu1 %v34981_v13, %s28391_s23  ;;  %27077 = vmatmul.mubr.msk.f32.vlgmr.msra.gmra.mrb[224].mxu1 %vm3435_vm3, %v14992_v10 }
 0xb2d   :  { %v28159_v55 = vpop.eup %28158  ;;  %27535 = vmatpush3.bf16.msra.mxu1 %v27532_v1 }
 0xb2e   :  { %v14993_v4 = vmul.f32 %v28159_v55, %v32125_v38  ;;  %20121 = vrot.lane.b32.xlu0 %v34980_v41, %s28391_s23  ;;  %v17938_v52 = vpop.permute.xlu1 %17937  ;;  %v17862_v43 = vpop.permute.xlu0 %17861  ;;  %27216 = vmatprep.subr.mxu1 %v34649_v40 }
 0xb30   :  { %21041 = vrot.lane.b32.xlu1 %v34982_v5, %s28391_s23  ;;  %27082 = vmatmul.mubr.msk.f32.vlgmr.msra.gmra.mrb[8].mxu0 %vm3435_vm3, %v14993_v4 }
 0xb31   :  { %27137 = vmatpush3.xpose.msk.msra.mxu0 %vm941_vm2, %v17784_v44  ;;  %27138 = vmatprep.mubr.msk.f32.mxu0 %vm28385_vm1, %v34649_v40 }
 0xb32   :  { %20661 = vrot.lane.b32.xlu0 %v34983_v3, %s28391_s23  ;;  %v18016_v38 = vpop.permute.xlu1 %18015  ;;  %v17940_v45 = vpop.permute.xlu0 %17939  ;;  %27141 = vmatprep.subr.mxu0 %v34649_v40 }
 0xb34   :  { %21117 = vrot.lane.b32.xlu1 %v34984_v46, %s28391_s23  ;;  %27139 = vmatmul.mubr.msk.f32.vlgmr.msra.gmra.mrb[10].mxu0 %vm941_vm2, %v17782_v49 }
 0xb35   :  { %27142 = vmatpush3.xpose.msk.msra.mxu0 %vm941_vm2, %v17862_v43  ;;  %27143 = vmatprep.mubr.msk.f32.mxu0 %vm28385_vm1, %v34649_v40 }
 0xb36   :  { %20813 = vrot.lane.b32.xlu0 %v34985_v9, %s28391_s23  ;;  %v18094_v47 = vpop.permute.xlu1 %18093  ;;  %v18018_v61 = vpop.permute.xlu0 %18017  ;;  %27146 = vmatprep.subr.mxu0 %v34649_v40 }
 0xb38   :  { %21269 = vrot.lane.b32.xlu1 %v34986_v19, %s28391_s23  ;;  %27144 = vmatmul.mubr.msk.f32.vlgmr.msra.gmra.mrb[12].mxu0 %vm941_vm2, %v17860_v26 }
 0xb39   :  { %27147 = vmatpush3.xpose.msk.msra.mxu0 %vm941_vm2, %v17940_v45  ;;  %27148 = vmatprep.mubr.msk.f32.mxu0 %vm28385_vm1, %v34649_v40 }
 0xb3a   :  { %20965 = vrot.lane.b32.xlu0 %v34987_v59, %s28391_s23  ;;  %v18172_v57 = vpop.permute.xlu1 %18171  ;;  %v18096_v14 = vpop.permute.xlu0 %18095  ;;  %27151 = vmatprep.subr.mxu0 %v34649_v40 }
 0xb3c   :  { %21345 = vrot.lane.b32.xlu1 %v34988_v42, %s28391_s23  ;;  %27149 = vmatmul.mubr.msk.f32.vlgmr.msra.gmra.mrb[14].mxu0 %vm941_vm2, %v17938_v52 }
 0xb3d   :  { %27152 = vmatpush3.xpose.msk.msra.mxu0 %vm941_vm2, %v18018_v61  ;;  %27153 = vmatprep.mubr.msk.f32.mxu0 %vm28385_vm1, %v34649_v40 }
 0xb3e   :  { %21193 = vrot.lane.b32.xlu0 %v34989_v17, %s28391_s23  ;;  %v18250_v60 = vpop.permute.xlu1 %18249  ;;  %v18174_v24 = vpop.permute.xlu0 %18173  ;;  %27156 = vmatprep.subr.mxu0 %v34649_v40 }
 0xb40   :  { %21497 = vrot.lane.b32.xlu1 %v34990_v15, %s28391_s23  ;;  %27154 = vmatmul.mubr.msk.f32.vlgmr.msra.gmra.mrb[16].mxu0 %vm941_vm2, %v18016_v38 }
 0xb41   :  { %27157 = vmatpush3.xpose.msk.msra.mxu0 %vm941_vm2, %v18096_v14  ;;  %27158 = vmatprep.mubr.msk.f32.mxu0 %vm28385_vm1, %v34649_v40 }
 0xb42   :  { %21421 = vrot.lane.b32.xlu0 %v34991_v63, %s28391_s23  ;;  %v18328_v23 = vpop.permute.xlu1 %18327  ;;  %v18252_v28 = vpop.permute.xlu0 %18251  ;;  %27161 = vmatprep.subr.mxu0 %v34649_v40 }
 0xb44   :  { %21649 = vrot.lane.b32.xlu1 %v34992_v39, %s28391_s23  ;;  %27159 = vmatmul.mubr.msk.f32.vlgmr.msra.gmra.mrb[18].mxu0 %vm941_vm2, %v18094_v47 }
 0xb45   :  { %27162 = vmatpush3.xpose.msk.msra.mxu0 %vm941_vm2, %v18174_v24  ;;  %27163 = vmatprep.mubr.msk.f32.mxu0 %vm28385_vm1, %v34649_v40 }
 0xb46   :  { %21573 = vrot.lane.b32.xlu0 %v34993_v58, %s28391_s23  ;;  %v18406_v20 = vpop.permute.xlu1 %18405  ;;  %v18330_v25 = vpop.permute.xlu0 %18329  ;;  %27166 = vmatprep.subr.mxu0 %v34649_v40 }
 0xb48   :  { %21801 = vrot.lane.b32.xlu1 %v34994_v11, %s28391_s23  ;;  %27164 = vmatmul.mubr.msk.f32.vlgmr.msra.gmra.mrb[20].mxu0 %vm941_vm2, %v18172_v57 }
 0xb49   :  { %27167 = vmatpush3.xpose.msk.msra.mxu0 %vm941_vm2, %v18252_v28  ;;  %27168 = vmatprep.mubr.msk.f32.mxu0 %vm28385_vm1, %v34649_v40 }
 0xb4a   :  { %21725 = vrot.lane.b32.xlu0 %v34995_v7, %s28391_s23  ;;  %v18484_v27 = vpop.permute.xlu1 %18483  ;;  %v18408_v36 = vpop.permute.xlu0 %18407  ;;  %27171 = vmatprep.subr.mxu0 %v34649_v40 }
 0xb4c   :  { %21953 = vrot.lane.b32.xlu1 %v34996_v53, %s28391_s23  ;;  %27169 = vmatmul.mubr.msk.f32.vlgmr.msra.gmra.mrb[22].mxu0 %vm941_vm2, %v18250_v60 }
 0xb4d   :  { %27172 = vmatpush3.xpose.msk.msra.mxu0 %vm941_vm2, %v18330_v25  ;;  %27173 = vmatprep.mubr.msk.f32.mxu0 %vm28385_vm1, %v34649_v40 }
 0xb4e   :  { %21877 = vrot.lane.b32.xlu0 %v34997_v62, %s28391_s23  ;;  %v18562_v33 = vpop.permute.xlu1 %18561  ;;  %v18486_v6 = vpop.permute.xlu0 %18485  ;;  %27176 = vmatprep.subr.mxu0 %v34649_v40 }
 0xb50   :  { %22105 = vrot.lane.b32.xlu1 %v34998_v34, %s28391_s23  ;;  %27174 = vmatmul.mubr.msk.f32.vlgmr.msra.gmra.mrb[24].mxu0 %vm941_vm2, %v18328_v23 }
 0xb51   :  { %27177 = vmatpush3.xpose.msk.msra.mxu0 %vm941_vm2, %v18408_v36  ;;  %27178 = vmatprep.mubr.msk.f32.mxu0 %vm28385_vm1, %v34649_v40 }
 0xb52   :  { %22029 = vrot.lane.b32.xlu0 %v34999_v48, %s28391_s23  ;;  %v18640_v12 = vpop.permute.xlu1 %18639  ;;  %v18564_v56 = vpop.permute.xlu0 %18563  ;;  %27181 = vmatprep.subr.mxu0 %v34649_v40 }
 0xb54   :  { %22257 = vrot.lane.b32.xlu1 %v35000_v21, %s28391_s23  ;;  %27179 = vmatmul.mubr.msk.f32.vlgmr.msra.gmra.mrb[26].mxu0 %vm941_vm2, %v18406_v20 }
 0xb55   :  { %27182 = vmatpush3.xpose.msk.msra.mxu0 %vm941_vm2, %v18486_v6  ;;  %27183 = vmatprep.mubr.msk.f32.mxu0 %vm28385_vm1, %v34649_v40 }
 0xb56   :  { %22181 = vrot.lane.b32.xlu0 %v35001_v32, %s28391_s23  ;;  %v18718_v37 = vpop.permute.xlu1 %18717  ;;  %v18642_v50 = vpop.permute.xlu0 %18641  ;;  %27186 = vmatprep.subr.mxu0 %v34649_v40 }
 0xb58   :  { %27184 = vmatmul.mubr.msk.f32.vlgmr.msra.gmra.mrb[28].mxu0 %vm941_vm2, %v18484_v27 }
 0xb59   :  { %27187 = vmatpush3.xpose.msk.msra.mxu0 %vm941_vm2, %v18564_v56  ;;  %27188 = vmatprep.mubr.msk.f32.mxu0 %vm28385_vm1, %v34649_v40 }
 0xb5a   :  { %22333 = vrot.lane.b32.xlu0 %v35002_v54, %s28391_s23  ;;  %v18796_v31 = vpop.permute.xlu1 %18795  ;;  %v18720_v0 = vpop.permute.xlu0 %18719  ;;  %27191 = vmatprep.subr.mxu0 %v34649_v40 }
 0xb5c   :  { %27189 = vmatmul.mubr.msk.f32.vlgmr.msra.gmra.mrb[30].mxu0 %vm941_vm2, %v18562_v33 }
 0xb5d   :  { %27192 = vmatpush3.xpose.msk.msra.mxu0 %vm941_vm2, %v18642_v50  ;;  %27193 = vmatprep.mubr.msk.f32.mxu0 %vm28385_vm1, %v34649_v40 }
 0xb5e   :  { %v18874_v29 = vpop.permute.xlu1 %18873  ;;  %27196 = vmatprep.subr.mxu0 %v34649_v40  ;;  %v18798_v8 = vpop.permute.xlu0 %18797 }
 0xb60   :  { %27194 = vmatmul.mubr.msk.f32.vlgmr.msra.gmra.mrb[32].mxu0 %vm941_vm2, %v18640_v12 }
 0xb61   :  { %27197 = vmatpush3.xpose.msk.msra.mxu0 %vm941_vm2, %v18720_v0  ;;  %27198 = vmatprep.mubr.msk.f32.mxu0 %vm28385_vm1, %v34649_v40 }
 0xb62   :  { %v18952_v35 = vpop.permute.xlu1 %18951  ;;  %27201 = vmatprep.subr.mxu0 %v34649_v40  ;;  %v18876_v2 = vpop.permute.xlu0 %18875 }
 0xb64   :  { %27199 = vmatmul.mubr.msk.f32.vlgmr.msra.gmra.mrb[34].mxu0 %vm941_vm2, %v18718_v37 }
 0xb65   :  { %27202 = vmatpush3.xpose.msk.msra.mxu0 %vm941_vm2, %v18798_v8  ;;  %27203 = vmatprep.mubr.msk.f32.mxu0 %vm28385_vm1, %v34649_v40 }
 0xb66   :  { %v19110_v49 = vpop.permute.xlu1 %19109  ;;  %27206 = vmatprep.subr.mxu0 %v34649_v40  ;;  %v18954_v1 = vpop.permute.xlu0 %18953 }
 0xb68   :  { %27204 = vmatmul.mubr.msk.f32.vlgmr.msra.gmra.mrb[36].mxu0 %vm941_vm2, %v18796_v31 }
 0xb69   :  { %27207 = vmatpush3.xpose.msk.msra.mxu0 %vm941_vm2, %v18876_v2  ;;  %27208 = vmatprep.mubr.msk.f32.mxu0 %vm28385_vm1, %v34649_v40 }
 0xb6a   :  { %v19108_v51 = vpop.permute.xlu1 %19107  ;;  %27211 = vmatprep.subr.mxu0 %v34649_v40  ;;  %v19032_v46 = vpop.permute.xlu0 %19031 }
 0xb6c   :  { %27209 = vmatmul.mubr.msk.f32.vlgmr.msra.gmra.mrb[38].mxu0 %vm941_vm2, %v18874_v29 }
 0xb6d   :  { %27212 = vmatpush3.xpose.msk.msra.mxu0 %vm941_vm2, %v18954_v1  ;;  %27213 = vmatprep.mubr.msk.f32.mxu0 %vm28385_vm1, %v34649_v40 }
 0xb6e   :  { %v19266_v30 = vpop.permute.xlu1 %19265  ;;  %27221 = vmatprep.subr.mxu0 %v34649_v40  ;;  %v19030_v50 = vpop.permute.xlu0 %19029 }
 0xb70   :  { %27214 = vmatmul.mubr.msk.f32.vlgmr.msra.gmra.mrb[40].mxu0 %vm941_vm2, %v18952_v35 }
 0xb71   :  { %27222 = vmatpush3.xpose.msk.msra.mxu0 %vm941_vm2, %v19110_v49  ;;  %27223 = vmatprep.mubr.msk.f32.mxu0 %vm28385_vm1, %v34649_v40 }
 0xb72   :  { %v19264_v16 = vpop.permute.xlu1 %19263  ;;  %27231 = vmatprep.subr.mxu0 %v34649_v40  ;;  %v19188_v29 = vpop.permute.xlu0 %19187 }
 0xb74   :  { %27224 = vmatmul.mubr.msk.f32.vlgmr.msra.gmra.mrb[42].mxu0 %vm941_vm2, %v19108_v51 }
 0xb75   :  { %27232 = vmatpush3.xpose.msk.msra.mxu0 %vm941_vm2, %v19266_v30  ;;  %27233 = vmatprep.mubr.msk.f32.mxu0 %vm28385_vm1, %v34649_v40 }
 0xb76   :  { %v19422_v41 = vpop.permute.xlu1 %19421  ;;  %27241 = vmatprep.subr.mxu0 %v34649_v40  ;;  %v19186_v49 = vpop.permute.xlu0 %19185 }
 0xb78   :  { %27234 = vmatmul.mubr.msk.f32.vlgmr.msra.gmra.mrb[44].mxu0 %vm941_vm2, %v19264_v16 }
 0xb79   :  { %27242 = vmatpush3.xpose.msk.msra.mxu0 %vm941_vm2, %v19422_v41  ;;  %27243 = vmatprep.mubr.msk.f32.mxu0 %vm28385_vm1, %v34649_v40 }
 0xb7a   :  { %v19420_v26 = vpop.permute.xlu1 %19419  ;;  %27251 = vmatprep.subr.mxu0 %v34649_v40  ;;  %v19344_v16 = vpop.permute.xlu0 %19343 }
 0xb7c   :  { %27244 = vmatmul.mubr.msk.f32.vlgmr.msra.gmra.mrb[46].mxu0 %vm941_vm2, %v19420_v26 }
 0xb7d   :  { %27253 = vmatprep.mubr.msk.f32.mxu0 %vm28385_vm1, %v34649_v40 }
 0xb7e   :  { %v19578_v44 = vpop.permute.xlu1 %19577 }
 0xb7f   :  { %27252 = vmatpush3.xpose.msk.msra.mxu0 %vm941_vm2, %v19578_v44 }
 0xb80   :  { %27261 = vmatprep.subr.mxu0 %v34649_v40 }
 0xb82   :  { %v19576_v10 = vpop.permute.xlu1 %19575 }
 0xb83   :  { %27254 = vmatmul.mubr.msk.f32.vlgmr.msra.gmra.mrb[48].mxu0 %vm941_vm2, %v19576_v10  ;;  %v19342_v10 = vpop.permute.xlu0 %19341 }
 0xb84   :  { %27263 = vmatprep.mubr.msk.f32.mxu0 %vm28385_vm1, %v34649_v40 }
 0xb86   :  { %v19734_v13 = vpop.permute.xlu1 %19733 }
 0xb87   :  { %27262 = vmatpush3.xpose.msk.msra.mxu0 %vm941_vm2, %v19734_v13 }
 0xb88   :  { %27271 = vmatprep.subr.mxu0 %v34649_v40 }
 0xb8a   :  { %v19732_v55 = vpop.permute.xlu1 %19731 }
 0xb8b   :  { %27264 = vmatmul.mubr.msk.f32.vlgmr.msra.gmra.mrb[50].mxu0 %vm941_vm2, %v19732_v55 }
 0xb8c   :  { %27273 = vmatprep.mubr.msk.f32.mxu0 %vm28385_vm1, %v34649_v40 }
 0xb8e   :  { %v19890_v4 = vpop.permute.xlu1 %19889 }
 0xb8f   :  { %27272 = vmatpush3.xpose.msk.msra.mxu0 %vm941_vm2, %v19890_v4 }
 0xb90   :  { %27281 = vmatprep.subr.mxu0 %v34649_v40 }
 0xb92   :  { %v19888_v52 = vpop.permute.xlu1 %19887 }
 0xb93   :  { %27274 = vmatmul.mubr.msk.f32.vlgmr.msra.gmra.mrb[52].mxu0 %vm941_vm2, %v19888_v52  ;;  %v19500_v52 = vpop.permute.xlu0 %19499 }
 0xb94   :  { %27283 = vmatprep.mubr.msk.f32.mxu0 %vm28385_vm1, %v34649_v40 }
 0xb96   :  { %v15066_v43 = vpop.f32.mrb[194].mxu1  ;;  %v20046_v5 = vpop.permute.xlu1 %20045 }
 0xb97   :  { %v26928_v3 = vpop.f32.mrb[195].mxu1  ;;  %27088 = vmatprep.mubr.msk.f32.mxu1 %vm941_vm2, %v15066_v43  ;;  %27282 = vmatpush3.xpose.msk.msra.mxu0 %vm941_vm2, %v20046_v5 }
 0xb98   :  { %27291 = vmatprep.subr.mxu0 %v34649_v40 }
 0xb9a   :  { %v15218_v38 = vpop.f32.mrb[196].mxu1  ;;  %v20044_v45 = vpop.permute.xlu1 %20043 }
 0xb9b   :  { %v15142_v9 = vpop.f32.mrb[234].mxu0  ;;  %27284 = vmatmul.mubr.msk.f32.vlgmr.msra.gmra.mrb[54].mxu0 %vm941_vm2, %v20044_v45  ;;  %v26938_v61 = vpop.f32.mrb[197].mxu1 }
 0xb9c   :  { %v26933_v47 = vpop.f32.mrb[235].mxu0  ;;  %27089 = vmatmul.mubr.msk.f32.vlgmr.msra.gmra.mrb[182].mxu1 %vm941_vm2, %v15142_v9  ;;  %27293 = vmatprep.mubr.msk.f32.mxu0 %vm28385_vm1, %v34649_v40 }
 0xb9d   :  { %27217 = vmatpush3.xpose.msk.msra.mxu1 %vm941_vm2, %v19032_v46  ;;  %27091 = vmatprep.mubr.msk.f32.mxu1 %vm941_vm2, %v15218_v38  ;;  %v19498_v38 = vpop.permute.xlu0 %19497 }
 0xb9e   :  { %v20202_v19 = vpop.permute.xlu1 %20201  ;;  %27226 = vmatprep.subr.mxu1 %v34649_v40 }
 0xb9f   :  { %v15370_v59 = vpop.f32.mrb[198].mxu1  ;;  %27292 = vmatpush3.xpose.msk.msra.mxu0 %vm941_vm2, %v20202_v19 }
 0xba0   :  { %v15294_v57 = vpop.f32.mrb[236].mxu0  ;;  %v26948_v14 = vpop.f32.mrb[199].mxu1  ;;  %27301 = vmatprep.subr.mxu0 %v34649_v40 }
 0xba1   :  { %v26943_v42 = vpop.f32.mrb[237].mxu0  ;;  %27092 = vmatmul.mubr.msk.f32.gmra.mrb[184].mxu1 %vm941_vm2, %v15294_v57  ;;  %v19656_v47 = vpop.permute.xlu0 %19655 }
 0xba2   :  { %27094 = vmatprep.mubr.msk.f32.mxu1 %vm941_vm2, %v15370_v59  ;;  %v20200_v17 = vpop.permute.xlu1 %20199 }
 0xba3   :  { %27294 = vmatmul.mubr.msk.f32.vlgmr.msra.gmra.mrb[56].mxu0 %vm941_vm2, %v20200_v17 }
 0xba4   :  { %v15522_v60 = vpop.f32.mrb[200].mxu1  ;;  %27303 = vmatprep.mubr.msk.f32.mxu0 %vm28385_vm1, %v34649_v40 }
 0xba5   :  { %v15446_v24 = vpop.f32.mrb[238].mxu0  ;;  %v26958_v15 = vpop.f32.mrb[201].mxu1 }
 0xba6   :  { %v26953_v63 = vpop.f32.mrb[239].mxu0  ;;  %27095 = vmatmul.mubr.msk.f32.gmra.mrb[186].mxu1 %vm941_vm2, %v15446_v24  ;;  %v20738_v23 = vpop.permute.xlu1 %20737 }
 0xba7   :  { %27097 = vmatprep.mubr.msk.f32.mxu1 %vm941_vm2, %v15522_v60  ;;  %27302 = vmatpush3.msra.mxu0 %v20738_v23  ;;  %v19654_v57 = vpop.permute.xlu0 %19653 }
 0xba8   :  { %27311 = vmatprep.subr.mxu0 %v34649_v40 }
 0xba9   :  { %v15598_v28 = vpop.f32.mrb[240].mxu0 }
 0xbaa   :  { %v26963_v39 = vpop.f32.mrb[241].mxu0  ;;  %v15674_v58 = vpop.f32.mrb[202].mxu1  ;;  %27098 = vmatmul.mubr.msk.f32.gmra.mrb[188].mxu1 %vm941_vm2, %v15598_v28 }
 0xbab   :  { %v26968_v20 = vpop.f32.mrb[203].mxu1  ;;  %27100 = vmatprep.mubr.msk.f32.mxu1 %vm941_vm2, %v15674_v58  ;;  %v19812_v60 = vpop.permute.xlu0 %19811 }
 0xbad   :  { %v15750_v25 = vpop.f32.mrb[242].mxu0 }
 0xbae   :  { %v26973_v11 = vpop.f32.mrb[243].mxu0  ;;  %27101 = vmatmul.mubr.msk.f32.gmra.mrb[190].mxu1 %vm941_vm2, %v15750_v25 }
 0xbaf   :  { %v19810_v23 = vpop.permute.xlu0 %19809 }
 0xbb0   :  { %v15826_v7 = vpop.f32.mrb[204].mxu1 }
 0xbb1   :  { %v26978_v27 = vpop.f32.mrb[205].mxu1  ;;  %27103 = vmatprep.mubr.msk.f32.mxu1 %vm941_vm2, %v15826_v7 }
 0xbb3   :  { %v15902_v36 = vpop.f32.mrb[244].mxu0  ;;  %v19968_v11 = vpop.permute.xlu0 %19967 }
 0xbb4   :  { %v26983_v53 = vpop.f32.mrb[245].mxu0  ;;  %27104 = vmatmul.mubr.msk.f32.gmra.mrb[192].mxu1 %vm941_vm2, %v15902_v36 }
 0xbb7   :  { %v15978_v62 = vpop.f32.mrb[206].mxu1 }
 0xbb8   :  { %v26988_v33 = vpop.f32.mrb[207].mxu1  ;;  %27106 = vmatprep.mubr.msk.f32.mxu1 %vm941_vm2, %v15978_v62 }
 0xbbb   :  { %v16054_v6 = vpop.f32.mrb[246].mxu0 }
 0xbbc   :  { %v26993_v34 = vpop.f32.mrb[247].mxu0  ;;  %27107 = vmatmul.mubr.msk.f32.gmra.mrb[162].mxu1 %vm941_vm2, %v16054_v6  ;;  %v19966_v6 = vpop.permute.xlu0 %19965 }
 0xbbf   :  { %v16130_v48 = vpop.f32.mrb[208].mxu1 }
 0xbc0   :  { %v26998_v12 = vpop.f32.mrb[209].mxu1  ;;  %27109 = vmatprep.mubr.msk.f32.mxu1 %vm941_vm2, %v16130_v48 }
 0xbc3   :  { %v16206_v56 = vpop.f32.mrb[248].mxu0 }
 0xbc4   :  { %v27003_v21 = vpop.f32.mrb[249].mxu0  ;;  %27110 = vmatmul.mubr.msk.f32.gmra.mrb[164].mxu1 %vm941_vm2, %v16206_v56 }
 0xbc7   :  { %v16282_v32 = vpop.f32.mrb[210].mxu1 }
 0xbc8   :  { %v27008_v37 = vpop.f32.mrb[211].mxu1  ;;  %27112 = vmatprep.mubr.msk.f32.mxu1 %vm941_vm2, %v16282_v32 }
 0xbc9   :  { %v20124_v37 = vpop.permute.xlu0 %20123 }
 0xbcb   :  { %v16358_v54 = vpop.f32.mrb[250].mxu0 }
 0xbcc   :  { %v27013_v31 = vpop.f32.mrb[251].mxu0  ;;  %27113 = vmatmul.mubr.msk.f32.gmra.mrb[166].mxu1 %vm941_vm2, %v16358_v54 }
 0xbcf   :  { %v16434_v0 = vpop.f32.mrb[212].mxu1 }
 0xbd0   :  { %v27018_v8 = vpop.f32.mrb[213].mxu1  ;;  %27115 = vmatprep.mubr.msk.f32.mxu1 %vm941_vm2, %v16434_v0 }
 0xbd3   :  { %v16510_v35 = vpop.f32.mrb[252].mxu0 }
 0xbd4   :  { %v27023_v2 = vpop.f32.mrb[253].mxu0  ;;  %27116 = vmatmul.mubr.msk.f32.gmra.mrb[168].mxu1 %vm941_vm2, %v16510_v35  ;;  %v20122_v35 = vpop.permute.xlu0 %20121 }
 0xbd7   :  { %v16586_v51 = vpop.f32.mrb[214].mxu1 }
 0xbd8   :  { %v27028_v1 = vpop.f32.mrb[215].mxu1  ;;  %27118 = vmatprep.mubr.msk.f32.mxu1 %vm941_vm2, %v16586_v51 }
 0xbdb   :  { %v16662_v30 = vpop.f32.mrb[254].mxu0 }
 0xbdc   :  { %v27033_v41 = vpop.f32.mrb[255].mxu0  ;;  %27119 = vmatmul.mubr.msk.f32.gmra.mrb[170].mxu1 %vm941_vm2, %v16662_v30 }
 0xbdd   :  { %v20662_v41 = vpop.permute.xlu0 %20661 }
 0xbdf   :  { %v16738_v26 = vpop.f32.mrb[216].mxu1 }
 0xbe0   :  { %v27038_v44 = vpop.f32.mrb[217].mxu1  ;;  %27121 = vmatprep.mubr.msk.f32.mxu1 %vm941_vm2, %v16738_v26 }
 0xbe3   :  { %v16814_v13 = vpop.f32.mrb[0].mxu0 }
 0xbe4   :  { %v27043_v55 = vpop.f32.mrb[1].mxu0  ;;  %27122 = vmatmul.mubr.msk.f32.gmra.mrb[172].mxu1 %vm941_vm2, %v16814_v13 }
 0xbe7   :  { %v16890_v4 = vpop.f32.mrb[218].mxu1 }
 0xbe8   :  { %v27048_v43 = vpop.f32.mrb[219].mxu1  ;;  %27124 = vmatprep.mubr.msk.f32.mxu1 %vm941_vm2, %v16890_v4 }
 0xbeb   :  { %v16966_v5 = vpop.f32.mrb[2].mxu0 }
 0xbec   :  { %v27053_v3 = vpop.f32.mrb[3].mxu0  ;;  %27125 = vmatmul.mubr.msk.f32.gmra.mrb[174].mxu1 %vm941_vm2, %v16966_v5 }
 0xbef   :  { %v17042_v45 = vpop.f32.mrb[220].mxu1 }
 0xbf0   :  { %v27058_v46 = vpop.f32.mrb[221].mxu1  ;;  %27127 = vmatprep.mubr.msk.f32.mxu1 %vm941_vm2, %v17042_v45 }
 0xbf3   :  { %v17118_v9 = vpop.f32.mrb[4].mxu0 }
 0xbf4   :  { %v27063_v61 = vpop.f32.mrb[5].mxu0  ;;  %27128 = vmatmul.mubr.msk.f32.gmra.mrb[176].mxu1 %vm941_vm2, %v17118_v9 }
 0xbf7   :  { %v17194_v19 = vpop.f32.mrb[222].mxu1 }
 0xbf8   :  { %v27068_v59 = vpop.f32.mrb[223].mxu1  ;;  %27130 = vmatprep.mubr.msk.f32.mxu1 %vm941_vm2, %v17194_v19 }
 0xbfb   :  { %v17270_v14 = vpop.f32.mrb[6].mxu0 }
 0xbfc   :  { %v27073_v42 = vpop.f32.mrb[7].mxu0  ;;  %27131 = vmatmul.mubr.msk.f32.gmra.mrb[178].mxu1 %vm941_vm2, %v17270_v14 }
 0xbff   :  { %v17346_v17 = vpop.f32.mrb[224].mxu1 }
 0xc00   :  { %v27078_v24 = vpop.f32.mrb[225].mxu1  ;;  %27133 = vmatprep.mubr.msk.f32.mxu1 %vm941_vm2, %v17346_v17 }
 0xc03   :  { %v17422_v15 = vpop.f32.mrb[8].mxu0 }
 0xc04   :  { %v27083_v63 = vpop.f32.mrb[9].mxu0  ;;  %27134 = vmatmul.mubr.msk.f32.gmra.mrb[180].mxu1 %vm941_vm2, %v17422_v15 }
 0xc05   :  { %27218 = vmatprep.mubr.msk.f32.mxu1 %vm28385_vm1, %v34649_v40 }
 0xc07   :  { %v17855_v28 = vpop.f32.mrb[10].mxu0 }
 0xc08   :  { %v32658_v39 = vmul.f32 0.125, %v17855_v28  ;;  %v27140_v58 = vpop.f32.mrb[11].mxu0  ;;  %27219 = vmatmul.mubr.msk.f32.vlgmr.msra.gmra.mrb[226].mxu1 %vm941_vm2, %v19030_v50 }
 0xc09   :  { %27227 = vmatpush3.xpose.msk.msra.mxu1 %vm941_vm2, %v19188_v29  ;;  %27228 = vmatprep.mubr.msk.f32.mxu1 %vm28385_vm1, %v34649_v40 }
 0xc0a   :  { %v20309_v20 = vsel %vm3435_vm3, %v32658_v39, -inf  ;;  %27236 = vmatprep.subr.mxu1 %v34649_v40 }
 0xc0b   :  { %20310 = vmax.xlane.f32.xlu0 %v20309_v20  ;;  %v17933_v25 = vpop.f32.mrb[12].mxu0 }
 0xc0c   :  { %v32667_v7 = vmul.f32 0.125, %v17933_v25  ;;  %v27145_v27 = vpop.f32.mrb[13].mxu0  ;;  %27229 = vmatmul.mubr.msk.f32.vlgmr.msra.gmra.mrb[228].mxu1 %vm941_vm2, %v19186_v49 }
 0xc0d   :  { %27237 = vmatpush3.xpose.msk.msra.mxu1 %vm941_vm2, %v19344_v16  ;;  %27238 = vmatprep.mubr.msk.f32.mxu1 %vm28385_vm1, %v34649_v40 }
 0xc0e   :  { %v20312_v36 = vsel %vm3435_vm3, %v32667_v7, -inf  ;;  %27246 = vmatprep.subr.mxu1 %v34649_v40 }
 0xc0f   :  { %20313 = vmax.xlane.f32.xlu1 %v20312_v36  ;;  %v18011_v53 = vpop.f32.mrb[14].mxu0 }
 0xc10   :  { %v32676_v62 = vmul.f32 0.125, %v18011_v53  ;;  %v27150_v33 = vpop.f32.mrb[15].mxu0  ;;  %27239 = vmatmul.mubr.msk.f32.vlgmr.msra.gmra.mrb[230].mxu1 %vm941_vm2, %v19342_v10 }
 0xc11   :  { %27247 = vmatpush3.xpose.msk.msra.mxu1 %vm941_vm2, %v19500_v52  ;;  %27248 = vmatprep.mubr.msk.f32.mxu1 %vm28385_vm1, %v34649_v40 }
 0xc12   :  { %v20315_v34 = vsel %vm3435_vm3, %v32676_v62, -inf  ;;  %27256 = vmatprep.subr.mxu1 %v34649_v40 }
 0xc13   :  { %20316 = vmax.xlane.f32.xlu0 %v20315_v34  ;;  %v18089_v48 = vpop.f32.mrb[16].mxu0 }
 0xc14   :  { %v32685_v12 = vmul.f32 0.125, %v18089_v48  ;;  %v27155_v56 = vpop.f32.mrb[17].mxu0  ;;  %27249 = vmatmul.mubr.msk.f32.vlgmr.msra.gmra.mrb[232].mxu1 %vm941_vm2, %v19498_v38 }
 0xc15   :  { %27257 = vmatpush3.xpose.msk.msra.mxu1 %vm941_vm2, %v19656_v47  ;;  %27258 = vmatprep.mubr.msk.f32.mxu1 %vm28385_vm1, %v34649_v40 }
 0xc16   :  { %v20318_v21 = vsel %vm3435_vm3, %v32685_v12, -inf  ;;  %27266 = vmatprep.subr.mxu1 %v34649_v40 }
 0xc17   :  { %20319 = vmax.xlane.f32.xlu0 %v20318_v21  ;;  %v18167_v32 = vpop.f32.mrb[18].mxu0 }
 0xc18   :  { %v32694_v50 = vmul.f32 0.125, %v18167_v32  ;;  %v27160_v54 = vpop.f32.mrb[19].mxu0  ;;  %27259 = vmatmul.mubr.msk.f32.vlgmr.msra.gmra.mrb[234].mxu1 %vm941_vm2, %v19654_v57 }
 0xc19   :  { %27267 = vmatpush3.xpose.msk.msra.mxu1 %vm941_vm2, %v19812_v60  ;;  %27268 = vmatprep.mubr.msk.f32.mxu1 %vm28385_vm1, %v34649_v40 }
 0xc1a   :  { %v20321_v31 = vsel %vm3435_vm3, %v32694_v50, -inf  ;;  %27276 = vmatprep.subr.mxu1 %v34649_v40 }
 0xc1b   :  { %20322 = vmax.xlane.f32.xlu1 %v20321_v31  ;;  %v18245_v0 = vpop.f32.mrb[20].mxu0 }
 0xc1c   :  { %v32703_v29 = vmul.f32 0.125, %v18245_v0  ;;  %v27165_v8 = vpop.f32.mrb[21].mxu0  ;;  %27269 = vmatmul.mubr.msk.f32.vlgmr.msra.gmra.mrb[236].mxu1 %vm941_vm2, %v19810_v23 }
 0xc1d   :  { %27277 = vmatpush3.xpose.msk.msra.mxu1 %vm941_vm2, %v19968_v11  ;;  %27278 = vmatprep.mubr.msk.f32.mxu1 %vm28385_vm1, %v34649_v40 }
 0xc1e   :  { %v20324_v2 = vsel %vm3435_vm3, %v32703_v29, -inf  ;;  %27286 = vmatprep.subr.mxu1 %v34649_v40 }
 0xc1f   :  { %20325 = vmax.xlane.f32.xlu0 %v20324_v2  ;;  %v18323_v49 = vpop.f32.mrb[22].mxu0 }
 0xc20   :  { %v32712_v51 = vmul.f32 0.125, %v18323_v49  ;;  %v27170_v1 = vpop.f32.mrb[23].mxu0  ;;  %27279 = vmatmul.mubr.msk.f32.vlgmr.msra.gmra.mrb[238].mxu1 %vm941_vm2, %v19966_v6 }
 0xc21   :  { %27287 = vmatpush3.xpose.msk.msra.mxu1 %vm941_vm2, %v20124_v37  ;;  %27288 = vmatprep.mubr.msk.f32.mxu1 %vm28385_vm1, %v34649_v40 }
 0xc22   :  { %v20327_v30 = vsel %vm3435_vm3, %v32712_v51, -inf  ;;  %27296 = vmatprep.subr.mxu1 %v34649_v40 }
 0xc23   :  { %20328 = vmax.xlane.f32.xlu1 %v20327_v30  ;;  %v18401_v16 = vpop.f32.mrb[24].mxu0  ;;  %v32777_v30 = vpop.permute.xlu1 %20889 }
 0xc24   :  { %v32721_v26 = vmul.f32 0.125, %v18401_v16  ;;  %v27175_v44 = vpop.f32.mrb[25].mxu0  ;;  %27289 = vmatmul.mubr.msk.f32.vlgmr.msra.gmra.mrb[240].mxu1 %vm941_vm2, %v20122_v35  ;;  %v32779_v16 = vpop.permute.xlu0 %20813 }
 0xc25   :  { %27297 = vmatpush3.msra.mxu1 %v20662_v41  ;;  %27298 = vmatprep.mubr.msk.f32.mxu1 %vm28385_vm1, %v34649_v40 }
 0xc26   :  { %v20330_v10 = vsel %vm3435_vm3, %v32721_v26, -inf  ;;  %27306 = vmatprep.subr.mxu1 %v34649_v40 }
 0xc27   :  { %20331 = vmax.xlane.f32.xlu0 %v20330_v10  ;;  %v18479_v13 = vpop.f32.mrb[26].mxu0 }
 0xc28   :  { %v32729_v55 = vmul.f32 0.125, %v18479_v13  ;;  %v27180_v4 = vpop.f32.mrb[27].mxu0 }
 0xc29   :  { %v32785_v4 = vpop.permute.xlu1 %21041 }
 0xc2a   :  { %v20333_v52 = vsel %vm3435_vm3, %v32729_v55, -inf }
 0xc2b   :  { %20334 = vmax.xlane.f32.xlu1 %v20333_v52  ;;  %v18557_v43 = vpop.f32.mrb[28].mxu0  ;;  %v32787_v52 = vpop.permute.xlu0 %20965 }
 0xc2c   :  { %v32733_v5 = vmul.f32 0.125, %v18557_v43  ;;  %v27185_v3 = vpop.f32.mrb[29].mxu0 }
 0xc2e   :  { %v20336_v38 = vsel %vm3435_vm3, %v32733_v5, -inf }
 0xc2f   :  { %20337 = vmax.xlane.f32.xlu0 %v20336_v38  ;;  %v18635_v45 = vpop.f32.mrb[30].mxu0 }
 0xc30   :  { %v32737_v46 = vmul.f32 0.125, %v18635_v45  ;;  %v27190_v9 = vpop.f32.mrb[31].mxu0  ;;  %v32791_v45 = vpop.permute.xlu1 %21117 }
 0xc32   :  { %v20339_v47 = vsel %vm3435_vm3, %v32737_v46, -inf }
 0xc33   :  { %20340 = vmax.xlane.f32.xlu1 %v20339_v47  ;;  %v18713_v61 = vpop.f32.mrb[32].mxu0  ;;  %v32795_v47 = vpop.permute.xlu0 %21193 }
 0xc34   :  { %v32741_v19 = vmul.f32 0.125, %v18713_v61  ;;  %v27195_v59 = vpop.f32.mrb[33].mxu0  ;;  %v32797_v61 = vpop.permute.xlu1 %21269 }
 0xc36   :  { %v20342_v57 = vsel %vm3435_vm3, %v32741_v19, -inf }
 0xc37   :  { %20343 = vmax.xlane.f32.xlu0 %v20342_v57  ;;  %v18791_v14 = vpop.f32.mrb[34].mxu0 }
 0xc38   :  { %v32745_v42 = vmul.f32 0.125, %v18791_v14  ;;  %v27200_v17 = vpop.f32.mrb[35].mxu0 }
 0xc39   :  { %v32801_v17 = vpop.permute.xlu0 %21421 }
 0xc3a   :  { %v20345_v60 = vsel %vm3435_vm3, %v32745_v42, -inf }
 0xc3b   :  { %20346 = vmax.xlane.f32.xlu1 %v20345_v60  ;;  %v18869_v24 = vpop.f32.mrb[36].mxu0 }
 0xc3c   :  { %v32749_v15 = vmul.f32 0.125, %v18869_v24  ;;  %v27205_v63 = vpop.f32.mrb[37].mxu0  ;;  %v32805_v24 = vpop.permute.xlu1 %21345 }
 0xc3d   :  { %v32807_v63 = vpop.permute.xlu0 %21573 }
 0xc3e   :  { %v20348_v23 = vsel %vm3435_vm3, %v32749_v15, -inf }
 0xc3f   :  { %20349 = vmax.xlane.f32.xlu0 %v20348_v23  ;;  %v18947_v28 = vpop.f32.mrb[38].mxu0 }
 0xc40   :  { %v32753_v58 = vmul.f32 0.125, %v18947_v28  ;;  %v27210_v20 = vpop.f32.mrb[39].mxu0 }
 0xc42   :  { %v20351_v25 = vsel %vm3435_vm3, %v32753_v58, -inf }
 0xc43   :  { %20352 = vmax.xlane.f32.xlu1 %v20351_v25  ;;  %v19025_v11 = vpop.f32.mrb[40].mxu0 }
 0xc44   :  { %v32757_v27 = vmul.f32 0.125, %v19025_v11  ;;  %v27215_v36 = vpop.f32.mrb[41].mxu0  ;;  %v32813_v11 = vpop.permute.xlu1 %21497 }
 0xc45   :  { %v32815_v36 = vpop.permute.xlu0 %21725 }
 0xc46   :  { %v20354_v53 = vsel %vm3435_vm3, %v32757_v27, -inf }
 0xc47   :  { %20355 = vmax.xlane.f32.xlu0 %v20354_v53  ;;  %v19181_v33 = vpop.f32.mrb[42].mxu0 }
 0xc48   :  { %v32761_v6 = vmul.f32 0.125, %v19181_v33  ;;  %v27225_v34 = vpop.f32.mrb[43].mxu0  ;;  %v32817_v53 = vpop.permute.xlu1 %21649 }
 0xc49   :  { %v32819_v33 = vpop.permute.xlu0 %21877 }
 0xc4a   :  { %v20360_v48 = vsel %vm3435_vm3, %v32761_v6, -inf }
 0xc4b   :  { %20361 = vmax.xlane.f32.xlu0 %v20360_v48  ;;  %v19337_v56 = vpop.f32.mrb[44].mxu0 }
 0xc4c   :  { %v32765_v21 = vmul.f32 0.125, %v19337_v56  ;;  %v27235_v32 = vpop.f32.mrb[45].mxu0  ;;  %v32821_v34 = vpop.permute.xlu1 %21801 }
 0xc4d   :  { %v32823_v48 = vpop.permute.xlu0 %22029 }
 0xc4e   :  { %v20366_v37 = vsel %vm3435_vm3, %v32765_v21, -inf }
 0xc4f   :  { %20367 = vmax.xlane.f32.xlu0 %v20366_v37  ;;  %v19493_v54 = vpop.f32.mrb[46].mxu0 }
 0xc50   :  { %v32769_v31 = vmul.f32 0.125, %v19493_v54  ;;  %v27245_v0 = vpop.f32.mrb[47].mxu0  ;;  %v32825_v56 = vpop.permute.xlu1 %21953 }
 0xc51   :  { %v32827_v32 = vpop.permute.xlu0 %22181 }
 0xc52   :  { %v20372_v8 = vsel %vm3435_vm3, %v32769_v31, -inf  ;;  %35003 = vst [vmem:[#allocation129_spill] sm:$0xff] %v32827_v32 }
 0xc53   :  { %20373 = vmax.xlane.f32.xlu0 %v20372_v8 }
 0xc54   :  { %v32829_v37 = vpop.permute.xlu1 %22105 }
 0xc55   :  { %v32831_v54 = vpop.permute.xlu0 %22333 }
 0xc56   :  { %v19649_v35 = vpop.f32.mrb[48].mxu0  ;;  %35004 = vst [vmem:[#allocation110_spill] sm:$0xff] %v32831_v54 }
 0xc57   :  { %v32773_v2 = vmul.f32 0.125, %v19649_v35  ;;  %v27255_v49 = vpop.f32.mrb[49].mxu0 }
 0xc58   :  { %v32833_v0 = vpop.permute.xlu1 %22257 }
 0xc59   :  { %v20378_v1 = vsel %vm3435_vm3, %v32773_v2, -inf }
 0xc5a   :  { %20379 = vmax.xlane.f32.xlu0 %v20378_v1 }
 0xc5e   :  { %v19805_v41 = vpop.f32.mrb[50].mxu0 }
 0xc5f   :  { %v32781_v44 = vmul.f32 0.125, %v19805_v41  ;;  %v27265_v10 = vpop.f32.mrb[51].mxu0 }
 0xc61   :  { %v20384_v13 = vsel %vm3435_vm3, %v32781_v44, -inf }
 0xc62   :  { %20385 = vmax.xlane.f32.xlu0 %v20384_v13 }
 0xc66   :  { %v19961_v43 = vpop.f32.mrb[52].mxu0 }
 0xc67   :  { %v32789_v3 = vmul.f32 0.125, %v19961_v43  ;;  %v27275_v38 = vpop.f32.mrb[53].mxu0 }
 0xc69   :  { %v20390_v9 = vsel %vm3435_vm3, %v32789_v3, -inf }
 0xc6a   :  { %20391 = vmax.xlane.f32.xlu0 %v20390_v9 }
 0xc6e   :  { %v20117_v59 = vpop.f32.mrb[54].mxu0 }
 0xc6f   :  { %v32799_v57 = vmul.f32 0.125, %v20117_v59  ;;  %v27285_v14 = vpop.f32.mrb[55].mxu0 }
 0xc71   :  { %v20396_v60 = vsel %vm3435_vm3, %v32799_v57, -inf }
 0xc72   :  { %20397 = vmax.xlane.f32.xlu1 %v20396_v60 }
 0xc76   :  { %v20273_v23 = vpop.f32.mrb[56].mxu0 }
 0xc77   :  { %v32809_v28 = vmul.f32 0.125, %v20273_v23  ;;  %v27295_v20 = vpop.f32.mrb[57].mxu0 }
 0xc79   :  { %v20402_v25 = vsel %vm3435_vm3, %v32809_v28, -inf }
 0xc7a   :  { %20403 = vmax.xlane.f32.xlu1 %v20402_v25 }
 0xc98   :  { %v20311_v8 = vpop.xlane.xlu0 %20310 }
 0xc99   :  { %v20405_v35 = vsub.f32 %v32658_v39, %v20311_v8 }
 0xc9b   :  { %v20437_v49 = vmul.f32 1.442695, %v20405_v35 }
 0xc9c   :  { %v20314_v1 = vpop.xlane.xlu1 %20313 }
 0xc9d   :  { %28160 = vpow2.f32 %v20437_v49  ;;  %v20406_v41 = vsub.f32 %v32667_v7, %v20314_v1 }
 0xc9f   :  { %v20439_v10 = vmul.f32 1.442695, %v20406_v41 }
 0xca0   :  { %v20317_v13 = vpop.xlane.xlu0 %20316 }
 0xca1   :  { %28162 = vpow2.f32 %v20439_v10  ;;  %v20407_v43 = vsub.f32 %v32676_v62, %v20317_v13 }
 0xca3   :  { %v20441_v38 = vmul.f32 1.442695, %v20407_v43 }
 0xca4   :  { %v20320_v9 = vpop.xlane.xlu0 %20319 }
 0xca5   :  { %28164 = vpow2.f32 %v20441_v38  ;;  %v20408_v59 = vsub.f32 %v32685_v12, %v20320_v9 }
 0xca7   :  { %v32839_v14 = vpop.eup %28160  ;;  %v20443_v60 = vmul.f32 1.442695, %v20408_v59 }
 0xca8   :  { %v20323_v23 = vpop.xlane.xlu1 %20322  ;;  %v20501_v39 = vsel %vm3435_vm3, %v32839_v14, 0.0 }
 0xca9   :  { %28166 = vpow2.f32 %v20443_v60  ;;  %v20409_v7 = vsub.f32 %v32694_v50, %v20323_v23  ;;  %20502 = vadd.xlane.f32.xlu1 %v20501_v39 }
 0xcab   :  { %v32844_v20 = vpop.eup %28162  ;;  %v20445_v25 = vmul.f32 1.442695, %v20409_v7 }
 0xcac   :  { %v20326_v62 = vpop.xlane.xlu0 %20325  ;;  %v20504_v8 = vsel %vm3435_vm3, %v32844_v20, 0.0 }
 0xcad   :  { %28168 = vpow2.f32 %v20445_v25  ;;  %v20410_v12 = vsub.f32 %v32703_v29, %v20326_v62  ;;  %20505 = vadd.xlane.f32.xlu0 %v20504_v8 }
 0xcaf   :  { %v32849_v35 = vpop.eup %28164  ;;  %v20447_v49 = vmul.f32 1.442695, %v20410_v12 }
 0xcb0   :  { %v20329_v1 = vpop.xlane.xlu1 %20328  ;;  %v20507_v41 = vsel %vm3435_vm3, %v32849_v35, 0.0 }
 0xcb1   :  { %28170 = vpow2.f32 %v20447_v49  ;;  %v20411_v50 = vsub.f32 %v32712_v51, %v20329_v1  ;;  %20508 = vadd.xlane.f32.xlu1 %v20507_v41 }
 0xcb3   :  { %v32854_v10 = vpop.eup %28166  ;;  %v20449_v13 = vmul.f32 1.442695, %v20411_v50 }
 0xcb4   :  { %v20332_v43 = vpop.xlane.xlu0 %20331  ;;  %v20510_v38 = vsel %vm3435_vm3, %v32854_v10, 0.0 }
 0xcb5   :  { %28172 = vpow2.f32 %v20449_v13  ;;  %v20412_v29 = vsub.f32 %v32721_v26, %v20332_v43  ;;  %20511 = vadd.xlane.f32.xlu0 %v20510_v38 }
 0xcb7   :  { %v32859_v9 = vpop.eup %28168  ;;  %v20451_v59 = vmul.f32 1.442695, %v20412_v29 }
 0xcb8   :  { %v20335_v60 = vpop.xlane.xlu1 %20334  ;;  %v20513_v23 = vsel %vm3435_vm3, %v32859_v9, 0.0 }
 0xcb9   :  { %28174 = vpow2.f32 %v20451_v59  ;;  %v20413_v51 = vsub.f32 %v32729_v55, %v20335_v60  ;;  %20514 = vadd.xlane.f32.xlu1 %v20513_v23 }
 0xcbb   :  { %v32864_v39 = vpop.eup %28170  ;;  %v20453_v7 = vmul.f32 1.442695, %v20413_v51 }
 0xcbc   :  { %v20338_v25 = vpop.xlane.xlu0 %20337  ;;  %v20516_v62 = vsel %vm3435_vm3, %v32864_v39, 0.0 }
 0xcbd   :  { %28176 = vpow2.f32 %v20453_v7  ;;  %v20414_v26 = vsub.f32 %v32733_v5, %v20338_v25  ;;  %20517 = vadd.xlane.f32.xlu0 %v20516_v62 }
 0xcbf   :  { %v32869_v8 = vpop.eup %28172  ;;  %v20455_v12 = vmul.f32 1.442695, %v20414_v26 }
 0xcc0   :  { %v20341_v49 = vpop.xlane.xlu1 %20340  ;;  %v20519_v1 = vsel %vm3435_vm3, %v32869_v8, 0.0 }
 0xcc1   :  { %28178 = vpow2.f32 %v20455_v12  ;;  %v20415_v55 = vsub.f32 %v32737_v46, %v20341_v49  ;;  %20520 = vadd.xlane.f32.xlu1 %v20519_v1 }
 0xcc3   :  { %v32874_v41 = vpop.eup %28174  ;;  %v20457_v50 = vmul.f32 1.442695, %v20415_v55 }
 0xcc4   :  { %v20344_v13 = vpop.xlane.xlu0 %20343  ;;  %v20522_v43 = vsel %vm3435_vm3, %v32874_v41, 0.0 }
 0xcc5   :  { %28180 = vpow2.f32 %v20457_v50  ;;  %v20416_v5 = vsub.f32 %v32741_v19, %v20344_v13  ;;  %20523 = vadd.xlane.f32.xlu0 %v20522_v43 }
 0xcc7   :  { %v32879_v38 = vpop.eup %28176  ;;  %v20459_v29 = vmul.f32 1.442695, %v20416_v5 }
 0xcc8   :  { %v20347_v59 = vpop.xlane.xlu1 %20346  ;;  %v20525_v60 = vsel %vm3435_vm3, %v32879_v38, 0.0 }
 0xcc9   :  { %28182 = vpow2.f32 %v20459_v29  ;;  %v20417_v46 = vsub.f32 %v32745_v42, %v20347_v59  ;;  %20526 = vadd.xlane.f32.xlu0 %v20525_v60 }
 0xccb   :  { %v32884_v23 = vpop.eup %28178  ;;  %v20461_v51 = vmul.f32 1.442695, %v20417_v46 }
 0xccc   :  { %v20350_v7 = vpop.xlane.xlu0 %20349  ;;  %v20528_v25 = vsel %vm3435_vm3, %v32884_v23, 0.0 }
 0xccd   :  { %28184 = vpow2.f32 %v20461_v51  ;;  %v20418_v19 = vsub.f32 %v32749_v15, %v20350_v7  ;;  %20529 = vadd.xlane.f32.xlu1 %v20528_v25 }
 0xccf   :  { %v32889_v62 = vpop.eup %28180  ;;  %v20463_v26 = vmul.f32 1.442695, %v20418_v19 }
 0xcd0   :  { %v20353_v12 = vpop.xlane.xlu1 %20352  ;;  %v20531_v49 = vsel %vm3435_vm3, %v32889_v62, 0.0 }
 0xcd1   :  { %28186 = vpow2.f32 %v20463_v26  ;;  %v20419_v42 = vsub.f32 %v32753_v58, %v20353_v12  ;;  %20532 = vadd.xlane.f32.xlu0 %v20531_v49 }
 0xcd3   :  { %v32894_v1 = vpop.eup %28182  ;;  %v20465_v55 = vmul.f32 1.442695, %v20419_v42 }
 0xcd4   :  { %v20356_v50 = vpop.xlane.xlu0 %20355  ;;  %v20534_v13 = vsel %vm3435_vm3, %v32894_v1, 0.0 }
 0xcd5   :  { %v20420_v15 = vsub.f32 %v32757_v27, %v20356_v50  ;;  %20535 = vadd.xlane.f32.xlu1 %v20534_v13  ;;  %28188 = vpow2.f32 %v20465_v55 }
 0xcd7   :  { %v32899_v43 = vpop.eup %28184  ;;  %v20467_v5 = vmul.f32 1.442695, %v20420_v15 }
 0xcd8   :  { %v20362_v29 = vpop.xlane.xlu0 %20361  ;;  %v20537_v59 = vsel %vm3435_vm3, %v32899_v43, 0.0 }
 0xcd9   :  { %28190 = vpow2.f32 %v20467_v5  ;;  %20538 = vadd.xlane.f32.xlu0 %v20537_v59  ;;  %v20422_v60 = vsub.f32 %v32761_v6, %v20362_v29 }
 0xcdb   :  { %v32903_v58 = vpop.eup %28186  ;;  %v19103_v46 = vpop.f32.mrb[226].mxu1  ;;  %v20471_v25 = vmul.f32 1.442695, %v20422_v60 }
 0xcdc   :  { %v32906_v51 = vmul.f32 0.125, %v19103_v46  ;;  %v27220_v7 = vpop.f32.mrb[227].mxu1  ;;  %v20540_v27 = vsel %vm3435_vm3, %v32903_v58, 0.0  ;;  %v20368_v26 = vpop.xlane.xlu0 %20367 }
 0xcdd   :  { %20541 = vadd.xlane.f32.xlu1 %v20540_v27  ;;  %28192 = vpow2.f32 %v20471_v25  ;;  %v20424_v6 = vsub.f32 %v32765_v21, %v20368_v26 }
 0xcde   :  { %v20357_v49 = vsel %vm3435_vm3, %v32906_v51, -inf }
 0xcdf   :  { %v19259_v19 = vpop.f32.mrb[228].mxu1  ;;  %v32912_v42 = vpop.eup %28188  ;;  %v20475_v59 = vmul.f32 1.442695, %v20424_v6 }
 0xce0   :  { %v27230_v12 = vpop.f32.mrb[229].mxu1  ;;  %v32917_v13 = vmul.f32 0.125, %v19259_v19  ;;  %v20543_v5 = vsel %vm3435_vm3, %v32912_v42, 0.0  ;;  %v20374_v46 = vpop.xlane.xlu0 %20373 }
 0xce1   :  { %20358 = vmax.xlane.f32.xlu1 %v20357_v49  ;;  %28194 = vpow2.f32 %v20475_v59  ;;  %v20426_v25 = vsub.f32 %v32769_v31, %v20374_v46 }
 0xce2   :  { %v20363_v21 = vsel %vm3435_vm3, %v32917_v13, -inf }
 0xce3   :  { %v32914_v55 = vpop.eup %28190  ;;  %v19415_v50 = vpop.f32.mrb[230].mxu1  ;;  %v20479_v6 = vmul.f32 1.442695, %v20426_v25 }
 0xce4   :  { %v27240_v15 = vpop.f32.mrb[231].mxu1  ;;  %v20546_v29 = vsel %vm3435_vm3, %v32914_v55, 0.0  ;;  %v32923_v7 = vmul.f32 0.125, %v19415_v50 }
 0xce5   :  { %20544 = vadd.xlane.f32.xlu1 %v20543_v5  ;;  %20547 = vadd.xlane.f32.xlu0 %v20546_v29  ;;  %28196 = vpow2.f32 %v20479_v6 }
 0xce6   :  { %v20369_v12 = vsel %vm3435_vm3, %v32923_v7, -inf }
 0xce7   :  { %v19571_v60 = vpop.f32.mrb[232].mxu1  ;;  %v32930_v49 = vpop.eup %28192 }
 0xce8   :  { %v27250_v27 = vpop.f32.mrb[233].mxu1  ;;  %v32932_v50 = vmul.f32 0.125, %v19571_v60  ;;  %v20380_v5 = vpop.xlane.xlu0 %20379 }
 0xce9   :  { %20364 = vmax.xlane.f32.xlu1 %v20363_v21  ;;  %v20552_v27 = vsel %vm3435_vm3, %v32930_v49, 0.0  ;;  %v20428_v31 = vsub.f32 %v32773_v2, %v20380_v5 }
 0xcea   :  { %v20375_v21 = vsel %vm3435_vm3, %v32932_v50, -inf }
 0xceb   :  { %v19727_v19 = vpop.f32.mrb[234].mxu1  ;;  %v20483_v25 = vmul.f32 1.442695, %v20428_v31 }
 0xcec   :  { %v27260_v26 = vpop.f32.mrb[235].mxu1 }
 0xced   :  { %20370 = vmax.xlane.f32.xlu1 %v20369_v12  ;;  %v32939_v26 = vpop.eup %28194  ;;  %v32941_v12 = vmul.f32 0.125, %v19727_v19  ;;  %28198 = vpow2.f32 %v20483_v25 }
 0xcee   :  { %v20558_v6 = vsel %vm3435_vm3, %v32939_v26, 0.0 }
 0xcef   :  { %v19883_v15 = vpop.f32.mrb[236].mxu1  ;;  %v20381_v19 = vsel %vm3435_vm3, %v32941_v12, -inf  ;;  %v32952_v31 = vpop.eup %28196 }
 0xcf0   :  { %v27270_v29 = vpop.f32.mrb[237].mxu1 }
 0xcf1   :  { %20553 = vadd.xlane.f32.xlu1 %v20552_v27  ;;  %v20386_v29 = vpop.xlane.xlu0 %20385 }
 0xcf2   :  { %v20430_v5 = vsub.f32 %v32781_v44, %v20386_v29 }
 0xcf3   :  { %v20039_v59 = vpop.f32.mrb[238].mxu1 }
 0xcf4   :  { %v27280_v46 = vpop.f32.mrb[239].mxu1 }
 0xcf5   :  { %20376 = vmax.xlane.f32.xlu1 %v20375_v21  ;;  %v20487_v46 = vmul.f32 1.442695, %v20430_v5  ;;  %v32955_v21 = vmul.f32 0.125, %v19883_v15 }
 0xcf7   :  { %v20195_v60 = vpop.f32.mrb[240].mxu1  ;;  %v20392_v27 = vpop.xlane.xlu0 %20391  ;;  %28200 = vpow2.f32 %v20487_v46  ;;  %v20387_v29 = vsel %vm3435_vm3, %v32955_v21, -inf }
 0xcf8   :  { %v32943_v54 = vmul.f32 0.125, %v20195_v60  ;;  %v27290_v32 = vpop.f32.mrb[241].mxu1 }
 0xcf9   :  { %20559 = vadd.xlane.f32.xlu1 %v20558_v6  ;;  %v20432_v32 = vsub.f32 %v32789_v3, %v20392_v27  ;;  %v20564_v6 = vsel %vm3435_vm3, %v32952_v31, 0.0  ;;  %v32964_v3 = vmul.f32 0.125, %v20039_v59 }
 0xcfa   :  { %v20399_v2 = vsel %vm3435_vm3, %v32943_v54, -inf }
 0xcfb   :  { %20400 = vmax.xlane.f32.xlu0 %v20399_v2  ;;  %v20491_v44 = vmul.f32 1.442695, %v20432_v32  ;;  %v32962_v2 = vpop.eup %28198  ;;  %v20393_v27 = vsel %vm3435_vm3, %v32964_v3, -inf  ;;  %v35005_v32 = vld [vmem:[#allocation51_spill] sm:$0xff] }
 0xcfc   :  { %v20570_v15 = vsel %vm3435_vm3, %v32962_v2, 0.0 }
 0xcfd   :  { %20382 = vmax.xlane.f32.xlu1 %v20381_v19  ;;  %28202 = vpow2.f32 %v20491_v44 }
 0xcff   :  { %v20398_v60 = vpop.xlane.xlu1 %20397 }
 0xd00   :  { %v20434_v25 = vsub.f32 %v32799_v57, %v20398_v60 }
 0xd01   :  { %20565 = vadd.xlane.f32.xlu1 %v20564_v6  ;;  %v32970_v19 = vpop.eup %28200  ;;  %v35006_v6 = vld [vmem:[#allocation55_spill] sm:$0xff] }
 0xd02   :  { %v20495_v5 = vmul.f32 1.442695, %v20434_v25  ;;  %v20576_v57 = vsel %vm3435_vm3, %v32970_v19, 0.0  ;;  %v35007_v25 = vld [vmem:[#allocation57_spill] sm:$0xff] }
 0xd04   :  { %28204 = vpow2.f32 %v20495_v5 }
 0xd05   :  { %20388 = vmax.xlane.f32.xlu1 %v20387_v29  ;;  %v35008_v29 = vld [vmem:[#allocation59_spill] sm:$0xff] }
 0xd07   :  { %v32974_v46 = vpop.eup %28202  ;;  %v32990_v5 = vpop.xlane.xlu1 %20403 }
 0xd08   :  { %v20582_v59 = vsel %vm3435_vm3, %v32974_v46, 0.0 }
 0xd09   :  { %20571 = vadd.xlane.f32.xlu1 %v20570_v15 }
 0xd0d   :  { %20394 = vmax.xlane.f32.xlu1 %v20393_v27 }
 0xd0e   :  { %v32980_v60 = vpop.eup %28204 }
 0xd0f   :  { %v20588_v44 = vsel %vm3435_vm3, %v32980_v60, 0.0 }
 0xd11   :  { %22485 = vrot.lane.b32.xlu0 %v35005_v32, %s28391_s23  ;;  %20577 = vadd.xlane.f32.xlu1 %v20576_v57 }
 0xd15   :  { %22637 = vrot.lane.b32.xlu0 %v35006_v6, %s28391_s23  ;;  %20583 = vadd.xlane.f32.xlu1 %v20582_v59 }
 0xd19   :  { %22713 = vrot.lane.b32.xlu0 %v35007_v25, %s28391_s23  ;;  %20589 = vadd.xlane.f32.xlu1 %v20588_v44 }
 0xd1d   :  { %22789 = vrot.lane.b32.xlu0 %v35008_v29, %s28391_s23 }
 0xd36   :  { %v20503_v15 = vpop.xlane.xlu1 %20502 }
 0xd37   :  { %28206 = vrcp.f32 %v20503_v15 }
 0xd3a   :  { %v20506_v27 = vpop.xlane.xlu0 %20505 }
 0xd3b   :  { %28208 = vrcp.f32 %v20506_v27 }
 0xd3e   :  { %v20509_v57 = vpop.xlane.xlu1 %20508 }
 0xd3f   :  { %28210 = vrcp.f32 %v20509_v57 }
 0xd41   :  { %v28207_v32 = vpop.eup %28206 }
 0xd42   :  { %v20512_v59 = vpop.xlane.xlu0 %20511  ;;  %v20629_v6 = vmul.f32 %v28207_v32, %v32839_v14 }
 0xd43   :  { %28212 = vrcp.f32 %v20512_v59 }
 0xd44   :  { %27299 = vmatmul.mubr.msk.f32.vlgmr.msra.gmra.mrb[242].mxu1 %vm3435_vm3, %v20629_v6 }
 0xd45   :  { %v28209_v25 = vpop.eup %28208  ;;  %27307 = vmatpush3.msra.mxu1 %v32779_v16  ;;  %27308 = vmatprep.mubr.msk.f32.mxu1 %vm28385_vm1, %v34649_v40 }
 0xd46   :  { %v20630_v44 = vmul.f32 %v28209_v25, %v32844_v20  ;;  %v20515_v29 = vpop.xlane.xlu1 %20514  ;;  %27316 = vmatprep.subr.mxu1 %v34649_v40 }
 0xd47   :  { %28214 = vrcp.f32 %v20515_v29 }
 0xd48   :  { %27304 = vmatmul.mubr.msk.f32.vlgmr.msra.gmra.mrb[58].mxu0 %vm3435_vm3, %v20630_v44 }
 0xd49   :  { %v28211_v15 = vpop.eup %28210  ;;  %27312 = vmatpush3.msra.mxu0 %v32777_v30  ;;  %27313 = vmatprep.mubr.msk.f32.mxu0 %vm28385_vm1, %v34649_v40 }
 0xd4a   :  { %v20518_v14 = vpop.xlane.xlu0 %20517  ;;  %v20631_v16 = vmul.f32 %v28211_v15, %v32849_v35  ;;  %27321 = vmatprep.subr.mxu0 %v34649_v40 }
 0xd4b   :  { %28216 = vrcp.f32 %v20518_v14 }
 0xd4c   :  { %27309 = vmatmul.mubr.msk.f32.vlgmr.msra.gmra.mrb[244].mxu1 %vm3435_vm3, %v20631_v16 }
 0xd4d   :  { %v28213_v20 = vpop.eup %28212  ;;  %27317 = vmatpush3.msra.mxu1 %v32787_v52  ;;  %27318 = vmatprep.mubr.msk.f32.mxu1 %vm28385_vm1, %v34649_v40 }
 0xd4e   :  { %v20632_v27 = vmul.f32 %v28213_v20, %v32854_v10  ;;  %v20521_v30 = vpop.xlane.xlu1 %20520  ;;  %27326 = vmatprep.subr.mxu1 %v34649_v40 }
 0xd4f   :  { %28218 = vrcp.f32 %v20521_v30 }
 0xd50   :  { %27314 = vmatmul.mubr.msk.f32.vlgmr.msra.gmra.mrb[60].mxu0 %vm3435_vm3, %v20632_v27 }
 0xd51   :  { %v28215_v35 = vpop.eup %28214  ;;  %27322 = vmatpush3.msra.mxu0 %v32785_v4  ;;  %27323 = vmatprep.mubr.msk.f32.mxu0 %vm28385_vm1, %v34649_v40 }
 0xd52   :  { %v20524_v57 = vpop.xlane.xlu0 %20523  ;;  %v20633_v52 = vmul.f32 %v28215_v35, %v32859_v9  ;;  %27331 = vmatprep.subr.mxu0 %v34649_v40 }
 0xd53   :  { %28220 = vrcp.f32 %v20524_v57 }
 0xd54   :  { %27319 = vmatmul.mubr.msk.f32.vlgmr.msra.gmra.mrb[246].mxu1 %vm3435_vm3, %v20633_v52 }
 0xd55   :  { %v28217_v10 = vpop.eup %28216  ;;  %27327 = vmatpush3.msra.mxu1 %v32791_v45  ;;  %27328 = vmatprep.mubr.msk.f32.mxu1 %vm28385_vm1, %v34649_v40 }
 0xd56   :  { %v20634_v32 = vmul.f32 %v28217_v10, %v32864_v39  ;;  %v20527_v4 = vpop.xlane.xlu0 %20526  ;;  %27336 = vmatprep.subr.mxu1 %v34649_v40 }
 0xd57   :  { %28222 = vrcp.f32 %v20527_v4 }
 0xd58   :  { %27324 = vmatmul.mubr.msk.f32.vlgmr.msra.gmra.mrb[62].mxu0 %vm3435_vm3, %v20634_v32 }
 0xd59   :  { %v28219_v9 = vpop.eup %28218  ;;  %27332 = vmatpush3.msra.mxu0 %v32795_v47  ;;  %27333 = vmatprep.mubr.msk.f32.mxu0 %vm28385_vm1, %v34649_v40 }
 0xd5a   :  { %v20530_v59 = vpop.xlane.xlu1 %20529  ;;  %v20635_v45 = vmul.f32 %v28219_v9, %v32869_v8  ;;  %27341 = vmatprep.subr.mxu0 %v34649_v40 }
 0xd5b   :  { %28224 = vrcp.f32 %v20530_v59 }
 0xd5c   :  { %27329 = vmatmul.mubr.msk.f32.vlgmr.msra.gmra.mrb[248].mxu1 %vm3435_vm3, %v20635_v45 }
 0xd5d   :  { %v28221_v39 = vpop.eup %28220  ;;  %27337 = vmatpush3.msra.mxu1 %v32797_v61  ;;  %27338 = vmatprep.mubr.msk.f32.mxu1 %vm28385_vm1, %v34649_v40 }
 0xd5e   :  { %v20636_v6 = vmul.f32 %v28221_v39, %v32874_v41  ;;  %v20533_v47 = vpop.xlane.xlu0 %20532  ;;  %27346 = vmatprep.subr.mxu1 %v34649_v40 }
 0xd5f   :  { %28226 = vrcp.f32 %v20533_v47 }
 0xd60   :  { %27334 = vmatmul.mubr.msk.f32.vlgmr.msra.gmra.mrb[64].mxu0 %vm3435_vm3, %v20636_v6 }
 0xd61   :  { %v28223_v8 = vpop.eup %28222  ;;  %27342 = vmatpush3.msra.mxu0 %v32805_v24  ;;  %27343 = vmatprep.mubr.msk.f32.mxu0 %vm28385_vm1, %v34649_v40 }
 0xd62   :  { %v20536_v25 = vpop.xlane.xlu1 %20535  ;;  %v20637_v61 = vmul.f32 %v28223_v8, %v32879_v38  ;;  %27351 = vmatprep.subr.mxu0 %v34649_v40 }
 0xd63   :  { %28228 = vrcp.f32 %v20536_v25 }
 0xd64   :  { %27339 = vmatmul.mubr.msk.f32.vlgmr.msra.gmra.mrb[250].mxu1 %vm3435_vm3, %v20637_v61  ;;  %v35009_v61 = vld [vmem:[#allocation49_spill] sm:$0xff] }
 0xd65   :  { %v28225_v41 = vpop.eup %28224  ;;  %27347 = vmatpush3.msra.mxu1 %v32801_v17  ;;  %27348 = vmatprep.mubr.msk.f32.mxu1 %vm28385_vm1, %v34649_v40 }
 0xd66   :  { %v20638_v44 = vmul.f32 %v28225_v41, %v32884_v23  ;;  %v20539_v24 = vpop.xlane.xlu0 %20538  ;;  %27356 = vmatprep.subr.mxu1 %v34649_v40 }
 0xd67   :  { %28230 = vrcp.f32 %v20539_v24 }
 0xd68   :  { %27344 = vmatmul.mubr.msk.f32.vlgmr.msra.gmra.mrb[66].mxu0 %vm3435_vm3, %v20638_v44 }
 0xd69   :  { %v28227_v38 = vpop.eup %28226  ;;  %27352 = vmatpush3.msra.mxu0 %v32813_v11  ;;  %27353 = vmatprep.mubr.msk.f32.mxu0 %vm28385_vm1, %v34649_v40 }
 0xd6a   :  { %v20542_v29 = vpop.xlane.xlu1 %20541  ;;  %v20639_v17 = vmul.f32 %v28227_v38, %v32889_v62  ;;  %27361 = vmatprep.subr.mxu0 %v34649_v40 }
 0xd6b   :  { %28232 = vrcp.f32 %v20542_v29 }
 0xd6c   :  { %27349 = vmatmul.mubr.msk.f32.vlgmr.msra.gmra.mrb[252].mxu1 %vm3435_vm3, %v20639_v17 }
 0xd6d   :  { %v28229_v23 = vpop.eup %28228  ;;  %27357 = vmatpush3.msra.mxu1 %v32807_v63  ;;  %27358 = vmatprep.mubr.msk.f32.mxu1 %vm28385_vm1, %v34649_v40 }
 0xd6e   :  { %v20640_v15 = vmul.f32 %v28229_v23, %v32894_v1  ;;  %v20359_v11 = vpop.xlane.xlu1 %20358  ;;  %27366 = vmatprep.subr.mxu1 %v34649_v40 }
 0xd6f   :  { %v20421_v14 = vsub.f32 %v32906_v51, %v20359_v11 }
 0xd70   :  { %27354 = vmatmul.mubr.msk.f32.vlgmr.msra.gmra.mrb[68].mxu0 %vm3435_vm3, %v20640_v15 }
 0xd71   :  { %v28231_v62 = vpop.eup %28230  ;;  %v20469_v16 = vmul.f32 1.442695, %v20421_v14  ;;  %27362 = vmatpush3.msra.mxu0 %v32817_v53  ;;  %27363 = vmatprep.mubr.msk.f32.mxu0 %vm28385_vm1, %v34649_v40 }
 0xd72   :  { %v20641_v63 = vmul.f32 %v28231_v62, %v32899_v43  ;;  %v20545_v20 = vpop.xlane.xlu1 %20544  ;;  %v20548_v27 = vpop.xlane.xlu0 %20547  ;;  %27371 = vmatprep.subr.mxu0 %v34649_v40 }
 0xd73   :  { %28234 = vpow2.f32 %v20469_v16 }
 0xd74   :  { %28236 = vrcp.f32 %v20545_v20  ;;  %27359 = vmatmul.mubr.msk.f32.vlgmr.msra.gmra.mrb[254].mxu1 %vm3435_vm3, %v20641_v63  ;;  %v35011_v20 = vld [vmem:[#allocation53_spill] sm:$0xff] }
 0xd75   :  { %v28233_v1 = vpop.eup %28232  ;;  %28238 = vrcp.f32 %v20548_v27  ;;  %27367 = vmatpush3.msra.mxu1 %v32815_v36  ;;  %27368 = vmatprep.mubr.msk.f32.mxu1 %vm28385_vm1, %v34649_v40 }
 0xd76   :  { %v20642_v53 = vmul.f32 %v28233_v1, %v32903_v58  ;;  %v20365_v51 = vpop.xlane.xlu1 %20364  ;;  %27376 = vmatprep.subr.mxu1 %v34649_v40 }
 0xd77   :  { %v20423_v43 = vsub.f32 %v32917_v13, %v20365_v51 }
 0xd78   :  { %27364 = vmatmul.mubr.msk.f32.vlgmr.msra.gmra.mrb[70].mxu0 %vm3435_vm3, %v20642_v53 }
 0xd79   :  { %v20473_v30 = vmul.f32 1.442695, %v20423_v43  ;;  %27372 = vmatpush3.msra.mxu0 %v32821_v34  ;;  %27373 = vmatprep.mubr.msk.f32.mxu0 %vm28385_vm1, %v34649_v40 }
 0xd7a   :  { %v20371_v35 = vpop.xlane.xlu1 %20370  ;;  %27381 = vmatprep.subr.mxu0 %v34649_v40 }
 0xd7b   :  { %28240 = vpow2.f32 %v20473_v30  ;;  %v20425_v36 = vsub.f32 %v32923_v7, %v20371_v35 }
 0xd7d   :  { %v33079_v58 = vpop.eup %28234  ;;  %v20477_v57 = vmul.f32 1.442695, %v20425_v36 }
 0xd7e   :  { %v28237_v52 = vpop.eup %28236  ;;  %v20554_v10 = vpop.xlane.xlu1 %20553  ;;  %v20549_v13 = vsel %vm3435_vm3, %v33079_v58, 0.0 }
 0xd7f   :  { %v28239_v32 = vpop.eup %28238  ;;  %v20643_v34 = vmul.f32 %v28237_v52, %v32912_v42  ;;  %28242 = vpow2.f32 %v20477_v57  ;;  %20550 = vadd.xlane.f32.xlu1 %v20549_v13 }
 0xd80   :  { %v20644_v4 = vmul.f32 %v28239_v32, %v32914_v55  ;;  %28244 = vrcp.f32 %v20554_v10 }
 0xd81   :  { %27369 = vmatmul.mubr.msk.f32.vlgmr.msra.gmra.mrb[0].mxu1 %vm3435_vm3, %v20643_v34 }
 0xd82   :  { %27374 = vmatmul.mubr.msk.f32.vlgmr.msra.gmra.mrb[72].mxu0 %vm3435_vm3, %v20644_v4  ;;  %27377 = vmatpush3.msra.mxu1 %v32819_v33  ;;  %v20377_v7 = vpop.xlane.xlu1 %20376 }
 0xd83   :  { %27382 = vmatpush3.msra.mxu0 %v32825_v56  ;;  %v20427_v9 = vsub.f32 %v32932_v50, %v20377_v7  ;;  %27383 = vmatprep.mubr.msk.f32.mxu0 %vm28385_vm1, %v34649_v40 }
 0xd84   :  { %27391 = vmatprep.subr.mxu0 %v34649_v40  ;;  %27378 = vmatprep.mubr.msk.f32.mxu1 %vm28385_vm1, %v34649_v40 }
 0xd85   :  { %v33095_v42 = vpop.eup %28240  ;;  %v20481_v55 = vmul.f32 1.442695, %v20427_v9  ;;  %27386 = vmatprep.subr.mxu1 %v34649_v40 }
 0xd86   :  { %v20560_v59 = vpop.xlane.xlu1 %20559  ;;  %v20555_v33 = vsel %vm3435_vm3, %v33095_v42, 0.0 }
 0xd87   :  { %28246 = vpow2.f32 %v20481_v55  ;;  %20556 = vadd.xlane.f32.xlu0 %v20555_v33 }
 0xd88   :  { %28248 = vrcp.f32 %v20560_v59  ;;  %v20401_v63 = vpop.xlane.xlu0 %20400 }
 0xd89   :  { %v33100_v56 = vpop.eup %28242  ;;  %v20435_v27 = vsub.f32 %v32943_v54, %v20401_v63 }
 0xd8a   :  { %v28245_v50 = vpop.eup %28244  ;;  %v20383_v45 = vpop.xlane.xlu1 %20382  ;;  %v20561_v39 = vsel %vm3435_vm3, %v33100_v56, 0.0 }
 0xd8b   :  { %v20646_v6 = vmul.f32 %v28245_v50, %v32930_v49  ;;  %v20429_v47 = vsub.f32 %v32941_v12, %v20383_v45  ;;  %20562 = vadd.xlane.f32.xlu0 %v20561_v39  ;;  %v20497_v53 = vmul.f32 1.442695, %v20435_v27 }
 0xd8d   :  { %v20485_v8 = vmul.f32 1.442695, %v20429_v47  ;;  %27384 = vmatmul.mubr.msk.f32.vlgmr.msra.gmra.mrb[74].mxu0 %vm3435_vm3, %v20646_v6 }
 0xd8e   :  { %27392 = vmatpush3.msra.mxu0 %v32829_v37  ;;  %v20566_v25 = vpop.xlane.xlu1 %20565  ;;  %27393 = vmatprep.mubr.msk.f32.mxu0 %vm28385_vm1, %v34649_v40 }
 0xd8f   :  { %28250 = vpow2.f32 %v20485_v8  ;;  %27401 = vmatprep.subr.mxu0 %v34649_v40 }
 0xd90   :  { %28252 = vrcp.f32 %v20566_v25  ;;  %22409 = vrot.lane.b32.xlu1 %v35009_v61, %s28391_s23 }
 0xd91   :  { %v33113_v49 = vpop.eup %28246 }
 0xd92   :  { %v28249_v12 = vpop.eup %28248  ;;  %v20389_v41 = vpop.xlane.xlu1 %20388  ;;  %v20567_v44 = vsel %vm3435_vm3, %v33113_v49, 0.0 }
 0xd93   :  { %v20648_v37 = vmul.f32 %v28249_v12, %v32939_v26  ;;  %v20431_v24 = vsub.f32 %v32955_v21, %v20389_v41  ;;  %20568 = vadd.xlane.f32.xlu0 %v20567_v44 }
 0xd95   :  { %v20489_v38 = vmul.f32 1.442695, %v20431_v24  ;;  %27394 = vmatmul.mubr.msk.f32.vlgmr.msra.gmra.mrb[76].mxu0 %vm3435_vm3, %v20648_v37 }
 0xd96   :  { %27402 = vmatpush3.msra.mxu0 %v32833_v0  ;;  %27403 = vmatprep.mubr.msk.f32.mxu0 %vm28385_vm1, %v34649_v40  ;;  %v20436_v0 = vsub.f32 %v32809_v28, %v32990_v5  ;;  %v20572_v62 = vpop.xlane.xlu1 %20571  ;;  %v35010_v28 = vld [vmem:[#allocation61_spill] sm:$0xff] }
 0xd97   :  { %28254 = vpow2.f32 %v20489_v38  ;;  %27411 = vmatprep.subr.mxu0 %v34649_v40 }
 0xd98   :  { %v20499_v15 = vmul.f32 1.442695, %v20436_v0 }
 0xd99   :  { %v33124_v29 = vpop.eup %28250 }
 0xd9a   :  { %v28253_v17 = vpop.eup %28252  ;;  %v20573_v26 = vsel %vm3435_vm3, %v33124_v29, 0.0  ;;  %28256 = vpow2.f32 %v20499_v15  ;;  %v20395_v5 = vpop.xlane.xlu1 %20394 }
 0xd9b   :  { %v20650_v21 = vmul.f32 %v28253_v17, %v32952_v31  ;;  %20574 = vadd.xlane.f32.xlu0 %v20573_v26  ;;  %v20433_v16 = vsub.f32 %v32964_v3, %v20395_v5 }
 0xd9d   :  { %27404 = vmatmul.mubr.msk.f32.vlgmr.msra.gmra.mrb[78].mxu0 %vm3435_vm3, %v20650_v21  ;;  %v20493_v1 = vmul.f32 1.442695, %v20433_v16 }
 0xd9e   :  { %27413 = vmatprep.mubr.msk.f32.mxu0 %vm28385_vm1, %v34649_v40  ;;  %v33160_v54 = vpop.xlane.xlu1 %20577 }
 0xd9f   :  { %28258 = vpow2.f32 %v20493_v1 }
 0xda0   :  { %28260 = vpow2.f32 %v20497_v53 }
 0xda1   :  { %v33134_v23 = vpop.eup %28254  ;;  %28262 = vrcp.f32 %v20572_v62 }
 0xda2   :  { %v20579_v11 = vsel %vm3435_vm3, %v33134_v23, 0.0  ;;  %v33162_v35 = vpop.xlane.xlu1 %20583 }
 0xda3   :  { %20580 = vadd.xlane.f32.xlu0 %v20579_v11 }
 0xda4   :  { %v33138_v14 = vpop.eup %28256 }
 0xda5   :  { %v20594_v31 = vsel %vm3435_vm3, %v33138_v14, 0.0 }
 0xda6   :  { %v33166_v57 = vpop.xlane.xlu1 %20589 }
 0xda9   :  { %v33150_v51 = vpop.eup %28258 }
 0xdaa   :  { %v20585_v43 = vsel %vm3435_vm3, %v33150_v51, 0.0  ;;  %v33154_v30 = vpop.eup %28260 }
 0xdab   :  { %v20591_v3 = vsel %vm3435_vm3, %v33154_v30, 0.0  ;;  %v28263_v13 = vpop.eup %28262 }
 0xdac   :  { %v20652_v32 = vmul.f32 %v28263_v13, %v32962_v2 }
 0xdb4   :  { %20595 = vadd.xlane.f32.xlu1 %v20594_v31 }
 0xdb9   :  { %22865 = vrot.lane.b32.xlu0 %v35010_v28, %s28391_s23 }
 0xdc5   :  { %22561 = vrot.lane.b32.xlu1 %v35011_v20, %s28391_s23 }
 0xdc9   :  { %23017 = vrot.lane.b32.xlu1 %v34936_v22, %s28391_s23  ;;  %v22486_v22 = vpop.permute.xlu0 %22485 }
 0xdcd   :  { %v33164_v36 = vpop.permute.xlu0 %22637 }
 0xdd1   :  { %v33168_v52 = vpop.permute.xlu0 %22713 }
 0xdd5   :  { %v33171_v34 = vpop.permute.xlu0 %22789 }
 0xdd8   :  { %20586 = vadd.xlane.f32.xlu0 %v20585_v43 }
 0xddc   :  { %20592 = vadd.xlane.f32.xlu0 %v20591_v3 }
 0xdf2   :  { %22941 = vrot.lane.b32.xlu0 %v34939_v18, %s28391_s23 }
 0xe0c   :  { %v20551_v10 = vpop.xlane.xlu1 %20550 }
 0xe0d   :  { %28264 = vrcp.f32 %v20551_v10 }
 0xe10   :  { %v22410_v18 = vpop.permute.xlu1 %22409 }
 0xe11   :  { %27412 = vmatpush3.msra.mxu0 %v22410_v18 }
 0xe12   :  { %27414 = vmatmul.mubr.msk.f32.vlgmr.msra.gmra.mrb[80].mxu0 %vm3435_vm3, %v20652_v32  ;;  %27421 = vmatprep.subr.mxu0 %v34649_v40 }
 0xe13   :  { %27423 = vmatprep.mubr.msk.f32.mxu0 %vm28385_vm1, %v34649_v40 }
 0xe14   :  { %v20557_v4 = vpop.xlane.xlu0 %20556 }
 0xe15   :  { %28266 = vrcp.f32 %v20557_v4 }
 0xe17   :  { %v28265_v7 = vpop.eup %28264  ;;  %v33177_v9 = vpop.f32.mrb[242].mxu1 }
 0xe18   :  { %v20645_v55 = vmul.f32 %v28265_v7, %v33079_v58  ;;  %v27300_v59 = vpop.f32.mrb[243].mxu1  ;;  %v20563_v2 = vpop.xlane.xlu0 %20562 }
 0xe19   :  { %28268 = vrcp.f32 %v20563_v2 }
 0xe1a   :  { %27379 = vmatmul.mubr.msk.f32.vlgmr.msra.gmra.mrb[2].mxu1 %vm3435_vm3, %v20645_v55 }
 0xe1b   :  { %27387 = vmatpush3.msra.mxu1 %v32823_v48  ;;  %v33182_v33 = vpop.f32.mrb[58].mxu0  ;;  %27388 = vmatprep.mubr.msk.f32.mxu1 %vm28385_vm1, %v34649_v40  ;;  %v35012_v48 = vld [vmem:[#allocation129_spill] sm:$0xff] }
 0xe1c   :  { %v27305_v50 = vpop.f32.mrb[59].mxu0  ;;  %27396 = vmatprep.subr.mxu1 %v34649_v40 }
 0xe1f   :  { %v28267_v45 = vpop.eup %28266  ;;  %v33187_v39 = vpop.f32.mrb[244].mxu1 }
 0xe20   :  { %v20647_v58 = vmul.f32 %v28267_v45, %v33095_v42  ;;  %v27310_v6 = vpop.f32.mrb[245].mxu1  ;;  %v20569_v47 = vpop.xlane.xlu0 %20568  ;;  %v35013_v42 = vld [vmem:[#allocation110_spill] sm:$0xff] }
 0xe21   :  { %28270 = vrcp.f32 %v20569_v47  ;;  %v23094_v47 = vld [vmem:[%s34383_s4 + $0x38] sm:$0xff] }
 0xe22   :  { %27389 = vmatmul.mubr.msk.f32.vlgmr.msra.gmra.mrb[4].mxu1 %vm3435_vm3, %v20647_v58 }
 0xe23   :  { %v28269_v8 = vpop.eup %28268  ;;  %27397 = vmatpush3.msra.mxu1 %v35012_v48  ;;  %v33192_v25 = vpop.f32.mrb[60].mxu0  ;;  %27398 = vmatprep.mubr.msk.f32.mxu1 %vm28385_vm1, %v34649_v40 }
 0xe24   :  { %v20649_v61 = vmul.f32 %v28269_v8, %v33100_v56  ;;  %v27315_v12 = vpop.f32.mrb[61].mxu0  ;;  %27406 = vmatprep.subr.mxu1 %v34649_v40 }
 0xe26   :  { %27399 = vmatmul.mubr.msk.f32.vlgmr.msra.gmra.mrb[6].mxu1 %vm3435_vm3, %v20649_v61 }
 0xe27   :  { %27407 = vmatpush3.msra.mxu1 %v35013_v42  ;;  %v33200_v41 = vpop.f32.mrb[246].mxu1  ;;  %27408 = vmatprep.mubr.msk.f32.mxu1 %vm28385_vm1, %v34649_v40 }
 0xe28   :  { %v27320_v44 = vpop.f32.mrb[247].mxu1  ;;  %v20575_v37 = vpop.xlane.xlu0 %20574  ;;  %27416 = vmatprep.subr.mxu1 %v34649_v40 }
 0xe29   :  { %28272 = vrcp.f32 %v20575_v37 }
 0xe2b   :  { %v28271_v24 = vpop.eup %28270  ;;  %v33205_v38 = vpop.f32.mrb[62].mxu0 }
 0xe2c   :  { %v20651_v56 = vmul.f32 %v28271_v24, %v33113_v49  ;;  %v27325_v17 = vpop.f32.mrb[63].mxu0 }
 0xe2e   :  { %27409 = vmatmul.mubr.msk.f32.vlgmr.msra.gmra.mrb[8].mxu1 %vm3435_vm3, %v20651_v56 }
 0xe2f   :  { %27417 = vmatpush3.msra.mxu1 %v22486_v22  ;;  %v33209_v26 = vpop.f32.mrb[248].mxu1  ;;  %27418 = vmatprep.mubr.msk.f32.mxu1 %vm28385_vm1, %v34649_v40 }
 0xe30   :  { %v27330_v21 = vpop.f32.mrb[249].mxu1  ;;  %v20581_v0 = vpop.xlane.xlu0 %20580  ;;  %27426 = vmatprep.subr.mxu1 %v34649_v40 }
 0xe31   :  { %28274 = vrcp.f32 %v20581_v0 }
 0xe32   :  { %28276 = vrcp.f32 %v33160_v54 }
 0xe33   :  { %v28273_v15 = vpop.eup %28272  ;;  %v33214_v11 = vpop.f32.mrb[64].mxu0  ;;  %28278 = vrcp.f32 %v33162_v35 }
 0xe34   :  { %v20653_v31 = vmul.f32 %v28273_v15, %v33124_v29  ;;  %v27335_v49 = vpop.f32.mrb[65].mxu0  ;;  %28280 = vrcp.f32 %v33166_v57  ;;  %v22866_v10 = vpop.permute.xlu0 %22865 }
 0xe36   :  { %27419 = vmatmul.mubr.msk.f32.vlgmr.msra.gmra.mrb[10].mxu1 %vm3435_vm3, %v20653_v31 }
 0xe37   :  { %27427 = vmatpush3.msra.mxu1 %v33164_v36  ;;  %v33219_v62 = vpop.f32.mrb[250].mxu1  ;;  %27428 = vmatprep.mubr.msk.f32.mxu1 %vm28385_vm1, %v34649_v40 }
 0xe38   :  { %v27340_v28 = vpop.f32.mrb[251].mxu1  ;;  %27436 = vmatprep.subr.mxu1 %v34649_v40 }
 0xe3b   :  { %v28275_v5 = vpop.eup %28274  ;;  %v33225_v16 = vpop.f32.mrb[66].mxu0 }
 0xe3c   :  { %v20655_v29 = vmul.f32 %v28275_v5, %v33134_v23  ;;  %v27345_v63 = vpop.f32.mrb[67].mxu0  ;;  %v28277_v53 = vpop.eup %28276 }
 0xe3d   :  { %v20654_v3 = vmul.f32 %v28277_v53, %v32970_v19  ;;  %v28279_v22 = vpop.eup %28278 }
 0xe3e   :  { %27429 = vmatmul.mubr.msk.f32.vlgmr.msra.gmra.mrb[12].mxu1 %vm3435_vm3, %v20655_v29  ;;  %v20656_v57 = vmul.f32 %v28279_v22, %v32974_v46  ;;  %v28281_v19 = vpop.eup %28280  ;;  %v35015_v22 = vld [vmem:[#allocation122_spill] sm:$0xff] }
 0xe3f   :  { %27437 = vmatpush3.msra.mxu1 %v33171_v34  ;;  %v33231_v20 = vpop.f32.mrb[252].mxu1  ;;  %27438 = vmatprep.mubr.msk.f32.mxu1 %vm28385_vm1, %v34649_v40  ;;  %v20658_v34 = vmul.f32 %v28281_v19, %v32980_v60  ;;  %v28353_v19 = vld [vmem:[%s34379_s0] sm:$0xff] }
 0xe40   :  { %v27350_v27 = vpop.f32.mrb[253].mxu1  ;;  %27446 = vmatprep.subr.mxu1 %v34649_v40 }
 0xe41   :  { %v20596_v1 = vpop.xlane.xlu1 %20595 }
 0xe42   :  { %28282 = vrcp.f32 %v20596_v1 }
 0xe43   :  { %v33237_v43 = vpop.f32.mrb[68].mxu0 }
 0xe44   :  { %v27355_v23 = vpop.f32.mrb[69].mxu0 }
 0xe45   :  { %v22562_v54 = vpop.permute.xlu1 %22561 }
 0xe46   :  { %27422 = vmatpush3.msra.mxu0 %v22562_v54  ;;  %v33321_v54 = vld [vmem:[%s34384_s5] ss:$0 sm:$0xff] }
 0xe47   :  { %v33240_v35 = vpop.f32.mrb[254].mxu1  ;;  %27424 = vmatmul.mubr.msk.f32.vlgmr.msra.gmra.mrb[82].mxu0 %vm3435_vm3, %v20654_v3  ;;  %27431 = vmatprep.subr.mxu0 %v34649_v40 }
 0xe48   :  { %v27360_v36 = vpop.f32.mrb[255].mxu1  ;;  %27432 = vmatpush3.msra.mxu0 %v33168_v52  ;;  %27433 = vmatprep.mubr.msk.f32.mxu0 %vm28385_vm1, %v34649_v40 }
 0xe49   :  { %27441 = vmatprep.subr.mxu0 %v34649_v40  ;;  %v23018_v18 = vpop.permute.xlu1 %23017  ;;  %v28352_v36 = vld [vmem:[%s34379_s0 + $0x8] sm:$0xff] }
 0xe4b   :  { %v21721_v13 = vpop.f32.mrb[70].mxu0  ;;  %27434 = vmatmul.mubr.msk.f32.vlgmr.msra.gmra.mrb[84].mxu0 %vm3435_vm3, %v20656_v57 }
 0xe4c   :  { %27442 = vmatpush3.msra.mxu0 %v22866_v10  ;;  %v27365_v32 = vpop.f32.mrb[71].mxu0  ;;  %27443 = vmatprep.mubr.msk.f32.mxu0 %vm28385_vm1, %v34649_v40  ;;  %v28283_v52 = vpop.eup %28282 }
 0xe4d   :  { %27451 = vmatprep.subr.mxu0 %v34649_v40  ;;  %v20660_v46 = vmul.f32 %v28283_v52, %v33138_v14  ;;  %v23093_v14 = vld [vmem:[%s34383_s4 + $0x30] sm:$0xff] }
 0xe4e   :  { %v27536_v42 = vpack.c.bf16 %v23094_v47, %v23093_v14 }
 0xe4f   :  { %27444 = vmatmul.mubr.msk.f32.vlgmr.msra.gmra.mrb[86].mxu0 %vm3435_vm3, %v20658_v34  ;;  %v35016_v34 = vld [vmem:[#allocation106_spill] sm:$0xff] }
 0xe50   :  { %27452 = vmatpush3.msra.mxu0 %v23018_v18  ;;  %27453 = vmatprep.mubr.msk.f32.mxu0 %vm28385_vm1, %v34649_v40 }
 0xe53   :  { %27454 = vmatmul.mubr.msk.f32.vlgmr.msra.gmra.mrb[88].mxu0 %vm3435_vm3, %v20660_v46 }
 0xe54   :  { %v21797_v4 = vpop.f32.mrb[0].mxu1  ;;  %24201 = vmatprep.mubr.f32.mxu0 %v34649_v40 }
 0xe55   :  { %v21873_v7 = vpop.f32.mrb[72].mxu0  ;;  %v27370_v55 = vpop.f32.mrb[1].mxu1 }
 0xe56   :  { %v27375_v60 = vpop.f32.mrb[73].mxu0 }
 0xe57   :  { %v28354_v60 = vld [vmem:[%s34379_s0 + $0x18] sm:$0xff] }
 0xe60   :  { %v22025_v59 = vpop.f32.mrb[74].mxu0 }
 0xe61   :  { %v27385_v2 = vpop.f32.mrb[75].mxu0 }
 0xe62   :  { %v28355_v2 = vld [vmem:[%s34379_s0 + $0x10] sm:$0xff] }
 0xe65   :  { %v20587_v50 = vpop.xlane.xlu0 %20586 }
 0xe66   :  { %28284 = vrcp.f32 %v20587_v50 }
 0xe68   :  { %v22177_v45 = vpop.f32.mrb[76].mxu0 }
 0xe69   :  { %v27395_v58 = vpop.f32.mrb[77].mxu0  ;;  %v20593_v6 = vpop.xlane.xlu0 %20592 }
 0xe6a   :  { %28286 = vrcp.f32 %v20593_v6  ;;  %v35018_v6 = vld [vmem:[#allocation108_spill] sm:$0xff] }
 0xe6d   :  { %v22942_v44 = vpop.permute.xlu0 %22941 }
 0xe70   :  { %v28285_v8 = vpop.eup %28284  ;;  %v22329_v48 = vpop.f32.mrb[78].mxu0 }
 0xe71   :  { %v20657_v61 = vmul.f32 %v28285_v8, %v33150_v51  ;;  %v27405_v12 = vpop.f32.mrb[79].mxu0 }
 0xe73   :  { %27439 = vmatmul.mubr.msk.f32.vlgmr.msra.gmra.mrb[14].mxu1 %vm3435_vm3, %v20657_v61 }
 0xe74   :  { %v28287_v37 = vpop.eup %28286  ;;  %27447 = vmatpush3.msra.mxu1 %v22942_v44  ;;  %27448 = vmatprep.mubr.msk.f32.mxu1 %vm28385_vm1, %v34649_v40 }
 0xe75   :  { %v20659_v24 = vmul.f32 %v28287_v37, %v33154_v30  ;;  %27537 = vmatprep.subr.bf16.mxu1 %v27536_v42  ;;  %v28357_v37 = vld [vmem:[%s34379_s0 + $0x20] sm:$0xff] }
 0xe77   :  { %27449 = vmatmul.mubr.msk.f32.vlgmr.msra.gmra.mrb[16].mxu1 %vm3435_vm3, %v20659_v24 }
 0xe78   :  { %27539 = vmatpush3.bf16.msra.mxu1 %v27536_v42  ;;  %27460 = vmatprep.mubr.msk.f32.mxu1 %vm941_vm2, %v33177_v9  ;;  %v28356_v42 = vld [vmem:[%s34379_s0 + $0x28] sm:$0xff] }
 0xe7b   :  { %27461 = vmatmul.mubr.msk.f32.vlgmr.msra.gmra.mrb[182].mxu1 %vm941_vm2, %v33182_v33 }
 0xe7c   :  { %27463 = vmatprep.mubr.msk.f32.mxu1 %vm941_vm2, %v33187_v39 }
 0xe7f   :  { %27464 = vmatmul.mubr.msk.f32.gmra.mrb[184].mxu1 %vm941_vm2, %v33192_v25 }
 0xe80   :  { %27466 = vmatprep.mubr.msk.f32.mxu1 %vm941_vm2, %v33200_v41 }
 0xe83   :  { %27467 = vmatmul.mubr.msk.f32.gmra.mrb[186].mxu1 %vm941_vm2, %v33205_v38 }
 0xe84   :  { %27469 = vmatprep.mubr.msk.f32.mxu1 %vm941_vm2, %v33209_v26 }
 0xe87   :  { %27470 = vmatmul.mubr.msk.f32.gmra.mrb[188].mxu1 %vm941_vm2, %v33214_v11 }
 0xe88   :  { %27472 = vmatprep.mubr.msk.f32.mxu1 %vm941_vm2, %v33219_v62 }
 0xe8b   :  { %27473 = vmatmul.mubr.msk.f32.gmra.mrb[190].mxu1 %vm941_vm2, %v33225_v16 }
 0xe8c   :  { %27475 = vmatprep.mubr.msk.f32.mxu1 %vm941_vm2, %v33231_v20 }
 0xe8f   :  { %27476 = vmatmul.mubr.msk.f32.gmra.mrb[192].mxu1 %vm941_vm2, %v33237_v43  ;;  %v35014_v43 = vld [vmem:[#allocation100_spill] sm:$0xff] }
 0xe90   :  { %27478 = vmatprep.mubr.msk.f32.mxu1 %vm941_vm2, %v33240_v35 }
 0xe93   :  { %27479 = vmatmul.mubr.msk.f32.gmra.mrb[162].mxu1 %vm941_vm2, %v21721_v13 }
 0xe94   :  { %27481 = vmatprep.mubr.msk.f32.mxu1 %vm941_vm2, %v21797_v4  ;;  %v35017_v4 = vld [vmem:[#allocation116_spill] sm:$0xff] }
 0xe97   :  { %27482 = vmatmul.mubr.msk.f32.gmra.mrb[164].mxu1 %vm941_vm2, %v21873_v7 }
 0xee5   :  { %v22481_v51 = vpop.f32.mrb[80].mxu0 }
 0xee6   :  { %v27415_v30 = vpop.f32.mrb[81].mxu0 }
 0xeed   :  { %v21949_v9 = vpop.f32.mrb[2].mxu1 }
 0xeee   :  { %v27380_v33 = vpop.f32.mrb[3].mxu1  ;;  %27484 = vmatprep.mubr.msk.f32.mxu1 %vm941_vm2, %v21949_v9  ;;  %v35020_v9 = vld [vmem:[#allocation111_spill] sm:$0xff] }
 0xeef   :  { %27485 = vmatmul.mubr.msk.f32.gmra.mrb[166].mxu1 %vm941_vm2, %v22025_v59 }
 0xef5   :  { %v22101_v39 = vpop.f32.mrb[4].mxu1 }
 0xef6   :  { %v27390_v25 = vpop.f32.mrb[5].mxu1  ;;  %27487 = vmatprep.mubr.msk.f32.mxu1 %vm941_vm2, %v22101_v39 }
 0xef7   :  { %27488 = vmatmul.mubr.msk.f32.gmra.mrb[168].mxu1 %vm941_vm2, %v22177_v45 }
 0xef9   :  { %v22253_v41 = vpop.f32.mrb[6].mxu1 }
 0xefa   :  { %v27400_v38 = vpop.f32.mrb[7].mxu1  ;;  %27490 = vmatprep.mubr.msk.f32.mxu1 %vm941_vm2, %v22253_v41  ;;  %v35021_v41 = vld [vmem:[#allocation114_spill] sm:$0xff] }
 0xefb   :  { %27491 = vmatmul.mubr.msk.f32.gmra.mrb[170].mxu1 %vm941_vm2, %v22329_v48  ;;  %v35019_v48 = vld [vmem:[#allocation109_spill] sm:$0xff] }
 0xf01   :  { %v22405_v56 = vpop.f32.mrb[8].mxu1 }
 0xf02   :  { %v27410_v17 = vpop.f32.mrb[9].mxu1  ;;  %27493 = vmatprep.mubr.msk.f32.mxu1 %vm941_vm2, %v22405_v56  ;;  %v28358_v56 = vld [vmem:[%s34379_s0 + $0x38] sm:$0xff] }
 0xf03   :  { %27494 = vmatmul.mubr.msk.f32.gmra.mrb[172].mxu1 %vm941_vm2, %v22481_v51 }
 0xf09   :  { %v22557_v26 = vpop.f32.mrb[10].mxu1 }
 0xf0a   :  { %v27420_v21 = vpop.f32.mrb[11].mxu1  ;;  %27496 = vmatprep.mubr.msk.f32.mxu1 %vm941_vm2, %v22557_v26 }
 0xf0b   :  { %v28359_v21 = vld [vmem:[%s34379_s0 + $0x30] sm:$0xff] }
 0xf11   :  { %v22709_v0 = vpop.f32.mrb[12].mxu1 }
 0xf12   :  { %v27430_v15 = vpop.f32.mrb[13].mxu1 }
 0xf1a   :  { %v22633_v11 = vpop.f32.mrb[82].mxu0 }
 0xf1b   :  { %v27425_v31 = vpop.f32.mrb[83].mxu0  ;;  %27497 = vmatmul.mubr.msk.f32.gmra.mrb[174].mxu1 %vm941_vm2, %v22633_v11 }
 0xf1c   :  { %27499 = vmatprep.mubr.msk.f32.mxu1 %vm941_vm2, %v22709_v0 }
 0xf1e   :  { %v22785_v49 = vpop.f32.mrb[84].mxu0 }
 0xf1f   :  { %v27435_v62 = vpop.f32.mrb[85].mxu0  ;;  %27500 = vmatmul.mubr.msk.f32.gmra.mrb[176].mxu1 %vm941_vm2, %v22785_v49  ;;  %v35022_v49 = vld [vmem:[#allocation117_spill] sm:$0xff] }
 0xf22   :  { %v22937_v28 = vpop.f32.mrb[86].mxu0 }
 0xf23   :  { %v27445_v5 = vpop.f32.mrb[87].mxu0 }
 0xf26   :  { %v23089_v16 = vpop.f32.mrb[88].mxu0 }
 0xf27   :  { %v27455_v29 = vpop.f32.mrb[89].mxu0 }
 0xf46   :  { %v22861_v63 = vpop.f32.mrb[14].mxu1 }
 0xf47   :  { %v27440_v20 = vpop.f32.mrb[15].mxu1  ;;  %27502 = vmatprep.mubr.msk.f32.mxu1 %vm941_vm2, %v22861_v63 }
 0xf48   :  { %27503 = vmatmul.mubr.msk.f32.gmra.mrb[178].mxu1 %vm941_vm2, %v22937_v28  ;;  %v28360_v20 = vld [vmem:[%s34379_s0 + $0x48] sm:$0xff] }
 0xf4a   :  { %v23013_v27 = vpop.f32.mrb[16].mxu1 }
 0xf4b   :  { %v27450_v1 = vpop.f32.mrb[17].mxu1  ;;  %27505 = vmatprep.mubr.msk.f32.mxu1 %vm941_vm2, %v23013_v27 }
 0xf4c   :  { %27506 = vmatmul.mubr.msk.f32.gmra.mrb[180].mxu1 %vm941_vm2, %v23089_v16  ;;  %v35023_v16 = vld [vmem:[#allocation144_spill] sm:$0xff]  ;;  %v28361_v1 = vld [vmem:[%s34379_s0 + $0x40] sm:$0xff] }
 0xf4e   :  { %v27462_v53 = vpop.f32.mrb[182].mxu1 }
 0xf4f   :  { %v27606_v23 = vadd.f32 %v27462_v53, %v35014_v43  ;;  %v23257_v3 = vpop.f32.mrb[183].mxu1 }
 0xf50   :  { %v27607_v35 = vadd.f32 %v23257_v3, %v35015_v22  ;;  %v35024_v22 = vld [vmem:[#allocation113_spill] sm:$0xff] }
 0xf51   :  { %v23449_v57 = vadd.f32 %v28352_v36, %v27606_v23 }
 0xf52   :  { %v23448_v10 = vadd.f32 %v28353_v19, %v27607_v35  ;;  %v27465_v13 = vpop.f32.mrb[184].mxu1  ;;  %v35025_v19 = vld [vmem:[#allocation145_spill] sm:$0xff] }
 0xf53   :  { %v33331_v32 = vadd.f32 %v33321_v54, %v23449_v57  ;;  %v27608_v52 = vadd.f32 %v27465_v13, %v35016_v34  ;;  %v23267_v18 = vpop.f32.mrb[185].mxu1 }
 0xf54   :  { %v33335_v46 = vadd.f32 %v33321_v54, %v23448_v10  ;;  %v27609_v7 = vadd.f32 %v23267_v18, %v35017_v4  ;;  %v28363_v4 = vld [vmem:[%s34379_s0 + $0x50] sm:$0xff] }
 0xf55   :  { %v23524_v55 = vsel %vm75_vm0, %v33331_v32, 0.0  ;;  %v23451_v59 = vadd.f32 %v28354_v60, %v27608_v52  ;;  %v28362_v52 = vld [vmem:[%s34379_s0 + $0x58] sm:$0xff] }
 0xf56   :  { %v23450_v50 = vadd.f32 %v28355_v2, %v27609_v7  ;;  %23525 = vadd.xlane.f32.xlu1 %v23524_v55  ;;  %v27468_v45 = vpop.f32.mrb[186].mxu1  ;;  %v23521_v58 = vsel %vm75_vm0, %v33335_v46, 0.0 }
 0xf57   :  { %v27610_v14 = vadd.f32 %v27468_v45, %v35018_v6  ;;  %23522 = vadd.xlane.f32.xlu0 %v23521_v58  ;;  %v23277_v47 = vpop.f32.mrb[187].mxu1  ;;  %v33354_v12 = vadd.f32 %v33321_v54, %v23451_v59  ;;  %v28365_v58 = vld [vmem:[%s34379_s0 + $0x68] sm:$0xff] }
 0xf58   :  { %v33350_v8 = vadd.f32 %v33321_v54, %v23450_v50  ;;  %v27611_v61 = vadd.f32 %v23277_v47, %v35019_v48  ;;  %v28364_v50 = vld [vmem:[%s34379_s0 + $0x60] sm:$0xff] }
 0xf59   :  { %v23453_v44 = vadd.f32 %v28356_v42, %v27610_v14  ;;  %v23530_v11 = vsel %vm75_vm0, %v33354_v12, 0.0 }
 0xf5a   :  { %v23452_v24 = vadd.f32 %v28357_v37, %v27611_v61  ;;  %v27471_v51 = vpop.f32.mrb[188].mxu1  ;;  %v23527_v30 = vsel %vm75_vm0, %v33350_v8, 0.0  ;;  %v28366_v37 = vld [vmem:[%s34379_s0 + $0x70] sm:$0xff] }
 0xf5b   :  { %v27612_v33 = vadd.f32 %v27471_v51, %v35020_v9  ;;  %23528 = vadd.xlane.f32.xlu0 %v23527_v30  ;;  %v23287_v39 = vpop.f32.mrb[189].mxu1  ;;  %v33373_v26 = vadd.f32 %v33321_v54, %v23453_v44  ;;  %v28367_v30 = vld [vmem:[%s34379_s0 + $0x78] sm:$0xff] }
 0xf5c   :  { %v33366_v25 = vadd.f32 %v33321_v54, %v23452_v24  ;;  %v27613_v38 = vadd.f32 %v23287_v39, %v35021_v41 }
 0xf5d   :  { %v23455_v17 = vadd.f32 %v28358_v56, %v27612_v33  ;;  %v23536_v23 = vsel %vm75_vm0, %v33373_v26, 0.0 }
 0xf5e   :  { %v23454_v0 = vadd.f32 %v28359_v21, %v27613_v38  ;;  %v27474_v15 = vpop.f32.mrb[190].mxu1  ;;  %v23533_v31 = vsel %vm75_vm0, %v33366_v25, 0.0 }
 0xf5f   :  { %v27614_v62 = vadd.f32 %v27474_v15, %v35022_v49  ;;  %23531 = vadd.xlane.f32.xlu0 %v23530_v11  ;;  %23534 = vadd.xlane.f32.xlu1 %v23533_v31  ;;  %v23297_v28 = vpop.f32.mrb[191].mxu1  ;;  %v33388_v63 = vadd.f32 %v33321_v54, %v23455_v17  ;;  %v28368_v15 = vld [vmem:[%s34379_s0 + $0x88] sm:$0xff]  ;;  %v28369_v49 = vld [vmem:[%s34379_s0 + $0x80] sm:$0xff] }
 0xf60   :  { %v33384_v5 = vadd.f32 %v33321_v54, %v23454_v0  ;;  %v27615_v29 = vadd.f32 %v23297_v28, %v35023_v16 }
 0xf61   :  { %v23457_v27 = vadd.f32 %v28360_v20, %v27614_v62  ;;  %v23542_v13 = vsel %vm75_vm0, %v33388_v63, 0.0 }
 0xf62   :  { %v23456_v53 = vadd.f32 %v28361_v1, %v27615_v29  ;;  %v27477_v43 = vpop.f32.mrb[192].mxu1  ;;  %v23539_v3 = vsel %vm75_vm0, %v33384_v5, 0.0  ;;  %v28370_v1 = vld [vmem:[%s34379_s0 + $0x98] sm:$0xff] }
 0xf63   :  { %v27616_v35 = vadd.f32 %v27477_v43, %v35024_v22  ;;  %23537 = vadd.xlane.f32.xlu0 %v23536_v23  ;;  %23540 = vadd.xlane.f32.xlu1 %v23539_v3  ;;  %v23307_v36 = vpop.f32.mrb[193].mxu1  ;;  %v33408_v34 = vadd.f32 %v33321_v54, %v23457_v27  ;;  %v28371_v23 = vld [vmem:[%s34379_s0 + $0x90] sm:$0xff] }
 0xf64   :  { %v33402_v57 = vadd.f32 %v33321_v54, %v23456_v53  ;;  %v27617_v10 = vadd.f32 %v23307_v36, %v35025_v19 }
 0xf65   :  { %v23459_v18 = vadd.f32 %v28362_v52, %v27616_v35  ;;  %v23548_v61 = vsel %vm75_vm0, %v33408_v34, 0.0 }
 0xf66   :  { %v23458_v7 = vadd.f32 %v28363_v4, %v27617_v10  ;;  %v27480_v55 = vpop.f32.mrb[162].mxu1  ;;  %v23545_v60 = vsel %vm75_vm0, %v33402_v57, 0.0 }
 0xf67   :  { %23543 = vadd.xlane.f32.xlu0 %v23542_v13  ;;  %23546 = vadd.xlane.f32.xlu1 %v23545_v60  ;;  %v23317_v59 = vpop.f32.mrb[163].mxu1  ;;  %v23461_v6 = vadd.f32 %v28365_v58, %v27480_v55  ;;  %v33428_v14 = vadd.f32 %v33321_v54, %v23459_v18  ;;  %v28372_v13 = vld [vmem:[%s34379_s0 + $0xa8] sm:$0xff]  ;;  %v28373_v18 = vld [vmem:[%s34379_s0 + $0xa0] sm:$0xff]  ;;  %v28374_v58 = vld [vmem:[%s34379_s0 + $0xb8] sm:$0xff] }
 0xf68   :  { %v33419_v2 = vadd.f32 %v33321_v54, %v23458_v7  ;;  %v23460_v45 = vadd.f32 %v28364_v50, %v23317_v59 }
 0xf69   :  { %v33441_v51 = vadd.f32 %v33321_v54, %v23461_v6  ;;  %v23554_v39 = vsel %vm75_vm0, %v33428_v14, 0.0 }
 0xf6a   :  { %v33431_v47 = vadd.f32 %v33321_v54, %v23460_v45  ;;  %v27483_v48 = vpop.f32.mrb[164].mxu1  ;;  %v23551_v42 = vsel %vm75_vm0, %v33419_v2, 0.0 }
 0xf6b   :  { %23549 = vadd.xlane.f32.xlu0 %v23548_v61  ;;  %23552 = vadd.xlane.f32.xlu1 %v23551_v42  ;;  %v23327_v44 = vpop.f32.mrb[165].mxu1  ;;  %v23463_v9 = vadd.f32 %v28367_v30, %v27483_v48  ;;  %v23560_v56 = vsel %vm75_vm0, %v33441_v51, 0.0  ;;  %v28375_v48 = vld [vmem:[%s34379_s0 + $0xb0] sm:$0xff] }
 0xf6c   :  { %v23462_v24 = vadd.f32 %v28366_v37, %v23327_v44  ;;  %v23557_v41 = vsel %vm75_vm0, %v33431_v47, 0.0 }
 0xf6d   :  { %v33454_v38 = vadd.f32 %v33321_v54, %v23463_v9 }
 0xf6e   :  { %v33447_v33 = vadd.f32 %v33321_v54, %v23462_v24 }
 0xf6f   :  { %23555 = vadd.xlane.f32.xlu0 %v23554_v39  ;;  %23558 = vadd.xlane.f32.xlu1 %v23557_v41  ;;  %35026 = vst [vmem:[#allocation131_spill] sm:$0xff] %v33454_v38  ;;  %v23566_v21 = vsel %vm75_vm0, %v33454_v38, 0.0 }
 0xf70   :  { %v23563_v17 = vsel %vm75_vm0, %v33447_v33, 0.0 }
 0xf73   :  { %23561 = vadd.xlane.f32.xlu0 %v23560_v56  ;;  %23564 = vadd.xlane.f32.xlu1 %v23563_v17 }
 0xf77   :  { %23567 = vadd.xlane.f32.xlu0 %v23566_v21 }
 0xfc2   :  { %v27486_v0 = vpop.f32.mrb[166].mxu1 }
 0xfc3   :  { %v23465_v11 = vadd.f32 %v28368_v15, %v27486_v0  ;;  %v23337_v31 = vpop.f32.mrb[167].mxu1 }
 0xfc4   :  { %v23464_v62 = vadd.f32 %v28369_v49, %v23337_v31 }
 0xfc5   :  { %v33469_v28 = vadd.f32 %v33321_v54, %v23465_v11 }
 0xfc6   :  { %v33472_v16 = vadd.f32 %v33321_v54, %v23464_v62 }
 0xfc7   :  { %35027 = vst [vmem:[#allocation112_spill] sm:$0xff] %v33469_v28  ;;  %v23572_v29 = vsel %vm75_vm0, %v33469_v28, 0.0 }
 0xfc8   :  { %35028 = vst [vmem:[#allocation115_spill] sm:$0xff] %v33472_v16  ;;  %23573 = vadd.xlane.f32.xlu0 %v23572_v29  ;;  %v23569_v20 = vsel %vm75_vm0, %v33472_v16, 0.0 }
 0xfc9   :  { %23570 = vadd.xlane.f32.xlu1 %v23569_v20 }
 0xfca   :  { %v27489_v27 = vpop.f32.mrb[168].mxu1 }
 0xfcb   :  { %v23467_v53 = vadd.f32 %v28370_v1, %v27489_v27  ;;  %v23347_v43 = vpop.f32.mrb[169].mxu1 }
 0xfcc   :  { %v23466_v3 = vadd.f32 %v28371_v23, %v23347_v43 }
 0xfcd   :  { %v33485_v22 = vadd.f32 %v33321_v54, %v23467_v53 }
 0xfce   :  { %v33488_v35 = vadd.f32 %v33321_v54, %v23466_v3  ;;  %v27492_v36 = vpop.f32.mrb[170].mxu1 }
 0xfcf   :  { %35029 = vst [vmem:[#allocation118_spill] sm:$0xff] %v33485_v22  ;;  %v23357_v19 = vpop.f32.mrb[171].mxu1  ;;  %v23578_v10 = vsel %vm75_vm0, %v33485_v22, 0.0  ;;  %v23469_v52 = vadd.f32 %v28372_v13, %v27492_v36  ;;  %v28377_v13 = vld [vmem:[%s34379_s0 + $0xc0] sm:$0xff] }
 0xfd0   :  { %35030 = vst [vmem:[#allocation133_spill] sm:$0xff] %v33488_v35  ;;  %v23468_v4 = vadd.f32 %v28373_v18, %v23357_v19  ;;  %23579 = vadd.xlane.f32.xlu0 %v23578_v10  ;;  %v23575_v7 = vsel %vm75_vm0, %v33488_v35, 0.0  ;;  %v28376_v19 = vld [vmem:[%s34379_s0 + $0xc8] sm:$0xff] }
 0xfd1   :  { %23576 = vadd.xlane.f32.xlu1 %v23575_v7  ;;  %v33504_v60 = vadd.f32 %v33321_v54, %v23469_v52 }
 0xfd2   :  { %v33501_v55 = vadd.f32 %v33321_v54, %v23468_v4 }
 0xfd3   :  { %35032 = vst [vmem:[#allocation125_spill] sm:$0xff] %v33504_v60  ;;  %v23584_v42 = vsel %vm75_vm0, %v33504_v60, 0.0 }
 0xfd4   :  { %35031 = vst [vmem:[#allocation123_spill] sm:$0xff] %v33501_v55  ;;  %v23581_v59 = vsel %vm75_vm0, %v33501_v55, 0.0 }
 0xfd5   :  { %23582 = vadd.xlane.f32.xlu0 %v23581_v59 }
 0xfd6   :  { %v27495_v50 = vpop.f32.mrb[172].mxu1 }
 0xfd7   :  { %v23367_v45 = vpop.f32.mrb[173].mxu1  ;;  %v23471_v6 = vadd.f32 %v28374_v58, %v27495_v50 }
 0xfd8   :  { %v23470_v61 = vadd.f32 %v28375_v48, %v23367_v45 }
 0xfd9   :  { %23585 = vadd.xlane.f32.xlu0 %v23584_v42  ;;  %v33520_v37 = vadd.f32 %v33321_v54, %v23471_v6  ;;  %v28378_v42 = vld [vmem:[%s34379_s0 + $0xd0] sm:$0xff] }
 0xfda   :  { %v33517_v44 = vadd.f32 %v33321_v54, %v23470_v61 }
 0xfdb   :  { %35034 = vst [vmem:[#allocation135_spill] sm:$0xff] %v33520_v37  ;;  %v23590_v30 = vsel %vm75_vm0, %v33520_v37, 0.0 }
 0xfdc   :  { %35033 = vst [vmem:[#allocation128_spill] sm:$0xff] %v33517_v44  ;;  %v23587_v24 = vsel %vm75_vm0, %v33517_v44, 0.0 }
 0xfdd   :  { %23588 = vadd.xlane.f32.xlu0 %v23587_v24 }
 0xfe1   :  { %23591 = vadd.xlane.f32.xlu0 %v23590_v30 }
 0xfe3   :  { %v23526_v9 = vpop.xlane.xlu1 %23525 }
 0xfe4   :  { %v23618_v39 = vmul.f32 0.015625, %v23526_v9  ;;  %v23523_v41 = vpop.xlane.xlu0 %23522 }
 0xfe5   :  { %v23617_v56 = vmul.f32 0.015625, %v23523_v41 }
 0xfe6   :  { %v33527_v17 = vsub.f32 %v33331_v32, %v23618_v39 }
 0xfe7   :  { %v33530_v21 = vsub.f32 %v33335_v46, %v23617_v56 }
 0xfe8   :  { %v23529_v0 = vpop.xlane.xlu0 %23528  ;;  %v23682_v62 = vmul.f32 %v33527_v17, %v33527_v17 }
 0xfe9   :  { %v23619_v15 = vmul.f32 0.015625, %v23529_v0  ;;  %v23681_v11 = vmul.f32 %v33530_v21, %v33530_v21  ;;  %v28379_v0 = vld [vmem:[%s34379_s0 + $0xd8] sm:$0xff] }
 0xfea   :  { %v23716_v3 = vsel %vm75_vm0, %v23682_v62, 0.0 }
 0xfeb   :  { %v33535_v31 = vsub.f32 %v33350_v8, %v23619_v15  ;;  %v23713_v49 = vsel %vm75_vm0, %v23681_v11, 0.0 }
 0xfec   :  { %v23532_v29 = vpop.xlane.xlu0 %23531  ;;  %v23535_v20 = vpop.xlane.xlu1 %23534  ;;  %23714 = vadd.xlane.f32.xlu1 %v23713_v49 }
 0xfed   :  { %v23620_v27 = vmul.f32 0.015625, %v23532_v29  ;;  %v23621_v43 = vmul.f32 0.015625, %v23535_v20  ;;  %v23683_v36 = vmul.f32 %v33535_v31, %v33535_v31 }
 0xfee   :  { %v27498_v1 = vpop.f32.mrb[174].mxu1 }
 0xfef   :  { %v33541_v53 = vsub.f32 %v33354_v12, %v23620_v27  ;;  %v23377_v23 = vpop.f32.mrb[175].mxu1  ;;  %v23473_v10 = vadd.f32 %v28376_v19, %v27498_v1  ;;  %v33556_v59 = vsub.f32 %v33366_v25, %v23621_v43  ;;  %v23719_v58 = vsel %vm75_vm0, %v23683_v36, 0.0 }
 0xff0   :  { %v23472_v52 = vadd.f32 %v28377_v13, %v23377_v23  ;;  %v23538_v18 = vpop.xlane.xlu0 %23537  ;;  %23717 = vadd.xlane.f32.xlu1 %v23716_v3  ;;  %v23541_v61 = vpop.xlane.xlu1 %23540 }
 0xff1   :  { %v23622_v50 = vmul.f32 0.015625, %v23538_v18  ;;  %v23684_v6 = vmul.f32 %v33541_v53, %v33541_v53  ;;  %v33562_v48 = vadd.f32 %v33321_v54, %v23473_v10  ;;  %v23623_v39 = vmul.f32 0.015625, %v23541_v61 }
 0xff2   :  { %v33553_v4 = vadd.f32 %v33321_v54, %v23472_v52  ;;  %v27501_v7 = vpop.f32.mrb[176].mxu1  ;;  %v23685_v56 = vmul.f32 %v33556_v59, %v33556_v59 }
 0xff3   :  { %v23387_v45 = vpop.f32.mrb[177].mxu1  ;;  %35036 = vst [vmem:[#allocation132_spill] sm:$0xff] %v33562_v48  ;;  %v33570_v9 = vsub.f32 %v33373_v26, %v23622_v50  ;;  %v23722_v41 = vsel %vm75_vm0, %v23684_v6, 0.0  ;;  %v23475_v15 = vadd.f32 %v28379_v0, %v27501_v7  ;;  %v23596_v62 = vsel %vm75_vm0, %v33562_v48, 0.0  ;;  %v24014_v7 = vld [vmem:[%s34385_s8 + $0x8] sm:$0xff]  ;;  %v24016_v50 = vld [vmem:[%s34385_s8 + $0x18] sm:$0xff] }
 0xff4   :  { %35035 = vst [vmem:[#allocation130_spill] sm:$0xff] %v33553_v4  ;;  %v23474_v24 = vadd.f32 %v28378_v42, %v23387_v45  ;;  %23720 = vadd.xlane.f32.xlu1 %v23719_v58  ;;  %v23593_v30 = vsel %vm75_vm0, %v33553_v4, 0.0  ;;  %v23544_v49 = vpop.xlane.xlu0 %23543  ;;  %v33584_v29 = vsub.f32 %v33384_v5, %v23623_v39  ;;  %v23725_v27 = vsel %vm75_vm0, %v23685_v56, 0.0  ;;  %v23547_v23 = vpop.xlane.xlu1 %23546  ;;  %v24013_v45 = vld [vmem:[%s34385_s8] sm:$0xff]  ;;  %v24015_v58 = vld [vmem:[%s34385_s8 + $0x10] sm:$0xff]  ;;  %v24018_v56 = vld [vmem:[%s34385_s8 + $0x28] sm:$0xff] }
 0xff5   :  { %23594 = vadd.xlane.f32.xlu0 %v23593_v30  ;;  %v23624_v20 = vmul.f32 0.015625, %v23544_v49  ;;  %v23686_v1 = vmul.f32 %v33570_v9, %v33570_v9  ;;  %v33590_v43 = vadd.f32 %v33321_v54, %v23475_v15  ;;  %v23625_v19 = vmul.f32 0.015625, %v23547_v23  ;;  %v24020_v0 = vld [vmem:[%s34385_s8 + $0x38] sm:$0xff]  ;;  %v24017_v49 = vld [vmem:[%s34385_s8 + $0x20] sm:$0xff] }
 0xff6   :  { %v33579_v11 = vadd.f32 %v33321_v54, %v23474_v24  ;;  %v23687_v13 = vmul.f32 %v33584_v29, %v33584_v29  ;;  %v27540_v6 = vpack.c.bf16 %v24016_v50, %v24014_v7  ;;  %v27542_v61 = vpack.c.bf16 %v24015_v58, %v24013_v45  ;;  %v24023_v7 = vld [vmem:[%s34385_s8 + $0x50] sm:$0xff] }
 0xff7   :  { %v33595_v36 = vsub.f32 %v33388_v63, %v23624_v20  ;;  %v23728_v10 = vsel %vm75_vm0, %v23686_v1, 0.0  ;;  %v23602_v18 = vsel %vm75_vm0, %v33590_v43, 0.0  ;;  %v33615_v42 = vsub.f32 %v33402_v57, %v23625_v19 }
 0xff8   :  { %23723 = vadd.xlane.f32.xlu1 %v23722_v41  ;;  %v23599_v3 = vsel %vm75_vm0, %v33579_v11, 0.0  ;;  %v23550_v52 = vpop.xlane.xlu0 %23549  ;;  %v23731_v30 = vsel %vm75_vm0, %v23687_v13, 0.0  ;;  %v23553_v41 = vpop.xlane.xlu1 %23552  ;;  %27541 = vmatprep.subr.bf16.mxu0 %v27540_v6  ;;  %v27544_v15 = vpack.c.bf16 %v24020_v0, %v24018_v56  ;;  %v24024_v13 = vld [vmem:[%s34385_s8 + $0x58] sm:$0xff]  ;;  %v24025_v56 = vld [vmem:[%s34385_s8 + $0x60] sm:$0xff]  ;;  %v24027_v0 = vld [vmem:[%s34385_s8 + $0x70] sm:$0xff] }
 0xff9   :  { %23597 = vadd.xlane.f32.xlu0 %v23596_v62  ;;  %v23626_v24 = vmul.f32 0.015625, %v23550_v52  ;;  %v23688_v39 = vmul.f32 %v33595_v36, %v33595_v36  ;;  %27543 = vmatpush1.bf16.msra.mxu0 %v27542_v61  ;;  %v24019_v62 = vld [vmem:[%s34385_s8 + $0x30] sm:$0xff]  ;;  %v23627_v1 = vmul.f32 0.015625, %v23553_v41 }
 0xffa   :  { %v27546_v20 = vpack.c.bf16 %v24019_v62, %v24017_v49  ;;  %27545 = vmatprep.subr.bf16.mxu0 %v27544_v15  ;;  %v27554_v15 = vpack.c.bf16 %v24027_v0, %v24025_v56 }
 0xffb   :  { %v23734_v23 = vsel %vm75_vm0, %v23688_v39, 0.0  ;;  %v33651_v58 = vsub.f32 %v33419_v2, %v23627_v1  ;;  %v24028_v39 = vld [vmem:[%s34385_s8 + $0x78] sm:$0xff] }
 0xffc   :  { %23726 = vadd.xlane.f32.xlu1 %v23725_v27  ;;  %v33633_v27 = vsub.f32 %v33408_v34, %v23626_v24  ;;  %v23556_v19 = vpop.xlane.xlu0 %23555  ;;  %v23559_v50 = vpop.xlane.xlu1 %23558 }
 0xffd   :  { %23600 = vadd.xlane.f32.xlu0 %v23599_v3  ;;  %v23689_v3 = vmul.f32 %v33615_v42, %v33615_v42  ;;  %27547 = vmatpush1.bf16.msra.mxu0 %v27546_v20  ;;  %v23628_v6 = vmul.f32 0.015625, %v23556_v19  ;;  %v23629_v62 = vmul.f32 0.015625, %v23559_v50  ;;  %v23691_v1 = vmul.f32 %v33651_v58, %v33651_v58 }
 0xffe   :  { %v23690_v24 = vmul.f32 %v33633_v27, %v33633_v27 }
 0xfff   :  { %v23737_v61 = vsel %vm75_vm0, %v23689_v3, 0.0  ;;  %v33669_v49 = vsub.f32 %v33428_v14, %v23628_v6  ;;  %v33675_v3 = vsub.f32 %v33431_v47, %v23629_v62 }
0x1000   :  { %23729 = vadd.xlane.f32.xlu1 %v23728_v10  ;;  %v24022_v10 = vld [vmem:[%s34385_s8 + $0x48] sm:$0xff]  ;;  %v23740_v20 = vsel %vm75_vm0, %v23690_v24, 0.0  ;;  %v23562_v62 = vpop.xlane.xlu0 %23561 }
0x1001   :  { %23603 = vadd.xlane.f32.xlu0 %v23602_v18  ;;  %v27548_v52 = vpack.c.bf16 %v24024_v13, %v24022_v10  ;;  %v24021_v18 = vld [vmem:[%s34385_s8 + $0x40] sm:$0xff]  ;;  %v23743_v10 = vsel %vm75_vm0, %v23691_v1, 0.0  ;;  %v23692_v13 = vmul.f32 %v33669_v49, %v33669_v49  ;;  %v28380_v24 = vld [vmem:[%s34379_s0 + $0xe8] sm:$0xff] }
0x1002   :  { %v27550_v45 = vpack.c.bf16 %v24023_v7, %v24021_v18  ;;  %v23693_v7 = vmul.f32 %v33675_v3, %v33675_v3 }
0x1003   :  { %27549 = vmatprep.subr.bf16.mxu0 %v27548_v52  ;;  %v23746_v18 = vsel %vm75_vm0, %v23692_v13, 0.0  ;;  %v23630_v13 = vmul.f32 0.015625, %v23562_v62 }
0x1004   :  { %23732 = vadd.xlane.f32.xlu1 %v23731_v30  ;;  %v24026_v30 = vld [vmem:[%s34385_s8 + $0x68] sm:$0xff]  ;;  %27551 = vmatpush1.bf16.msra.mxu0 %v27550_v45  ;;  %v23749_v45 = vsel %vm75_vm0, %v23693_v7, 0.0 }
0x1005   :  { %v27552_v41 = vpack.c.bf16 %v24028_v39, %v24026_v30  ;;  %v28381_v39 = vld [vmem:[%s34379_s0 + $0xe0] sm:$0xff] }
0x1007   :  { %27553 = vmatprep.subr.bf16.mxu0 %v27552_v41 }
0x1008   :  { %23735 = vadd.xlane.f32.xlu1 %v23734_v23  ;;  %v23565_v23 = vpop.xlane.xlu1 %23564  ;;  %27555 = vmatpush1.bf16.msra.mxu0 %v27554_v15 }
0x1009   :  { %v23631_v19 = vmul.f32 0.015625, %v23565_v23  ;;  %v28382_v23 = vld [vmem:[%s34379_s0 + $0xf0] sm:$0xff] }
0x100b   :  { %v33681_v52 = vsub.f32 %v33447_v33, %v23631_v19 }
0x100c   :  { %23738 = vadd.xlane.f32.xlu1 %v23737_v61 }
0x100d   :  { %v23695_v6 = vmul.f32 %v33681_v52, %v33681_v52 }
0x100f   :  { %v23755_v15 = vsel %vm75_vm0, %v23695_v6, 0.0  ;;  %v23568_v6 = vpop.xlane.xlu0 %23567 }
0x1010   :  { %23741 = vadd.xlane.f32.xlu1 %v23740_v20 }
0x1014   :  { %23744 = vadd.xlane.f32.xlu1 %v23743_v10 }
0x1018   :  { %23747 = vadd.xlane.f32.xlu1 %v23746_v18  ;;  %v28383_v18 = vld [vmem:[%s34379_s0 + $0xf8] sm:$0xff] }
0x101b   :  { %v27504_v50 = vpop.f32.mrb[178].mxu1 }
0x101c   :  { %23750 = vadd.xlane.f32.xlu1 %v23749_v45  ;;  %v23397_v61 = vpop.f32.mrb[179].mxu1  ;;  %v23477_v30 = vadd.f32 %v28380_v24, %v27504_v50  ;;  %v23632_v24 = vmul.f32 0.015625, %v23568_v6 }
0x101d   :  { %v23476_v41 = vadd.f32 %v28381_v39, %v23397_v61  ;;  %v33716_v61 = vsub.f32 %v33441_v51, %v23630_v13 }
0x101e   :  { %v33700_v1 = vadd.f32 %v33321_v54, %v23477_v30 }
0x101f   :  { %v33696_v56 = vadd.f32 %v33321_v54, %v23476_v41  ;;  %v27507_v0 = vpop.f32.mrb[180].mxu1  ;;  %v33724_v41 = vsub.f32 %v33454_v38, %v23632_v24 }
0x1020   :  { %23756 = vadd.xlane.f32.xlu1 %v23755_v15  ;;  %v23407_v20 = vpop.f32.mrb[181].mxu1  ;;  %v23479_v7 = vadd.f32 %v28383_v18, %v27507_v0  ;;  %v23608_v45 = vsel %vm75_vm0, %v33700_v1, 0.0  ;;  %v23694_v15 = vmul.f32 %v33716_v61, %v33716_v61 }
0x1021   :  { %v23478_v19 = vadd.f32 %v28382_v23, %v23407_v20  ;;  %v23605_v10 = vsel %vm75_vm0, %v33696_v56, 0.0 }
0x1022   :  { %23606 = vadd.xlane.f32.xlu0 %v23605_v10  ;;  %v33719_v30 = vadd.f32 %v33321_v54, %v23479_v7  ;;  %v23752_v62 = vsel %vm75_vm0, %v23694_v15, 0.0 }
0x1023   :  { %v33711_v50 = vadd.f32 %v33321_v54, %v23478_v19  ;;  %v23696_v54 = vmul.f32 %v33724_v41, %v33724_v41 }
0x1024   :  { %v23614_v0 = vsel %vm75_vm0, %v33719_v30, 0.0 }
0x1025   :  { %v23611_v39 = vsel %vm75_vm0, %v33711_v50, 0.0  ;;  %v23758_v20 = vsel %vm75_vm0, %v23696_v54, 0.0 }
0x1026   :  { %23609 = vadd.xlane.f32.xlu0 %v23608_v45 }
0x102a   :  { %23612 = vadd.xlane.f32.xlu0 %v23611_v39 }
0x102e   :  { %23615 = vadd.xlane.f32.xlu0 %v23614_v0 }
0x1032   :  { %23753 = vadd.xlane.f32.xlu0 %v23752_v62 }
0x1036   :  { %23759 = vadd.xlane.f32.xlu0 %v23758_v20 }
0x1055   :  { %v23574_v23 = vpop.xlane.xlu0 %23573 }
0x1056   :  { %v23634_v19 = vmul.f32 0.015625, %v23574_v23  ;;  %v23571_v10 = vpop.xlane.xlu1 %23570 }
0x1057   :  { %v23633_v13 = vmul.f32 0.015625, %v23571_v10 }
0x1058   :  { %v33735_v18 = vsub.f32 %v33469_v28, %v23634_v19 }
0x1059   :  { %v33738_v7 = vsub.f32 %v33472_v16, %v23633_v13 }
0x105a   :  { %v23698_v45 = vmul.f32 %v33735_v18, %v33735_v18 }
0x105b   :  { %v23697_v6 = vmul.f32 %v33738_v7, %v33738_v7 }
0x105c   :  { %v23764_v24 = vsel %vm75_vm0, %v23698_v45, 0.0 }
0x105d   :  { %v23580_v39 = vpop.xlane.xlu0 %23579  ;;  %23765 = vadd.xlane.f32.xlu0 %v23764_v24  ;;  %v23761_v0 = vsel %vm75_vm0, %v23697_v6, 0.0 }
0x105e   :  { %v23636_v15 = vmul.f32 0.015625, %v23580_v39  ;;  %23762 = vadd.xlane.f32.xlu1 %v23761_v0  ;;  %v23577_v62 = vpop.xlane.xlu1 %23576 }
0x105f   :  { %v23635_v54 = vmul.f32 0.015625, %v23577_v62 }
0x1060   :  { %v33747_v20 = vsub.f32 %v33485_v22, %v23636_v15 }
0x1061   :  { %v33750_v23 = vsub.f32 %v33488_v35, %v23635_v54 }
0x1062   :  { %v23583_v19 = vpop.xlane.xlu0 %23582  ;;  %v23700_v10 = vmul.f32 %v33747_v20, %v33747_v20 }
0x1063   :  { %v23637_v13 = vmul.f32 0.015625, %v23583_v19  ;;  %v23699_v45 = vmul.f32 %v33750_v23, %v33750_v23 }
0x1064   :  { %v23770_v6 = vsel %vm75_vm0, %v23700_v10, 0.0 }
0x1065   :  { %v33758_v24 = vsub.f32 %v33501_v55, %v23637_v13  ;;  %23771 = vadd.xlane.f32.xlu0 %v23770_v6  ;;  %v23767_v39 = vsel %vm75_vm0, %v23699_v45, 0.0 }
0x1066   :  { %23768 = vadd.xlane.f32.xlu1 %v23767_v39  ;;  %v23586_v0 = vpop.xlane.xlu0 %23585 }
0x1067   :  { %v23638_v15 = vmul.f32 0.015625, %v23586_v0  ;;  %v23701_v62 = vmul.f32 %v33758_v24, %v33758_v24 }
0x1069   :  { %v33764_v54 = vsub.f32 %v33504_v60, %v23638_v15  ;;  %v23773_v19 = vsel %vm75_vm0, %v23701_v62, 0.0 }
0x106a   :  { %23774 = vadd.xlane.f32.xlu1 %v23773_v19  ;;  %v23589_v22 = vpop.xlane.xlu0 %23588 }
0x106b   :  { %v23639_v10 = vmul.f32 0.015625, %v23589_v22  ;;  %v23702_v13 = vmul.f32 %v33764_v54, %v33764_v54 }
0x106d   :  { %v33770_v6 = vsub.f32 %v33517_v44, %v23639_v10  ;;  %v23776_v45 = vsel %vm75_vm0, %v23702_v13, 0.0 }
0x106e   :  { %v23592_v39 = vpop.xlane.xlu0 %23591  ;;  %23777 = vadd.xlane.f32.xlu0 %v23776_v45 }
0x106f   :  { %v23640_v0 = vmul.f32 0.015625, %v23592_v39  ;;  %v23703_v15 = vmul.f32 %v33770_v6, %v33770_v6 }
0x1071   :  { %v33776_v60 = vsub.f32 %v33520_v37, %v23640_v0  ;;  %v23779_v62 = vsel %vm75_vm0, %v23703_v15, 0.0 }
0x1072   :  { %23780 = vadd.xlane.f32.xlu1 %v23779_v62 }
0x1073   :  { %v23704_v22 = vmul.f32 %v33776_v60, %v33776_v60 }
0x1075   :  { %v23782_v19 = vsel %vm75_vm0, %v23704_v22, 0.0 }
0x1076   :  { %23783 = vadd.xlane.f32.xlu0 %v23782_v19 }
0x1079   :  { %v23715_v10 = vpop.xlane.xlu1 %23714 }
0x107a   :  { %v23809_v13 = vmul.f32 0.015625, %v23715_v10 }
0x107c   :  { %v23841_v44 = vadd.f32 1e-05, %v23809_v13 }
0x107d   :  { %v23718_v45 = vpop.xlane.xlu1 %23717 }
0x107e   :  { %28288 = vrsqrt.f32 %v23841_v44  ;;  %v23810_v39 = vmul.f32 0.015625, %v23718_v45  ;;  %v33800_v45 = vld [vmem:[%s34387_s7] ss:$0 sm:$0xff] }
0x1080   :  { %v23842_v55 = vadd.f32 1e-05, %v23810_v39 }
0x1081   :  { %v23721_v35 = vpop.xlane.xlu1 %23720 }
0x1082   :  { %28290 = vrsqrt.f32 %v23842_v55  ;;  %v23811_v0 = vmul.f32 0.015625, %v23721_v35  ;;  %v23595_v37 = vpop.xlane.xlu0 %23594  ;;  %v33790_v55 = vld [vmem:[%s34386_s6] ss:$0 sm:$0xff] }
0x1083   :  { %v23641_v28 = vmul.f32 0.015625, %v23595_v37 }
0x1084   :  { %v23843_v15 = vadd.f32 1e-05, %v23811_v0 }
0x1085   :  { %v33783_v62 = vsub.f32 %v33553_v4, %v23641_v28  ;;  %v23724_v16 = vpop.xlane.xlu1 %23723 }
0x1086   :  { %28292 = vrsqrt.f32 %v23843_v15  ;;  %v23812_v22 = vmul.f32 0.015625, %v23724_v16  ;;  %v23598_v19 = vpop.xlane.xlu0 %23597 }
0x1087   :  { %v23642_v38 = vmul.f32 0.015625, %v23598_v19  ;;  %v23705_v10 = vmul.f32 %v33783_v62, %v33783_v62 }
0x1088   :  { %v28289_v44 = vpop.eup %28288  ;;  %v23844_v35 = vadd.f32 1e-05, %v23812_v22 }
0x1089   :  { %v23905_v37 = vmul.f32 %v28289_v44, %v33530_v21  ;;  %v33794_v28 = vsub.f32 %v33562_v48, %v23642_v38  ;;  %v23727_v13 = vpop.xlane.xlu1 %23726  ;;  %v23785_v16 = vsel %vm75_vm0, %v23705_v10, 0.0 }
0x108a   :  { %28294 = vrsqrt.f32 %v23844_v35  ;;  %v23813_v39 = vmul.f32 0.015625, %v23727_v13  ;;  %23786 = vadd.xlane.f32.xlu1 %v23785_v16  ;;  %v23601_v0 = vpop.xlane.xlu0 %23600 }
0x108b   :  { %v23943_v15 = vmul.f32 %v33790_v55, %v23905_v37  ;;  %v23643_v22 = vmul.f32 0.015625, %v23601_v0  ;;  %v23706_v21 = vmul.f32 %v33794_v28, %v33794_v28 }
0x108c   :  { %v28291_v38 = vpop.eup %28290  ;;  %v23845_v19 = vadd.f32 1e-05, %v23813_v39 }
0x108d   :  { %v23981_v44 = vadd.f32 %v33800_v45, %v23943_v15  ;;  %v23906_v10 = vmul.f32 %v28291_v38, %v33527_v17  ;;  %v33808_v48 = vsub.f32 %v33579_v11, %v23643_v22  ;;  %v23730_v4 = vpop.xlane.xlu1 %23729  ;;  %v23788_v35 = vsel %vm75_vm0, %v23706_v21, 0.0 }
0x108e   :  { %28296 = vrsqrt.f32 %v23845_v19  ;;  %v23814_v13 = vmul.f32 0.015625, %v23730_v4  ;;  %v23604_v16 = vpop.xlane.xlu0 %23603  ;;  %23789 = vadd.xlane.f32.xlu0 %v23788_v35 }
0x108f   :  { %v23944_v37 = vmul.f32 %v33790_v55, %v23906_v10  ;;  %v23644_v0 = vmul.f32 0.015625, %v23604_v16  ;;  %25339 = vmatmul.mubr.msk.f32.vlgmr.msra.gmra.mrb[90].mxu0 %vm75_vm0, %v23981_v44  ;;  %v23707_v39 = vmul.f32 %v33808_v48, %v33808_v48 }
0x1090   :  { %v28293_v15 = vpop.eup %28292  ;;  %v23846_v17 = vadd.f32 1e-05, %v23814_v13  ;;  %24207 = vmatprep.mubr.f32.mxu0 %v34649_v40 }
0x1091   :  { %v23982_v22 = vadd.f32 %v33800_v45, %v23944_v37  ;;  %v23907_v21 = vmul.f32 %v28293_v15, %v33535_v31  ;;  %v33819_v4 = vsub.f32 %v33590_v43, %v23644_v0  ;;  %v23733_v38 = vpop.xlane.xlu1 %23732  ;;  %v23791_v19 = vsel %vm75_vm0, %v23707_v39, 0.0 }
0x1092   :  { %28298 = vrsqrt.f32 %v23846_v17  ;;  %v23815_v10 = vmul.f32 0.015625, %v23733_v38  ;;  %23792 = vadd.xlane.f32.xlu1 %v23791_v19 }
0x1093   :  { %v23945_v44 = vmul.f32 %v33790_v55, %v23907_v21  ;;  %25340 = vmatmul.mubr.msk.f32.gmra.mrb[92].mxu0 %vm75_vm0, %v23982_v22  ;;  %v23708_v35 = vmul.f32 %v33819_v4, %v33819_v4 }
0x1094   :  { %v28295_v13 = vpop.eup %28294  ;;  %v23847_v16 = vadd.f32 1e-05, %v23815_v10  ;;  %24213 = vmatprep.mubr.f32.mxu0 %v34649_v40 }
0x1095   :  { %v23983_v31 = vadd.f32 %v33800_v45, %v23945_v44  ;;  %v23908_v37 = vmul.f32 %v28295_v13, %v33541_v53  ;;  %v23736_v0 = vpop.xlane.xlu1 %23735  ;;  %v23794_v39 = vsel %vm75_vm0, %v23708_v35, 0.0 }
0x1096   :  { %28300 = vrsqrt.f32 %v23847_v16  ;;  %v23816_v15 = vmul.f32 0.015625, %v23736_v0  ;;  %23795 = vadd.xlane.f32.xlu0 %v23794_v39 }
0x1097   :  { %v23946_v17 = vmul.f32 %v33790_v55, %v23908_v37  ;;  %25341 = vmatmul.mubr.msk.f32.gmra.mrb[94].mxu0 %vm75_vm0, %v23983_v31 }
0x1098   :  { %v28297_v22 = vpop.eup %28296  ;;  %v23848_v21 = vadd.f32 1e-05, %v23816_v15  ;;  %24219 = vmatprep.mubr.f32.mxu0 %v34649_v40 }
0x1099   :  { %v23984_v38 = vadd.f32 %v33800_v45, %v23946_v17  ;;  %v23909_v19 = vmul.f32 %v28297_v22, %v33556_v59  ;;  %v23739_v10 = vpop.xlane.xlu1 %23738 }
0x109a   :  { %28302 = vrsqrt.f32 %v23848_v21  ;;  %v23817_v53 = vmul.f32 0.015625, %v23739_v10 }
0x109b   :  { %v23947_v44 = vmul.f32 %v33790_v55, %v23909_v19  ;;  %25342 = vmatmul.mubr.msk.f32.gmra.mrb[96].mxu0 %vm75_vm0, %v23984_v38 }
0x109c   :  { %v28299_v35 = vpop.eup %28298  ;;  %v23849_v13 = vadd.f32 1e-05, %v23817_v53  ;;  %24225 = vmatprep.mubr.f32.mxu0 %v34649_v40 }
0x109d   :  { %v23985_v16 = vadd.f32 %v33800_v45, %v23947_v44  ;;  %v23910_v31 = vmul.f32 %v28299_v35, %v33570_v9  ;;  %v23742_v37 = vpop.xlane.xlu1 %23741 }
0x109e   :  { %28304 = vrsqrt.f32 %v23849_v13  ;;  %v23818_v0 = vmul.f32 0.015625, %v23742_v37 }
0x109f   :  { %v23948_v59 = vmul.f32 %v33790_v55, %v23910_v31  ;;  %25343 = vmatmul.mubr.msk.f32.gmra.mrb[98].mxu0 %vm75_vm0, %v23985_v16 }
0x10a0   :  { %v28301_v39 = vpop.eup %28300  ;;  %v23850_v15 = vadd.f32 1e-05, %v23818_v0  ;;  %24231 = vmatprep.mubr.f32.mxu0 %v34649_v40 }
0x10a1   :  { %v23986_v17 = vadd.f32 %v33800_v45, %v23948_v59  ;;  %v23911_v22 = vmul.f32 %v28301_v39, %v33584_v29  ;;  %v23745_v21 = vpop.xlane.xlu1 %23744 }
0x10a2   :  { %28306 = vrsqrt.f32 %v23850_v15  ;;  %v23819_v38 = vmul.f32 0.015625, %v23745_v21  ;;  %v24458_v15 = vld [vmem:[%s34388_s10] sm:$0xff] }
0x10a3   :  { %v23949_v9 = vmul.f32 %v33790_v55, %v23911_v22  ;;  %25344 = vmatmul.mubr.msk.f32.gmra.mrb[100].mxu0 %vm75_vm0, %v23986_v17  ;;  %v24459_v17 = vld [vmem:[%s34388_s10 + $0x8] sm:$0xff] }
0x10a4   :  { %v28303_v19 = vpop.eup %28302  ;;  %v23851_v10 = vadd.f32 1e-05, %v23819_v38  ;;  %24237 = vmatprep.mubr.f32.mxu0 %v34649_v40 }
0x10a5   :  { %v23987_v53 = vadd.f32 %v33800_v45, %v23949_v9  ;;  %v23912_v44 = vmul.f32 %v28303_v19, %v33595_v36  ;;  %v23748_v35 = vpop.xlane.xlu1 %23747  ;;  %v28393_v19 = vmov 0.0|0.0  }
0x10a6   :  { %28308 = vrsqrt.f32 %v23851_v10  ;;  %v23820_v13 = vmul.f32 0.015625, %v23748_v35  ;;  %27556 = vmatprep.subr.bf16.mxu1 %v28393_v19 }
0x10a7   :  { %v23950_v29 = vmul.f32 %v33790_v55, %v23912_v44  ;;  %25345 = vmatmul.mubr.msk.f32.gmra.mrb[102].mxu0 %vm75_vm0, %v23987_v53  ;;  %v24460_v44 = vld [vmem:[%s34388_s10 + $0x10] sm:$0xff] }
0x10a8   :  { %v28305_v16 = vpop.eup %28304  ;;  %v23852_v31 = vadd.f32 1e-05, %v23820_v13  ;;  %24243 = vmatprep.mubr.f32.mxu0 %v34649_v40 }
0x10a9   :  { %v23988_v37 = vadd.f32 %v33800_v45, %v23950_v29  ;;  %v23913_v0 = vmul.f32 %v28305_v16, %v33615_v42  ;;  %v23751_v59 = vpop.xlane.xlu1 %23750  ;;  %v27557_v42 = vpack.c.bf16 %v24459_v17, %v24458_v15 }
0x10aa   :  { %28310 = vrsqrt.f32 %v23852_v31  ;;  %v23821_v39 = vmul.f32 0.015625, %v23751_v59 }
0x10ab   :  { %v23951_v36 = vmul.f32 %v33790_v55, %v23913_v0  ;;  %25346 = vmatmul.mubr.msk.f32.gmra.mrb[104].mxu0 %vm75_vm0, %v23988_v37  ;;  %27558 = vmatpush1.bf16.msra.mxu1 %v27557_v42 }
0x10ac   :  { %v28307_v22 = vpop.eup %28306  ;;  %v23853_v21 = vadd.f32 1e-05, %v23821_v39  ;;  %24249 = vmatprep.mubr.f32.mxu0 %v34649_v40  ;;  %27559 = vmatprep.subr.bf16.mxu1 %v28393_v19  ;;  %v24462_v39 = vld [vmem:[%s34388_s10 + $0x20] sm:$0xff] }
0x10ad   :  { %v23989_v38 = vadd.f32 %v33800_v45, %v23951_v36  ;;  %v23914_v9 = vmul.f32 %v28307_v22, %v33633_v27  ;;  %v24461_v27 = vld [vmem:[%s34388_s10 + $0x18] sm:$0xff]  ;;  %v24463_v36 = vld [vmem:[%s34388_s10 + $0x28] sm:$0xff] }
0x10ae   :  { %28312 = vrsqrt.f32 %v23853_v21  ;;  %v27560_v29 = vpack.c.bf16 %v24461_v27, %v24460_v44  ;;  %v27563_v22 = vpack.c.bf16 %v24463_v36, %v24462_v39  ;;  %v24464_v27 = vld [vmem:[%s34388_s10 + $0x30] sm:$0xff]  ;;  %v24467_v39 = vld [vmem:[%s34388_s10 + $0x48] sm:$0xff] }
0x10af   :  { %v23952_v10 = vmul.f32 %v33790_v55, %v23914_v9  ;;  %25347 = vmatmul.mubr.msk.f32.gmra.mrb[106].mxu0 %vm75_vm0, %v23989_v38  ;;  %v23607_v53 = vpop.xlane.xlu0 %23606 }
0x10b0   :  { %v28309_v35 = vpop.eup %28308  ;;  %v23645_v13 = vmul.f32 0.015625, %v23607_v53  ;;  %24255 = vmatprep.mubr.f32.mxu0 %v34649_v40  ;;  %27561 = vmatpush1.bf16.msra.mxu1 %v27560_v29  ;;  %v23757_v53 = vpop.xlane.xlu1 %23756 }
0x10b1   :  { %v23990_v16 = vadd.f32 %v33800_v45, %v23952_v10  ;;  %v23915_v31 = vmul.f32 %v28309_v35, %v33651_v58  ;;  %27562 = vmatprep.subr.bf16.mxu1 %v28393_v19  ;;  %v23823_v36 = vmul.f32 0.015625, %v23757_v53 }
0x10b2   :  { %v33880_v37 = vsub.f32 %v33696_v56, %v23645_v13 }
0x10b3   :  { %v23953_v0 = vmul.f32 %v33790_v55, %v23915_v31  ;;  %25348 = vmatmul.mubr.msk.f32.gmra.mrb[108].mxu0 %vm75_vm0, %v23990_v16  ;;  %v23610_v59 = vpop.xlane.xlu0 %23609 }
0x10b4   :  { %v28311_v58 = vpop.eup %28310  ;;  %v23646_v15 = vmul.f32 0.015625, %v23610_v59  ;;  %24261 = vmatprep.mubr.f32.mxu0 %v34649_v40  ;;  %v23709_v17 = vmul.f32 %v33880_v37, %v33880_v37  ;;  %27564 = vmatpush1.bf16.msra.mxu1 %v27563_v22  ;;  %v24466_v59 = vld [vmem:[%s34388_s10 + $0x40] sm:$0xff] }
0x10b5   :  { %v23991_v21 = vadd.f32 %v33800_v45, %v23953_v0  ;;  %v23916_v42 = vmul.f32 %v28311_v58, %v33669_v49  ;;  %v24465_v49 = vld [vmem:[%s34388_s10 + $0x38] sm:$0xff]  ;;  %27565 = vmatprep.subr.bf16.mxu1 %v28393_v19 }
0x10b6   :  { %v33897_v38 = vsub.f32 %v33700_v1, %v23646_v15  ;;  %v23797_v9 = vsel %vm75_vm0, %v23709_v17, 0.0  ;;  %v27566_v16 = vpack.c.bf16 %v24465_v49, %v24464_v27  ;;  %v27569_v17 = vpack.c.bf16 %v24467_v39, %v24466_v59 }
0x10b7   :  { %v23954_v10 = vmul.f32 %v33790_v55, %v23916_v42  ;;  %25349 = vmatmul.mubr.msk.f32.gmra.mrb[110].mxu0 %vm75_vm0, %v23991_v21  ;;  %23798 = vadd.xlane.f32.xlu1 %v23797_v9  ;;  %v23613_v44 = vpop.xlane.xlu0 %23612  ;;  %v24468_v21 = vld [vmem:[%s34388_s10 + $0x50] sm:$0xff]  ;;  %v24469_v42 = vld [vmem:[%s34388_s10 + $0x58] sm:$0xff] }
0x10b8   :  { %v28313_v35 = vpop.eup %28312  ;;  %v23647_v13 = vmul.f32 0.015625, %v23613_v44  ;;  %24267 = vmatprep.mubr.f32.mxu0 %v34649_v40  ;;  %v23710_v29 = vmul.f32 %v33897_v38, %v33897_v38  ;;  %27567 = vmatpush1.bf16.msra.mxu1 %v27566_v16  ;;  %v23855_v44 = vadd.f32 1e-05, %v23823_v36  ;;  %v24471_v16 = vld [vmem:[%s34388_s10 + $0x68] sm:$0xff] }
0x10b9   :  { %v23992_v31 = vadd.f32 %v33800_v45, %v23954_v10  ;;  %v23917_v0 = vmul.f32 %v28313_v35, %v33675_v3  ;;  %27568 = vmatprep.subr.bf16.mxu1 %v28393_v19  ;;  %v27572_v35 = vpack.c.bf16 %v24469_v42, %v24468_v21  ;;  %v24473_v21 = vld [vmem:[%s34388_s10 + $0x78] sm:$0xff] }
0x10ba   :  { %v33921_v58 = vsub.f32 %v33711_v50, %v23647_v13  ;;  %v23800_v15 = vsel %vm75_vm0, %v23710_v29, 0.0  ;;  %v24470_v29 = vld [vmem:[%s34388_s10 + $0x60] sm:$0xff]  ;;  %28314 = vrsqrt.f32 %v23855_v44 }
0x10bb   :  { %v23955_v22 = vmul.f32 %v33790_v55, %v23917_v0  ;;  %25350 = vmatmul.mubr.msk.f32.gmra.mrb[112].mxu0 %vm75_vm0, %v23992_v31  ;;  %23801 = vadd.xlane.f32.xlu0 %v23800_v15  ;;  %v23616_v3 = vpop.xlane.xlu0 %23615  ;;  %v27575_v36 = vpack.c.bf16 %v24471_v16, %v24470_v29  ;;  %v24476_v29 = vld [vmem:[%s34388_s10 + $0x90] sm:$0xff]  ;;  %v24477_v16 = vld [vmem:[%s34388_s10 + $0x98] sm:$0xff] }
0x10bc   :  { %v23648_v9 = vmul.f32 0.015625, %v23616_v3  ;;  %24273 = vmatprep.mubr.f32.mxu0 %v34649_v40  ;;  %v23711_v10 = vmul.f32 %v33921_v58, %v33921_v58  ;;  %27570 = vmatpush1.bf16.msra.mxu1 %v27569_v17  ;;  %v24472_v3 = vld [vmem:[%s34388_s10 + $0x70] sm:$0xff] }
0x10bd   :  { %v23993_v53 = vadd.f32 %v33800_v45, %v23955_v22  ;;  %27571 = vmatprep.subr.bf16.mxu1 %v28393_v19  ;;  %v27578_v42 = vpack.c.bf16 %v24473_v21, %v24472_v3  ;;  %v24480_v3 = vld [vmem:[%s34388_s10 + $0xb0] sm:$0xff]  ;;  %v24481_v21 = vld [vmem:[%s34388_s10 + $0xb8] sm:$0xff] }
0x10be   :  { %v33938_v27 = vsub.f32 %v33719_v30, %v23648_v9  ;;  %v23803_v49 = vsel %vm75_vm0, %v23711_v10, 0.0  ;;  %v24474_v9 = vld [vmem:[%s34388_s10 + $0x80] sm:$0xff]  ;;  %v24475_v10 = vld [vmem:[%s34388_s10 + $0x88] sm:$0xff] }
0x10bf   :  { %25351 = vmatmul.mubr.msk.f32.gmra.mrb[114].mxu0 %vm75_vm0, %v23993_v53  ;;  %23804 = vadd.xlane.f32.xlu1 %v23803_v49  ;;  %v23754_v13 = vpop.xlane.xlu0 %23753  ;;  %v27581_v44 = vpack.c.bf16 %v24475_v10, %v24474_v9  ;;  %v24482_v10 = vld [vmem:[%s34388_s10 + $0xc0] sm:$0xff] }
0x10c0   :  { %v23822_v31 = vmul.f32 0.015625, %v23754_v13  ;;  %v23712_v0 = vmul.f32 %v33938_v27, %v33938_v27  ;;  %24279 = vmatprep.mubr.f32.mxu0 %v34649_v40  ;;  %27573 = vmatpush1.bf16.msra.mxu1 %v27572_v35 }
0x10c1   :  { %27574 = vmatprep.subr.bf16.mxu1 %v28393_v19 }
0x10c2   :  { %v23854_v59 = vadd.f32 1e-05, %v23822_v31  ;;  %v23806_v39 = vsel %vm75_vm0, %v23712_v0, 0.0  ;;  %v27584_v31 = vpack.c.bf16 %v24477_v16, %v24476_v29  ;;  %v24486_v29 = vld [vmem:[%s34388_s10 + $0xe0] sm:$0xff]  ;;  %v24487_v16 = vld [vmem:[%s34388_s10 + $0xe8] sm:$0xff] }
0x10c3   :  { %23807 = vadd.xlane.f32.xlu0 %v23806_v39  ;;  %v23760_v15 = vpop.xlane.xlu0 %23759 }
0x10c4   :  { %28316 = vrsqrt.f32 %v23854_v59  ;;  %v23824_v17 = vmul.f32 0.015625, %v23760_v15  ;;  %27576 = vmatpush1.bf16.msra.mxu1 %v27575_v36  ;;  %v28315_v53 = vpop.eup %28314  ;;  %v24478_v36 = vld [vmem:[%s34388_s10 + $0xa0] sm:$0xff]  ;;  %v24479_v15 = vld [vmem:[%s34388_s10 + $0xa8] sm:$0xff] }
0x10c5   :  { %27577 = vmatprep.subr.bf16.mxu1 %v28393_v19  ;;  %v23919_v35 = vmul.f32 %v28315_v53, %v33681_v52  ;;  %v24483_v53 = vld [vmem:[%s34388_s10 + $0xc8] sm:$0xff] }
0x10c6   :  { %v23856_v22 = vadd.f32 1e-05, %v23824_v17  ;;  %v27587_v17 = vpack.c.bf16 %v24479_v15, %v24478_v36 }
0x10c7   :  { %v23957_v39 = vmul.f32 %v33790_v55, %v23919_v35  ;;  %v24485_v35 = vld [vmem:[%s34388_s10 + $0xd8] sm:$0xff] }
0x10c8   :  { %28318 = vrsqrt.f32 %v23856_v22  ;;  %27579 = vmatpush1.bf16.msra.mxu1 %v27578_v42  ;;  %v27590_v42 = vpack.c.bf16 %v24481_v21, %v24480_v3 }
0x10c9   :  { %27580 = vmatprep.subr.bf16.mxu1 %v28393_v19  ;;  %v23995_v22 = vadd.f32 %v33800_v45, %v23957_v39 }
0x10cc   :  { %27582 = vmatpush1.bf16.msra.mxu1 %v27581_v44  ;;  %v27593_v44 = vpack.c.bf16 %v24483_v53, %v24482_v10 }
0x10cd   :  { %27583 = vmatprep.subr.bf16.mxu1 %v28393_v19 }
0x10ce   :  { %v28317_v49 = vpop.eup %28316 }
0x10cf   :  { %v23918_v13 = vmul.f32 %v28317_v49, %v33716_v61  ;;  %v24484_v49 = vld [vmem:[%s34388_s10 + $0xd0] sm:$0xff] }
0x10d0   :  { %27585 = vmatpush1.bf16.msra.mxu1 %v27584_v31  ;;  %v27599_v31 = vpack.c.bf16 %v24487_v16, %v24486_v29 }
0x10d1   :  { %v23956_v0 = vmul.f32 %v33790_v55, %v23918_v13  ;;  %27586 = vmatprep.subr.bf16.mxu1 %v28393_v19  ;;  %v27596_v13 = vpack.c.bf16 %v24485_v35, %v24484_v49 }
0x10d2   :  { %v28319_v59 = vpop.eup %28318 }
0x10d3   :  { %v23994_v52 = vadd.f32 %v33800_v45, %v23956_v0  ;;  %v23920_v61 = vmul.f32 %v28319_v59, %v33724_v41  ;;  %v24488_v0 = vld [vmem:[%s34388_s10 + $0xf0] sm:$0xff]  ;;  %v24489_v59 = vld [vmem:[%s34388_s10 + $0xf8] sm:$0xff] }
0x10d4   :  { %27588 = vmatpush1.bf16.msra.mxu1 %v27587_v17  ;;  %v27602_v39 = vpack.c.bf16 %v24489_v59, %v24488_v0 }
0x10d5   :  { %25352 = vmatmul.mubr.msk.f32.gmra.mrb[116].mxu0 %vm75_vm0, %v23994_v52  ;;  %v23958_v41 = vmul.f32 %v33790_v55, %v23920_v61  ;;  %27589 = vmatprep.subr.bf16.mxu1 %v28393_v19 }
0x10d6   :  { %24285 = vmatprep.mubr.f32.mxu0 %v34649_v40 }
0x10d7   :  { %v23996_v9 = vadd.f32 %v33800_v45, %v23958_v41 }
0x10d8   :  { %27591 = vmatpush1.bf16.msra.mxu1 %v27590_v42 }
0x10d9   :  { %25353 = vmatmul.mubr.msk.f32.gmra.mrb[118].mxu0 %vm75_vm0, %v23995_v22  ;;  %27592 = vmatprep.subr.bf16.mxu1 %v28393_v19 }
0x10da   :  { %24291 = vmatprep.mubr.f32.mxu0 %v34649_v40 }
0x10dc   :  { %27594 = vmatpush1.bf16.msra.mxu1 %v27593_v44 }
0x10dd   :  { %25354 = vmatmul.mubr.msk.f32.gmra.mrb[120].mxu0 %vm75_vm0, %v23996_v9  ;;  %27595 = vmatprep.subr.bf16.mxu1 %v28393_v19 }
0x10de   :  { %24297 = vmatprep.mubr.f32.mxu0 %v34649_v40 }
0x10e0   :  { %27597 = vmatpush1.bf16.msra.mxu1 %v27596_v13 }
0x10e1   :  { %27598 = vmatprep.subr.bf16.mxu1 %v28393_v19 }
0x10e4   :  { %27600 = vmatpush1.bf16.msra.mxu1 %v27599_v31 }
0x10e5   :  { %27601 = vmatprep.subr.bf16.mxu1 %v28393_v19 }
0x10e8   :  { %27603 = vmatpush1.bf16.msra.mxu1 %v27602_v39 }
0x10ea   :  { %v23766_v52 = vpop.xlane.xlu0 %23765 }
0x10eb   :  { %v23826_v61 = vmul.f32 0.015625, %v23766_v52  ;;  %v23763_v36 = vpop.xlane.xlu1 %23762 }
0x10ec   :  { %v23825_v15 = vmul.f32 0.015625, %v23763_v36 }
0x10ed   :  { %v23858_v17 = vadd.f32 1e-05, %v23826_v61 }
0x10ee   :  { %v23857_v22 = vadd.f32 1e-05, %v23825_v15 }
0x10ef   :  { %28320 = vrsqrt.f32 %v23858_v17 }
0x10f0   :  { %28322 = vrsqrt.f32 %v23857_v22 }
0x10f2   :  { %v23772_v41 = vpop.xlane.xlu0 %23771 }
0x10f3   :  { %v23828_v19 = vmul.f32 0.015625, %v23772_v41  ;;  %v23769_v3 = vpop.xlane.xlu1 %23768 }
0x10f4   :  { %v23827_v21 = vmul.f32 0.015625, %v23769_v3 }
0x10f5   :  { %v23860_v42 = vadd.f32 1e-05, %v23828_v19 }
0x10f6   :  { %v23859_v9 = vadd.f32 1e-05, %v23827_v21 }
0x10f7   :  { %28324 = vrsqrt.f32 %v23860_v42  ;;  %v23775_v10 = vpop.xlane.xlu1 %23774 }
0x10f8   :  { %28326 = vrsqrt.f32 %v23859_v9  ;;  %v23829_v53 = vmul.f32 0.015625, %v23775_v10 }
0x10f9   :  { %v28321_v44 = vpop.eup %28320 }
0x10fa   :  { %v28323_v49 = vpop.eup %28322  ;;  %v23861_v35 = vadd.f32 1e-05, %v23829_v53  ;;  %v23922_v13 = vmul.f32 %v28321_v44, %v33735_v18 }
0x10fb   :  { %v23921_v29 = vmul.f32 %v28323_v49, %v33738_v7  ;;  %v23778_v16 = vpop.xlane.xlu0 %23777 }
0x10fc   :  { %28328 = vrsqrt.f32 %v23861_v35  ;;  %v23830_v31 = vmul.f32 0.015625, %v23778_v16  ;;  %v23960_v39 = vmul.f32 %v33790_v55, %v23922_v13 }
0x10fd   :  { %v23959_v0 = vmul.f32 %v33790_v55, %v23921_v29 }
0x10fe   :  { %v23862_v59 = vadd.f32 1e-05, %v23830_v31  ;;  %v23998_v7 = vadd.f32 %v33800_v45, %v23960_v39 }
0x10ff   :  { %v23997_v52 = vadd.f32 %v33800_v45, %v23959_v0  ;;  %v23781_v61 = vpop.xlane.xlu1 %23780 }
0x1100   :  { %28330 = vrsqrt.f32 %v23862_v59  ;;  %v23831_v36 = vmul.f32 0.015625, %v23781_v61 }
0x1101   :  { %v28325_v15 = vpop.eup %28324  ;;  %25355 = vmatmul.mubr.msk.f32.gmra.mrb[122].mxu0 %vm75_vm0, %v23997_v52 }
0x1102   :  { %v28327_v17 = vpop.eup %28326  ;;  %v23863_v18 = vadd.f32 1e-05, %v23831_v36  ;;  %24303 = vmatprep.mubr.f32.mxu0 %v34649_v40  ;;  %v23924_v22 = vmul.f32 %v28325_v15, %v33747_v20 }
0x1103   :  { %v23923_v41 = vmul.f32 %v28327_v17, %v33750_v23  ;;  %v23784_v19 = vpop.xlane.xlu0 %23783 }
0x1104   :  { %28332 = vrsqrt.f32 %v23863_v18  ;;  %v23832_v3 = vmul.f32 0.015625, %v23784_v19  ;;  %v23962_v10 = vmul.f32 %v33790_v55, %v23924_v22 }
0x1105   :  { %v23961_v21 = vmul.f32 %v33790_v55, %v23923_v41  ;;  %25356 = vmatmul.mubr.msk.f32.gmra.mrb[124].mxu0 %vm75_vm0, %v23998_v7 }
0x1106   :  { %v28329_v42 = vpop.eup %28328  ;;  %v23864_v9 = vadd.f32 1e-05, %v23832_v3  ;;  %24309 = vmatprep.mubr.f32.mxu0 %v34649_v40  ;;  %v24000_v23 = vadd.f32 %v33800_v45, %v23962_v10 }
0x1107   :  { %v23999_v53 = vadd.f32 %v33800_v45, %v23961_v21  ;;  %v23925_v44 = vmul.f32 %v28329_v42, %v33758_v24 }
0x1108   :  { %28334 = vrsqrt.f32 %v23864_v9 }
0x1109   :  { %25357 = vmatmul.mubr.msk.f32.gmra.mrb[126].mxu0 %vm75_vm0, %v23999_v53  ;;  %v23963_v49 = vmul.f32 %v33790_v55, %v23925_v44 }
0x110a   :  { %v28331_v20 = vpop.eup %28330  ;;  %24315 = vmatprep.mubr.f32.mxu0 %v34649_v40 }
0x110b   :  { %v23926_v35 = vmul.f32 %v28331_v20, %v33764_v54  ;;  %v24001_v29 = vadd.f32 %v33800_v45, %v23963_v49 }
0x110d   :  { %25358 = vmatmul.mubr.msk.f32.gmra.mrb[128].mxu0 %vm75_vm0, %v24000_v23  ;;  %v23964_v24 = vmul.f32 %v33790_v55, %v23926_v35 }
0x110e   :  { %v28333_v13 = vpop.eup %28332  ;;  %24321 = vmatprep.mubr.f32.mxu0 %v34649_v40 }
0x110f   :  { %v23927_v16 = vmul.f32 %v28333_v13, %v33770_v6  ;;  %v24002_v0 = vadd.f32 %v33800_v45, %v23964_v24 }
0x1111   :  { %25359 = vmatmul.mubr.msk.f32.gmra.mrb[130].mxu0 %vm75_vm0, %v24001_v29  ;;  %v23965_v54 = vmul.f32 %v33790_v55, %v23927_v16 }
0x1112   :  { %v28335_v31 = vpop.eup %28334  ;;  %24327 = vmatprep.mubr.f32.mxu0 %v34649_v40 }
0x1113   :  { %v23928_v59 = vmul.f32 %v28335_v31, %v33776_v60  ;;  %v24003_v39 = vadd.f32 %v33800_v45, %v23965_v54 }
0x1115   :  { %25360 = vmatmul.mubr.msk.f32.gmra.mrb[132].mxu0 %vm75_vm0, %v24002_v0  ;;  %v23966_v52 = vmul.f32 %v33790_v55, %v23928_v59 }
0x1116   :  { %24333 = vmatprep.mubr.f32.mxu0 %v34649_v40 }
0x1117   :  { %v23787_v6 = vpop.xlane.xlu1 %23786  ;;  %v24004_v15 = vadd.f32 %v33800_v45, %v23966_v52 }
0x1118   :  { %v23833_v61 = vmul.f32 0.015625, %v23787_v6 }
0x1119   :  { %25361 = vmatmul.mubr.msk.f32.gmra.mrb[134].mxu0 %vm75_vm0, %v24003_v39 }
0x111a   :  { %v23865_v36 = vadd.f32 1e-05, %v23833_v61  ;;  %24339 = vmatprep.mubr.f32.mxu0 %v34649_v40 }
0x111b   :  { %v23790_v17 = vpop.xlane.xlu0 %23789 }
0x111c   :  { %28336 = vrsqrt.f32 %v23865_v36  ;;  %v23834_v60 = vmul.f32 0.015625, %v23790_v17 }
0x111d   :  { %25362 = vmatmul.mubr.msk.f32.gmra.mrb[136].mxu0 %vm75_vm0, %v24004_v15 }
0x111e   :  { %v23866_v18 = vadd.f32 1e-05, %v23834_v60  ;;  %24345 = vmatprep.mubr.f32.mxu0 %v34649_v40 }
0x111f   :  { %v23793_v7 = vpop.xlane.xlu1 %23792 }
0x1120   :  { %28338 = vrsqrt.f32 %v23866_v18  ;;  %v23835_v22 = vmul.f32 0.015625, %v23793_v7  ;;  %v24031_v18 = vlaneseq }
0x1122   :  { %v23867_v41 = vadd.f32 1e-05, %v23835_v22 }
0x1123   :  { %v23796_v19 = vpop.xlane.xlu0 %23795 }
0x1124   :  { %28340 = vrsqrt.f32 %v23867_v41  ;;  %v23836_v3 = vmul.f32 0.015625, %v23796_v19  ;;  %v24032_v19 = vshrl.u32 %v24031_v18, 7 }
0x1126   :  { %v28337_v21 = vpop.eup %28336  ;;  %v23868_v42 = vadd.f32 1e-05, %v23836_v3 }
0x1127   :  { %v23929_v9 = vmul.f32 %v28337_v21, %v33783_v62 }
0x1128   :  { %28342 = vrsqrt.f32 %v23868_v42 }
0x1129   :  { %v23967_v10 = vmul.f32 %v33790_v55, %v23929_v9 }
0x112a   :  { %v28339_v53 = vpop.eup %28338 }
0x112b   :  { %v24005_v44 = vadd.f32 %v33800_v45, %v23967_v10  ;;  %v23930_v20 = vmul.f32 %v28339_v53, %v33794_v28  ;;  %v24033_v10 = vsub.s32 0, %v24032_v19 }
0x112d   :  { %v23968_v23 = vmul.f32 %v33790_v55, %v23930_v20  ;;  %25363 = vmatmul.mubr.msk.f32.gmra.mrb[138].mxu0 %vm75_vm0, %v24005_v44  ;;  %v24029_v44 = vld [vmem:[%s34389_s9] sm:$0x3]  ;;  %v24037_v20 = vsub.s32 1, %v24032_v19 }
0x112e   :  { %v28341_v49 = vpop.eup %28340  ;;  %24351 = vmatprep.mubr.f32.mxu0 %v34649_v40 }
0x112f   :  { %v24006_v35 = vadd.f32 %v33800_v45, %v23968_v23  ;;  %v23931_v13 = vmul.f32 %v28341_v49, %v33808_v48  ;;  %v34107_v49 = vrot.slane %v24029_v44, %v24033_v10 }
0x1131   :  { %v23969_v62 = vmul.f32 %v33790_v55, %v23931_v13  ;;  %25364 = vmatmul.mubr.msk.f32.gmra.mrb[140].mxu0 %vm75_vm0, %v24006_v35 }
0x1132   :  { %v28343_v29 = vpop.eup %28342  ;;  %24357 = vmatprep.mubr.f32.mxu0 %v34649_v40 }
0x1133   :  { %v24007_v28 = vadd.f32 %v33800_v45, %v23969_v62  ;;  %v23932_v24 = vmul.f32 %v28343_v29, %v33819_v4  ;;  %v34111_v62 = vrot.slane %v24029_v44, %v24037_v20 }
0x1135   :  { %v23970_v16 = vmul.f32 %v33790_v55, %v23932_v24  ;;  %25365 = vmatmul.mubr.msk.f32.gmra.mrb[142].mxu0 %vm75_vm0, %v24007_v28 }
0x1136   :  { %24363 = vmatprep.mubr.f32.mxu0 %v34649_v40 }
0x1137   :  { %v24008_v31 = vadd.f32 %v33800_v45, %v23970_v16 }
0x1139   :  { %25366 = vmatmul.mubr.msk.f32.gmra.mrb[144].mxu0 %vm75_vm0, %v24008_v31 }
0x113a   :  { %24369 = vmatprep.mubr.f32.mxu0 %v34649_v40 }
0x1144   :  { %v23799_v48 = vpop.xlane.xlu1 %23798 }
0x1145   :  { %v23837_v0 = vmul.f32 0.015625, %v23799_v48 }
0x1147   :  { %v23869_v54 = vadd.f32 1e-05, %v23837_v0 }
0x1148   :  { %v23802_v59 = vpop.xlane.xlu0 %23801 }
0x1149   :  { %28344 = vrsqrt.f32 %v23869_v54  ;;  %v23838_v39 = vmul.f32 0.015625, %v23802_v59 }
0x114b   :  { %v23870_v52 = vadd.f32 1e-05, %v23838_v39 }
0x114c   :  { %v23805_v4 = vpop.xlane.xlu1 %23804 }
0x114d   :  { %28346 = vrsqrt.f32 %v23870_v52  ;;  %v23839_v6 = vmul.f32 0.015625, %v23805_v4 }
0x114f   :  { %v23871_v61 = vadd.f32 1e-05, %v23839_v6 }
0x1150   :  { %v23808_v36 = vpop.xlane.xlu0 %23807 }
0x1151   :  { %28348 = vrsqrt.f32 %v23871_v61  ;;  %v23840_v15 = vmul.f32 0.015625, %v23808_v36 }
0x1153   :  { %v28345_v17 = vpop.eup %28344  ;;  %v23872_v60 = vadd.f32 1e-05, %v23840_v15 }
0x1154   :  { %v23933_v7 = vmul.f32 %v28345_v17, %v33880_v37 }
0x1155   :  { %28350 = vrsqrt.f32 %v23872_v60 }
0x1156   :  { %v23971_v22 = vmul.f32 %v33790_v55, %v23933_v7 }
0x1157   :  { %v28347_v41 = vpop.eup %28346 }
0x1158   :  { %v24009_v3 = vadd.f32 %v33800_v45, %v23971_v22  ;;  %v23934_v21 = vmul.f32 %v28347_v41, %v33897_v38 }
0x115a   :  { %v23972_v42 = vmul.f32 %v33790_v55, %v23934_v21  ;;  %25367 = vmatmul.mubr.msk.f32.gmra.mrb[146].mxu0 %vm75_vm0, %v24009_v3 }
0x115b   :  { %v28349_v9 = vpop.eup %28348  ;;  %24375 = vmatprep.mubr.f32.mxu0 %v34649_v40 }
0x115c   :  { %v24010_v53 = vadd.f32 %v33800_v45, %v23972_v42  ;;  %v23935_v37 = vmul.f32 %v28349_v9, %v33921_v58 }
0x115e   :  { %v23973_v23 = vmul.f32 %v33790_v55, %v23935_v37  ;;  %25368 = vmatmul.mubr.msk.f32.gmra.mrb[148].mxu0 %vm75_vm0, %v24010_v53 }
0x115f   :  { %v28351_v38 = vpop.eup %28350  ;;  %24381 = vmatprep.mubr.f32.mxu0 %v34649_v40 }
0x1160   :  { %v24011_v35 = vadd.f32 %v33800_v45, %v23973_v23  ;;  %v23936_v13 = vmul.f32 %v28351_v38, %v33938_v27 }
0x1162   :  { %v23974_v58 = vmul.f32 %v33790_v55, %v23936_v13  ;;  %v24203_v29 = vpop.f32.mrb[90].mxu0  ;;  %25369 = vmatmul.mubr.msk.f32.gmra.mrb[150].mxu0 %vm75_vm0, %v24011_v35 }
0x1163   :  { %v24204_v28 = vadd.f32 %v24203_v29, %v34107_v49  ;;  %v24205_v24 = vpop.f32.mrb[91].mxu0  ;;  %24387 = vmatprep.mubr.f32.mxu0 %v34649_v40 }
0x1164   :  { %v24012_v16 = vadd.f32 %v33800_v45, %v23974_v58  ;;  %v24206_v31 = vadd.f32 %v24205_v24, %v34111_v62 }
0x1165   :  { %v24394_v27 = vmax.f32 %v24204_v28, 0.0 }
0x1166   :  { %v24395_v48 = vmax.f32 %v24206_v31, 0.0  ;;  %v24209_v0 = vpop.f32.mrb[92].mxu0  ;;  %25370 = vmatmul.mubr.msk.f32.gmra.mrb[152].mxu0 %vm75_vm0, %v24012_v16 }
0x1167   :  { %v24210_v54 = vadd.f32 %v24209_v0, %v34107_v49  ;;  %v24211_v55 = vpop.f32.mrb[93].mxu0 }
0x1168   :  { %v24212_v59 = vadd.f32 %v24211_v55, %v34111_v62  ;;  %24561 = vmatprep.mubr.f32.mxu1 %v24395_v48 }
0x1169   :  { %24562 = vmatmul.mubr.f32.vlgmr.msra.gmra.mrb[18].mxu1 %v24394_v27  ;;  %v24396_v4 = vmax.f32 %v24210_v54, 0.0 }
0x116a   :  { %v24397_v39 = vmax.f32 %v24212_v59, 0.0  ;;  %v24215_v52 = vpop.f32.mrb[94].mxu0 }
0x116b   :  { %v24216_v40 = vadd.f32 %v24215_v52, %v34107_v49  ;;  %v24217_v45 = vpop.f32.mrb[95].mxu0 }
0x116c   :  { %v24218_v6 = vadd.f32 %v24217_v45, %v34111_v62  ;;  %24566 = vmatprep.mubr.f32.mxu1 %v24397_v39 }
0x116d   :  { %24567 = vmatmul.mubr.f32.gmra.mrb[20].mxu1 %v24396_v4  ;;  %v24398_v15 = vmax.f32 %v24216_v40, 0.0 }
0x116e   :  { %v24399_v61 = vmax.f32 %v24218_v6, 0.0  ;;  %v24221_v36 = vpop.f32.mrb[96].mxu0 }
0x116f   :  { %v24222_v17 = vadd.f32 %v24221_v36, %v34107_v49  ;;  %v24223_v60 = vpop.f32.mrb[97].mxu0 }
0x1170   :  { %v24224_v18 = vadd.f32 %v24223_v60, %v34111_v62  ;;  %24571 = vmatprep.mubr.f32.mxu1 %v24399_v61 }
0x1171   :  { %24572 = vmatmul.mubr.f32.gmra.mrb[22].mxu1 %v24398_v15  ;;  %v24400_v41 = vmax.f32 %v24222_v17, 0.0 }
0x1172   :  { %v24401_v7 = vmax.f32 %v24224_v18, 0.0  ;;  %v24227_v22 = vpop.f32.mrb[98].mxu0 }
0x1173   :  { %v24228_v19 = vadd.f32 %v24227_v22, %v34107_v49  ;;  %v24229_v3 = vpop.f32.mrb[99].mxu0 }
0x1174   :  { %v24230_v21 = vadd.f32 %v24229_v3, %v34111_v62  ;;  %24576 = vmatprep.mubr.f32.mxu1 %v24401_v7 }
0x1175   :  { %24577 = vmatmul.mubr.f32.gmra.mrb[24].mxu1 %v24400_v41  ;;  %v24402_v10 = vmax.f32 %v24228_v19, 0.0 }
0x1176   :  { %v24403_v42 = vmax.f32 %v24230_v21, 0.0  ;;  %v24233_v9 = vpop.f32.mrb[100].mxu0 }
0x1177   :  { %v24234_v53 = vadd.f32 %v24233_v9, %v34107_v49  ;;  %v24235_v37 = vpop.f32.mrb[101].mxu0 }
0x1178   :  { %v24236_v44 = vadd.f32 %v24235_v37, %v34111_v62  ;;  %24581 = vmatprep.mubr.f32.mxu1 %v24403_v42 }
0x1179   :  { %24582 = vmatmul.mubr.f32.gmra.mrb[26].mxu1 %v24402_v10  ;;  %v24404_v38 = vmax.f32 %v24234_v53, 0.0 }
0x117a   :  { %v24405_v20 = vmax.f32 %v24236_v44, 0.0  ;;  %v24239_v23 = vpop.f32.mrb[102].mxu0 }
0x117b   :  { %v24240_v35 = vadd.f32 %v24239_v23, %v34107_v49  ;;  %v24241_v13 = vpop.f32.mrb[103].mxu0 }
0x117c   :  { %v24242_v58 = vadd.f32 %v24241_v13, %v34111_v62  ;;  %24586 = vmatprep.mubr.f32.mxu1 %v24405_v20 }
0x117d   :  { %24587 = vmatmul.mubr.f32.gmra.mrb[28].mxu1 %v24404_v38  ;;  %v24406_v24 = vmax.f32 %v24240_v35, 0.0 }
0x117e   :  { %v24407_v29 = vmax.f32 %v24242_v58, 0.0  ;;  %v24245_v28 = vpop.f32.mrb[104].mxu0 }
0x117f   :  { %v24246_v16 = vadd.f32 %v24245_v28, %v34107_v49  ;;  %v24247_v31 = vpop.f32.mrb[105].mxu0 }
0x1180   :  { %v24248_v48 = vadd.f32 %v24247_v31, %v34111_v62  ;;  %24591 = vmatprep.mubr.f32.mxu1 %v24407_v29 }
0x1181   :  { %24592 = vmatmul.mubr.f32.gmra.mrb[30].mxu1 %v24406_v24  ;;  %v24408_v54 = vmax.f32 %v24246_v16, 0.0 }
0x1182   :  { %v24409_v0 = vmax.f32 %v24248_v48, 0.0  ;;  %v24251_v27 = vpop.f32.mrb[106].mxu0 }
0x1183   :  { %v24252_v55 = vadd.f32 %v24251_v27, %v34107_v49  ;;  %v24253_v59 = vpop.f32.mrb[107].mxu0 }
0x1184   :  { %v24254_v39 = vadd.f32 %v24253_v59, %v34111_v62  ;;  %24596 = vmatprep.mubr.f32.mxu1 %v24409_v0 }
0x1185   :  { %24597 = vmatmul.mubr.f32.gmra.mrb[32].mxu1 %v24408_v54  ;;  %v24410_v40 = vmax.f32 %v24252_v55, 0.0 }
0x1186   :  { %v24411_v52 = vmax.f32 %v24254_v39, 0.0  ;;  %v24257_v4 = vpop.f32.mrb[108].mxu0 }
0x1187   :  { %v24258_v45 = vadd.f32 %v24257_v4, %v34107_v49  ;;  %v24259_v6 = vpop.f32.mrb[109].mxu0 }
0x1188   :  { %v24260_v61 = vadd.f32 %v24259_v6, %v34111_v62  ;;  %24601 = vmatprep.mubr.f32.mxu1 %v24411_v52 }
0x1189   :  { %24602 = vmatmul.mubr.f32.gmra.mrb[34].mxu1 %v24410_v40  ;;  %v24412_v17 = vmax.f32 %v24258_v45, 0.0 }
0x118a   :  { %v24413_v36 = vmax.f32 %v24260_v61, 0.0  ;;  %v24263_v15 = vpop.f32.mrb[110].mxu0 }
0x118b   :  { %v24264_v60 = vadd.f32 %v24263_v15, %v34107_v49  ;;  %v24265_v18 = vpop.f32.mrb[111].mxu0 }
0x118c   :  { %v24266_v7 = vadd.f32 %v24265_v18, %v34111_v62  ;;  %24606 = vmatprep.mubr.f32.mxu1 %v24413_v36 }
0x118d   :  { %24607 = vmatmul.mubr.f32.gmra.mrb[36].mxu1 %v24412_v17  ;;  %v24414_v19 = vmax.f32 %v24264_v60, 0.0 }
0x118e   :  { %v24415_v22 = vmax.f32 %v24266_v7, 0.0  ;;  %v24269_v41 = vpop.f32.mrb[112].mxu0 }
0x118f   :  { %v24270_v3 = vadd.f32 %v24269_v41, %v34107_v49  ;;  %v24271_v21 = vpop.f32.mrb[113].mxu0 }
0x1190   :  { %v24272_v42 = vadd.f32 %v24271_v21, %v34111_v62  ;;  %24611 = vmatprep.mubr.f32.mxu1 %v24415_v22 }
0x1191   :  { %24612 = vmatmul.mubr.f32.gmra.mrb[38].mxu1 %v24414_v19  ;;  %v24416_v53 = vmax.f32 %v24270_v3, 0.0 }
0x1192   :  { %v24417_v9 = vmax.f32 %v24272_v42, 0.0  ;;  %v24275_v10 = vpop.f32.mrb[114].mxu0 }
0x1193   :  { %v24276_v37 = vadd.f32 %v24275_v10, %v34107_v49  ;;  %v24277_v44 = vpop.f32.mrb[115].mxu0 }
0x1194   :  { %v24278_v20 = vadd.f32 %v24277_v44, %v34111_v62  ;;  %24616 = vmatprep.mubr.f32.mxu1 %v24417_v9 }
0x1195   :  { %24617 = vmatmul.mubr.f32.gmra.mrb[40].mxu1 %v24416_v53  ;;  %v24418_v38 = vmax.f32 %v24276_v37, 0.0 }
0x1196   :  { %v24419_v23 = vmax.f32 %v24278_v20, 0.0 }
0x1198   :  { %24621 = vmatprep.mubr.f32.mxu1 %v24419_v23 }
0x1199   :  { %24622 = vmatmul.mubr.f32.gmra.mrb[42].mxu1 %v24418_v38 }
0x11a8   :  { %v24281_v35 = vpop.f32.mrb[116].mxu0 }
0x11a9   :  { %v24282_v13 = vadd.f32 %v24281_v35, %v34107_v49  ;;  %v24283_v58 = vpop.f32.mrb[117].mxu0 }
0x11aa   :  { %v24284_v29 = vadd.f32 %v24283_v58, %v34111_v62 }
0x11ab   :  { %v24420_v16 = vmax.f32 %v24282_v13, 0.0 }
0x11ac   :  { %v24421_v28 = vmax.f32 %v24284_v29, 0.0  ;;  %v24287_v24 = vpop.f32.mrb[118].mxu0 }
0x11ad   :  { %v24288_v31 = vadd.f32 %v24287_v24, %v34107_v49  ;;  %v24289_v48 = vpop.f32.mrb[119].mxu0 }
0x11ae   :  { %v24290_v0 = vadd.f32 %v24289_v48, %v34111_v62  ;;  %24626 = vmatprep.mubr.f32.mxu1 %v24421_v28 }
0x11af   :  { %24627 = vmatmul.mubr.f32.gmra.mrb[44].mxu1 %v24420_v16  ;;  %v24422_v55 = vmax.f32 %v24288_v31, 0.0 }
0x11b0   :  { %v24423_v27 = vmax.f32 %v24290_v0, 0.0  ;;  %v24293_v54 = vpop.f32.mrb[120].mxu0 }
0x11b1   :  { %v24294_v59 = vadd.f32 %v24293_v54, %v34107_v49  ;;  %v24295_v39 = vpop.f32.mrb[121].mxu0 }
0x11b2   :  { %v24296_v52 = vadd.f32 %v24295_v39, %v34111_v62  ;;  %24631 = vmatprep.mubr.f32.mxu1 %v24423_v27 }
0x11b3   :  { %24632 = vmatmul.mubr.f32.gmra.mrb[46].mxu1 %v24422_v55  ;;  %v24424_v40 = vmax.f32 %v24294_v59, 0.0 }
0x11b4   :  { %v24425_v4 = vmax.f32 %v24296_v52, 0.0 }
0x11b6   :  { %24636 = vmatprep.mubr.f32.mxu1 %v24425_v4 }
0x11b7   :  { %24637 = vmatmul.mubr.f32.gmra.mrb[48].mxu1 %v24424_v40 }
0x11d4   :  { %v24299_v45 = vpop.f32.mrb[122].mxu0 }
0x11d5   :  { %v24300_v6 = vadd.f32 %v24299_v45, %v34107_v49  ;;  %v24301_v61 = vpop.f32.mrb[123].mxu0 }
0x11d6   :  { %v24302_v36 = vadd.f32 %v24301_v61, %v34111_v62 }
0x11d7   :  { %v24426_v60 = vmax.f32 %v24300_v6, 0.0 }
0x11d8   :  { %v24427_v15 = vmax.f32 %v24302_v36, 0.0  ;;  %v24305_v17 = vpop.f32.mrb[124].mxu0 }
0x11d9   :  { %v24306_v18 = vadd.f32 %v24305_v17, %v34107_v49  ;;  %v24307_v7 = vpop.f32.mrb[125].mxu0 }
0x11da   :  { %v24308_v22 = vadd.f32 %v24307_v7, %v34111_v62  ;;  %24641 = vmatprep.mubr.f32.mxu1 %v24427_v15 }
0x11db   :  { %24642 = vmatmul.mubr.f32.gmra.mrb[50].mxu1 %v24426_v60  ;;  %v24428_v3 = vmax.f32 %v24306_v18, 0.0 }
0x11dc   :  { %v24429_v41 = vmax.f32 %v24308_v22, 0.0  ;;  %v24311_v19 = vpop.f32.mrb[126].mxu0 }
0x11dd   :  { %v24312_v21 = vadd.f32 %v24311_v19, %v34107_v49  ;;  %v24313_v42 = vpop.f32.mrb[127].mxu0 }
0x11de   :  { %v24314_v9 = vadd.f32 %v24313_v42, %v34111_v62  ;;  %24646 = vmatprep.mubr.f32.mxu1 %v24429_v41 }
0x11df   :  { %24647 = vmatmul.mubr.f32.gmra.mrb[52].mxu1 %v24428_v3  ;;  %v24430_v37 = vmax.f32 %v24312_v21, 0.0 }
0x11e0   :  { %v24431_v10 = vmax.f32 %v24314_v9, 0.0  ;;  %v24317_v53 = vpop.f32.mrb[128].mxu0 }
0x11e1   :  { %v24318_v44 = vadd.f32 %v24317_v53, %v34107_v49  ;;  %v24319_v20 = vpop.f32.mrb[129].mxu0 }
0x11e2   :  { %v24320_v23 = vadd.f32 %v24319_v20, %v34111_v62  ;;  %24651 = vmatprep.mubr.f32.mxu1 %v24431_v10 }
0x11e3   :  { %24652 = vmatmul.mubr.f32.gmra.mrb[54].mxu1 %v24430_v37  ;;  %v24432_v13 = vmax.f32 %v24318_v44, 0.0 }
0x11e4   :  { %v24433_v38 = vmax.f32 %v24320_v23, 0.0  ;;  %v24323_v35 = vpop.f32.mrb[130].mxu0 }
0x11e5   :  { %v24324_v58 = vadd.f32 %v24323_v35, %v34107_v49  ;;  %v24325_v29 = vpop.f32.mrb[131].mxu0 }
0x11e6   :  { %v24326_v28 = vadd.f32 %v24325_v29, %v34111_v62  ;;  %24656 = vmatprep.mubr.f32.mxu1 %v24433_v38 }
0x11e7   :  { %24657 = vmatmul.mubr.f32.gmra.mrb[56].mxu1 %v24432_v13  ;;  %v24434_v31 = vmax.f32 %v24324_v58, 0.0 }
0x11e8   :  { %v24435_v24 = vmax.f32 %v24326_v28, 0.0  ;;  %v24329_v16 = vpop.f32.mrb[132].mxu0 }
0x11e9   :  { %v24330_v48 = vadd.f32 %v24329_v16, %v34107_v49  ;;  %v24331_v0 = vpop.f32.mrb[133].mxu0 }
0x11ea   :  { %v24332_v27 = vadd.f32 %v24331_v0, %v34111_v62  ;;  %24661 = vmatprep.mubr.f32.mxu1 %v24435_v24 }
0x11eb   :  { %24662 = vmatmul.mubr.f32.gmra.mrb[58].mxu1 %v24434_v31  ;;  %v24436_v59 = vmax.f32 %v24330_v48, 0.0 }
0x11ec   :  { %v24437_v54 = vmax.f32 %v24332_v27, 0.0  ;;  %v24335_v55 = vpop.f32.mrb[134].mxu0 }
0x11ed   :  { %v24336_v39 = vadd.f32 %v24335_v55, %v34107_v49  ;;  %v24337_v52 = vpop.f32.mrb[135].mxu0 }
0x11ee   :  { %v24338_v4 = vadd.f32 %v24337_v52, %v34111_v62  ;;  %24666 = vmatprep.mubr.f32.mxu1 %v24437_v54 }
0x11ef   :  { %24667 = vmatmul.mubr.f32.gmra.mrb[60].mxu1 %v24436_v59  ;;  %v24438_v6 = vmax.f32 %v24336_v39, 0.0 }
0x11f0   :  { %v24439_v40 = vmax.f32 %v24338_v4, 0.0  ;;  %v24341_v45 = vpop.f32.mrb[136].mxu0 }
0x11f1   :  { %v24342_v61 = vadd.f32 %v24341_v45, %v34107_v49  ;;  %v24343_v36 = vpop.f32.mrb[137].mxu0 }
0x11f2   :  { %v24344_v15 = vadd.f32 %v24343_v36, %v34111_v62  ;;  %24671 = vmatprep.mubr.f32.mxu1 %v24439_v40 }
0x11f3   :  { %24672 = vmatmul.mubr.f32.gmra.mrb[62].mxu1 %v24438_v6  ;;  %v24440_v60 = vmax.f32 %v24342_v61, 0.0 }
0x11f4   :  { %v24441_v17 = vmax.f32 %v24344_v15, 0.0 }
0x11f6   :  { %24676 = vmatprep.mubr.f32.mxu1 %v24441_v17 }
0x11f7   :  { %24677 = vmatmul.mubr.f32.gmra.mrb[64].mxu1 %v24440_v60 }
0x1200   :  { %v24347_v18 = vpop.f32.mrb[138].mxu0 }
0x1201   :  { %v24348_v7 = vadd.f32 %v24347_v18, %v34107_v49  ;;  %v24349_v22 = vpop.f32.mrb[139].mxu0 }
0x1202   :  { %v24350_v41 = vadd.f32 %v24349_v22, %v34111_v62 }
0x1203   :  { %v24442_v21 = vmax.f32 %v24348_v7, 0.0 }
0x1204   :  { %v24443_v19 = vmax.f32 %v24350_v41, 0.0  ;;  %v24353_v3 = vpop.f32.mrb[140].mxu0 }
0x1205   :  { %v24354_v42 = vadd.f32 %v24353_v3, %v34107_v49  ;;  %v24355_v9 = vpop.f32.mrb[141].mxu0 }
0x1206   :  { %v24356_v10 = vadd.f32 %v24355_v9, %v34111_v62  ;;  %24681 = vmatprep.mubr.f32.mxu1 %v24443_v19  ;;  %v34184_v19 = vld [vmem:[%s34390_s11] ss:$0 sm:$0xff] }
0x1207   :  { %24682 = vmatmul.mubr.f32.gmra.mrb[66].mxu1 %v24442_v21  ;;  %v24444_v44 = vmax.f32 %v24354_v42, 0.0 }
0x1208   :  { %v24445_v53 = vmax.f32 %v24356_v10, 0.0  ;;  %v24359_v37 = vpop.f32.mrb[142].mxu0 }
0x1209   :  { %v24360_v20 = vadd.f32 %v24359_v37, %v34107_v49  ;;  %v24361_v23 = vpop.f32.mrb[143].mxu0 }
0x120a   :  { %v24362_v38 = vadd.f32 %v24361_v23, %v34111_v62  ;;  %24686 = vmatprep.mubr.f32.mxu1 %v24445_v53 }
0x120b   :  { %24687 = vmatmul.mubr.f32.gmra.mrb[68].mxu1 %v24444_v44  ;;  %v24446_v58 = vmax.f32 %v24360_v20, 0.0 }
0x120c   :  { %v24447_v35 = vmax.f32 %v24362_v38, 0.0  ;;  %v24365_v13 = vpop.f32.mrb[144].mxu0 }
0x120d   :  { %v24366_v29 = vadd.f32 %v24365_v13, %v34107_v49  ;;  %v24367_v28 = vpop.f32.mrb[145].mxu0 }
0x120e   :  { %v24368_v24 = vadd.f32 %v24367_v28, %v34111_v62  ;;  %24691 = vmatprep.mubr.f32.mxu1 %v24447_v35 }
0x120f   :  { %24692 = vmatmul.mubr.f32.gmra.mrb[70].mxu1 %v24446_v58  ;;  %v24448_v31 = vmax.f32 %v24366_v29, 0.0 }
0x1210   :  { %v24449_v16 = vmax.f32 %v24368_v24, 0.0 }
0x1212   :  { %24696 = vmatprep.mubr.f32.mxu1 %v24449_v16 }
0x1213   :  { %24697 = vmatmul.mubr.f32.gmra.mrb[72].mxu1 %v24448_v31 }
0x122d   :  { %v24371_v48 = vpop.f32.mrb[146].mxu0 }
0x122e   :  { %v24372_v0 = vadd.f32 %v24371_v48, %v34107_v49  ;;  %v24373_v27 = vpop.f32.mrb[147].mxu0 }
0x122f   :  { %v24374_v54 = vadd.f32 %v24373_v27, %v34111_v62 }
0x1230   :  { %v24450_v39 = vmax.f32 %v24372_v0, 0.0 }
0x1231   :  { %v24451_v55 = vmax.f32 %v24374_v54, 0.0  ;;  %v24377_v59 = vpop.f32.mrb[148].mxu0 }
0x1232   :  { %v24378_v52 = vadd.f32 %v24377_v59, %v34107_v49  ;;  %v24379_v4 = vpop.f32.mrb[149].mxu0 }
0x1233   :  { %v24380_v40 = vadd.f32 %v24379_v4, %v34111_v62  ;;  %24701 = vmatprep.mubr.f32.mxu1 %v24451_v55 }
0x1234   :  { %24702 = vmatmul.mubr.f32.gmra.mrb[74].mxu1 %v24450_v39  ;;  %v24452_v61 = vmax.f32 %v24378_v52, 0.0 }
0x1235   :  { %v24453_v45 = vmax.f32 %v24380_v40, 0.0  ;;  %v24383_v6 = vpop.f32.mrb[150].mxu0 }
0x1236   :  { %v24384_v36 = vadd.f32 %v24383_v6, %v34107_v49  ;;  %v24385_v15 = vpop.f32.mrb[151].mxu0 }
0x1237   :  { %v24386_v17 = vadd.f32 %v24385_v15, %v34111_v62  ;;  %24706 = vmatprep.mubr.f32.mxu1 %v24453_v45 }
0x1238   :  { %24707 = vmatmul.mubr.f32.gmra.mrb[76].mxu1 %v24452_v61  ;;  %v24454_v7 = vmax.f32 %v24384_v36, 0.0 }
0x1239   :  { %v24455_v60 = vmax.f32 %v24386_v17, 0.0  ;;  %v24389_v18 = vpop.f32.mrb[152].mxu0 }
0x123a   :  { %v24390_v22 = vadd.f32 %v24389_v18, %v34107_v49  ;;  %v24391_v41 = vpop.f32.mrb[153].mxu0 }
0x123b   :  { %v24392_v3 = vadd.f32 %v24391_v41, %v34111_v62  ;;  %24711 = vmatprep.mubr.f32.mxu1 %v24455_v60 }
0x123c   :  { %v24563_v21 = vpop.f32.mrb[18].mxu1  ;;  %24712 = vmatmul.mubr.f32.gmra.mrb[78].mxu1 %v24454_v7  ;;  %v24456_v53 = vmax.f32 %v24390_v22, 0.0 }
0x123d   :  { %v24457_v42 = vmax.f32 %v24392_v3, 0.0  ;;  %v24564_v9 = vadd.f32 %v34184_v19, %v24563_v21  ;;  %v24565_v10 = vpop.f32.mrb[19].mxu1 }
0x123f   :  { %v24722_v37 = vadd.f32 %v24564_v9, %v33335_v46  ;;  %24716 = vmatprep.mubr.f32.mxu1 %v24457_v42 }
0x1240   :  { %v24568_v49 = vpop.f32.mrb[20].mxu1  ;;  %24717 = vmatmul.mubr.f32.gmra.mrb[80].mxu1 %v24456_v53 }
0x1241   :  { %24754 = vst.msk [vmem:[%s34391_s12] sm:$0xff] %vm75_vm0, %v24722_v37  ;;  %v24569_v62 = vadd.f32 %v34184_v19, %v24568_v49  ;;  %v24570_v44 = vpop.f32.mrb[21].mxu1 }
0x1243   :  { %v24723_v20 = vadd.f32 %v24569_v62, %v33331_v32 }
0x1244   :  { %v24573_v23 = vpop.f32.mrb[22].mxu1 }
0x1245   :  { %24755 = vst.msk [vmem:[%s34391_s12 + $0x8] sm:$0xff] %vm75_vm0, %v24723_v20  ;;  %v24574_v46 = vadd.f32 %v34184_v19, %v24573_v23  ;;  %v24575_v38 = vpop.f32.mrb[23].mxu1  ;;  %v35037_v20 = vld [vmem:[#allocation131_spill] sm:$0xff] }
0x1247   :  { %v24724_v35 = vadd.f32 %v24574_v46, %v33350_v8 }
0x1248   :  { %v24578_v13 = vpop.f32.mrb[24].mxu1 }
0x1249   :  { %24756 = vst.msk [vmem:[%s34391_s12 + $0x10] sm:$0xff] %vm75_vm0, %v24724_v35  ;;  %v24579_v58 = vadd.f32 %v34184_v19, %v24578_v13  ;;  %v24580_v32 = vpop.f32.mrb[25].mxu1  ;;  %v35038_v35 = vld [vmem:[#allocation115_spill] sm:$0xff] }
0x124b   :  { %v24725_v29 = vadd.f32 %v24579_v58, %v33354_v12 }
0x124c   :  { %v24583_v28 = vpop.f32.mrb[26].mxu1 }
0x124d   :  { %24757 = vst.msk [vmem:[%s34391_s12 + $0x18] sm:$0xff] %vm75_vm0, %v24725_v29  ;;  %v24584_v24 = vadd.f32 %v34184_v19, %v24583_v28  ;;  %v24585_v8 = vpop.f32.mrb[27].mxu1  ;;  %v35039_v28 = vld [vmem:[#allocation112_spill] sm:$0xff] }
0x124f   :  { %v24726_v16 = vadd.f32 %v24584_v24, %v33366_v25 }
0x1250   :  { %v24588_v31 = vpop.f32.mrb[28].mxu1 }
0x1251   :  { %24758 = vst.msk [vmem:[%s34391_s12 + $0x20] sm:$0xff] %vm75_vm0, %v24726_v16  ;;  %v24589_v48 = vadd.f32 %v34184_v19, %v24588_v31  ;;  %v24590_v12 = vpop.f32.mrb[29].mxu1 }
0x1253   :  { %v24727_v0 = vadd.f32 %v24589_v48, %v33373_v26  ;;  %v35040_v48 = vld [vmem:[#allocation133_spill] sm:$0xff] }
0x1254   :  { %v24593_v27 = vpop.f32.mrb[30].mxu1 }
0x1255   :  { %24759 = vst.msk [vmem:[%s34391_s12 + $0x28] sm:$0xff] %vm75_vm0, %v24727_v0  ;;  %v24594_v54 = vadd.f32 %v34184_v19, %v24593_v27  ;;  %v24595_v25 = vpop.f32.mrb[31].mxu1 }
0x1256   :  { %v35041_v25 = vld [vmem:[#allocation118_spill] sm:$0xff] }
0x1257   :  { %v24728_v55 = vadd.f32 %v24594_v54, %v33384_v5 }
0x1258   :  { %v24598_v59 = vpop.f32.mrb[32].mxu1 }
0x1259   :  { %24760 = vst.msk [vmem:[%s34391_s12 + $0x30] sm:$0xff] %vm75_vm0, %v24728_v55  ;;  %v24599_v39 = vadd.f32 %v34184_v19, %v24598_v59  ;;  %v24600_v26 = vpop.f32.mrb[33].mxu1 }
0x125b   :  { %v24729_v52 = vadd.f32 %v24599_v39, %v33388_v63 }
0x125c   :  { %v24603_v4 = vpop.f32.mrb[34].mxu1 }
0x125d   :  { %24761 = vst.msk [vmem:[%s34391_s12 + $0x38] sm:$0xff] %vm75_vm0, %v24729_v52  ;;  %v24604_v40 = vadd.f32 %v34184_v19, %v24603_v4  ;;  %v24605_v5 = vpop.f32.mrb[35].mxu1  ;;  %v35042_v52 = vld [vmem:[#allocation123_spill] sm:$0xff] }
0x125f   :  { %v24730_v45 = vadd.f32 %v24604_v40, %v33402_v57 }
0x1260   :  { %v24608_v6 = vpop.f32.mrb[36].mxu1 }
0x1261   :  { %24762 = vst.msk [vmem:[%s34391_s12 + $0x40] sm:$0xff] %vm75_vm0, %v24730_v45  ;;  %v24609_v61 = vadd.f32 %v34184_v19, %v24608_v6  ;;  %v24610_v63 = vpop.f32.mrb[37].mxu1  ;;  %v35043_v6 = vld [vmem:[#allocation125_spill] sm:$0xff] }
0x1263   :  { %v24731_v36 = vadd.f32 %v24609_v61, %v33408_v34 }
0x1264   :  { %v24613_v15 = vpop.f32.mrb[38].mxu1 }
0x1265   :  { %24763 = vst.msk [vmem:[%s34391_s12 + $0x48] sm:$0xff] %vm75_vm0, %v24731_v36  ;;  %v24614_v17 = vadd.f32 %v34184_v19, %v24613_v15  ;;  %v24615_v57 = vpop.f32.mrb[39].mxu1 }
0x1267   :  { %v24732_v60 = vadd.f32 %v24614_v17, %v33419_v2  ;;  %v35044_v17 = vld [vmem:[#allocation128_spill] sm:$0xff] }
0x1268   :  { %v24618_v18 = vpop.f32.mrb[40].mxu1 }
0x1269   :  { %24764 = vst.msk [vmem:[%s34391_s12 + $0x50] sm:$0xff] %vm75_vm0, %v24732_v60  ;;  %v24619_v7 = vadd.f32 %v34184_v19, %v24618_v18  ;;  %v24620_v34 = vpop.f32.mrb[41].mxu1 }
0x126a   :  { %v35045_v34 = vld [vmem:[#allocation135_spill] sm:$0xff] }
0x126b   :  { %v24733_v22 = vadd.f32 %v24619_v7, %v33428_v14 }
0x126c   :  { %v24623_v41 = vpop.f32.mrb[42].mxu1 }
0x126d   :  { %24765 = vst.msk [vmem:[%s34391_s12 + $0x58] sm:$0xff] %vm75_vm0, %v24733_v22  ;;  %v24624_v3 = vadd.f32 %v34184_v19, %v24623_v41  ;;  %v24625_v2 = vpop.f32.mrb[43].mxu1 }
0x126f   :  { %v24734_v21 = vadd.f32 %v24624_v3, %v33431_v47 }
0x1271   :  { %24766 = vst.msk [vmem:[%s34391_s12 + $0x60] sm:$0xff] %vm75_vm0, %v24734_v21  ;;  %v35046_v21 = vld [vmem:[#allocation130_spill] sm:$0xff] }
0x1282   :  { %v24628_v42 = vpop.f32.mrb[44].mxu1 }
0x1283   :  { %v24629_v9 = vadd.f32 %v34184_v19, %v24628_v42  ;;  %v24630_v14 = vpop.f32.mrb[45].mxu1 }
0x1285   :  { %v24735_v10 = vadd.f32 %v24629_v9, %v33441_v51 }
0x1286   :  { %v24633_v53 = vpop.f32.mrb[46].mxu1 }
0x1287   :  { %24767 = vst.msk [vmem:[%s34391_s12 + $0x68] sm:$0xff] %vm75_vm0, %v24735_v10  ;;  %v24634_v37 = vadd.f32 %v34184_v19, %v24633_v53  ;;  %v24635_v47 = vpop.f32.mrb[47].mxu1  ;;  %v35047_v53 = vld [vmem:[#allocation132_spill] sm:$0xff] }
0x1289   :  { %v24736_v49 = vadd.f32 %v24634_v37, %v33447_v33 }
0x128a   :  { %v24638_v62 = vpop.f32.mrb[48].mxu1 }
0x128b   :  { %24768 = vst.msk [vmem:[%s34391_s12 + $0x70] sm:$0xff] %vm75_vm0, %v24736_v49  ;;  %v24639_v44 = vadd.f32 %v34184_v19, %v24638_v62  ;;  %v24640_v51 = vpop.f32.mrb[49].mxu1 }
0x128d   :  { %v24737_v23 = vadd.f32 %v24639_v44, %v35037_v20 }
0x128f   :  { %24769 = vst.msk [vmem:[%s34391_s12 + $0x78] sm:$0xff] %vm75_vm0, %v24737_v23 }
0x12ae   :  { %v24643_v46 = vpop.f32.mrb[50].mxu1 }
0x12af   :  { %v24644_v38 = vadd.f32 %v34184_v19, %v24643_v46  ;;  %v24645_v33 = vpop.f32.mrb[51].mxu1 }
0x12b1   :  { %v24738_v13 = vadd.f32 %v24644_v38, %v35038_v35 }
0x12b2   :  { %v24648_v58 = vpop.f32.mrb[52].mxu1 }
0x12b3   :  { %24770 = vst.msk [vmem:[%s34391_s12 + $0x80] sm:$0xff] %vm75_vm0, %v24738_v13  ;;  %v24649_v32 = vadd.f32 %v34184_v19, %v24648_v58  ;;  %v24650_v29 = vpop.f32.mrb[53].mxu1 }
0x12b5   :  { %v24739_v24 = vadd.f32 %v24649_v32, %v35039_v28 }
0x12b6   :  { %v24653_v8 = vpop.f32.mrb[54].mxu1 }
0x12b7   :  { %24771 = vst.msk [vmem:[%s34391_s12 + $0x88] sm:$0xff] %vm75_vm0, %v24739_v24  ;;  %v24654_v16 = vadd.f32 %v34184_v19, %v24653_v8  ;;  %v24655_v31 = vpop.f32.mrb[55].mxu1 }
0x12b9   :  { %v24740_v12 = vadd.f32 %v24654_v16, %v35040_v48 }
0x12ba   :  { %v24658_v0 = vpop.f32.mrb[56].mxu1 }
0x12bb   :  { %24772 = vst.msk [vmem:[%s34391_s12 + $0x90] sm:$0xff] %vm75_vm0, %v24740_v12  ;;  %v24659_v27 = vadd.f32 %v34184_v19, %v24658_v0  ;;  %v24660_v54 = vpop.f32.mrb[57].mxu1 }
0x12bd   :  { %v24741_v55 = vadd.f32 %v24659_v27, %v35041_v25 }
0x12be   :  { %v24663_v59 = vpop.f32.mrb[58].mxu1 }
0x12bf   :  { %24773 = vst.msk [vmem:[%s34391_s12 + $0x98] sm:$0xff] %vm75_vm0, %v24741_v55  ;;  %v24664_v39 = vadd.f32 %v34184_v19, %v24663_v59  ;;  %v24665_v26 = vpop.f32.mrb[59].mxu1 }
0x12c1   :  { %v24742_v4 = vadd.f32 %v24664_v39, %v35042_v52 }
0x12c2   :  { %v24668_v40 = vpop.f32.mrb[60].mxu1 }
0x12c3   :  { %24774 = vst.msk [vmem:[%s34391_s12 + $0xa0] sm:$0xff] %vm75_vm0, %v24742_v4  ;;  %v24669_v5 = vadd.f32 %v34184_v19, %v24668_v40  ;;  %v24670_v45 = vpop.f32.mrb[61].mxu1 }
0x12c5   :  { %v24743_v61 = vadd.f32 %v24669_v5, %v35043_v6 }
0x12c6   :  { %v24673_v63 = vpop.f32.mrb[62].mxu1 }
0x12c7   :  { %24775 = vst.msk [vmem:[%s34391_s12 + $0xa8] sm:$0xff] %vm75_vm0, %v24743_v61  ;;  %v24674_v36 = vadd.f32 %v34184_v19, %v24673_v63  ;;  %v24675_v15 = vpop.f32.mrb[63].mxu1 }
0x12c9   :  { %v24744_v57 = vadd.f32 %v24674_v36, %v35044_v17 }
0x12ca   :  { %v24678_v60 = vpop.f32.mrb[64].mxu1 }
0x12cb   :  { %24776 = vst.msk [vmem:[%s34391_s12 + $0xb0] sm:$0xff] %vm75_vm0, %v24744_v57  ;;  %v24679_v18 = vadd.f32 %v34184_v19, %v24678_v60  ;;  %v24680_v7 = vpop.f32.mrb[65].mxu1 }
0x12cd   :  { %v24745_v22 = vadd.f32 %v24679_v18, %v35045_v34 }
0x12cf   :  { %24777 = vst.msk [vmem:[%s34391_s12 + $0xb8] sm:$0xff] %vm75_vm0, %v24745_v22 }
0x12da   :  { %v24683_v41 = vpop.f32.mrb[66].mxu1 }
0x12db   :  { %v24684_v3 = vadd.f32 %v34184_v19, %v24683_v41  ;;  %v24685_v2 = vpop.f32.mrb[67].mxu1 }
0x12dd   :  { %v24746_v42 = vadd.f32 %v24684_v3, %v35046_v21 }
0x12de   :  { %v24688_v9 = vpop.f32.mrb[68].mxu1 }
0x12df   :  { %24778 = vst.msk [vmem:[%s34391_s12 + $0xc0] sm:$0xff] %vm75_vm0, %v24746_v42  ;;  %v24689_v14 = vadd.f32 %v34184_v19, %v24688_v9  ;;  %v24690_v10 = vpop.f32.mrb[69].mxu1 }
0x12e1   :  { %v24747_v37 = vadd.f32 %v24689_v14, %v35047_v53 }
0x12e2   :  { %v24693_v47 = vpop.f32.mrb[70].mxu1 }
0x12e3   :  { %24779 = vst.msk [vmem:[%s34391_s12 + $0xc8] sm:$0xff] %vm75_vm0, %v24747_v37  ;;  %v24694_v49 = vadd.f32 %v34184_v19, %v24693_v47  ;;  %v24695_v62 = vpop.f32.mrb[71].mxu1 }
0x12e5   :  { %v24748_v44 = vadd.f32 %v24694_v49, %v33579_v11 }
0x12e6   :  { %v24698_v51 = vpop.f32.mrb[72].mxu1 }
0x12e7   :  { %24780 = vst.msk [vmem:[%s34391_s12 + $0xd0] sm:$0xff] %vm75_vm0, %v24748_v44  ;;  %v24699_v20 = vadd.f32 %v34184_v19, %v24698_v51  ;;  %v24700_v23 = vpop.f32.mrb[73].mxu1 }
0x12e9   :  { %v24749_v46 = vadd.f32 %v24699_v20, %v33590_v43 }
0x12eb   :  { %24781 = vst.msk [vmem:[%s34391_s12 + $0xd8] sm:$0xff] %vm75_vm0, %v24749_v46 }
0x1307   :  { %v24703_v38 = vpop.f32.mrb[74].mxu1 }
0x1308   :  { %v24704_v33 = vadd.f32 %v34184_v19, %v24703_v38  ;;  %v24705_v11 = vpop.f32.mrb[75].mxu1 }
0x130a   :  { %v24750_v35 = vadd.f32 %v24704_v33, %v33696_v56 }
0x130b   :  { %v24708_v13 = vpop.f32.mrb[76].mxu1 }
0x130c   :  { %24782 = vst.msk [vmem:[%s34391_s12 + $0xe0] sm:$0xff] %vm75_vm0, %v24750_v35  ;;  %v24709_v58 = vadd.f32 %v34184_v19, %v24708_v13  ;;  %v24710_v43 = vpop.f32.mrb[77].mxu1 }
0x130e   :  { %v24751_v32 = vadd.f32 %v24709_v58, %v33700_v1 }
0x130f   :  { %v24713_v29 = vpop.f32.mrb[78].mxu1 }
0x1310   :  { %24783 = vst.msk [vmem:[%s34391_s12 + $0xe8] sm:$0xff] %vm75_vm0, %v24751_v32  ;;  %v24714_v28 = vadd.f32 %v34184_v19, %v24713_v29  ;;  %v24715_v56 = vpop.f32.mrb[79].mxu1 }
0x1312   :  { %v24752_v24 = vadd.f32 %v24714_v28, %v33711_v50 }
0x1313   :  { %v24718_v8 = vpop.f32.mrb[80].mxu1 }
0x1314   :  { %24784 = vst.msk [vmem:[%s34391_s12 + $0xf0] sm:$0xff] %vm75_vm0, %v24752_v24  ;;  %v24719_v16 = vadd.f32 %v34184_v19, %v24718_v8  ;;  %v24720_v1 = vpop.f32.mrb[81].mxu1 }
0x1316   :  { %v24753_v31 = vadd.f32 %v24719_v16, %v33719_v30 }
0x1318   :  { %24785 = vst.msk [vmem:[%s34391_s12 + $0xf8] sm:$0xff] %vm75_vm0, %v24753_v31 }

</bundles_post_ra>
